<compile_context>
chip_gen: v5e
topology: v5e:2x2
jax: 0.10.0
libtpu: 0.0.40
codegen_flags: <defaults>
</compile_context>

<pallas_src>
import functools
import math

import numpy as np
import jax
import jax.numpy as jnp
from jax import lax
from jax.experimental import pallas as pl
from jax.experimental.pallas import tpu as pltpu


def _round8(x):
    return ((x + 7) // 8) * 8


# ---------------------------------------------------------------------------
# Weight-slab packing: many tiny matrices -> one (R, C) f32 slab per subnet
# (compact column blocks, rows zero-padded to a common 8-aligned R), all bias
# vectors -> one (1, C) slab.  Offsets are static Python ints used for static
# in-kernel slicing, so the whole subnet needs just 2 lane-dense DMAs.
# ---------------------------------------------------------------------------
class _SlabBuilder:
    def __init__(self):
        self._mats = []
        self._vecs = []

    def add_w(self, arr):
        arr = np.asarray(arr, np.float32)
        ent = {"r": int(arr.shape[0]), "c": int(arr.shape[1]), "o": None}
        self._mats.append((arr, ent))
        return ent

    def add_b(self, arr):
        arr = np.asarray(arr, np.float32).reshape(1, -1)
        ent = {"c": int(arr.shape[1]), "o": None}
        self._vecs.append((arr, ent))
        return ent

    def finish(self):
        rmax = _round8(max(a.shape[0] for a, _ in self._mats))
        off = 0
        for _, ent in self._mats:
            ent["o"] = off
            off += ent["c"]
        wslab = np.zeros((rmax, _round8(off)), np.float32)
        for a, ent in self._mats:
            wslab[: ent["r"], ent["o"]: ent["o"] + ent["c"]] = a
        off = 0
        for _, ent in self._vecs:
            ent["o"] = off
            off += ent["c"]
        bslab = np.zeros((1, _round8(off)), np.float32)
        for a, ent in self._vecs:
            bslab[:, ent["o"]: ent["o"] + ent["c"]] = a
        return jnp.asarray(wslab), jnp.asarray(bslab)


def _dense_np(rng, fan_in, fan_out):
    return (rng.standard_normal((fan_in, fan_out)) / math.sqrt(fan_in)).astype(np.float32)


def _bias_np(rng, n, scale=0.01):
    return (scale * rng.standard_normal(n)).astype(np.float32)


# ---------------------------------------------------------------------------
# Synthetic parameters, already in the kernel layout.  The same static
# reorderings (W1 column fusion + mid padding, inp/y row split, maxpool
# channel permutation, qkv row split + [Q|K|V] head-major columns, per-head
# o_proj blocks, classifier row split) would be applied to real torch weights.
# ---------------------------------------------------------------------------
def make_deepset_params(rng, in_features, conv_feats, attn_feats, num_heads):
    sb = _SlabBuilder()
    meta = {"orig": in_features, "conv": [], "attn": []}
    dims = [(in_features, 0, conv_feats[0])] + [(in_features, c, c) for c in conv_feats]
    n_layers = len(dims)

    for i, (orig, inf, outf) in enumerate(dims):
        mid = (orig + inf + outf) // 2
        mid_p = _round8(mid)                 # aligned [w1a | w1b] split point
        pooled = 0 < i < n_layers - 1

        def fused_w1(rows):
            w = np.zeros((rows, 2 * mid_p), np.float32)
            w[:, :mid] = _dense_np(rng, rows, mid)
            w[:, mid_p:mid_p + mid] = _dense_np(rng, rows, mid)
            return w

        def padded_b1():
            b = np.zeros(mid_p, np.float32)
            b[:mid] = _bias_np(rng, mid)
            return b

        lay = {"mid_p": mid_p, "out": outf, "pooled": pooled,
               "w1_inp": sb.add_w(fused_w1(orig)),
               "w1_y": sb.add_w(fused_w1(inf)) if inf > 0 else None}

        b1a, b1b = padded_b1(), padded_b1()
        w2a = np.zeros((mid_p, outf), np.float32)
        w2a[:mid] = _dense_np(rng, mid, outf)
        w2b = np.zeros((mid_p, outf), np.float32)
        w2b[:mid] = _dense_np(rng, mid, outf)
        b2a, b2b = _bias_np(rng, outf), _bias_np(rng, outf)
        if pooled:
            # Permute output channels so max_pool1d(4, 4) stride-4 groups
            # become 4 contiguous column blocks: new[t*(C/4)+g] = old[4g+t].
            c4 = outf // 4
            perm = np.array([4 * (n % c4) + (n // c4) for n in range(outf)])
            w2a, b2a = w2a[:, perm], b2a[perm]
            w2b, b2b = w2b[:, perm], b2b[perm]
        lay.update(w2a=sb.add_w(w2a), w2b=sb.add_w(w2b),
                   b1a=sb.add_b(b1a), b1b=sb.add_b(b1b),
                   b2a=sb.add_b(b2a), b2b=sb.add_b(b2b))
        meta["conv"].append(lay)

    for ef in attn_feats:
        assert ef % num_heads == 0
        d = ef // num_heads
        wo = _dense_np(rng, ef, ef)
        meta["attn"].append({
            "e": ef,
            # qkv weights row-split (x rows / inp rows); columns ordered
            # [Q_heads | K_heads | V_heads], head-major within each block.
            "wqkv_x": sb.add_w(_dense_np(rng, ef, 3 * ef)),
            "wqkv_inp": sb.add_w(_dense_np(rng, in_features, 3 * ef)),
            # o_proj stored per head -> the per-head fold needs no concat.
            "wo_h": [sb.add_w(wo[h * d:(h + 1) * d, :]) for h in range(num_heads)],
            "bqkv": sb.add_b(np.zeros(3 * ef, np.float32)),   # torch fills with 0
            "bo": sb.add_b(np.zeros(ef, np.float32)),
        })

    wslab, bslab = sb.finish()
    return wslab, bslab, meta


def make_classifier_params(rng, e_dim, cls_out):
    sb = _SlabBuilder()
    meta = []
    for i in range(1, len(cls_out)):
        fin, fout = cls_out[i - 1], cls_out[i]
        w = _dense_np(rng, fin, fout)
        ent = {"out": fout, "b": sb.add_b(_bias_np(rng, fout))}
        if i == 1:
            assert fin == 3 * e_dim
            # torch.cat((t, e, h), dim=1) @ W  ==  t@Wt + e@We + h@Wh
            ent["w_split"] = [sb.add_w(w[k * e_dim:(k + 1) * e_dim, :]) for k in range(3)]
        else:
            ent["w"] = sb.add_w(w)
        meta.append(ent)
    wslab, bslab = sb.finish()
    return wslab, bslab, meta


# ---------------------------------------------------------------------------
# The single fused kernel: 3 x (DeepSetLayer stack -> attention stack ->
# set-sum) followed by the classifier head, everything VMEM/vreg resident.
# ---------------------------------------------------------------------------
def _make_triple_kernel(metas, cls_meta, B, N, num_heads, apply_bn):
    def kernel(tr_ref, em_ref, hd_ref, pmean_ref, ssum_ref,
               wt_ref, bt_ref, we_ref, be_ref, wh_ref, bh_ref,
               wc_ref, bc_ref, o_ref):
        # Block-diagonal helpers for the B stacked sets:
        #   pmean @ x -> per-set mean (broadcast over the set)
        #   ssum  @ x -> per-set sum (DeepSet output reduction)
        #   same_set  -> within-set mask for the stacked attention map
        pmean = pmean_ref[...]                       # (B*N, B*N), 1/N on blocks
        ssum = ssum_ref[...]                         # (B, B*N),   1   on blocks
        same_set = pmean > 0.0

        def run_subnet(inp_ref, w_ref, b_ref, meta):
            def W(ent):
                return w_ref[0:ent["r"], ent["o"]:ent["o"] + ent["c"]]

            def Bv(ent):
                return b_ref[:, ent["o"]:ent["o"] + ent["c"]]

            inp = inp_ref[...]                       # (B*N, F_in)

            # ---------------- DeepSetLayer stack ----------------
            y = None
            last = meta["conv"][-1]
            for lay in meta["conv"]:
                mid_p = lay["mid_p"]
                # Fused first-stage weight [w1a | w1b]; torch.cat((inp, y))
                # is replaced by the inp/y row-split matmuls.
                hh = jnp.dot(inp, W(lay["w1_inp"]),
                             preferred_element_type=jnp.float32)
                if lay["w1_y"] is not None:
                    hh = hh + jnp.dot(y, W(lay["w1_y"]),
                                      preferred_element_type=jnp.float32)
                xa = hh[:, :mid_p]
                xb = hh[:, mid_p:]
                # (z - mean_set(z)) @ w1b == z@w1b - mean_set(z@w1b);
                # the per-set mean is a block-diagonal matmul (idle MXU).
                xb = xb - jnp.dot(pmean, xb, preferred_element_type=jnp.float32)
                h1 = jnp.maximum(xa + Bv(lay["b1a"]), 0.0)
                h2 = jnp.maximum(xb + Bv(lay["b1b"]), 0.0)
                out = (jnp.tanh(jnp.dot(h1, W(lay["w2a"]),
                                        preferred_element_type=jnp.float32)
                                + Bv(lay["b2a"]))
                       + jnp.tanh(jnp.dot(h2, W(lay["w2b"]),
                                          preferred_element_type=jnp.float32)
                                  + Bv(lay["b2b"])))
                # torch.norm(., 'fro', dim=channels): no epsilon, like torch.
                out = out / jnp.sqrt(jnp.sum(out * out, axis=-1, keepdims=True))
                if lay["pooled"]:
                    # max_pool1d(4, 4) over channels; channels pre-permuted ->
                    # 3 elementwise maxima of contiguous column blocks.
                    c4 = lay["out"] // 4
                    out = jnp.maximum(
                        jnp.maximum(out[:, :c4], out[:, c4:2 * c4]),
                        jnp.maximum(out[:, 2 * c4:3 * c4], out[:, 3 * c4:]))
                y = out if lay is last else jnp.maximum(out, 0.0)  # DeepSet.activ

            x = y                                     # (B*N, E)

            # ---------------- MultiheadAttentionMY stack ----------------
            prev_attn = None                          # per-head (B*N, B*N) maps
            for lay in meta["attn"]:
                e = lay["e"]
                d = e // num_heads
                scale = 1.0 / math.sqrt(d)
                qkv = (jnp.dot(x, W(lay["wqkv_x"]),
                               preferred_element_type=jnp.float32)
                       + jnp.dot(inp, W(lay["wqkv_inp"]),
                                 preferred_element_type=jnp.float32)
                       + Bv(lay["bqkv"]))
                new_attn = []
                x = Bv(lay["bo"])                     # accumulates to (B*N, E)
                for h in range(num_heads):
                    q = qkv[:, h * d:(h + 1) * d]
                    k = qkv[:, e + h * d:e + (h + 1) * d]
                    v = qkv[:, 2 * e + h * d:2 * e + (h + 1) * d]
                    logits = lax.dot_general(
                        q, k, (((1,), (1,)), ((), ())),
                        preferred_element_type=jnp.float32) * scale
                    if prev_attn is not None:
                        # torch: masked_fill(prev_attention == 0, -9e15)
                        logits = jnp.where(prev_attn[h] == 0.0,
                                           jnp.float32(-9e15), logits)
                    # Keep the B stacked sets independent: cross-set logits
                    # -> -inf so their softmax weights are exactly 0.
                    logits = jnp.where(same_set, logits, -jnp.inf)
                    amax = jnp.max(logits, axis=-1, keepdims=True)
                    ex = jnp.exp(logits - amax)
                    attn = ex / jnp.sum(ex, axis=-1, keepdims=True)  # exact softmax
                    new_attn.append(attn)
                    val = jnp.dot(attn, v, preferred_element_type=jnp.float32)
                    # o_proj folded per head: no lane concat of head values.
                    x = x + jnp.dot(val, W(lay["wo_h"][h]),
                                    preferred_element_type=jnp.float32)
                prev_attn = new_attn

            # DeepSet set-sum (x.sum(dim=1)) via the block-sum matrix.
            return jnp.dot(ssum, x, preferred_element_type=jnp.float32)  # (B, E)

        t_sum = run_subnet(tr_ref, wt_ref, bt_ref, metas[0])
        e_sum = run_subnet(em_ref, we_ref, be_ref, metas[1])
        h_sum = run_subnet(hd_ref, wh_ref, bh_ref, metas[2])

        # ---------------- classifier head ----------------
        def Wc(ent):
            return wc_ref[0:ent["r"], ent["o"]:ent["o"] + ent["c"]]

        def Bc(ent):
            return bc_ref[:, ent["o"]:ent["o"] + ent["c"]]

        z = None
        for li, lay in enumerate(cls_meta):
            if "w_split" in lay:
                z = Bc(lay["b"])                      # row-split first Linear
                for f, ent in zip((t_sum, e_sum, h_sum), lay["w_split"]):
                    z = z + jnp.dot(f, Wc(ent), preferred_element_type=jnp.float32)
            else:
                z = jnp.dot(z, Wc(lay["w"]),
                            preferred_element_type=jnp.float32) + Bc(lay["b"])
            if apply_bn:
                # train-mode BatchNorm1d: biased batch stats, gamma=1, beta=0.
                mu = jnp.mean(z, axis=0, keepdims=True)
                var = jnp.mean((z - mu) ** 2, axis=0, keepdims=True)
                z = (z - mu) * lax.rsqrt(var + 1e-5)
            if li < len(cls_meta) - 1:
                z = jnp.maximum(z, 0.0)
        o_ref[...] = z

    return kernel


def triple_deepset_forward(tracks, em, had, slabs, *, metas, cls_meta, num_heads):
    """Whole TripleDeepSet.forward in one pallas_call (grid=(1,)): the
    BatchNorm classifier couples all batch elements / subnets, so full fusion
    needs a single program.  All activations + weights stay VMEM resident."""
    B, N, _ = tracks.shape
    BN = B * N
    f_out = cls_meta[-1]["out"]

    # Block-diagonal per-set mean / per-set sum matrices (host constants).
    blk = np.equal.outer(np.arange(BN) // N, np.arange(BN) // N)
    pmean = jnp.asarray(blk.astype(np.float32) / N)                       # (BN, BN)
    ssum = jnp.asarray(
        np.equal.outer(np.arange(B), np.arange(BN) // N).astype(np.float32))  # (B, BN)

    args = [tracks.reshape(BN, -1), em.reshape(BN, -1), had.reshape(BN, -1),
            pmean, ssum] + list(slabs)
    in_specs = [pl.BlockSpec(tuple(a.shape), lambda i: (0, 0)) for a in args]

    kernel = _make_triple_kernel(metas, cls_meta, B, N, num_heads, apply_bn=B > 1)
    return pl.pallas_call(
        kernel,
        out_shape=jax.ShapeDtypeStruct((B, f_out), jnp.float32),
        grid=(1,),
        in_specs=in_specs,
        out_specs=pl.BlockSpec((B, f_out), lambda i: (0, 0)),
        compiler_params=pltpu.CompilerParams(
            dimension_semantics=("arbitrary",)),
    )(*args)


if __name__ == "__main__":
    B, N = 2, 8
    in_track, in_em, in_had = 6, 5, 4
    conv_feats = [32, 8]          # conv_feats[i+1] == conv_feats[i] // 4 (pool + cat)
    attn_feats = [8, 8]           # == conv_feats[-1]
    num_heads = 2                 # hard-coded in the PyTorch DeepSet
    cls_out = [3 * attn_feats[-1], 16, 4]

    rng = np.random.default_rng(0)
    wt, bt, mt = make_deepset_params(rng, in_track, conv_feats, attn_feats, num_heads)
    we, be, me = make_deepset_params(rng, in_em, conv_feats, attn_feats, num_heads)
    wh, bh, mh = make_deepset_params(rng, in_had, conv_feats, attn_feats, num_heads)
    wc, bc, mc = make_classifier_params(rng, attn_feats[-1], cls_out)
    slabs = (wt, bt, we, be, wh, bh, wc, bc)

    key = jax.random.PRNGKey(0)
    kt, ke, kh = jax.random.split(key, 3)
    tracks = jax.random.normal(kt, (B, N, in_track), jnp.float32)
    em = jax.random.normal(ke, (B, N, in_em), jnp.float32)
    had = jax.random.normal(kh, (B, N, in_had), jnp.float32)

    fwd = jax.jit(functools.partial(
        triple_deepset_forward, metas=(mt, me, mh), cls_meta=mc, num_heads=num_heads))
    out = jax.block_until_ready(fwd(tracks, em, had, slabs))
    assert out.shape == (B, cls_out[-1]), out.shape
    assert bool(jnp.all(jnp.isfinite(out)))
    print("KERNEL_OK")
</pallas_src>

<mosaic_0001>
module attributes {stable_mosaic.version = 11 : i64} {
  func.func @kernel(%arg0: i32, %arg1: memref<16x6xf32, #tpu.memory_space<vmem>>, %arg2: memref<16x5xf32, #tpu.memory_space<vmem>>, %arg3: memref<16x4xf32, #tpu.memory_space<vmem>>, %arg4: memref<16x16xf32, #tpu.memory_space<vmem>>, %arg5: memref<2x16xf32, #tpu.memory_space<vmem>>, %arg6: memref<40x544xf32, #tpu.memory_space<vmem>>, %arg7: memref<1x368xf32, #tpu.memory_space<vmem>>, %arg8: memref<40x544xf32, #tpu.memory_space<vmem>>, %arg9: memref<1x368xf32, #tpu.memory_space<vmem>>, %arg10: memref<40x544xf32, #tpu.memory_space<vmem>>, %arg11: memref<1x368xf32, #tpu.memory_space<vmem>>, %arg12: memref<16x56xf32, #tpu.memory_space<vmem>>, %arg13: memref<1x24xf32, #tpu.memory_space<vmem>>, %arg14: memref<2x4xf32, #tpu.memory_space<vmem>>) attributes {dimension_semantics = [#tpu.dimension_semantics<arbitrary>], iteration_bounds = array<i64: 1>, scalar_prefetch = 0 : i64, scratch_operands = 0 : i64, tpu.core_type = #tpu.core_type<tc>, window_params = [{pipeline_mode = #tpu.pipeline_mode<synchronous>, transform_indices = @transform_0, window_bounds = array<i64: 16, 6>}, {pipeline_mode = #tpu.pipeline_mode<synchronous>, transform_indices = @transform_1, window_bounds = array<i64: 16, 5>}, {pipeline_mode = #tpu.pipeline_mode<synchronous>, transform_indices = @transform_2, window_bounds = array<i64: 16, 4>}, {pipeline_mode = #tpu.pipeline_mode<synchronous>, transform_indices = @transform_3, window_bounds = array<i64: 16, 16>}, {pipeline_mode = #tpu.pipeline_mode<synchronous>, transform_indices = @transform_4, window_bounds = array<i64: 2, 16>}, {pipeline_mode = #tpu.pipeline_mode<synchronous>, transform_indices = @transform_5, window_bounds = array<i64: 40, 544>}, {pipeline_mode = #tpu.pipeline_mode<synchronous>, transform_indices = @transform_6, window_bounds = array<i64: 1, 368>}, {pipeline_mode = #tpu.pipeline_mode<synchronous>, transform_indices = @transform_7, window_bounds = array<i64: 40, 544>}, {pipeline_mode = #tpu.pipeline_mode<synchronous>, transform_indices = @transform_8, window_bounds = array<i64: 1, 368>}, {pipeline_mode = #tpu.pipeline_mode<synchronous>, transform_indices = @transform_9, window_bounds = array<i64: 40, 544>}, {pipeline_mode = #tpu.pipeline_mode<synchronous>, transform_indices = @transform_10, window_bounds = array<i64: 1, 368>}, {pipeline_mode = #tpu.pipeline_mode<synchronous>, transform_indices = @transform_11, window_bounds = array<i64: 16, 56>}, {pipeline_mode = #tpu.pipeline_mode<synchronous>, transform_indices = @transform_12, window_bounds = array<i64: 1, 24>}, {pipeline_mode = #tpu.pipeline_mode<synchronous>, transform_indices = @transform_13, window_bounds = array<i64: 2, 4>}]} {
    %c0 = arith.constant 0 : index
    %c0_0 = arith.constant 0 : index
    %0 = vector.load %arg4[%c0, %c0_0] : memref<16x16xf32, #tpu.memory_space<vmem>>, vector<16x16xf32>
    %c0_1 = arith.constant 0 : index
    %c0_2 = arith.constant 0 : index
    %1 = vector.load %arg5[%c0_1, %c0_2] : memref<2x16xf32, #tpu.memory_space<vmem>>, vector<2x16xf32>
    %cst = arith.constant 0.000000e+00 : f32
    %2 = vector.broadcast %cst : f32 to vector<16x16xf32>
    %3 = arith.cmpf ogt, %0, %2 : vector<16x16xf32>
    %c0_3 = arith.constant 0 : index
    %c0_4 = arith.constant 0 : index
    %4 = vector.load %arg1[%c0_3, %c0_4] : memref<16x6xf32, #tpu.memory_space<vmem>>, vector<16x6xf32>
    %c0_5 = arith.constant 0 : index
    %c0_6 = arith.constant 0 : index
    %5 = vector.load %arg6[%c0_5, %c0_6] : memref<40x544xf32, #tpu.memory_space<vmem>>, vector<6x48xf32>
    %cst_7 = arith.constant dense<0.000000e+00> : vector<16x48xf32>
    %6 = tpu.matmul %4, %5, %cst_7 {dimension_numbers = #tpu.dot_dimension_numbers<[1], [0], [0], [1], [0, 0, 1, 1], [], []>} : vector<16x6xf32>, vector<6x48xf32>, vector<16x48xf32> -> vector<16x48xf32>
    %7 = vector.extract_strided_slice %6 {offsets = [0, 0], sizes = [16, 24], strides = [1, 1]} : vector<16x48xf32> to vector<16x24xf32>
    %8 = vector.extract_strided_slice %6 {offsets = [0, 24], sizes = [16, 24], strides = [1, 1]} : vector<16x48xf32> to vector<16x24xf32>
    %cst_8 = arith.constant dense<0.000000e+00> : vector<16x24xf32>
    %9 = tpu.matmul %0, %8, %cst_8 {dimension_numbers = #tpu.dot_dimension_numbers<[1], [0], [0], [1], [0, 0, 1, 1], [], []>} : vector<16x16xf32>, vector<16x24xf32>, vector<16x24xf32> -> vector<16x24xf32>
    %10 = arith.subf %8, %9 : vector<16x24xf32>
    %c0_9 = arith.constant 0 : index
    %c0_10 = arith.constant 0 : index
    %11 = vector.load %arg7[%c0_9, %c0_10] : memref<1x368xf32, #tpu.memory_space<vmem>>, vector<1x24xf32>
    %12 = vector.broadcast %11 : vector<1x24xf32> to vector<16x24xf32>
    %13 = arith.addf %7, %12 : vector<16x24xf32>
    %cst_11 = arith.constant 0.000000e+00 : f32
    %14 = vector.broadcast %cst_11 : f32 to vector<16x24xf32>
    %15 = arith.maximumf %13, %14 : vector<16x24xf32>
    %c0_12 = arith.constant 0 : index
    %c24 = arith.constant 24 : index
    %16 = vector.load %arg7[%c0_12, %c24] : memref<1x368xf32, #tpu.memory_space<vmem>>, vector<1x24xf32>
    %17 = vector.broadcast %16 : vector<1x24xf32> to vector<16x24xf32>
    %18 = arith.addf %10, %17 : vector<16x24xf32>
    %cst_13 = arith.constant 0.000000e+00 : f32
    %19 = vector.broadcast %cst_13 : f32 to vector<16x24xf32>
    %20 = arith.maximumf %18, %19 : vector<16x24xf32>
    %c0_14 = arith.constant 0 : index
    %c48 = arith.constant 48 : index
    %21 = vector.load %arg6[%c0_14, %c48] : memref<40x544xf32, #tpu.memory_space<vmem>>, vector<24x32xf32>
    %cst_15 = arith.constant dense<0.000000e+00> : vector<16x32xf32>
    %22 = tpu.matmul %15, %21, %cst_15 {dimension_numbers = #tpu.dot_dimension_numbers<[1], [0], [0], [1], [0, 0, 1, 1], [], []>} : vector<16x24xf32>, vector<24x32xf32>, vector<16x32xf32> -> vector<16x32xf32>
    %c0_16 = arith.constant 0 : index
    %c48_17 = arith.constant 48 : index
    %23 = vector.load %arg7[%c0_16, %c48_17] : memref<1x368xf32, #tpu.memory_space<vmem>>, vector<1x32xf32>
    %24 = vector.broadcast %23 : vector<1x32xf32> to vector<16x32xf32>
    %25 = arith.addf %22, %24 : vector<16x32xf32>
    %26 = math.tanh %25 : vector<16x32xf32>
    %c0_18 = arith.constant 0 : index
    %c80 = arith.constant 80 : index
    %27 = vector.load %arg6[%c0_18, %c80] : memref<40x544xf32, #tpu.memory_space<vmem>>, vector<24x32xf32>
    %cst_19 = arith.constant dense<0.000000e+00> : vector<16x32xf32>
    %28 = tpu.matmul %20, %27, %cst_19 {dimension_numbers = #tpu.dot_dimension_numbers<[1], [0], [0], [1], [0, 0, 1, 1], [], []>} : vector<16x24xf32>, vector<24x32xf32>, vector<16x32xf32> -> vector<16x32xf32>
    %c0_20 = arith.constant 0 : index
    %c80_21 = arith.constant 80 : index
    %29 = vector.load %arg7[%c0_20, %c80_21] : memref<1x368xf32, #tpu.memory_space<vmem>>, vector<1x32xf32>
    %30 = vector.broadcast %29 : vector<1x32xf32> to vector<16x32xf32>
    %31 = arith.addf %28, %30 : vector<16x32xf32>
    %32 = math.tanh %31 : vector<16x32xf32>
    %33 = arith.addf %26, %32 : vector<16x32xf32>
    %34 = arith.mulf %33, %33 : vector<16x32xf32>
    %cst_22 = arith.constant dense<0.000000e+00> : vector<16xf32>
    %35 = vector.multi_reduction <add>, %34, %cst_22 [1] : vector<16x32xf32> to vector<16xf32>
    %36 = vector.shape_cast %35 : vector<16xf32> to vector<16x1xf32>
    %37 = math.sqrt %36 : vector<16x1xf32>
    %38 = vector.broadcast %37 : vector<16x1xf32> to vector<16x32xf32>
    %39 = arith.divf %33, %38 : vector<16x32xf32>
    %cst_23 = arith.constant 0.000000e+00 : f32
    %40 = vector.broadcast %cst_23 : f32 to vector<16x32xf32>
    %41 = arith.maximumf %39, %40 : vector<16x32xf32>
    %c0_24 = arith.constant 0 : index
    %c112 = arith.constant 112 : index
    %42 = vector.load %arg6[%c0_24, %c112] : memref<40x544xf32, #tpu.memory_space<vmem>>, vector<6x80xf32>
    %cst_25 = arith.constant dense<0.000000e+00> : vector<16x80xf32>
    %43 = tpu.matmul %4, %42, %cst_25 {dimension_numbers = #tpu.dot_dimension_numbers<[1], [0], [0], [1], [0, 0, 1, 1], [], []>} : vector<16x6xf32>, vector<6x80xf32>, vector<16x80xf32> -> vector<16x80xf32>
    %c0_26 = arith.constant 0 : index
    %c192 = arith.constant 192 : index
    %44 = vector.load %arg6[%c0_26, %c192] : memref<40x544xf32, #tpu.memory_space<vmem>>, vector<32x80xf32>
    %cst_27 = arith.constant dense<0.000000e+00> : vector<16x80xf32>
    %45 = tpu.matmul %41, %44, %cst_27 {dimension_numbers = #tpu.dot_dimension_numbers<[1], [0], [0], [1], [0, 0, 1, 1], [], []>} : vector<16x32xf32>, vector<32x80xf32>, vector<16x80xf32> -> vector<16x80xf32>
    %46 = arith.addf %43, %45 : vector<16x80xf32>
    %47 = vector.extract_strided_slice %46 {offsets = [0, 0], sizes = [16, 40], strides = [1, 1]} : vector<16x80xf32> to vector<16x40xf32>
    %48 = vector.extract_strided_slice %46 {offsets = [0, 40], sizes = [16, 40], strides = [1, 1]} : vector<16x80xf32> to vector<16x40xf32>
    %cst_28 = arith.constant dense<0.000000e+00> : vector<16x40xf32>
    %49 = tpu.matmul %0, %48, %cst_28 {dimension_numbers = #tpu.dot_dimension_numbers<[1], [0], [0], [1], [0, 0, 1, 1], [], []>} : vector<16x16xf32>, vector<16x40xf32>, vector<16x40xf32> -> vector<16x40xf32>
    %50 = arith.subf %48, %49 : vector<16x40xf32>
    %c0_29 = arith.constant 0 : index
    %c112_30 = arith.constant 112 : index
    %51 = vector.load %arg7[%c0_29, %c112_30] : memref<1x368xf32, #tpu.memory_space<vmem>>, vector<1x40xf32>
    %52 = vector.broadcast %51 : vector<1x40xf32> to vector<16x40xf32>
    %53 = arith.addf %47, %52 : vector<16x40xf32>
    %cst_31 = arith.constant 0.000000e+00 : f32
    %54 = vector.broadcast %cst_31 : f32 to vector<16x40xf32>
    %55 = arith.maximumf %53, %54 : vector<16x40xf32>
    %c0_32 = arith.constant 0 : index
    %c152 = arith.constant 152 : index
    %56 = vector.load %arg7[%c0_32, %c152] : memref<1x368xf32, #tpu.memory_space<vmem>>, vector<1x40xf32>
    %57 = vector.broadcast %56 : vector<1x40xf32> to vector<16x40xf32>
    %58 = arith.addf %50, %57 : vector<16x40xf32>
    %cst_33 = arith.constant 0.000000e+00 : f32
    %59 = vector.broadcast %cst_33 : f32 to vector<16x40xf32>
    %60 = arith.maximumf %58, %59 : vector<16x40xf32>
    %c0_34 = arith.constant 0 : index
    %c272 = arith.constant 272 : index
    %61 = vector.load %arg6[%c0_34, %c272] : memref<40x544xf32, #tpu.memory_space<vmem>>, vector<40x32xf32>
    %cst_35 = arith.constant dense<0.000000e+00> : vector<16x32xf32>
    %62 = tpu.matmul %55, %61, %cst_35 {dimension_numbers = #tpu.dot_dimension_numbers<[1], [0], [0], [1], [0, 0, 1, 1], [], []>} : vector<16x40xf32>, vector<40x32xf32>, vector<16x32xf32> -> vector<16x32xf32>
    %c0_36 = arith.constant 0 : index
    %c192_37 = arith.constant 192 : index
    %63 = vector.load %arg7[%c0_36, %c192_37] : memref<1x368xf32, #tpu.memory_space<vmem>>, vector<1x32xf32>
    %64 = vector.broadcast %63 : vector<1x32xf32> to vector<16x32xf32>
    %65 = arith.addf %62, %64 : vector<16x32xf32>
    %66 = math.tanh %65 : vector<16x32xf32>
    %c0_38 = arith.constant 0 : index
    %c304 = arith.constant 304 : index
    %67 = vector.load %arg6[%c0_38, %c304] : memref<40x544xf32, #tpu.memory_space<vmem>>, vector<40x32xf32>
    %cst_39 = arith.constant dense<0.000000e+00> : vector<16x32xf32>
    %68 = tpu.matmul %60, %67, %cst_39 {dimension_numbers = #tpu.dot_dimension_numbers<[1], [0], [0], [1], [0, 0, 1, 1], [], []>} : vector<16x40xf32>, vector<40x32xf32>, vector<16x32xf32> -> vector<16x32xf32>
    %c0_40 = arith.constant 0 : index
    %c224 = arith.constant 224 : index
    %69 = vector.load %arg7[%c0_40, %c224] : memref<1x368xf32, #tpu.memory_space<vmem>>, vector<1x32xf32>
    %70 = vector.broadcast %69 : vector<1x32xf32> to vector<16x32xf32>
    %71 = arith.addf %68, %70 : vector<16x32xf32>
    %72 = math.tanh %71 : vector<16x32xf32>
    %73 = arith.addf %66, %72 : vector<16x32xf32>
    %74 = arith.mulf %73, %73 : vector<16x32xf32>
    %cst_41 = arith.constant dense<0.000000e+00> : vector<16xf32>
    %75 = vector.multi_reduction <add>, %74, %cst_41 [1] : vector<16x32xf32> to vector<16xf32>
    %76 = vector.shape_cast %75 : vector<16xf32> to vector<16x1xf32>
    %77 = math.sqrt %76 : vector<16x1xf32>
    %78 = vector.broadcast %77 : vector<16x1xf32> to vector<16x32xf32>
    %79 = arith.divf %73, %78 : vector<16x32xf32>
    %80 = vector.extract_strided_slice %79 {offsets = [0, 0], sizes = [16, 8], strides = [1, 1]} : vector<16x32xf32> to vector<16x8xf32>
    %81 = vector.extract_strided_slice %79 {offsets = [0, 8], sizes = [16, 8], strides = [1, 1]} : vector<16x32xf32> to vector<16x8xf32>
    %82 = arith.maximumf %80, %81 : vector<16x8xf32>
    %83 = vector.extract_strided_slice %79 {offsets = [0, 16], sizes = [16, 8], strides = [1, 1]} : vector<16x32xf32> to vector<16x8xf32>
    %84 = vector.extract_strided_slice %79 {offsets = [0, 24], sizes = [16, 8], strides = [1, 1]} : vector<16x32xf32> to vector<16x8xf32>
    %85 = arith.maximumf %83, %84 : vector<16x8xf32>
    %86 = arith.maximumf %82, %85 : vector<16x8xf32>
    %cst_42 = arith.constant 0.000000e+00 : f32
    %87 = vector.broadcast %cst_42 : f32 to vector<16x8xf32>
    %88 = arith.maximumf %86, %87 : vector<16x8xf32>
    %c0_43 = arith.constant 0 : index
    %c336 = arith.constant 336 : index
    %89 = vector.load %arg6[%c0_43, %c336] : memref<40x544xf32, #tpu.memory_space<vmem>>, vector<6x32xf32>
    %cst_44 = arith.constant dense<0.000000e+00> : vector<16x32xf32>
    %90 = tpu.matmul %4, %89, %cst_44 {dimension_numbers = #tpu.dot_dimension_numbers<[1], [0], [0], [1], [0, 0, 1, 1], [], []>} : vector<16x6xf32>, vector<6x32xf32>, vector<16x32xf32> -> vector<16x32xf32>
    %c0_45 = arith.constant 0 : index
    %c368 = arith.constant 368 : index
    %91 = vector.load %arg6[%c0_45, %c368] : memref<40x544xf32, #tpu.memory_space<vmem>>, vector<8x32xf32>
    %cst_46 = arith.constant dense<0.000000e+00> : vector<16x32xf32>
    %92 = tpu.matmul %88, %91, %cst_46 {dimension_numbers = #tpu.dot_dimension_numbers<[1], [0], [0], [1], [0, 0, 1, 1], [], []>} : vector<16x8xf32>, vector<8x32xf32>, vector<16x32xf32> -> vector<16x32xf32>
    %93 = arith.addf %90, %92 : vector<16x32xf32>
    %94 = vector.extract_strided_slice %93 {offsets = [0, 0], sizes = [16, 16], strides = [1, 1]} : vector<16x32xf32> to vector<16x16xf32>
    %95 = vector.extract_strided_slice %93 {offsets = [0, 16], sizes = [16, 16], strides = [1, 1]} : vector<16x32xf32> to vector<16x16xf32>
    %cst_47 = arith.constant dense<0.000000e+00> : vector<16x16xf32>
    %96 = tpu.matmul %0, %95, %cst_47 {dimension_numbers = #tpu.dot_dimension_numbers<[1], [0], [0], [1], [0, 0, 1, 1], [], []>} : vector<16x16xf32>, vector<16x16xf32>, vector<16x16xf32> -> vector<16x16xf32>
    %97 = arith.subf %95, %96 : vector<16x16xf32>
    %c0_48 = arith.constant 0 : index
    %c256 = arith.constant 256 : index
    %98 = vector.load %arg7[%c0_48, %c256] : memref<1x368xf32, #tpu.memory_space<vmem>>, vector<1x16xf32>
    %99 = vector.broadcast %98 : vector<1x16xf32> to vector<16x16xf32>
    %100 = arith.addf %94, %99 : vector<16x16xf32>
    %cst_49 = arith.constant 0.000000e+00 : f32
    %101 = vector.broadcast %cst_49 : f32 to vector<16x16xf32>
    %102 = arith.maximumf %100, %101 : vector<16x16xf32>
    %c0_50 = arith.constant 0 : index
    %c272_51 = arith.constant 272 : index
    %103 = vector.load %arg7[%c0_50, %c272_51] : memref<1x368xf32, #tpu.memory_space<vmem>>, vector<1x16xf32>
    %104 = vector.broadcast %103 : vector<1x16xf32> to vector<16x16xf32>
    %105 = arith.addf %97, %104 : vector<16x16xf32>
    %cst_52 = arith.constant 0.000000e+00 : f32
    %106 = vector.broadcast %cst_52 : f32 to vector<16x16xf32>
    %107 = arith.maximumf %105, %106 : vector<16x16xf32>
    %c0_53 = arith.constant 0 : index
    %c400 = arith.constant 400 : index
    %108 = vector.load %arg6[%c0_53, %c400] : memref<40x544xf32, #tpu.memory_space<vmem>>, vector<16x8xf32>
    %cst_54 = arith.constant dense<0.000000e+00> : vector<16x8xf32>
    %109 = tpu.matmul %102, %108, %cst_54 {dimension_numbers = #tpu.dot_dimension_numbers<[1], [0], [0], [1], [0, 0, 1, 1], [], []>} : vector<16x16xf32>, vector<16x8xf32>, vector<16x8xf32> -> vector<16x8xf32>
    %c0_55 = arith.constant 0 : index
    %c288 = arith.constant 288 : index
    %110 = vector.load %arg7[%c0_55, %c288] : memref<1x368xf32, #tpu.memory_space<vmem>>, vector<1x8xf32>
    %111 = vector.broadcast %110 : vector<1x8xf32> to vector<16x8xf32>
    %112 = arith.addf %109, %111 : vector<16x8xf32>
    %113 = math.tanh %112 : vector<16x8xf32>
    %c0_56 = arith.constant 0 : index
    %c408 = arith.constant 408 : index
    %114 = vector.load %arg6[%c0_56, %c408] : memref<40x544xf32, #tpu.memory_space<vmem>>, vector<16x8xf32>
    %cst_57 = arith.constant dense<0.000000e+00> : vector<16x8xf32>
    %115 = tpu.matmul %107, %114, %cst_57 {dimension_numbers = #tpu.dot_dimension_numbers<[1], [0], [0], [1], [0, 0, 1, 1], [], []>} : vector<16x16xf32>, vector<16x8xf32>, vector<16x8xf32> -> vector<16x8xf32>
    %c0_58 = arith.constant 0 : index
    %c296 = arith.constant 296 : index
    %116 = vector.load %arg7[%c0_58, %c296] : memref<1x368xf32, #tpu.memory_space<vmem>>, vector<1x8xf32>
    %117 = vector.broadcast %116 : vector<1x8xf32> to vector<16x8xf32>
    %118 = arith.addf %115, %117 : vector<16x8xf32>
    %119 = math.tanh %118 : vector<16x8xf32>
    %120 = arith.addf %113, %119 : vector<16x8xf32>
    %121 = arith.mulf %120, %120 : vector<16x8xf32>
    %cst_59 = arith.constant dense<0.000000e+00> : vector<16xf32>
    %122 = vector.multi_reduction <add>, %121, %cst_59 [1] : vector<16x8xf32> to vector<16xf32>
    %123 = vector.shape_cast %122 : vector<16xf32> to vector<16x1xf32>
    %124 = math.sqrt %123 : vector<16x1xf32>
    %125 = vector.broadcast %124 : vector<16x1xf32> to vector<16x8xf32>
    %126 = arith.divf %120, %125 : vector<16x8xf32>
    %c0_60 = arith.constant 0 : index
    %c416 = arith.constant 416 : index
    %127 = vector.load %arg6[%c0_60, %c416] : memref<40x544xf32, #tpu.memory_space<vmem>>, vector<8x24xf32>
    %cst_61 = arith.constant dense<0.000000e+00> : vector<16x24xf32>
    %128 = tpu.matmul %126, %127, %cst_61 {dimension_numbers = #tpu.dot_dimension_numbers<[1], [0], [0], [1], [0, 0, 1, 1], [], []>} : vector<16x8xf32>, vector<8x24xf32>, vector<16x24xf32> -> vector<16x24xf32>
    %c0_62 = arith.constant 0 : index
    %c440 = arith.constant 440 : index
    %129 = vector.load %arg6[%c0_62, %c440] : memref<40x544xf32, #tpu.memory_space<vmem>>, vector<6x24xf32>
    %cst_63 = arith.constant dense<0.000000e+00> : vector<16x24xf32>
    %130 = tpu.matmul %4, %129, %cst_63 {dimension_numbers = #tpu.dot_dimension_numbers<[1], [0], [0], [1], [0, 0, 1, 1], [], []>} : vector<16x6xf32>, vector<6x24xf32>, vector<16x24xf32> -> vector<16x24xf32>
    %131 = arith.addf %128, %130 : vector<16x24xf32>
    %c0_64 = arith.constant 0 : index
    %c304_65 = arith.constant 304 : index
    %132 = vector.load %arg7[%c0_64, %c304_65] : memref<1x368xf32, #tpu.memory_space<vmem>>, vector<1x24xf32>
    %133 = vector.broadcast %132 : vector<1x24xf32> to vector<16x24xf32>
    %134 = arith.addf %131, %133 : vector<16x24xf32>
    %c0_66 = arith.constant 0 : index
    %c328 = arith.constant 328 : index
    %135 = vector.load %arg7[%c0_66, %c328] : memref<1x368xf32, #tpu.memory_space<vmem>>, vector<1x8xf32>
    %136 = vector.extract_strided_slice %134 {offsets = [0, 0], sizes = [16, 4], strides = [1, 1]} : vector<16x24xf32> to vector<16x4xf32>
    %137 = vector.extract_strided_slice %134 {offsets = [0, 8], sizes = [16, 4], strides = [1, 1]} : vector<16x24xf32> to vector<16x4xf32>
    %138 = vector.extract_strided_slice %134 {offsets = [0, 16], sizes = [16, 4], strides = [1, 1]} : vector<16x24xf32> to vector<16x4xf32>
    %cst_67 = arith.constant dense<0.000000e+00> : vector<16x16xf32>
    %139 = tpu.matmul %136, %137, %cst_67 {dimension_numbers = #tpu.dot_dimension_numbers<[1], [1], [0], [0], [0, 0, 1, 0], [], []>} : vector<16x4xf32>, vector<16x4xf32>, vector<16x16xf32> -> vector<16x16xf32>
    %cst_68 = arith.constant 5.000000e-01 : f32
    %140 = vector.broadcast %cst_68 : f32 to vector<16x16xf32>
    %141 = arith.mulf %139, %140 : vector<16x16xf32>
    %cst_69 = arith.constant 0xFF800000 : f32
    %142 = vector.broadcast %cst_69 : f32 to vector<16x16xf32>
    %143 = arith.select %3, %141, %142 : vector<16x16xi1>, vector<16x16xf32>
    %cst_70 = arith.constant dense<0xFF800000> : vector<16xf32>
    %144 = vector.multi_reduction <maximumf>, %143, %cst_70 [1] : vector<16x16xf32> to vector<16xf32>
    %145 = vector.shape_cast %144 : vector<16xf32> to vector<16x1xf32>
    %146 = vector.broadcast %145 : vector<16x1xf32> to vector<16x16xf32>
    %147 = arith.subf %143, %146 : vector<16x16xf32>
    %148 = math.exp %147 : vector<16x16xf32>
    %cst_71 = arith.constant dense<0.000000e+00> : vector<16xf32>
    %149 = vector.multi_reduction <add>, %148, %cst_71 [1] : vector<16x16xf32> to vector<16xf32>
    %150 = vector.shape_cast %149 : vector<16xf32> to vector<16x1xf32>
    %151 = vector.broadcast %150 : vector<16x1xf32> to vector<16x16xf32>
    %152 = arith.divf %148, %151 : vector<16x16xf32>
    %cst_72 = arith.constant dense<0.000000e+00> : vector<16x4xf32>
    %153 = tpu.matmul %152, %138, %cst_72 {dimension_numbers = #tpu.dot_dimension_numbers<[1], [0], [0], [1], [0, 0, 1, 1], [], []>} : vector<16x16xf32>, vector<16x4xf32>, vector<16x4xf32> -> vector<16x4xf32>
    %c0_73 = arith.constant 0 : index
    %c464 = arith.constant 464 : index
    %154 = vector.load %arg6[%c0_73, %c464] : memref<40x544xf32, #tpu.memory_space<vmem>>, vector<4x8xf32>
    %cst_74 = arith.constant dense<0.000000e+00> : vector<16x8xf32>
    %155 = tpu.matmul %153, %154, %cst_74 {dimension_numbers = #tpu.dot_dimension_numbers<[1], [0], [0], [1], [0, 0, 1, 1], [], []>} : vector<16x4xf32>, vector<4x8xf32>, vector<16x8xf32> -> vector<16x8xf32>
    %156 = vector.broadcast %135 : vector<1x8xf32> to vector<16x8xf32>
    %157 = arith.addf %156, %155 : vector<16x8xf32>
    %158 = vector.extract_strided_slice %134 {offsets = [0, 4], sizes = [16, 4], strides = [1, 1]} : vector<16x24xf32> to vector<16x4xf32>
    %159 = vector.extract_strided_slice %134 {offsets = [0, 12], sizes = [16, 4], strides = [1, 1]} : vector<16x24xf32> to vector<16x4xf32>
    %160 = vector.extract_strided_slice %134 {offsets = [0, 20], sizes = [16, 4], strides = [1, 1]} : vector<16x24xf32> to vector<16x4xf32>
    %cst_75 = arith.constant dense<0.000000e+00> : vector<16x16xf32>
    %161 = tpu.matmul %158, %159, %cst_75 {dimension_numbers = #tpu.dot_dimension_numbers<[1], [1], [0], [0], [0, 0, 1, 0], [], []>} : vector<16x4xf32>, vector<16x4xf32>, vector<16x16xf32> -> vector<16x16xf32>
    %cst_76 = arith.constant 5.000000e-01 : f32
    %162 = vector.broadcast %cst_76 : f32 to vector<16x16xf32>
    %163 = arith.mulf %161, %162 : vector<16x16xf32>
    %cst_77 = arith.constant 0xFF800000 : f32
    %164 = vector.broadcast %cst_77 : f32 to vector<16x16xf32>
    %165 = arith.select %3, %163, %164 : vector<16x16xi1>, vector<16x16xf32>
    %cst_78 = arith.constant dense<0xFF800000> : vector<16xf32>
    %166 = vector.multi_reduction <maximumf>, %165, %cst_78 [1] : vector<16x16xf32> to vector<16xf32>
    %167 = vector.shape_cast %166 : vector<16xf32> to vector<16x1xf32>
    %168 = vector.broadcast %167 : vector<16x1xf32> to vector<16x16xf32>
    %169 = arith.subf %165, %168 : vector<16x16xf32>
    %170 = math.exp %169 : vector<16x16xf32>
    %cst_79 = arith.constant dense<0.000000e+00> : vector<16xf32>
    %171 = vector.multi_reduction <add>, %170, %cst_79 [1] : vector<16x16xf32> to vector<16xf32>
    %172 = vector.shape_cast %171 : vector<16xf32> to vector<16x1xf32>
    %173 = vector.broadcast %172 : vector<16x1xf32> to vector<16x16xf32>
    %174 = arith.divf %170, %173 : vector<16x16xf32>
    %cst_80 = arith.constant dense<0.000000e+00> : vector<16x4xf32>
    %175 = tpu.matmul %174, %160, %cst_80 {dimension_numbers = #tpu.dot_dimension_numbers<[1], [0], [0], [1], [0, 0, 1, 1], [], []>} : vector<16x16xf32>, vector<16x4xf32>, vector<16x4xf32> -> vector<16x4xf32>
    %c0_81 = arith.constant 0 : index
    %c472 = arith.constant 472 : index
    %176 = vector.load %arg6[%c0_81, %c472] : memref<40x544xf32, #tpu.memory_space<vmem>>, vector<4x8xf32>
    %cst_82 = arith.constant dense<0.000000e+00> : vector<16x8xf32>
    %177 = tpu.matmul %175, %176, %cst_82 {dimension_numbers = #tpu.dot_dimension_numbers<[1], [0], [0], [1], [0, 0, 1, 1], [], []>} : vector<16x4xf32>, vector<4x8xf32>, vector<16x8xf32> -> vector<16x8xf32>
    %178 = arith.addf %157, %177 : vector<16x8xf32>
    %c0_83 = arith.constant 0 : index
    %c480 = arith.constant 480 : index
    %179 = vector.load %arg6[%c0_83, %c480] : memref<40x544xf32, #tpu.memory_space<vmem>>, vector<8x24xf32>
    %cst_84 = arith.constant dense<0.000000e+00> : vector<16x24xf32>
    %180 = tpu.matmul %178, %179, %cst_84 {dimension_numbers = #tpu.dot_dimension_numbers<[1], [0], [0], [1], [0, 0, 1, 1], [], []>} : vector<16x8xf32>, vector<8x24xf32>, vector<16x24xf32> -> vector<16x24xf32>
    %c0_85 = arith.constant 0 : index
    %c504 = arith.constant 504 : index
    %181 = vector.load %arg6[%c0_85, %c504] : memref<40x544xf32, #tpu.memory_space<vmem>>, vector<6x24xf32>
    %cst_86 = arith.constant dense<0.000000e+00> : vector<16x24xf32>
    %182 = tpu.matmul %4, %181, %cst_86 {dimension_numbers = #tpu.dot_dimension_numbers<[1], [0], [0], [1], [0, 0, 1, 1], [], []>} : vector<16x6xf32>, vector<6x24xf32>, vector<16x24xf32> -> vector<16x24xf32>
    %183 = arith.addf %180, %182 : vector<16x24xf32>
    %c0_87 = arith.constant 0 : index
    %c336_88 = arith.constant 336 : index
    %184 = vector.load %arg7[%c0_87, %c336_88] : memref<1x368xf32, #tpu.memory_space<vmem>>, vector<1x24xf32>
    %185 = vector.broadcast %184 : vector<1x24xf32> to vector<16x24xf32>
    %186 = arith.addf %183, %185 : vector<16x24xf32>
    %c0_89 = arith.constant 0 : index
    %c360 = arith.constant 360 : index
    %187 = vector.load %arg7[%c0_89, %c360] : memref<1x368xf32, #tpu.memory_space<vmem>>, vector<1x8xf32>
    %188 = vector.extract_strided_slice %186 {offsets = [0, 0], sizes = [16, 4], strides = [1, 1]} : vector<16x24xf32> to vector<16x4xf32>
    %189 = vector.extract_strided_slice %186 {offsets = [0, 8], sizes = [16, 4], strides = [1, 1]} : vector<16x24xf32> to vector<16x4xf32>
    %190 = vector.extract_strided_slice %186 {offsets = [0, 16], sizes = [16, 4], strides = [1, 1]} : vector<16x24xf32> to vector<16x4xf32>
    %cst_90 = arith.constant dense<0.000000e+00> : vector<16x16xf32>
    %191 = tpu.matmul %188, %189, %cst_90 {dimension_numbers = #tpu.dot_dimension_numbers<[1], [1], [0], [0], [0, 0, 1, 0], [], []>} : vector<16x4xf32>, vector<16x4xf32>, vector<16x16xf32> -> vector<16x16xf32>
    %cst_91 = arith.constant 5.000000e-01 : f32
    %192 = vector.broadcast %cst_91 : f32 to vector<16x16xf32>
    %193 = arith.mulf %191, %192 : vector<16x16xf32>
    %cst_92 = arith.constant 0.000000e+00 : f32
    %194 = vector.broadcast %cst_92 : f32 to vector<16x16xf32>
    %195 = arith.cmpf oeq, %152, %194 : vector<16x16xf32>
    %cst_93 = arith.constant -9.000000e+15 : f32
    %196 = vector.broadcast %cst_93 : f32 to vector<16x16xf32>
    %197 = arith.select %195, %196, %193 : vector<16x16xi1>, vector<16x16xf32>
    %cst_94 = arith.constant 0xFF800000 : f32
    %198 = vector.broadcast %cst_94 : f32 to vector<16x16xf32>
    %199 = arith.select %3, %197, %198 : vector<16x16xi1>, vector<16x16xf32>
    %cst_95 = arith.constant dense<0xFF800000> : vector<16xf32>
    %200 = vector.multi_reduction <maximumf>, %199, %cst_95 [1] : vector<16x16xf32> to vector<16xf32>
    %201 = vector.shape_cast %200 : vector<16xf32> to vector<16x1xf32>
    %202 = vector.broadcast %201 : vector<16x1xf32> to vector<16x16xf32>
    %203 = arith.subf %199, %202 : vector<16x16xf32>
    %204 = math.exp %203 : vector<16x16xf32>
    %cst_96 = arith.constant dense<0.000000e+00> : vector<16xf32>
    %205 = vector.multi_reduction <add>, %204, %cst_96 [1] : vector<16x16xf32> to vector<16xf32>
    %206 = vector.shape_cast %205 : vector<16xf32> to vector<16x1xf32>
    %207 = vector.broadcast %206 : vector<16x1xf32> to vector<16x16xf32>
    %208 = arith.divf %204, %207 : vector<16x16xf32>
    %cst_97 = arith.constant dense<0.000000e+00> : vector<16x4xf32>
    %209 = tpu.matmul %208, %190, %cst_97 {dimension_numbers = #tpu.dot_dimension_numbers<[1], [0], [0], [1], [0, 0, 1, 1], [], []>} : vector<16x16xf32>, vector<16x4xf32>, vector<16x4xf32> -> vector<16x4xf32>
    %c0_98 = arith.constant 0 : index
    %c528 = arith.constant 528 : index
    %210 = vector.load %arg6[%c0_98, %c528] : memref<40x544xf32, #tpu.memory_space<vmem>>, vector<4x8xf32>
    %cst_99 = arith.constant dense<0.000000e+00> : vector<16x8xf32>
    %211 = tpu.matmul %209, %210, %cst_99 {dimension_numbers = #tpu.dot_dimension_numbers<[1], [0], [0], [1], [0, 0, 1, 1], [], []>} : vector<16x4xf32>, vector<4x8xf32>, vector<16x8xf32> -> vector<16x8xf32>
    %212 = vector.broadcast %187 : vector<1x8xf32> to vector<16x8xf32>
    %213 = arith.addf %212, %211 : vector<16x8xf32>
    %214 = vector.extract_strided_slice %186 {offsets = [0, 4], sizes = [16, 4], strides = [1, 1]} : vector<16x24xf32> to vector<16x4xf32>
    %215 = vector.extract_strided_slice %186 {offsets = [0, 12], sizes = [16, 4], strides = [1, 1]} : vector<16x24xf32> to vector<16x4xf32>
    %216 = vector.extract_strided_slice %186 {offsets = [0, 20], sizes = [16, 4], strides = [1, 1]} : vector<16x24xf32> to vector<16x4xf32>
    %cst_100 = arith.constant dense<0.000000e+00> : vector<16x16xf32>
    %217 = tpu.matmul %214, %215, %cst_100 {dimension_numbers = #tpu.dot_dimension_numbers<[1], [1], [0], [0], [0, 0, 1, 0], [], []>} : vector<16x4xf32>, vector<16x4xf32>, vector<16x16xf32> -> vector<16x16xf32>
    %cst_101 = arith.constant 5.000000e-01 : f32
    %218 = vector.broadcast %cst_101 : f32 to vector<16x16xf32>
    %219 = arith.mulf %217, %218 : vector<16x16xf32>
    %cst_102 = arith.constant 0.000000e+00 : f32
    %220 = vector.broadcast %cst_102 : f32 to vector<16x16xf32>
    %221 = arith.cmpf oeq, %174, %220 : vector<16x16xf32>
    %cst_103 = arith.constant -9.000000e+15 : f32
    %222 = vector.broadcast %cst_103 : f32 to vector<16x16xf32>
    %223 = arith.select %221, %222, %219 : vector<16x16xi1>, vector<16x16xf32>
    %cst_104 = arith.constant 0xFF800000 : f32
    %224 = vector.broadcast %cst_104 : f32 to vector<16x16xf32>
    %225 = arith.select %3, %223, %224 : vector<16x16xi1>, vector<16x16xf32>
    %cst_105 = arith.constant dense<0xFF800000> : vector<16xf32>
    %226 = vector.multi_reduction <maximumf>, %225, %cst_105 [1] : vector<16x16xf32> to vector<16xf32>
    %227 = vector.shape_cast %226 : vector<16xf32> to vector<16x1xf32>
    %228 = vector.broadcast %227 : vector<16x1xf32> to vector<16x16xf32>
    %229 = arith.subf %225, %228 : vector<16x16xf32>
    %230 = math.exp %229 : vector<16x16xf32>
    %cst_106 = arith.constant dense<0.000000e+00> : vector<16xf32>
    %231 = vector.multi_reduction <add>, %230, %cst_106 [1] : vector<16x16xf32> to vector<16xf32>
    %232 = vector.shape_cast %231 : vector<16xf32> to vector<16x1xf32>
    %233 = vector.broadcast %232 : vector<16x1xf32> to vector<16x16xf32>
    %234 = arith.divf %230, %233 : vector<16x16xf32>
    %cst_107 = arith.constant dense<0.000000e+00> : vector<16x4xf32>
    %235 = tpu.matmul %234, %216, %cst_107 {dimension_numbers = #tpu.dot_dimension_numbers<[1], [0], [0], [1], [0, 0, 1, 1], [], []>} : vector<16x16xf32>, vector<16x4xf32>, vector<16x4xf32> -> vector<16x4xf32>
    %c0_108 = arith.constant 0 : index
    %c536 = arith.constant 536 : index
    %236 = vector.load %arg6[%c0_108, %c536] : memref<40x544xf32, #tpu.memory_space<vmem>>, vector<4x8xf32>
    %cst_109 = arith.constant dense<0.000000e+00> : vector<16x8xf32>
    %237 = tpu.matmul %235, %236, %cst_109 {dimension_numbers = #tpu.dot_dimension_numbers<[1], [0], [0], [1], [0, 0, 1, 1], [], []>} : vector<16x4xf32>, vector<4x8xf32>, vector<16x8xf32> -> vector<16x8xf32>
    %238 = arith.addf %213, %237 : vector<16x8xf32>
    %cst_110 = arith.constant dense<0.000000e+00> : vector<2x8xf32>
    %239 = tpu.matmul %1, %238, %cst_110 {dimension_numbers = #tpu.dot_dimension_numbers<[1], [0], [0], [1], [0, 0, 1, 1], [], []>} : vector<2x16xf32>, vector<16x8xf32>, vector<2x8xf32> -> vector<2x8xf32>
    %c0_111 = arith.constant 0 : index
    %c0_112 = arith.constant 0 : index
    %240 = vector.load %arg2[%c0_111, %c0_112] : memref<16x5xf32, #tpu.memory_space<vmem>>, vector<16x5xf32>
    %c0_113 = arith.constant 0 : index
    %c0_114 = arith.constant 0 : index
    %241 = vector.load %arg8[%c0_113, %c0_114] : memref<40x544xf32, #tpu.memory_space<vmem>>, vector<5x48xf32>
    %cst_115 = arith.constant dense<0.000000e+00> : vector<16x48xf32>
    %242 = tpu.matmul %240, %241, %cst_115 {dimension_numbers = #tpu.dot_dimension_numbers<[1], [0], [0], [1], [0, 0, 1, 1], [], []>} : vector<16x5xf32>, vector<5x48xf32>, vector<16x48xf32> -> vector<16x48xf32>
    %243 = vector.extract_strided_slice %242 {offsets = [0, 0], sizes = [16, 24], strides = [1, 1]} : vector<16x48xf32> to vector<16x24xf32>
    %244 = vector.extract_strided_slice %242 {offsets = [0, 24], sizes = [16, 24], strides = [1, 1]} : vector<16x48xf32> to vector<16x24xf32>
    %cst_116 = arith.constant dense<0.000000e+00> : vector<16x24xf32>
    %245 = tpu.matmul %0, %244, %cst_116 {dimension_numbers = #tpu.dot_dimension_numbers<[1], [0], [0], [1], [0, 0, 1, 1], [], []>} : vector<16x16xf32>, vector<16x24xf32>, vector<16x24xf32> -> vector<16x24xf32>
    %246 = arith.subf %244, %245 : vector<16x24xf32>
    %c0_117 = arith.constant 0 : index
    %c0_118 = arith.constant 0 : index
    %247 = vector.load %arg9[%c0_117, %c0_118] : memref<1x368xf32, #tpu.memory_space<vmem>>, vector<1x24xf32>
    %248 = vector.broadcast %247 : vector<1x24xf32> to vector<16x24xf32>
    %249 = arith.addf %243, %248 : vector<16x24xf32>
    %cst_119 = arith.constant 0.000000e+00 : f32
    %250 = vector.broadcast %cst_119 : f32 to vector<16x24xf32>
    %251 = arith.maximumf %249, %250 : vector<16x24xf32>
    %c0_120 = arith.constant 0 : index
    %c24_121 = arith.constant 24 : index
    %252 = vector.load %arg9[%c0_120, %c24_121] : memref<1x368xf32, #tpu.memory_space<vmem>>, vector<1x24xf32>
    %253 = vector.broadcast %252 : vector<1x24xf32> to vector<16x24xf32>
    %254 = arith.addf %246, %253 : vector<16x24xf32>
    %cst_122 = arith.constant 0.000000e+00 : f32
    %255 = vector.broadcast %cst_122 : f32 to vector<16x24xf32>
    %256 = arith.maximumf %254, %255 : vector<16x24xf32>
    %c0_123 = arith.constant 0 : index
    %c48_124 = arith.constant 48 : index
    %257 = vector.load %arg8[%c0_123, %c48_124] : memref<40x544xf32, #tpu.memory_space<vmem>>, vector<24x32xf32>
    %cst_125 = arith.constant dense<0.000000e+00> : vector<16x32xf32>
    %258 = tpu.matmul %251, %257, %cst_125 {dimension_numbers = #tpu.dot_dimension_numbers<[1], [0], [0], [1], [0, 0, 1, 1], [], []>} : vector<16x24xf32>, vector<24x32xf32>, vector<16x32xf32> -> vector<16x32xf32>
    %c0_126 = arith.constant 0 : index
    %c48_127 = arith.constant 48 : index
    %259 = vector.load %arg9[%c0_126, %c48_127] : memref<1x368xf32, #tpu.memory_space<vmem>>, vector<1x32xf32>
    %260 = vector.broadcast %259 : vector<1x32xf32> to vector<16x32xf32>
    %261 = arith.addf %258, %260 : vector<16x32xf32>
    %262 = math.tanh %261 : vector<16x32xf32>
    %c0_128 = arith.constant 0 : index
    %c80_129 = arith.constant 80 : index
    %263 = vector.load %arg8[%c0_128, %c80_129] : memref<40x544xf32, #tpu.memory_space<vmem>>, vector<24x32xf32>
    %cst_130 = arith.constant dense<0.000000e+00> : vector<16x32xf32>
    %264 = tpu.matmul %256, %263, %cst_130 {dimension_numbers = #tpu.dot_dimension_numbers<[1], [0], [0], [1], [0, 0, 1, 1], [], []>} : vector<16x24xf32>, vector<24x32xf32>, vector<16x32xf32> -> vector<16x32xf32>
    %c0_131 = arith.constant 0 : index
    %c80_132 = arith.constant 80 : index
    %265 = vector.load %arg9[%c0_131, %c80_132] : memref<1x368xf32, #tpu.memory_space<vmem>>, vector<1x32xf32>
    %266 = vector.broadcast %265 : vector<1x32xf32> to vector<16x32xf32>
    %267 = arith.addf %264, %266 : vector<16x32xf32>
    %268 = math.tanh %267 : vector<16x32xf32>
    %269 = arith.addf %262, %268 : vector<16x32xf32>
    %270 = arith.mulf %269, %269 : vector<16x32xf32>
    %cst_133 = arith.constant dense<0.000000e+00> : vector<16xf32>
    %271 = vector.multi_reduction <add>, %270, %cst_133 [1] : vector<16x32xf32> to vector<16xf32>
    %272 = vector.shape_cast %271 : vector<16xf32> to vector<16x1xf32>
    %273 = math.sqrt %272 : vector<16x1xf32>
    %274 = vector.broadcast %273 : vector<16x1xf32> to vector<16x32xf32>
    %275 = arith.divf %269, %274 : vector<16x32xf32>
    %cst_134 = arith.constant 0.000000e+00 : f32
    %276 = vector.broadcast %cst_134 : f32 to vector<16x32xf32>
    %277 = arith.maximumf %275, %276 : vector<16x32xf32>
    %c0_135 = arith.constant 0 : index
    %c112_136 = arith.constant 112 : index
    %278 = vector.load %arg8[%c0_135, %c112_136] : memref<40x544xf32, #tpu.memory_space<vmem>>, vector<5x80xf32>
    %cst_137 = arith.constant dense<0.000000e+00> : vector<16x80xf32>
    %279 = tpu.matmul %240, %278, %cst_137 {dimension_numbers = #tpu.dot_dimension_numbers<[1], [0], [0], [1], [0, 0, 1, 1], [], []>} : vector<16x5xf32>, vector<5x80xf32>, vector<16x80xf32> -> vector<16x80xf32>
    %c0_138 = arith.constant 0 : index
    %c192_139 = arith.constant 192 : index
    %280 = vector.load %arg8[%c0_138, %c192_139] : memref<40x544xf32, #tpu.memory_space<vmem>>, vector<32x80xf32>
    %cst_140 = arith.constant dense<0.000000e+00> : vector<16x80xf32>
    %281 = tpu.matmul %277, %280, %cst_140 {dimension_numbers = #tpu.dot_dimension_numbers<[1], [0], [0], [1], [0, 0, 1, 1], [], []>} : vector<16x32xf32>, vector<32x80xf32>, vector<16x80xf32> -> vector<16x80xf32>
    %282 = arith.addf %279, %281 : vector<16x80xf32>
    %283 = vector.extract_strided_slice %282 {offsets = [0, 0], sizes = [16, 40], strides = [1, 1]} : vector<16x80xf32> to vector<16x40xf32>
    %284 = vector.extract_strided_slice %282 {offsets = [0, 40], sizes = [16, 40], strides = [1, 1]} : vector<16x80xf32> to vector<16x40xf32>
    %cst_141 = arith.constant dense<0.000000e+00> : vector<16x40xf32>
    %285 = tpu.matmul %0, %284, %cst_141 {dimension_numbers = #tpu.dot_dimension_numbers<[1], [0], [0], [1], [0, 0, 1, 1], [], []>} : vector<16x16xf32>, vector<16x40xf32>, vector<16x40xf32> -> vector<16x40xf32>
    %286 = arith.subf %284, %285 : vector<16x40xf32>
    %c0_142 = arith.constant 0 : index
    %c112_143 = arith.constant 112 : index
    %287 = vector.load %arg9[%c0_142, %c112_143] : memref<1x368xf32, #tpu.memory_space<vmem>>, vector<1x40xf32>
    %288 = vector.broadcast %287 : vector<1x40xf32> to vector<16x40xf32>
    %289 = arith.addf %283, %288 : vector<16x40xf32>
    %cst_144 = arith.constant 0.000000e+00 : f32
    %290 = vector.broadcast %cst_144 : f32 to vector<16x40xf32>
    %291 = arith.maximumf %289, %290 : vector<16x40xf32>
    %c0_145 = arith.constant 0 : index
    %c152_146 = arith.constant 152 : index
    %292 = vector.load %arg9[%c0_145, %c152_146] : memref<1x368xf32, #tpu.memory_space<vmem>>, vector<1x40xf32>
    %293 = vector.broadcast %292 : vector<1x40xf32> to vector<16x40xf32>
    %294 = arith.addf %286, %293 : vector<16x40xf32>
    %cst_147 = arith.constant 0.000000e+00 : f32
    %295 = vector.broadcast %cst_147 : f32 to vector<16x40xf32>
    %296 = arith.maximumf %294, %295 : vector<16x40xf32>
    %c0_148 = arith.constant 0 : index
    %c272_149 = arith.constant 272 : index
    %297 = vector.load %arg8[%c0_148, %c272_149] : memref<40x544xf32, #tpu.memory_space<vmem>>, vector<40x32xf32>
    %cst_150 = arith.constant dense<0.000000e+00> : vector<16x32xf32>
    %298 = tpu.matmul %291, %297, %cst_150 {dimension_numbers = #tpu.dot_dimension_numbers<[1], [0], [0], [1], [0, 0, 1, 1], [], []>} : vector<16x40xf32>, vector<40x32xf32>, vector<16x32xf32> -> vector<16x32xf32>
    %c0_151 = arith.constant 0 : index
    %c192_152 = arith.constant 192 : index
    %299 = vector.load %arg9[%c0_151, %c192_152] : memref<1x368xf32, #tpu.memory_space<vmem>>, vector<1x32xf32>
    %300 = vector.broadcast %299 : vector<1x32xf32> to vector<16x32xf32>
    %301 = arith.addf %298, %300 : vector<16x32xf32>
    %302 = math.tanh %301 : vector<16x32xf32>
    %c0_153 = arith.constant 0 : index
    %c304_154 = arith.constant 304 : index
    %303 = vector.load %arg8[%c0_153, %c304_154] : memref<40x544xf32, #tpu.memory_space<vmem>>, vector<40x32xf32>
    %cst_155 = arith.constant dense<0.000000e+00> : vector<16x32xf32>
    %304 = tpu.matmul %296, %303, %cst_155 {dimension_numbers = #tpu.dot_dimension_numbers<[1], [0], [0], [1], [0, 0, 1, 1], [], []>} : vector<16x40xf32>, vector<40x32xf32>, vector<16x32xf32> -> vector<16x32xf32>
    %c0_156 = arith.constant 0 : index
    %c224_157 = arith.constant 224 : index
    %305 = vector.load %arg9[%c0_156, %c224_157] : memref<1x368xf32, #tpu.memory_space<vmem>>, vector<1x32xf32>
    %306 = vector.broadcast %305 : vector<1x32xf32> to vector<16x32xf32>
    %307 = arith.addf %304, %306 : vector<16x32xf32>
    %308 = math.tanh %307 : vector<16x32xf32>
    %309 = arith.addf %302, %308 : vector<16x32xf32>
    %310 = arith.mulf %309, %309 : vector<16x32xf32>
    %cst_158 = arith.constant dense<0.000000e+00> : vector<16xf32>
    %311 = vector.multi_reduction <add>, %310, %cst_158 [1] : vector<16x32xf32> to vector<16xf32>
    %312 = vector.shape_cast %311 : vector<16xf32> to vector<16x1xf32>
    %313 = math.sqrt %312 : vector<16x1xf32>
    %314 = vector.broadcast %313 : vector<16x1xf32> to vector<16x32xf32>
    %315 = arith.divf %309, %314 : vector<16x32xf32>
    %316 = vector.extract_strided_slice %315 {offsets = [0, 0], sizes = [16, 8], strides = [1, 1]} : vector<16x32xf32> to vector<16x8xf32>
    %317 = vector.extract_strided_slice %315 {offsets = [0, 8], sizes = [16, 8], strides = [1, 1]} : vector<16x32xf32> to vector<16x8xf32>
    %318 = arith.maximumf %316, %317 : vector<16x8xf32>
    %319 = vector.extract_strided_slice %315 {offsets = [0, 16], sizes = [16, 8], strides = [1, 1]} : vector<16x32xf32> to vector<16x8xf32>
    %320 = vector.extract_strided_slice %315 {offsets = [0, 24], sizes = [16, 8], strides = [1, 1]} : vector<16x32xf32> to vector<16x8xf32>
    %321 = arith.maximumf %319, %320 : vector<16x8xf32>
    %322 = arith.maximumf %318, %321 : vector<16x8xf32>
    %cst_159 = arith.constant 0.000000e+00 : f32
    %323 = vector.broadcast %cst_159 : f32 to vector<16x8xf32>
    %324 = arith.maximumf %322, %323 : vector<16x8xf32>
    %c0_160 = arith.constant 0 : index
    %c336_161 = arith.constant 336 : index
    %325 = vector.load %arg8[%c0_160, %c336_161] : memref<40x544xf32, #tpu.memory_space<vmem>>, vector<5x32xf32>
    %cst_162 = arith.constant dense<0.000000e+00> : vector<16x32xf32>
    %326 = tpu.matmul %240, %325, %cst_162 {dimension_numbers = #tpu.dot_dimension_numbers<[1], [0], [0], [1], [0, 0, 1, 1], [], []>} : vector<16x5xf32>, vector<5x32xf32>, vector<16x32xf32> -> vector<16x32xf32>
    %c0_163 = arith.constant 0 : index
    %c368_164 = arith.constant 368 : index
    %327 = vector.load %arg8[%c0_163, %c368_164] : memref<40x544xf32, #tpu.memory_space<vmem>>, vector<8x32xf32>
    %cst_165 = arith.constant dense<0.000000e+00> : vector<16x32xf32>
    %328 = tpu.matmul %324, %327, %cst_165 {dimension_numbers = #tpu.dot_dimension_numbers<[1], [0], [0], [1], [0, 0, 1, 1], [], []>} : vector<16x8xf32>, vector<8x32xf32>, vector<16x32xf32> -> vector<16x32xf32>
    %329 = arith.addf %326, %328 : vector<16x32xf32>
    %330 = vector.extract_strided_slice %329 {offsets = [0, 0], sizes = [16, 16], strides = [1, 1]} : vector<16x32xf32> to vector<16x16xf32>
    %331 = vector.extract_strided_slice %329 {offsets = [0, 16], sizes = [16, 16], strides = [1, 1]} : vector<16x32xf32> to vector<16x16xf32>
    %cst_166 = arith.constant dense<0.000000e+00> : vector<16x16xf32>
    %332 = tpu.matmul %0, %331, %cst_166 {dimension_numbers = #tpu.dot_dimension_numbers<[1], [0], [0], [1], [0, 0, 1, 1], [], []>} : vector<16x16xf32>, vector<16x16xf32>, vector<16x16xf32> -> vector<16x16xf32>
    %333 = arith.subf %331, %332 : vector<16x16xf32>
    %c0_167 = arith.constant 0 : index
    %c256_168 = arith.constant 256 : index
    %334 = vector.load %arg9[%c0_167, %c256_168] : memref<1x368xf32, #tpu.memory_space<vmem>>, vector<1x16xf32>
    %335 = vector.broadcast %334 : vector<1x16xf32> to vector<16x16xf32>
    %336 = arith.addf %330, %335 : vector<16x16xf32>
    %cst_169 = arith.constant 0.000000e+00 : f32
    %337 = vector.broadcast %cst_169 : f32 to vector<16x16xf32>
    %338 = arith.maximumf %336, %337 : vector<16x16xf32>
    %c0_170 = arith.constant 0 : index
    %c272_171 = arith.constant 272 : index
    %339 = vector.load %arg9[%c0_170, %c272_171] : memref<1x368xf32, #tpu.memory_space<vmem>>, vector<1x16xf32>
    %340 = vector.broadcast %339 : vector<1x16xf32> to vector<16x16xf32>
    %341 = arith.addf %333, %340 : vector<16x16xf32>
    %cst_172 = arith.constant 0.000000e+00 : f32
    %342 = vector.broadcast %cst_172 : f32 to vector<16x16xf32>
    %343 = arith.maximumf %341, %342 : vector<16x16xf32>
    %c0_173 = arith.constant 0 : index
    %c400_174 = arith.constant 400 : index
    %344 = vector.load %arg8[%c0_173, %c400_174] : memref<40x544xf32, #tpu.memory_space<vmem>>, vector<16x8xf32>
    %cst_175 = arith.constant dense<0.000000e+00> : vector<16x8xf32>
    %345 = tpu.matmul %338, %344, %cst_175 {dimension_numbers = #tpu.dot_dimension_numbers<[1], [0], [0], [1], [0, 0, 1, 1], [], []>} : vector<16x16xf32>, vector<16x8xf32>, vector<16x8xf32> -> vector<16x8xf32>
    %c0_176 = arith.constant 0 : index
    %c288_177 = arith.constant 288 : index
    %346 = vector.load %arg9[%c0_176, %c288_177] : memref<1x368xf32, #tpu.memory_space<vmem>>, vector<1x8xf32>
    %347 = vector.broadcast %346 : vector<1x8xf32> to vector<16x8xf32>
    %348 = arith.addf %345, %347 : vector<16x8xf32>
    %349 = math.tanh %348 : vector<16x8xf32>
    %c0_178 = arith.constant 0 : index
    %c408_179 = arith.constant 408 : index
    %350 = vector.load %arg8[%c0_178, %c408_179] : memref<40x544xf32, #tpu.memory_space<vmem>>, vector<16x8xf32>
    %cst_180 = arith.constant dense<0.000000e+00> : vector<16x8xf32>
    %351 = tpu.matmul %343, %350, %cst_180 {dimension_numbers = #tpu.dot_dimension_numbers<[1], [0], [0], [1], [0, 0, 1, 1], [], []>} : vector<16x16xf32>, vector<16x8xf32>, vector<16x8xf32> -> vector<16x8xf32>
    %c0_181 = arith.constant 0 : index
    %c296_182 = arith.constant 296 : index
    %352 = vector.load %arg9[%c0_181, %c296_182] : memref<1x368xf32, #tpu.memory_space<vmem>>, vector<1x8xf32>
    %353 = vector.broadcast %352 : vector<1x8xf32> to vector<16x8xf32>
    %354 = arith.addf %351, %353 : vector<16x8xf32>
    %355 = math.tanh %354 : vector<16x8xf32>
    %356 = arith.addf %349, %355 : vector<16x8xf32>
    %357 = arith.mulf %356, %356 : vector<16x8xf32>
    %cst_183 = arith.constant dense<0.000000e+00> : vector<16xf32>
    %358 = vector.multi_reduction <add>, %357, %cst_183 [1] : vector<16x8xf32> to vector<16xf32>
    %359 = vector.shape_cast %358 : vector<16xf32> to vector<16x1xf32>
    %360 = math.sqrt %359 : vector<16x1xf32>
    %361 = vector.broadcast %360 : vector<16x1xf32> to vector<16x8xf32>
    %362 = arith.divf %356, %361 : vector<16x8xf32>
    %c0_184 = arith.constant 0 : index
    %c416_185 = arith.constant 416 : index
    %363 = vector.load %arg8[%c0_184, %c416_185] : memref<40x544xf32, #tpu.memory_space<vmem>>, vector<8x24xf32>
    %cst_186 = arith.constant dense<0.000000e+00> : vector<16x24xf32>
    %364 = tpu.matmul %362, %363, %cst_186 {dimension_numbers = #tpu.dot_dimension_numbers<[1], [0], [0], [1], [0, 0, 1, 1], [], []>} : vector<16x8xf32>, vector<8x24xf32>, vector<16x24xf32> -> vector<16x24xf32>
    %c0_187 = arith.constant 0 : index
    %c440_188 = arith.constant 440 : index
    %365 = vector.load %arg8[%c0_187, %c440_188] : memref<40x544xf32, #tpu.memory_space<vmem>>, vector<5x24xf32>
    %cst_189 = arith.constant dense<0.000000e+00> : vector<16x24xf32>
    %366 = tpu.matmul %240, %365, %cst_189 {dimension_numbers = #tpu.dot_dimension_numbers<[1], [0], [0], [1], [0, 0, 1, 1], [], []>} : vector<16x5xf32>, vector<5x24xf32>, vector<16x24xf32> -> vector<16x24xf32>
    %367 = arith.addf %364, %366 : vector<16x24xf32>
    %c0_190 = arith.constant 0 : index
    %c304_191 = arith.constant 304 : index
    %368 = vector.load %arg9[%c0_190, %c304_191] : memref<1x368xf32, #tpu.memory_space<vmem>>, vector<1x24xf32>
    %369 = vector.broadcast %368 : vector<1x24xf32> to vector<16x24xf32>
    %370 = arith.addf %367, %369 : vector<16x24xf32>
    %c0_192 = arith.constant 0 : index
    %c328_193 = arith.constant 328 : index
    %371 = vector.load %arg9[%c0_192, %c328_193] : memref<1x368xf32, #tpu.memory_space<vmem>>, vector<1x8xf32>
    %372 = vector.extract_strided_slice %370 {offsets = [0, 0], sizes = [16, 4], strides = [1, 1]} : vector<16x24xf32> to vector<16x4xf32>
    %373 = vector.extract_strided_slice %370 {offsets = [0, 8], sizes = [16, 4], strides = [1, 1]} : vector<16x24xf32> to vector<16x4xf32>
    %374 = vector.extract_strided_slice %370 {offsets = [0, 16], sizes = [16, 4], strides = [1, 1]} : vector<16x24xf32> to vector<16x4xf32>
    %cst_194 = arith.constant dense<0.000000e+00> : vector<16x16xf32>
    %375 = tpu.matmul %372, %373, %cst_194 {dimension_numbers = #tpu.dot_dimension_numbers<[1], [1], [0], [0], [0, 0, 1, 0], [], []>} : vector<16x4xf32>, vector<16x4xf32>, vector<16x16xf32> -> vector<16x16xf32>
    %cst_195 = arith.constant 5.000000e-01 : f32
    %376 = vector.broadcast %cst_195 : f32 to vector<16x16xf32>
    %377 = arith.mulf %375, %376 : vector<16x16xf32>
    %cst_196 = arith.constant 0xFF800000 : f32
    %378 = vector.broadcast %cst_196 : f32 to vector<16x16xf32>
    %379 = arith.select %3, %377, %378 : vector<16x16xi1>, vector<16x16xf32>
    %cst_197 = arith.constant dense<0xFF800000> : vector<16xf32>
    %380 = vector.multi_reduction <maximumf>, %379, %cst_197 [1] : vector<16x16xf32> to vector<16xf32>
    %381 = vector.shape_cast %380 : vector<16xf32> to vector<16x1xf32>
    %382 = vector.broadcast %381 : vector<16x1xf32> to vector<16x16xf32>
    %383 = arith.subf %379, %382 : vector<16x16xf32>
    %384 = math.exp %383 : vector<16x16xf32>
    %cst_198 = arith.constant dense<0.000000e+00> : vector<16xf32>
    %385 = vector.multi_reduction <add>, %384, %cst_198 [1] : vector<16x16xf32> to vector<16xf32>
    %386 = vector.shape_cast %385 : vector<16xf32> to vector<16x1xf32>
    %387 = vector.broadcast %386 : vector<16x1xf32> to vector<16x16xf32>
    %388 = arith.divf %384, %387 : vector<16x16xf32>
    %cst_199 = arith.constant dense<0.000000e+00> : vector<16x4xf32>
    %389 = tpu.matmul %388, %374, %cst_199 {dimension_numbers = #tpu.dot_dimension_numbers<[1], [0], [0], [1], [0, 0, 1, 1], [], []>} : vector<16x16xf32>, vector<16x4xf32>, vector<16x4xf32> -> vector<16x4xf32>
    %c0_200 = arith.constant 0 : index
    %c464_201 = arith.constant 464 : index
    %390 = vector.load %arg8[%c0_200, %c464_201] : memref<40x544xf32, #tpu.memory_space<vmem>>, vector<4x8xf32>
    %cst_202 = arith.constant dense<0.000000e+00> : vector<16x8xf32>
    %391 = tpu.matmul %389, %390, %cst_202 {dimension_numbers = #tpu.dot_dimension_numbers<[1], [0], [0], [1], [0, 0, 1, 1], [], []>} : vector<16x4xf32>, vector<4x8xf32>, vector<16x8xf32> -> vector<16x8xf32>
    %392 = vector.broadcast %371 : vector<1x8xf32> to vector<16x8xf32>
    %393 = arith.addf %392, %391 : vector<16x8xf32>
    %394 = vector.extract_strided_slice %370 {offsets = [0, 4], sizes = [16, 4], strides = [1, 1]} : vector<16x24xf32> to vector<16x4xf32>
    %395 = vector.extract_strided_slice %370 {offsets = [0, 12], sizes = [16, 4], strides = [1, 1]} : vector<16x24xf32> to vector<16x4xf32>
    %396 = vector.extract_strided_slice %370 {offsets = [0, 20], sizes = [16, 4], strides = [1, 1]} : vector<16x24xf32> to vector<16x4xf32>
    %cst_203 = arith.constant dense<0.000000e+00> : vector<16x16xf32>
    %397 = tpu.matmul %394, %395, %cst_203 {dimension_numbers = #tpu.dot_dimension_numbers<[1], [1], [0], [0], [0, 0, 1, 0], [], []>} : vector<16x4xf32>, vector<16x4xf32>, vector<16x16xf32> -> vector<16x16xf32>
    %cst_204 = arith.constant 5.000000e-01 : f32
    %398 = vector.broadcast %cst_204 : f32 to vector<16x16xf32>
    %399 = arith.mulf %397, %398 : vector<16x16xf32>
    %cst_205 = arith.constant 0xFF800000 : f32
    %400 = vector.broadcast %cst_205 : f32 to vector<16x16xf32>
    %401 = arith.select %3, %399, %400 : vector<16x16xi1>, vector<16x16xf32>
    %cst_206 = arith.constant dense<0xFF800000> : vector<16xf32>
    %402 = vector.multi_reduction <maximumf>, %401, %cst_206 [1] : vector<16x16xf32> to vector<16xf32>
    %403 = vector.shape_cast %402 : vector<16xf32> to vector<16x1xf32>
    %404 = vector.broadcast %403 : vector<16x1xf32> to vector<16x16xf32>
    %405 = arith.subf %401, %404 : vector<16x16xf32>
    %406 = math.exp %405 : vector<16x16xf32>
    %cst_207 = arith.constant dense<0.000000e+00> : vector<16xf32>
    %407 = vector.multi_reduction <add>, %406, %cst_207 [1] : vector<16x16xf32> to vector<16xf32>
    %408 = vector.shape_cast %407 : vector<16xf32> to vector<16x1xf32>
    %409 = vector.broadcast %408 : vector<16x1xf32> to vector<16x16xf32>
    %410 = arith.divf %406, %409 : vector<16x16xf32>
    %cst_208 = arith.constant dense<0.000000e+00> : vector<16x4xf32>
    %411 = tpu.matmul %410, %396, %cst_208 {dimension_numbers = #tpu.dot_dimension_numbers<[1], [0], [0], [1], [0, 0, 1, 1], [], []>} : vector<16x16xf32>, vector<16x4xf32>, vector<16x4xf32> -> vector<16x4xf32>
    %c0_209 = arith.constant 0 : index
    %c472_210 = arith.constant 472 : index
    %412 = vector.load %arg8[%c0_209, %c472_210] : memref<40x544xf32, #tpu.memory_space<vmem>>, vector<4x8xf32>
    %cst_211 = arith.constant dense<0.000000e+00> : vector<16x8xf32>
    %413 = tpu.matmul %411, %412, %cst_211 {dimension_numbers = #tpu.dot_dimension_numbers<[1], [0], [0], [1], [0, 0, 1, 1], [], []>} : vector<16x4xf32>, vector<4x8xf32>, vector<16x8xf32> -> vector<16x8xf32>
    %414 = arith.addf %393, %413 : vector<16x8xf32>
    %c0_212 = arith.constant 0 : index
    %c480_213 = arith.constant 480 : index
    %415 = vector.load %arg8[%c0_212, %c480_213] : memref<40x544xf32, #tpu.memory_space<vmem>>, vector<8x24xf32>
    %cst_214 = arith.constant dense<0.000000e+00> : vector<16x24xf32>
    %416 = tpu.matmul %414, %415, %cst_214 {dimension_numbers = #tpu.dot_dimension_numbers<[1], [0], [0], [1], [0, 0, 1, 1], [], []>} : vector<16x8xf32>, vector<8x24xf32>, vector<16x24xf32> -> vector<16x24xf32>
    %c0_215 = arith.constant 0 : index
    %c504_216 = arith.constant 504 : index
    %417 = vector.load %arg8[%c0_215, %c504_216] : memref<40x544xf32, #tpu.memory_space<vmem>>, vector<5x24xf32>
    %cst_217 = arith.constant dense<0.000000e+00> : vector<16x24xf32>
    %418 = tpu.matmul %240, %417, %cst_217 {dimension_numbers = #tpu.dot_dimension_numbers<[1], [0], [0], [1], [0, 0, 1, 1], [], []>} : vector<16x5xf32>, vector<5x24xf32>, vector<16x24xf32> -> vector<16x24xf32>
    %419 = arith.addf %416, %418 : vector<16x24xf32>
    %c0_218 = arith.constant 0 : index
    %c336_219 = arith.constant 336 : index
    %420 = vector.load %arg9[%c0_218, %c336_219] : memref<1x368xf32, #tpu.memory_space<vmem>>, vector<1x24xf32>
    %421 = vector.broadcast %420 : vector<1x24xf32> to vector<16x24xf32>
    %422 = arith.addf %419, %421 : vector<16x24xf32>
    %c0_220 = arith.constant 0 : index
    %c360_221 = arith.constant 360 : index
    %423 = vector.load %arg9[%c0_220, %c360_221] : memref<1x368xf32, #tpu.memory_space<vmem>>, vector<1x8xf32>
    %424 = vector.extract_strided_slice %422 {offsets = [0, 0], sizes = [16, 4], strides = [1, 1]} : vector<16x24xf32> to vector<16x4xf32>
    %425 = vector.extract_strided_slice %422 {offsets = [0, 8], sizes = [16, 4], strides = [1, 1]} : vector<16x24xf32> to vector<16x4xf32>
    %426 = vector.extract_strided_slice %422 {offsets = [0, 16], sizes = [16, 4], strides = [1, 1]} : vector<16x24xf32> to vector<16x4xf32>
    %cst_222 = arith.constant dense<0.000000e+00> : vector<16x16xf32>
    %427 = tpu.matmul %424, %425, %cst_222 {dimension_numbers = #tpu.dot_dimension_numbers<[1], [1], [0], [0], [0, 0, 1, 0], [], []>} : vector<16x4xf32>, vector<16x4xf32>, vector<16x16xf32> -> vector<16x16xf32>
    %cst_223 = arith.constant 5.000000e-01 : f32
    %428 = vector.broadcast %cst_223 : f32 to vector<16x16xf32>
    %429 = arith.mulf %427, %428 : vector<16x16xf32>
    %cst_224 = arith.constant 0.000000e+00 : f32
    %430 = vector.broadcast %cst_224 : f32 to vector<16x16xf32>
    %431 = arith.cmpf oeq, %388, %430 : vector<16x16xf32>
    %cst_225 = arith.constant -9.000000e+15 : f32
    %432 = vector.broadcast %cst_225 : f32 to vector<16x16xf32>
    %433 = arith.select %431, %432, %429 : vector<16x16xi1>, vector<16x16xf32>
    %cst_226 = arith.constant 0xFF800000 : f32
    %434 = vector.broadcast %cst_226 : f32 to vector<16x16xf32>
    %435 = arith.select %3, %433, %434 : vector<16x16xi1>, vector<16x16xf32>
    %cst_227 = arith.constant dense<0xFF800000> : vector<16xf32>
    %436 = vector.multi_reduction <maximumf>, %435, %cst_227 [1] : vector<16x16xf32> to vector<16xf32>
    %437 = vector.shape_cast %436 : vector<16xf32> to vector<16x1xf32>
    %438 = vector.broadcast %437 : vector<16x1xf32> to vector<16x16xf32>
    %439 = arith.subf %435, %438 : vector<16x16xf32>
    %440 = math.exp %439 : vector<16x16xf32>
    %cst_228 = arith.constant dense<0.000000e+00> : vector<16xf32>
    %441 = vector.multi_reduction <add>, %440, %cst_228 [1] : vector<16x16xf32> to vector<16xf32>
    %442 = vector.shape_cast %441 : vector<16xf32> to vector<16x1xf32>
    %443 = vector.broadcast %442 : vector<16x1xf32> to vector<16x16xf32>
    %444 = arith.divf %440, %443 : vector<16x16xf32>
    %cst_229 = arith.constant dense<0.000000e+00> : vector<16x4xf32>
    %445 = tpu.matmul %444, %426, %cst_229 {dimension_numbers = #tpu.dot_dimension_numbers<[1], [0], [0], [1], [0, 0, 1, 1], [], []>} : vector<16x16xf32>, vector<16x4xf32>, vector<16x4xf32> -> vector<16x4xf32>
    %c0_230 = arith.constant 0 : index
    %c528_231 = arith.constant 528 : index
    %446 = vector.load %arg8[%c0_230, %c528_231] : memref<40x544xf32, #tpu.memory_space<vmem>>, vector<4x8xf32>
    %cst_232 = arith.constant dense<0.000000e+00> : vector<16x8xf32>
    %447 = tpu.matmul %445, %446, %cst_232 {dimension_numbers = #tpu.dot_dimension_numbers<[1], [0], [0], [1], [0, 0, 1, 1], [], []>} : vector<16x4xf32>, vector<4x8xf32>, vector<16x8xf32> -> vector<16x8xf32>
    %448 = vector.broadcast %423 : vector<1x8xf32> to vector<16x8xf32>
    %449 = arith.addf %448, %447 : vector<16x8xf32>
    %450 = vector.extract_strided_slice %422 {offsets = [0, 4], sizes = [16, 4], strides = [1, 1]} : vector<16x24xf32> to vector<16x4xf32>
    %451 = vector.extract_strided_slice %422 {offsets = [0, 12], sizes = [16, 4], strides = [1, 1]} : vector<16x24xf32> to vector<16x4xf32>
    %452 = vector.extract_strided_slice %422 {offsets = [0, 20], sizes = [16, 4], strides = [1, 1]} : vector<16x24xf32> to vector<16x4xf32>
    %cst_233 = arith.constant dense<0.000000e+00> : vector<16x16xf32>
    %453 = tpu.matmul %450, %451, %cst_233 {dimension_numbers = #tpu.dot_dimension_numbers<[1], [1], [0], [0], [0, 0, 1, 0], [], []>} : vector<16x4xf32>, vector<16x4xf32>, vector<16x16xf32> -> vector<16x16xf32>
    %cst_234 = arith.constant 5.000000e-01 : f32
    %454 = vector.broadcast %cst_234 : f32 to vector<16x16xf32>
    %455 = arith.mulf %453, %454 : vector<16x16xf32>
    %cst_235 = arith.constant 0.000000e+00 : f32
    %456 = vector.broadcast %cst_235 : f32 to vector<16x16xf32>
    %457 = arith.cmpf oeq, %410, %456 : vector<16x16xf32>
    %cst_236 = arith.constant -9.000000e+15 : f32
    %458 = vector.broadcast %cst_236 : f32 to vector<16x16xf32>
    %459 = arith.select %457, %458, %455 : vector<16x16xi1>, vector<16x16xf32>
    %cst_237 = arith.constant 0xFF800000 : f32
    %460 = vector.broadcast %cst_237 : f32 to vector<16x16xf32>
    %461 = arith.select %3, %459, %460 : vector<16x16xi1>, vector<16x16xf32>
    %cst_238 = arith.constant dense<0xFF800000> : vector<16xf32>
    %462 = vector.multi_reduction <maximumf>, %461, %cst_238 [1] : vector<16x16xf32> to vector<16xf32>
    %463 = vector.shape_cast %462 : vector<16xf32> to vector<16x1xf32>
    %464 = vector.broadcast %463 : vector<16x1xf32> to vector<16x16xf32>
    %465 = arith.subf %461, %464 : vector<16x16xf32>
    %466 = math.exp %465 : vector<16x16xf32>
    %cst_239 = arith.constant dense<0.000000e+00> : vector<16xf32>
    %467 = vector.multi_reduction <add>, %466, %cst_239 [1] : vector<16x16xf32> to vector<16xf32>
    %468 = vector.shape_cast %467 : vector<16xf32> to vector<16x1xf32>
    %469 = vector.broadcast %468 : vector<16x1xf32> to vector<16x16xf32>
    %470 = arith.divf %466, %469 : vector<16x16xf32>
    %cst_240 = arith.constant dense<0.000000e+00> : vector<16x4xf32>
    %471 = tpu.matmul %470, %452, %cst_240 {dimension_numbers = #tpu.dot_dimension_numbers<[1], [0], [0], [1], [0, 0, 1, 1], [], []>} : vector<16x16xf32>, vector<16x4xf32>, vector<16x4xf32> -> vector<16x4xf32>
    %c0_241 = arith.constant 0 : index
    %c536_242 = arith.constant 536 : index
    %472 = vector.load %arg8[%c0_241, %c536_242] : memref<40x544xf32, #tpu.memory_space<vmem>>, vector<4x8xf32>
    %cst_243 = arith.constant dense<0.000000e+00> : vector<16x8xf32>
    %473 = tpu.matmul %471, %472, %cst_243 {dimension_numbers = #tpu.dot_dimension_numbers<[1], [0], [0], [1], [0, 0, 1, 1], [], []>} : vector<16x4xf32>, vector<4x8xf32>, vector<16x8xf32> -> vector<16x8xf32>
    %474 = arith.addf %449, %473 : vector<16x8xf32>
    %cst_244 = arith.constant dense<0.000000e+00> : vector<2x8xf32>
    %475 = tpu.matmul %1, %474, %cst_244 {dimension_numbers = #tpu.dot_dimension_numbers<[1], [0], [0], [1], [0, 0, 1, 1], [], []>} : vector<2x16xf32>, vector<16x8xf32>, vector<2x8xf32> -> vector<2x8xf32>
    %c0_245 = arith.constant 0 : index
    %c0_246 = arith.constant 0 : index
    %476 = vector.load %arg3[%c0_245, %c0_246] : memref<16x4xf32, #tpu.memory_space<vmem>>, vector<16x4xf32>
    %c0_247 = arith.constant 0 : index
    %c0_248 = arith.constant 0 : index
    %477 = vector.load %arg10[%c0_247, %c0_248] : memref<40x544xf32, #tpu.memory_space<vmem>>, vector<4x48xf32>
    %cst_249 = arith.constant dense<0.000000e+00> : vector<16x48xf32>
    %478 = tpu.matmul %476, %477, %cst_249 {dimension_numbers = #tpu.dot_dimension_numbers<[1], [0], [0], [1], [0, 0, 1, 1], [], []>} : vector<16x4xf32>, vector<4x48xf32>, vector<16x48xf32> -> vector<16x48xf32>
    %479 = vector.extract_strided_slice %478 {offsets = [0, 0], sizes = [16, 24], strides = [1, 1]} : vector<16x48xf32> to vector<16x24xf32>
    %480 = vector.extract_strided_slice %478 {offsets = [0, 24], sizes = [16, 24], strides = [1, 1]} : vector<16x48xf32> to vector<16x24xf32>
    %cst_250 = arith.constant dense<0.000000e+00> : vector<16x24xf32>
    %481 = tpu.matmul %0, %480, %cst_250 {dimension_numbers = #tpu.dot_dimension_numbers<[1], [0], [0], [1], [0, 0, 1, 1], [], []>} : vector<16x16xf32>, vector<16x24xf32>, vector<16x24xf32> -> vector<16x24xf32>
    %482 = arith.subf %480, %481 : vector<16x24xf32>
    %c0_251 = arith.constant 0 : index
    %c0_252 = arith.constant 0 : index
    %483 = vector.load %arg11[%c0_251, %c0_252] : memref<1x368xf32, #tpu.memory_space<vmem>>, vector<1x24xf32>
    %484 = vector.broadcast %483 : vector<1x24xf32> to vector<16x24xf32>
    %485 = arith.addf %479, %484 : vector<16x24xf32>
    %cst_253 = arith.constant 0.000000e+00 : f32
    %486 = vector.broadcast %cst_253 : f32 to vector<16x24xf32>
    %487 = arith.maximumf %485, %486 : vector<16x24xf32>
    %c0_254 = arith.constant 0 : index
    %c24_255 = arith.constant 24 : index
    %488 = vector.load %arg11[%c0_254, %c24_255] : memref<1x368xf32, #tpu.memory_space<vmem>>, vector<1x24xf32>
    %489 = vector.broadcast %488 : vector<1x24xf32> to vector<16x24xf32>
    %490 = arith.addf %482, %489 : vector<16x24xf32>
    %cst_256 = arith.constant 0.000000e+00 : f32
    %491 = vector.broadcast %cst_256 : f32 to vector<16x24xf32>
    %492 = arith.maximumf %490, %491 : vector<16x24xf32>
    %c0_257 = arith.constant 0 : index
    %c48_258 = arith.constant 48 : index
    %493 = vector.load %arg10[%c0_257, %c48_258] : memref<40x544xf32, #tpu.memory_space<vmem>>, vector<24x32xf32>
    %cst_259 = arith.constant dense<0.000000e+00> : vector<16x32xf32>
    %494 = tpu.matmul %487, %493, %cst_259 {dimension_numbers = #tpu.dot_dimension_numbers<[1], [0], [0], [1], [0, 0, 1, 1], [], []>} : vector<16x24xf32>, vector<24x32xf32>, vector<16x32xf32> -> vector<16x32xf32>
    %c0_260 = arith.constant 0 : index
    %c48_261 = arith.constant 48 : index
    %495 = vector.load %arg11[%c0_260, %c48_261] : memref<1x368xf32, #tpu.memory_space<vmem>>, vector<1x32xf32>
    %496 = vector.broadcast %495 : vector<1x32xf32> to vector<16x32xf32>
    %497 = arith.addf %494, %496 : vector<16x32xf32>
    %498 = math.tanh %497 : vector<16x32xf32>
    %c0_262 = arith.constant 0 : index
    %c80_263 = arith.constant 80 : index
    %499 = vector.load %arg10[%c0_262, %c80_263] : memref<40x544xf32, #tpu.memory_space<vmem>>, vector<24x32xf32>
    %cst_264 = arith.constant dense<0.000000e+00> : vector<16x32xf32>
    %500 = tpu.matmul %492, %499, %cst_264 {dimension_numbers = #tpu.dot_dimension_numbers<[1], [0], [0], [1], [0, 0, 1, 1], [], []>} : vector<16x24xf32>, vector<24x32xf32>, vector<16x32xf32> -> vector<16x32xf32>
    %c0_265 = arith.constant 0 : index
    %c80_266 = arith.constant 80 : index
    %501 = vector.load %arg11[%c0_265, %c80_266] : memref<1x368xf32, #tpu.memory_space<vmem>>, vector<1x32xf32>
    %502 = vector.broadcast %501 : vector<1x32xf32> to vector<16x32xf32>
    %503 = arith.addf %500, %502 : vector<16x32xf32>
    %504 = math.tanh %503 : vector<16x32xf32>
    %505 = arith.addf %498, %504 : vector<16x32xf32>
    %506 = arith.mulf %505, %505 : vector<16x32xf32>
    %cst_267 = arith.constant dense<0.000000e+00> : vector<16xf32>
    %507 = vector.multi_reduction <add>, %506, %cst_267 [1] : vector<16x32xf32> to vector<16xf32>
    %508 = vector.shape_cast %507 : vector<16xf32> to vector<16x1xf32>
    %509 = math.sqrt %508 : vector<16x1xf32>
    %510 = vector.broadcast %509 : vector<16x1xf32> to vector<16x32xf32>
    %511 = arith.divf %505, %510 : vector<16x32xf32>
    %cst_268 = arith.constant 0.000000e+00 : f32
    %512 = vector.broadcast %cst_268 : f32 to vector<16x32xf32>
    %513 = arith.maximumf %511, %512 : vector<16x32xf32>
    %c0_269 = arith.constant 0 : index
    %c112_270 = arith.constant 112 : index
    %514 = vector.load %arg10[%c0_269, %c112_270] : memref<40x544xf32, #tpu.memory_space<vmem>>, vector<4x80xf32>
    %cst_271 = arith.constant dense<0.000000e+00> : vector<16x80xf32>
    %515 = tpu.matmul %476, %514, %cst_271 {dimension_numbers = #tpu.dot_dimension_numbers<[1], [0], [0], [1], [0, 0, 1, 1], [], []>} : vector<16x4xf32>, vector<4x80xf32>, vector<16x80xf32> -> vector<16x80xf32>
    %c0_272 = arith.constant 0 : index
    %c192_273 = arith.constant 192 : index
    %516 = vector.load %arg10[%c0_272, %c192_273] : memref<40x544xf32, #tpu.memory_space<vmem>>, vector<32x80xf32>
    %cst_274 = arith.constant dense<0.000000e+00> : vector<16x80xf32>
    %517 = tpu.matmul %513, %516, %cst_274 {dimension_numbers = #tpu.dot_dimension_numbers<[1], [0], [0], [1], [0, 0, 1, 1], [], []>} : vector<16x32xf32>, vector<32x80xf32>, vector<16x80xf32> -> vector<16x80xf32>
    %518 = arith.addf %515, %517 : vector<16x80xf32>
    %519 = vector.extract_strided_slice %518 {offsets = [0, 0], sizes = [16, 40], strides = [1, 1]} : vector<16x80xf32> to vector<16x40xf32>
    %520 = vector.extract_strided_slice %518 {offsets = [0, 40], sizes = [16, 40], strides = [1, 1]} : vector<16x80xf32> to vector<16x40xf32>
    %cst_275 = arith.constant dense<0.000000e+00> : vector<16x40xf32>
    %521 = tpu.matmul %0, %520, %cst_275 {dimension_numbers = #tpu.dot_dimension_numbers<[1], [0], [0], [1], [0, 0, 1, 1], [], []>} : vector<16x16xf32>, vector<16x40xf32>, vector<16x40xf32> -> vector<16x40xf32>
    %522 = arith.subf %520, %521 : vector<16x40xf32>
    %c0_276 = arith.constant 0 : index
    %c112_277 = arith.constant 112 : index
    %523 = vector.load %arg11[%c0_276, %c112_277] : memref<1x368xf32, #tpu.memory_space<vmem>>, vector<1x40xf32>
    %524 = vector.broadcast %523 : vector<1x40xf32> to vector<16x40xf32>
    %525 = arith.addf %519, %524 : vector<16x40xf32>
    %cst_278 = arith.constant 0.000000e+00 : f32
    %526 = vector.broadcast %cst_278 : f32 to vector<16x40xf32>
    %527 = arith.maximumf %525, %526 : vector<16x40xf32>
    %c0_279 = arith.constant 0 : index
    %c152_280 = arith.constant 152 : index
    %528 = vector.load %arg11[%c0_279, %c152_280] : memref<1x368xf32, #tpu.memory_space<vmem>>, vector<1x40xf32>
    %529 = vector.broadcast %528 : vector<1x40xf32> to vector<16x40xf32>
    %530 = arith.addf %522, %529 : vector<16x40xf32>
    %cst_281 = arith.constant 0.000000e+00 : f32
    %531 = vector.broadcast %cst_281 : f32 to vector<16x40xf32>
    %532 = arith.maximumf %530, %531 : vector<16x40xf32>
    %c0_282 = arith.constant 0 : index
    %c272_283 = arith.constant 272 : index
    %533 = vector.load %arg10[%c0_282, %c272_283] : memref<40x544xf32, #tpu.memory_space<vmem>>, vector<40x32xf32>
    %cst_284 = arith.constant dense<0.000000e+00> : vector<16x32xf32>
    %534 = tpu.matmul %527, %533, %cst_284 {dimension_numbers = #tpu.dot_dimension_numbers<[1], [0], [0], [1], [0, 0, 1, 1], [], []>} : vector<16x40xf32>, vector<40x32xf32>, vector<16x32xf32> -> vector<16x32xf32>
    %c0_285 = arith.constant 0 : index
    %c192_286 = arith.constant 192 : index
    %535 = vector.load %arg11[%c0_285, %c192_286] : memref<1x368xf32, #tpu.memory_space<vmem>>, vector<1x32xf32>
    %536 = vector.broadcast %535 : vector<1x32xf32> to vector<16x32xf32>
    %537 = arith.addf %534, %536 : vector<16x32xf32>
    %538 = math.tanh %537 : vector<16x32xf32>
    %c0_287 = arith.constant 0 : index
    %c304_288 = arith.constant 304 : index
    %539 = vector.load %arg10[%c0_287, %c304_288] : memref<40x544xf32, #tpu.memory_space<vmem>>, vector<40x32xf32>
    %cst_289 = arith.constant dense<0.000000e+00> : vector<16x32xf32>
    %540 = tpu.matmul %532, %539, %cst_289 {dimension_numbers = #tpu.dot_dimension_numbers<[1], [0], [0], [1], [0, 0, 1, 1], [], []>} : vector<16x40xf32>, vector<40x32xf32>, vector<16x32xf32> -> vector<16x32xf32>
    %c0_290 = arith.constant 0 : index
    %c224_291 = arith.constant 224 : index
    %541 = vector.load %arg11[%c0_290, %c224_291] : memref<1x368xf32, #tpu.memory_space<vmem>>, vector<1x32xf32>
    %542 = vector.broadcast %541 : vector<1x32xf32> to vector<16x32xf32>
    %543 = arith.addf %540, %542 : vector<16x32xf32>
    %544 = math.tanh %543 : vector<16x32xf32>
    %545 = arith.addf %538, %544 : vector<16x32xf32>
    %546 = arith.mulf %545, %545 : vector<16x32xf32>
    %cst_292 = arith.constant dense<0.000000e+00> : vector<16xf32>
    %547 = vector.multi_reduction <add>, %546, %cst_292 [1] : vector<16x32xf32> to vector<16xf32>
    %548 = vector.shape_cast %547 : vector<16xf32> to vector<16x1xf32>
    %549 = math.sqrt %548 : vector<16x1xf32>
    %550 = vector.broadcast %549 : vector<16x1xf32> to vector<16x32xf32>
    %551 = arith.divf %545, %550 : vector<16x32xf32>
    %552 = vector.extract_strided_slice %551 {offsets = [0, 0], sizes = [16, 8], strides = [1, 1]} : vector<16x32xf32> to vector<16x8xf32>
    %553 = vector.extract_strided_slice %551 {offsets = [0, 8], sizes = [16, 8], strides = [1, 1]} : vector<16x32xf32> to vector<16x8xf32>
    %554 = arith.maximumf %552, %553 : vector<16x8xf32>
    %555 = vector.extract_strided_slice %551 {offsets = [0, 16], sizes = [16, 8], strides = [1, 1]} : vector<16x32xf32> to vector<16x8xf32>
    %556 = vector.extract_strided_slice %551 {offsets = [0, 24], sizes = [16, 8], strides = [1, 1]} : vector<16x32xf32> to vector<16x8xf32>
    %557 = arith.maximumf %555, %556 : vector<16x8xf32>
    %558 = arith.maximumf %554, %557 : vector<16x8xf32>
    %cst_293 = arith.constant 0.000000e+00 : f32
    %559 = vector.broadcast %cst_293 : f32 to vector<16x8xf32>
    %560 = arith.maximumf %558, %559 : vector<16x8xf32>
    %c0_294 = arith.constant 0 : index
    %c336_295 = arith.constant 336 : index
    %561 = vector.load %arg10[%c0_294, %c336_295] : memref<40x544xf32, #tpu.memory_space<vmem>>, vector<4x32xf32>
    %cst_296 = arith.constant dense<0.000000e+00> : vector<16x32xf32>
    %562 = tpu.matmul %476, %561, %cst_296 {dimension_numbers = #tpu.dot_dimension_numbers<[1], [0], [0], [1], [0, 0, 1, 1], [], []>} : vector<16x4xf32>, vector<4x32xf32>, vector<16x32xf32> -> vector<16x32xf32>
    %c0_297 = arith.constant 0 : index
    %c368_298 = arith.constant 368 : index
    %563 = vector.load %arg10[%c0_297, %c368_298] : memref<40x544xf32, #tpu.memory_space<vmem>>, vector<8x32xf32>
    %cst_299 = arith.constant dense<0.000000e+00> : vector<16x32xf32>
    %564 = tpu.matmul %560, %563, %cst_299 {dimension_numbers = #tpu.dot_dimension_numbers<[1], [0], [0], [1], [0, 0, 1, 1], [], []>} : vector<16x8xf32>, vector<8x32xf32>, vector<16x32xf32> -> vector<16x32xf32>
    %565 = arith.addf %562, %564 : vector<16x32xf32>
    %566 = vector.extract_strided_slice %565 {offsets = [0, 0], sizes = [16, 16], strides = [1, 1]} : vector<16x32xf32> to vector<16x16xf32>
    %567 = vector.extract_strided_slice %565 {offsets = [0, 16], sizes = [16, 16], strides = [1, 1]} : vector<16x32xf32> to vector<16x16xf32>
    %cst_300 = arith.constant dense<0.000000e+00> : vector<16x16xf32>
    %568 = tpu.matmul %0, %567, %cst_300 {dimension_numbers = #tpu.dot_dimension_numbers<[1], [0], [0], [1], [0, 0, 1, 1], [], []>} : vector<16x16xf32>, vector<16x16xf32>, vector<16x16xf32> -> vector<16x16xf32>
    %569 = arith.subf %567, %568 : vector<16x16xf32>
    %c0_301 = arith.constant 0 : index
    %c256_302 = arith.constant 256 : index
    %570 = vector.load %arg11[%c0_301, %c256_302] : memref<1x368xf32, #tpu.memory_space<vmem>>, vector<1x16xf32>
    %571 = vector.broadcast %570 : vector<1x16xf32> to vector<16x16xf32>
    %572 = arith.addf %566, %571 : vector<16x16xf32>
    %cst_303 = arith.constant 0.000000e+00 : f32
    %573 = vector.broadcast %cst_303 : f32 to vector<16x16xf32>
    %574 = arith.maximumf %572, %573 : vector<16x16xf32>
    %c0_304 = arith.constant 0 : index
    %c272_305 = arith.constant 272 : index
    %575 = vector.load %arg11[%c0_304, %c272_305] : memref<1x368xf32, #tpu.memory_space<vmem>>, vector<1x16xf32>
    %576 = vector.broadcast %575 : vector<1x16xf32> to vector<16x16xf32>
    %577 = arith.addf %569, %576 : vector<16x16xf32>
    %cst_306 = arith.constant 0.000000e+00 : f32
    %578 = vector.broadcast %cst_306 : f32 to vector<16x16xf32>
    %579 = arith.maximumf %577, %578 : vector<16x16xf32>
    %c0_307 = arith.constant 0 : index
    %c400_308 = arith.constant 400 : index
    %580 = vector.load %arg10[%c0_307, %c400_308] : memref<40x544xf32, #tpu.memory_space<vmem>>, vector<16x8xf32>
    %cst_309 = arith.constant dense<0.000000e+00> : vector<16x8xf32>
    %581 = tpu.matmul %574, %580, %cst_309 {dimension_numbers = #tpu.dot_dimension_numbers<[1], [0], [0], [1], [0, 0, 1, 1], [], []>} : vector<16x16xf32>, vector<16x8xf32>, vector<16x8xf32> -> vector<16x8xf32>
    %c0_310 = arith.constant 0 : index
    %c288_311 = arith.constant 288 : index
    %582 = vector.load %arg11[%c0_310, %c288_311] : memref<1x368xf32, #tpu.memory_space<vmem>>, vector<1x8xf32>
    %583 = vector.broadcast %582 : vector<1x8xf32> to vector<16x8xf32>
    %584 = arith.addf %581, %583 : vector<16x8xf32>
    %585 = math.tanh %584 : vector<16x8xf32>
    %c0_312 = arith.constant 0 : index
    %c408_313 = arith.constant 408 : index
    %586 = vector.load %arg10[%c0_312, %c408_313] : memref<40x544xf32, #tpu.memory_space<vmem>>, vector<16x8xf32>
    %cst_314 = arith.constant dense<0.000000e+00> : vector<16x8xf32>
    %587 = tpu.matmul %579, %586, %cst_314 {dimension_numbers = #tpu.dot_dimension_numbers<[1], [0], [0], [1], [0, 0, 1, 1], [], []>} : vector<16x16xf32>, vector<16x8xf32>, vector<16x8xf32> -> vector<16x8xf32>
    %c0_315 = arith.constant 0 : index
    %c296_316 = arith.constant 296 : index
    %588 = vector.load %arg11[%c0_315, %c296_316] : memref<1x368xf32, #tpu.memory_space<vmem>>, vector<1x8xf32>
    %589 = vector.broadcast %588 : vector<1x8xf32> to vector<16x8xf32>
    %590 = arith.addf %587, %589 : vector<16x8xf32>
    %591 = math.tanh %590 : vector<16x8xf32>
    %592 = arith.addf %585, %591 : vector<16x8xf32>
    %593 = arith.mulf %592, %592 : vector<16x8xf32>
    %cst_317 = arith.constant dense<0.000000e+00> : vector<16xf32>
    %594 = vector.multi_reduction <add>, %593, %cst_317 [1] : vector<16x8xf32> to vector<16xf32>
    %595 = vector.shape_cast %594 : vector<16xf32> to vector<16x1xf32>
    %596 = math.sqrt %595 : vector<16x1xf32>
    %597 = vector.broadcast %596 : vector<16x1xf32> to vector<16x8xf32>
    %598 = arith.divf %592, %597 : vector<16x8xf32>
    %c0_318 = arith.constant 0 : index
    %c416_319 = arith.constant 416 : index
    %599 = vector.load %arg10[%c0_318, %c416_319] : memref<40x544xf32, #tpu.memory_space<vmem>>, vector<8x24xf32>
    %cst_320 = arith.constant dense<0.000000e+00> : vector<16x24xf32>
    %600 = tpu.matmul %598, %599, %cst_320 {dimension_numbers = #tpu.dot_dimension_numbers<[1], [0], [0], [1], [0, 0, 1, 1], [], []>} : vector<16x8xf32>, vector<8x24xf32>, vector<16x24xf32> -> vector<16x24xf32>
    %c0_321 = arith.constant 0 : index
    %c440_322 = arith.constant 440 : index
    %601 = vector.load %arg10[%c0_321, %c440_322] : memref<40x544xf32, #tpu.memory_space<vmem>>, vector<4x24xf32>
    %cst_323 = arith.constant dense<0.000000e+00> : vector<16x24xf32>
    %602 = tpu.matmul %476, %601, %cst_323 {dimension_numbers = #tpu.dot_dimension_numbers<[1], [0], [0], [1], [0, 0, 1, 1], [], []>} : vector<16x4xf32>, vector<4x24xf32>, vector<16x24xf32> -> vector<16x24xf32>
    %603 = arith.addf %600, %602 : vector<16x24xf32>
    %c0_324 = arith.constant 0 : index
    %c304_325 = arith.constant 304 : index
    %604 = vector.load %arg11[%c0_324, %c304_325] : memref<1x368xf32, #tpu.memory_space<vmem>>, vector<1x24xf32>
    %605 = vector.broadcast %604 : vector<1x24xf32> to vector<16x24xf32>
    %606 = arith.addf %603, %605 : vector<16x24xf32>
    %c0_326 = arith.constant 0 : index
    %c328_327 = arith.constant 328 : index
    %607 = vector.load %arg11[%c0_326, %c328_327] : memref<1x368xf32, #tpu.memory_space<vmem>>, vector<1x8xf32>
    %608 = vector.extract_strided_slice %606 {offsets = [0, 0], sizes = [16, 4], strides = [1, 1]} : vector<16x24xf32> to vector<16x4xf32>
    %609 = vector.extract_strided_slice %606 {offsets = [0, 8], sizes = [16, 4], strides = [1, 1]} : vector<16x24xf32> to vector<16x4xf32>
    %610 = vector.extract_strided_slice %606 {offsets = [0, 16], sizes = [16, 4], strides = [1, 1]} : vector<16x24xf32> to vector<16x4xf32>
    %cst_328 = arith.constant dense<0.000000e+00> : vector<16x16xf32>
    %611 = tpu.matmul %608, %609, %cst_328 {dimension_numbers = #tpu.dot_dimension_numbers<[1], [1], [0], [0], [0, 0, 1, 0], [], []>} : vector<16x4xf32>, vector<16x4xf32>, vector<16x16xf32> -> vector<16x16xf32>
    %cst_329 = arith.constant 5.000000e-01 : f32
    %612 = vector.broadcast %cst_329 : f32 to vector<16x16xf32>
    %613 = arith.mulf %611, %612 : vector<16x16xf32>
    %cst_330 = arith.constant 0xFF800000 : f32
    %614 = vector.broadcast %cst_330 : f32 to vector<16x16xf32>
    %615 = arith.select %3, %613, %614 : vector<16x16xi1>, vector<16x16xf32>
    %cst_331 = arith.constant dense<0xFF800000> : vector<16xf32>
    %616 = vector.multi_reduction <maximumf>, %615, %cst_331 [1] : vector<16x16xf32> to vector<16xf32>
    %617 = vector.shape_cast %616 : vector<16xf32> to vector<16x1xf32>
    %618 = vector.broadcast %617 : vector<16x1xf32> to vector<16x16xf32>
    %619 = arith.subf %615, %618 : vector<16x16xf32>
    %620 = math.exp %619 : vector<16x16xf32>
    %cst_332 = arith.constant dense<0.000000e+00> : vector<16xf32>
    %621 = vector.multi_reduction <add>, %620, %cst_332 [1] : vector<16x16xf32> to vector<16xf32>
    %622 = vector.shape_cast %621 : vector<16xf32> to vector<16x1xf32>
    %623 = vector.broadcast %622 : vector<16x1xf32> to vector<16x16xf32>
    %624 = arith.divf %620, %623 : vector<16x16xf32>
    %cst_333 = arith.constant dense<0.000000e+00> : vector<16x4xf32>
    %625 = tpu.matmul %624, %610, %cst_333 {dimension_numbers = #tpu.dot_dimension_numbers<[1], [0], [0], [1], [0, 0, 1, 1], [], []>} : vector<16x16xf32>, vector<16x4xf32>, vector<16x4xf32> -> vector<16x4xf32>
    %c0_334 = arith.constant 0 : index
    %c464_335 = arith.constant 464 : index
    %626 = vector.load %arg10[%c0_334, %c464_335] : memref<40x544xf32, #tpu.memory_space<vmem>>, vector<4x8xf32>
    %cst_336 = arith.constant dense<0.000000e+00> : vector<16x8xf32>
    %627 = tpu.matmul %625, %626, %cst_336 {dimension_numbers = #tpu.dot_dimension_numbers<[1], [0], [0], [1], [0, 0, 1, 1], [], []>} : vector<16x4xf32>, vector<4x8xf32>, vector<16x8xf32> -> vector<16x8xf32>
    %628 = vector.broadcast %607 : vector<1x8xf32> to vector<16x8xf32>
    %629 = arith.addf %628, %627 : vector<16x8xf32>
    %630 = vector.extract_strided_slice %606 {offsets = [0, 4], sizes = [16, 4], strides = [1, 1]} : vector<16x24xf32> to vector<16x4xf32>
    %631 = vector.extract_strided_slice %606 {offsets = [0, 12], sizes = [16, 4], strides = [1, 1]} : vector<16x24xf32> to vector<16x4xf32>
    %632 = vector.extract_strided_slice %606 {offsets = [0, 20], sizes = [16, 4], strides = [1, 1]} : vector<16x24xf32> to vector<16x4xf32>
    %cst_337 = arith.constant dense<0.000000e+00> : vector<16x16xf32>
    %633 = tpu.matmul %630, %631, %cst_337 {dimension_numbers = #tpu.dot_dimension_numbers<[1], [1], [0], [0], [0, 0, 1, 0], [], []>} : vector<16x4xf32>, vector<16x4xf32>, vector<16x16xf32> -> vector<16x16xf32>
    %cst_338 = arith.constant 5.000000e-01 : f32
    %634 = vector.broadcast %cst_338 : f32 to vector<16x16xf32>
    %635 = arith.mulf %633, %634 : vector<16x16xf32>
    %cst_339 = arith.constant 0xFF800000 : f32
    %636 = vector.broadcast %cst_339 : f32 to vector<16x16xf32>
    %637 = arith.select %3, %635, %636 : vector<16x16xi1>, vector<16x16xf32>
    %cst_340 = arith.constant dense<0xFF800000> : vector<16xf32>
    %638 = vector.multi_reduction <maximumf>, %637, %cst_340 [1] : vector<16x16xf32> to vector<16xf32>
    %639 = vector.shape_cast %638 : vector<16xf32> to vector<16x1xf32>
    %640 = vector.broadcast %639 : vector<16x1xf32> to vector<16x16xf32>
    %641 = arith.subf %637, %640 : vector<16x16xf32>
    %642 = math.exp %641 : vector<16x16xf32>
    %cst_341 = arith.constant dense<0.000000e+00> : vector<16xf32>
    %643 = vector.multi_reduction <add>, %642, %cst_341 [1] : vector<16x16xf32> to vector<16xf32>
    %644 = vector.shape_cast %643 : vector<16xf32> to vector<16x1xf32>
    %645 = vector.broadcast %644 : vector<16x1xf32> to vector<16x16xf32>
    %646 = arith.divf %642, %645 : vector<16x16xf32>
    %cst_342 = arith.constant dense<0.000000e+00> : vector<16x4xf32>
    %647 = tpu.matmul %646, %632, %cst_342 {dimension_numbers = #tpu.dot_dimension_numbers<[1], [0], [0], [1], [0, 0, 1, 1], [], []>} : vector<16x16xf32>, vector<16x4xf32>, vector<16x4xf32> -> vector<16x4xf32>
    %c0_343 = arith.constant 0 : index
    %c472_344 = arith.constant 472 : index
    %648 = vector.load %arg10[%c0_343, %c472_344] : memref<40x544xf32, #tpu.memory_space<vmem>>, vector<4x8xf32>
    %cst_345 = arith.constant dense<0.000000e+00> : vector<16x8xf32>
    %649 = tpu.matmul %647, %648, %cst_345 {dimension_numbers = #tpu.dot_dimension_numbers<[1], [0], [0], [1], [0, 0, 1, 1], [], []>} : vector<16x4xf32>, vector<4x8xf32>, vector<16x8xf32> -> vector<16x8xf32>
    %650 = arith.addf %629, %649 : vector<16x8xf32>
    %c0_346 = arith.constant 0 : index
    %c480_347 = arith.constant 480 : index
    %651 = vector.load %arg10[%c0_346, %c480_347] : memref<40x544xf32, #tpu.memory_space<vmem>>, vector<8x24xf32>
    %cst_348 = arith.constant dense<0.000000e+00> : vector<16x24xf32>
    %652 = tpu.matmul %650, %651, %cst_348 {dimension_numbers = #tpu.dot_dimension_numbers<[1], [0], [0], [1], [0, 0, 1, 1], [], []>} : vector<16x8xf32>, vector<8x24xf32>, vector<16x24xf32> -> vector<16x24xf32>
    %c0_349 = arith.constant 0 : index
    %c504_350 = arith.constant 504 : index
    %653 = vector.load %arg10[%c0_349, %c504_350] : memref<40x544xf32, #tpu.memory_space<vmem>>, vector<4x24xf32>
    %cst_351 = arith.constant dense<0.000000e+00> : vector<16x24xf32>
    %654 = tpu.matmul %476, %653, %cst_351 {dimension_numbers = #tpu.dot_dimension_numbers<[1], [0], [0], [1], [0, 0, 1, 1], [], []>} : vector<16x4xf32>, vector<4x24xf32>, vector<16x24xf32> -> vector<16x24xf32>
    %655 = arith.addf %652, %654 : vector<16x24xf32>
    %c0_352 = arith.constant 0 : index
    %c336_353 = arith.constant 336 : index
    %656 = vector.load %arg11[%c0_352, %c336_353] : memref<1x368xf32, #tpu.memory_space<vmem>>, vector<1x24xf32>
    %657 = vector.broadcast %656 : vector<1x24xf32> to vector<16x24xf32>
    %658 = arith.addf %655, %657 : vector<16x24xf32>
    %c0_354 = arith.constant 0 : index
    %c360_355 = arith.constant 360 : index
    %659 = vector.load %arg11[%c0_354, %c360_355] : memref<1x368xf32, #tpu.memory_space<vmem>>, vector<1x8xf32>
    %660 = vector.extract_strided_slice %658 {offsets = [0, 0], sizes = [16, 4], strides = [1, 1]} : vector<16x24xf32> to vector<16x4xf32>
    %661 = vector.extract_strided_slice %658 {offsets = [0, 8], sizes = [16, 4], strides = [1, 1]} : vector<16x24xf32> to vector<16x4xf32>
    %662 = vector.extract_strided_slice %658 {offsets = [0, 16], sizes = [16, 4], strides = [1, 1]} : vector<16x24xf32> to vector<16x4xf32>
    %cst_356 = arith.constant dense<0.000000e+00> : vector<16x16xf32>
    %663 = tpu.matmul %660, %661, %cst_356 {dimension_numbers = #tpu.dot_dimension_numbers<[1], [1], [0], [0], [0, 0, 1, 0], [], []>} : vector<16x4xf32>, vector<16x4xf32>, vector<16x16xf32> -> vector<16x16xf32>
    %cst_357 = arith.constant 5.000000e-01 : f32
    %664 = vector.broadcast %cst_357 : f32 to vector<16x16xf32>
    %665 = arith.mulf %663, %664 : vector<16x16xf32>
    %cst_358 = arith.constant 0.000000e+00 : f32
    %666 = vector.broadcast %cst_358 : f32 to vector<16x16xf32>
    %667 = arith.cmpf oeq, %624, %666 : vector<16x16xf32>
    %cst_359 = arith.constant -9.000000e+15 : f32
    %668 = vector.broadcast %cst_359 : f32 to vector<16x16xf32>
    %669 = arith.select %667, %668, %665 : vector<16x16xi1>, vector<16x16xf32>
    %cst_360 = arith.constant 0xFF800000 : f32
    %670 = vector.broadcast %cst_360 : f32 to vector<16x16xf32>
    %671 = arith.select %3, %669, %670 : vector<16x16xi1>, vector<16x16xf32>
    %cst_361 = arith.constant dense<0xFF800000> : vector<16xf32>
    %672 = vector.multi_reduction <maximumf>, %671, %cst_361 [1] : vector<16x16xf32> to vector<16xf32>
    %673 = vector.shape_cast %672 : vector<16xf32> to vector<16x1xf32>
    %674 = vector.broadcast %673 : vector<16x1xf32> to vector<16x16xf32>
    %675 = arith.subf %671, %674 : vector<16x16xf32>
    %676 = math.exp %675 : vector<16x16xf32>
    %cst_362 = arith.constant dense<0.000000e+00> : vector<16xf32>
    %677 = vector.multi_reduction <add>, %676, %cst_362 [1] : vector<16x16xf32> to vector<16xf32>
    %678 = vector.shape_cast %677 : vector<16xf32> to vector<16x1xf32>
    %679 = vector.broadcast %678 : vector<16x1xf32> to vector<16x16xf32>
    %680 = arith.divf %676, %679 : vector<16x16xf32>
    %cst_363 = arith.constant dense<0.000000e+00> : vector<16x4xf32>
    %681 = tpu.matmul %680, %662, %cst_363 {dimension_numbers = #tpu.dot_dimension_numbers<[1], [0], [0], [1], [0, 0, 1, 1], [], []>} : vector<16x16xf32>, vector<16x4xf32>, vector<16x4xf32> -> vector<16x4xf32>
    %c0_364 = arith.constant 0 : index
    %c528_365 = arith.constant 528 : index
    %682 = vector.load %arg10[%c0_364, %c528_365] : memref<40x544xf32, #tpu.memory_space<vmem>>, vector<4x8xf32>
    %cst_366 = arith.constant dense<0.000000e+00> : vector<16x8xf32>
    %683 = tpu.matmul %681, %682, %cst_366 {dimension_numbers = #tpu.dot_dimension_numbers<[1], [0], [0], [1], [0, 0, 1, 1], [], []>} : vector<16x4xf32>, vector<4x8xf32>, vector<16x8xf32> -> vector<16x8xf32>
    %684 = vector.broadcast %659 : vector<1x8xf32> to vector<16x8xf32>
    %685 = arith.addf %684, %683 : vector<16x8xf32>
    %686 = vector.extract_strided_slice %658 {offsets = [0, 4], sizes = [16, 4], strides = [1, 1]} : vector<16x24xf32> to vector<16x4xf32>
    %687 = vector.extract_strided_slice %658 {offsets = [0, 12], sizes = [16, 4], strides = [1, 1]} : vector<16x24xf32> to vector<16x4xf32>
    %688 = vector.extract_strided_slice %658 {offsets = [0, 20], sizes = [16, 4], strides = [1, 1]} : vector<16x24xf32> to vector<16x4xf32>
    %cst_367 = arith.constant dense<0.000000e+00> : vector<16x16xf32>
    %689 = tpu.matmul %686, %687, %cst_367 {dimension_numbers = #tpu.dot_dimension_numbers<[1], [1], [0], [0], [0, 0, 1, 0], [], []>} : vector<16x4xf32>, vector<16x4xf32>, vector<16x16xf32> -> vector<16x16xf32>
    %cst_368 = arith.constant 5.000000e-01 : f32
    %690 = vector.broadcast %cst_368 : f32 to vector<16x16xf32>
    %691 = arith.mulf %689, %690 : vector<16x16xf32>
    %cst_369 = arith.constant 0.000000e+00 : f32
    %692 = vector.broadcast %cst_369 : f32 to vector<16x16xf32>
    %693 = arith.cmpf oeq, %646, %692 : vector<16x16xf32>
    %cst_370 = arith.constant -9.000000e+15 : f32
    %694 = vector.broadcast %cst_370 : f32 to vector<16x16xf32>
    %695 = arith.select %693, %694, %691 : vector<16x16xi1>, vector<16x16xf32>
    %cst_371 = arith.constant 0xFF800000 : f32
    %696 = vector.broadcast %cst_371 : f32 to vector<16x16xf32>
    %697 = arith.select %3, %695, %696 : vector<16x16xi1>, vector<16x16xf32>
    %cst_372 = arith.constant dense<0xFF800000> : vector<16xf32>
    %698 = vector.multi_reduction <maximumf>, %697, %cst_372 [1] : vector<16x16xf32> to vector<16xf32>
    %699 = vector.shape_cast %698 : vector<16xf32> to vector<16x1xf32>
    %700 = vector.broadcast %699 : vector<16x1xf32> to vector<16x16xf32>
    %701 = arith.subf %697, %700 : vector<16x16xf32>
    %702 = math.exp %701 : vector<16x16xf32>
    %cst_373 = arith.constant dense<0.000000e+00> : vector<16xf32>
    %703 = vector.multi_reduction <add>, %702, %cst_373 [1] : vector<16x16xf32> to vector<16xf32>
    %704 = vector.shape_cast %703 : vector<16xf32> to vector<16x1xf32>
    %705 = vector.broadcast %704 : vector<16x1xf32> to vector<16x16xf32>
    %706 = arith.divf %702, %705 : vector<16x16xf32>
    %cst_374 = arith.constant dense<0.000000e+00> : vector<16x4xf32>
    %707 = tpu.matmul %706, %688, %cst_374 {dimension_numbers = #tpu.dot_dimension_numbers<[1], [0], [0], [1], [0, 0, 1, 1], [], []>} : vector<16x16xf32>, vector<16x4xf32>, vector<16x4xf32> -> vector<16x4xf32>
    %c0_375 = arith.constant 0 : index
    %c536_376 = arith.constant 536 : index
    %708 = vector.load %arg10[%c0_375, %c536_376] : memref<40x544xf32, #tpu.memory_space<vmem>>, vector<4x8xf32>
    %cst_377 = arith.constant dense<0.000000e+00> : vector<16x8xf32>
    %709 = tpu.matmul %707, %708, %cst_377 {dimension_numbers = #tpu.dot_dimension_numbers<[1], [0], [0], [1], [0, 0, 1, 1], [], []>} : vector<16x4xf32>, vector<4x8xf32>, vector<16x8xf32> -> vector<16x8xf32>
    %710 = arith.addf %685, %709 : vector<16x8xf32>
    %cst_378 = arith.constant dense<0.000000e+00> : vector<2x8xf32>
    %711 = tpu.matmul %1, %710, %cst_378 {dimension_numbers = #tpu.dot_dimension_numbers<[1], [0], [0], [1], [0, 0, 1, 1], [], []>} : vector<2x16xf32>, vector<16x8xf32>, vector<2x8xf32> -> vector<2x8xf32>
    %c0_379 = arith.constant 0 : index
    %c0_380 = arith.constant 0 : index
    %712 = vector.load %arg13[%c0_379, %c0_380] : memref<1x24xf32, #tpu.memory_space<vmem>>, vector<1x16xf32>
    %c0_381 = arith.constant 0 : index
    %c0_382 = arith.constant 0 : index
    %713 = vector.load %arg12[%c0_381, %c0_382] : memref<16x56xf32, #tpu.memory_space<vmem>>, vector<8x16xf32>
    %cst_383 = arith.constant dense<0.000000e+00> : vector<2x16xf32>
    %714 = tpu.matmul %239, %713, %cst_383 {dimension_numbers = #tpu.dot_dimension_numbers<[1], [0], [0], [1], [0, 0, 1, 1], [], []>} : vector<2x8xf32>, vector<8x16xf32>, vector<2x16xf32> -> vector<2x16xf32>
    %715 = vector.broadcast %712 : vector<1x16xf32> to vector<2x16xf32>
    %716 = arith.addf %715, %714 : vector<2x16xf32>
    %c0_384 = arith.constant 0 : index
    %c16 = arith.constant 16 : index
    %717 = vector.load %arg12[%c0_384, %c16] : memref<16x56xf32, #tpu.memory_space<vmem>>, vector<8x16xf32>
    %cst_385 = arith.constant dense<0.000000e+00> : vector<2x16xf32>
    %718 = tpu.matmul %475, %717, %cst_385 {dimension_numbers = #tpu.dot_dimension_numbers<[1], [0], [0], [1], [0, 0, 1, 1], [], []>} : vector<2x8xf32>, vector<8x16xf32>, vector<2x16xf32> -> vector<2x16xf32>
    %719 = arith.addf %716, %718 : vector<2x16xf32>
    %c0_386 = arith.constant 0 : index
    %c32 = arith.constant 32 : index
    %720 = vector.load %arg12[%c0_386, %c32] : memref<16x56xf32, #tpu.memory_space<vmem>>, vector<8x16xf32>
    %cst_387 = arith.constant dense<0.000000e+00> : vector<2x16xf32>
    %721 = tpu.matmul %711, %720, %cst_387 {dimension_numbers = #tpu.dot_dimension_numbers<[1], [0], [0], [1], [0, 0, 1, 1], [], []>} : vector<2x8xf32>, vector<8x16xf32>, vector<2x16xf32> -> vector<2x16xf32>
    %722 = arith.addf %719, %721 : vector<2x16xf32>
    %cst_388 = arith.constant dense<0.000000e+00> : vector<16xf32>
    %723 = vector.multi_reduction <add>, %722, %cst_388 [0] : vector<2x16xf32> to vector<16xf32>
    %724 = vector.shape_cast %723 : vector<16xf32> to vector<1x16xf32>
    %cst_389 = arith.constant 2.000000e+00 : f32
    %725 = vector.broadcast %cst_389 : f32 to vector<1x16xf32>
    %726 = arith.divf %724, %725 : vector<1x16xf32>
    %727 = vector.broadcast %726 : vector<1x16xf32> to vector<2x16xf32>
    %728 = arith.subf %722, %727 : vector<2x16xf32>
    %729 = arith.mulf %728, %728 : vector<2x16xf32>
    %cst_390 = arith.constant dense<0.000000e+00> : vector<16xf32>
    %730 = vector.multi_reduction <add>, %729, %cst_390 [0] : vector<2x16xf32> to vector<16xf32>
    %731 = vector.shape_cast %730 : vector<16xf32> to vector<1x16xf32>
    %cst_391 = arith.constant 2.000000e+00 : f32
    %732 = vector.broadcast %cst_391 : f32 to vector<1x16xf32>
    %733 = arith.divf %731, %732 : vector<1x16xf32>
    %734 = vector.broadcast %726 : vector<1x16xf32> to vector<2x16xf32>
    %735 = arith.subf %722, %734 : vector<2x16xf32>
    %cst_392 = arith.constant 9.99999974E-6 : f32
    %736 = vector.broadcast %cst_392 : f32 to vector<1x16xf32>
    %737 = arith.addf %733, %736 : vector<1x16xf32>
    %738 = math.rsqrt %737 : vector<1x16xf32>
    %739 = vector.broadcast %738 : vector<1x16xf32> to vector<2x16xf32>
    %740 = arith.mulf %735, %739 : vector<2x16xf32>
    %cst_393 = arith.constant 0.000000e+00 : f32
    %741 = vector.broadcast %cst_393 : f32 to vector<2x16xf32>
    %742 = arith.maximumf %740, %741 : vector<2x16xf32>
    %c0_394 = arith.constant 0 : index
    %c48_395 = arith.constant 48 : index
    %743 = vector.load %arg12[%c0_394, %c48_395] : memref<16x56xf32, #tpu.memory_space<vmem>>, vector<16x4xf32>
    %cst_396 = arith.constant dense<0.000000e+00> : vector<2x4xf32>
    %744 = tpu.matmul %742, %743, %cst_396 {dimension_numbers = #tpu.dot_dimension_numbers<[1], [0], [0], [1], [0, 0, 1, 1], [], []>} : vector<2x16xf32>, vector<16x4xf32>, vector<2x4xf32> -> vector<2x4xf32>
    %c0_397 = arith.constant 0 : index
    %c16_398 = arith.constant 16 : index
    %745 = vector.load %arg13[%c0_397, %c16_398] : memref<1x24xf32, #tpu.memory_space<vmem>>, vector<1x4xf32>
    %746 = vector.broadcast %745 : vector<1x4xf32> to vector<2x4xf32>
    %747 = arith.addf %744, %746 : vector<2x4xf32>
    %cst_399 = arith.constant dense<0.000000e+00> : vector<4xf32>
    %748 = vector.multi_reduction <add>, %747, %cst_399 [0] : vector<2x4xf32> to vector<4xf32>
    %749 = vector.shape_cast %748 : vector<4xf32> to vector<1x4xf32>
    %cst_400 = arith.constant 2.000000e+00 : f32
    %750 = vector.broadcast %cst_400 : f32 to vector<1x4xf32>
    %751 = arith.divf %749, %750 : vector<1x4xf32>
    %752 = vector.broadcast %751 : vector<1x4xf32> to vector<2x4xf32>
    %753 = arith.subf %747, %752 : vector<2x4xf32>
    %754 = arith.mulf %753, %753 : vector<2x4xf32>
    %cst_401 = arith.constant dense<0.000000e+00> : vector<4xf32>
    %755 = vector.multi_reduction <add>, %754, %cst_401 [0] : vector<2x4xf32> to vector<4xf32>
    %756 = vector.shape_cast %755 : vector<4xf32> to vector<1x4xf32>
    %cst_402 = arith.constant 2.000000e+00 : f32
    %757 = vector.broadcast %cst_402 : f32 to vector<1x4xf32>
    %758 = arith.divf %756, %757 : vector<1x4xf32>
    %759 = vector.broadcast %751 : vector<1x4xf32> to vector<2x4xf32>
    %760 = arith.subf %747, %759 : vector<2x4xf32>
    %cst_403 = arith.constant 9.99999974E-6 : f32
    %761 = vector.broadcast %cst_403 : f32 to vector<1x4xf32>
    %762 = arith.addf %758, %761 : vector<1x4xf32>
    %763 = math.rsqrt %762 : vector<1x4xf32>
    %764 = vector.broadcast %763 : vector<1x4xf32> to vector<2x4xf32>
    %765 = arith.mulf %760, %764 : vector<2x4xf32>
    %c0_404 = arith.constant 0 : index
    %c0_405 = arith.constant 0 : index
    %766 = vector.load %arg14[%c0_404, %c0_405] : memref<2x4xf32, #tpu.memory_space<vmem>>, vector<2x4xf32>
    tpu.vector_store %arg14[%c0_404, %c0_405], %765 {strides = array<i32>} : memref<2x4xf32, #tpu.memory_space<vmem>>, vector<2x4xf32>,
    return
  }
  func.func @transform_0(%arg0: i32) -> (i32, i32) {
    %c0_i32 = arith.constant 0 : i32
    %c0_i32_0 = arith.constant 0 : i32
    %c0_i32_1 = arith.constant 0 : i32
    return %c0_i32, %c0_i32_0 : i32, i32
  }
  func.func @transform_1(%arg0: i32) -> (i32, i32) {
    %c0_i32 = arith.constant 0 : i32
    %c0_i32_0 = arith.constant 0 : i32
    %c0_i32_1 = arith.constant 0 : i32
    return %c0_i32, %c0_i32_0 : i32, i32
  }
  func.func @transform_2(%arg0: i32) -> (i32, i32) {
    %c0_i32 = arith.constant 0 : i32
    %c0_i32_0 = arith.constant 0 : i32
    %c0_i32_1 = arith.constant 0 : i32
    return %c0_i32, %c0_i32_0 : i32, i32
  }
  func.func @transform_3(%arg0: i32) -> (i32, i32) {
    %c0_i32 = arith.constant 0 : i32
    %c0_i32_0 = arith.constant 0 : i32
    %c0_i32_1 = arith.constant 0 : i32
    return %c0_i32, %c0_i32_0 : i32, i32
  }
  func.func @transform_4(%arg0: i32) -> (i32, i32) {
    %c0_i32 = arith.constant 0 : i32
    %c0_i32_0 = arith.constant 0 : i32
    %c0_i32_1 = arith.constant 0 : i32
    return %c0_i32, %c0_i32_0 : i32, i32
  }
  func.func @transform_5(%arg0: i32) -> (i32, i32) {
    %c0_i32 = arith.constant 0 : i32
    %c0_i32_0 = arith.constant 0 : i32
    %c0_i32_1 = arith.constant 0 : i32
    return %c0_i32, %c0_i32_0 : i32, i32
  }
  func.func @transform_6(%arg0: i32) -> (i32, i32) {
    %c0_i32 = arith.constant 0 : i32
    %c0_i32_0 = arith.constant 0 : i32
    %c0_i32_1 = arith.constant 0 : i32
    return %c0_i32, %c0_i32_0 : i32, i32
  }
  func.func @transform_7(%arg0: i32) -> (i32, i32) {
    %c0_i32 = arith.constant 0 : i32
    %c0_i32_0 = arith.constant 0 : i32
    %c0_i32_1 = arith.constant 0 : i32
    return %c0_i32, %c0_i32_0 : i32, i32
  }
  func.func @transform_8(%arg0: i32) -> (i32, i32) {
    %c0_i32 = arith.constant 0 : i32
    %c0_i32_0 = arith.constant 0 : i32
    %c0_i32_1 = arith.constant 0 : i32
    return %c0_i32, %c0_i32_0 : i32, i32
  }
  func.func @transform_9(%arg0: i32) -> (i32, i32) {
    %c0_i32 = arith.constant 0 : i32
    %c0_i32_0 = arith.constant 0 : i32
    %c0_i32_1 = arith.constant 0 : i32
    return %c0_i32, %c0_i32_0 : i32, i32
  }
  func.func @transform_10(%arg0: i32) -> (i32, i32) {
    %c0_i32 = arith.constant 0 : i32
    %c0_i32_0 = arith.constant 0 : i32
    %c0_i32_1 = arith.constant 0 : i32
    return %c0_i32, %c0_i32_0 : i32, i32
  }
  func.func @transform_11(%arg0: i32) -> (i32, i32) {
    %c0_i32 = arith.constant 0 : i32
    %c0_i32_0 = arith.constant 0 : i32
    %c0_i32_1 = arith.constant 0 : i32
    return %c0_i32, %c0_i32_0 : i32, i32
  }
  func.func @transform_12(%arg0: i32) -> (i32, i32) {
    %c0_i32 = arith.constant 0 : i32
    %c0_i32_0 = arith.constant 0 : i32
    %c0_i32_1 = arith.constant 0 : i32
    return %c0_i32, %c0_i32_0 : i32, i32
  }
  func.func @transform_13(%arg0: i32) -> (i32, i32) {
    %c0_i32 = arith.constant 0 : i32
    %c0_i32_0 = arith.constant 0 : i32
    %c0_i32_1 = arith.constant 0 : i32
    return %c0_i32, %c0_i32_0 : i32, i32
  }
}

</mosaic_0001>

<bundles_post_ra>
// kernel: triple_deepset_forward.1
= control target key start
LH: loop header
LB: loop body
LE: loop exit
PB: predicated region body
PF: predicated region fallthrough
CT: control target
= control target key end

     0   :  { %18 = vsyncpa [#allocation3], 0  ;;  %s8009_s0 = inlined_call_operand.vmem [shape: f32[16,6], index: 0, kind: input, shape index: {}]   ;;  %s8010_s1 = inlined_call_operand.vmem [shape: f32[16,5], index: 1, kind: input, shape index: {}]   ;;  %s8011_s2 = inlined_call_operand.vmem [shape: f32[16,4], index: 2, kind: input, shape index: {}]   ;;  %s8012_s3 = inlined_call_operand.vmem [shape: f32[16,16], index: 3, kind: input, shape index: {}]   ;;  %s8013_s4 = inlined_call_operand.vmem [shape: f32[2,16], index: 4, kind: input, shape index: {}]   ;;  %s8014_s5 = inlined_call_operand.hbm [shape: f32[40,544], index: 5, kind: input, shape index: {}]   ;;  %s8015_s6 = inlined_call_operand.vmem [shape: f32[1,368], index: 6, kind: input, shape index: {}]   ;;  %s8016_s7 = inlined_call_operand.hbm [shape: f32[40,544], index: 7, kind: input, shape index: {}]   ;;  %s8017_s8 = inlined_call_operand.vmem [shape: f32[1,368], index: 8, kind: input, shape index: {}]   ;;  %s8018_s9 = inlined_call_operand.hbm [shape: f32[40,544], index: 9, kind: input, shape index: {}]   ;;  %s8019_s10 = inlined_call_operand.vmem [shape: f32[1,368], index: 10, kind: input, shape index: {}]   ;;  %s8020_s11 = inlined_call_operand.vmem [shape: f32[16,56], index: 11, kind: input, shape index: {}]   ;;  %s8021_s12 = inlined_call_operand.vmem [shape: f32[1,24], index: 12, kind: input, shape index: {}]   ;;  %s8022_s13 = inlined_call_operand.hbm [shape: f32[2,4], index: 13, kind: output, shape index: {}]  }
   0x1   :  { %19 = vsyncpa [#allocation6], 0 }
   0x2   :  { %20 = vsyncpa [#allocation4], 0  ;;  %s50_s27 = sshll.u32 %s8016_s7, 4  ;;  %s6506_s28 = smov [#allocation5]   ;;  %s51_s27 = int_to_ptr.hbm [resolvable:$true] %s50_s27 }
   0x3   :  { %s52_s29 = sshll.u32 %s6506_s28, 4  ;;  %s35_s15 = sshll.u32 %s8014_s5, 4  ;;  %s53_s29 = int_to_ptr.vmem [resolvable:$true] %s52_s29  ;;  %s36_s15 = int_to_ptr.hbm [resolvable:$true] %s35_s15 }
   0x4   :  { %s6507_s16 = smov 640   ;;  %s6508_s17 = smov 40  }
   0x5   :  { %58 = dma.hbm_to_vmem [thread:$0]  %s51_s27, 3200, %s53_s29, [#allocation6], %s6507_s16, %s6507_s16, %s6508_s17  }
   0x6   :  { %s6509_s18 = smov [#allocation2]   ;;  %s65_s22 = sshll.u32 %s8018_s9, 4  ;;  %s66_s22 = int_to_ptr.hbm [resolvable:$true] %s65_s22 }
   0x7   :  { %s37_s19 = sshll.u32 %s6509_s18, 4  ;;  %s6510_s7 = smov [#allocation7]   ;;  %s38_s19 = int_to_ptr.vmem [resolvable:$true] %s37_s19 }
   0x8   :  { %43 = dma.hbm_to_vmem [thread:$0]  %s36_s15, 3200, %s38_s19, [#allocation3], %s6507_s16, %s6507_s16, %s6508_s17  }
   0x9   :  { %s67_s23 = sshll.u32 %s6510_s7, 4  ;;  %s68_s23 = int_to_ptr.vmem [resolvable:$true] %s67_s23 }
   0xa   :  { %73 = dma.hbm_to_vmem [thread:$0]  %s66_s22, 3200, %s68_s23, [#allocation6], %s6507_s16, %s6507_s16, %s6508_s17  }
   0xb   :  { %6500 = dma.done.wait [#allocation3], 3200  }
   0xc   :  { %6501 = vsyncadd [#allocation3], 4294964096 }
   0xd   :  { %6502 = dma.done.wait [#allocation6], 6400  }
   0xe   :  { %6503 = vsyncadd [#allocation6], 4294960896  ;;  %vm107_vm0 = vcmask 1045504   ;;  %vm100_vm1 = vcmask 48128   ;;  %v99_v0 = vld [vmem:[#allocation2] sm:$0x3f] }
   0xf   :  { %v6615_v1 = vld [vmem:[%s8009_s0] sm:$0xff]  ;;  %5549 = vmatpush.msk.msra.mxu0 %vm107_vm0, %v99_v0  ;;  %v6623_v2 = vld [vmem:[%s8009_s0 + $0x8] sm:$0xff]  ;;  %s6511_s26 = smov 104   ;;  %vm142_vm2 = vcmask 130048   ;;  %v196_v12 = vld [vmem:[#allocation2 + $0x50] sm:$0xff]  ;;  %s6512_s14 = smov 48  }
  0x10   :  { %5550 = vmatmul.msk.f32.vlgmr.msra.gmra.mxu0 %vm100_vm1, %v6615_v1  ;;  %v6631_v9 = vld [vmem:[%s8012_s3] sm:$0xff]  ;;  %v6638_v10 = vld [vmem:[%s8012_s3 + $0x8] sm:$0xff]  ;;  %s6513_s15 = smov 80   ;;  %s8028_s16 = smov 24   ;;  %vm8027_vm3 = vcmask 195584   ;;  %v364_v44 = vld [vmem:[#allocation2 + $0x58] sm:$0xff] }
  0x11   :  { %v195_v11 = vld [vmem:[#allocation2 + $0x28] sm:$0xff]  ;;  %v194_v14 = vld [vmem:[#allocation2] sm:$0xff]  ;;  %s6515_s20 = smov 64   ;;  %v362_v52 = vld [vmem:[#allocation2 + $0x30] sm:$0xff]  ;;  %vm295_vm4 = vcmask 261120   ;;  %s6516_s21 = smov 16  }
  0x12   :  { %v5821_v13 = vpack.i.bf16 %v195_v11, %v196_v12  ;;  %v6131_v17 = vld [vmem:[%s8015_s6] ss:$0 sm:$0xff]  ;;  %v6659_v41 = vld [vmem:[#allocation2 + $0x88] sm:$0xff]  ;;  %v6667_v53 = vld [vmem:[#allocation2 + $0x38] sm:$0xff]  ;;  %vm8024_vm5 = vcmask 523264   ;;  %s6517_s22 = smov 88  }
  0x13   :  { %v366_v40 = vld [vmem:[#allocation2 + $0x80] sm:$0xff]  ;;  %v5836_v55 = vpack.i.bf16 %v6667_v53, %v362_v52  ;;  %v360_v61 = vld [vmem:[#allocation2 + $0x8] sm:$0xff]  ;;  %v6671_v62 = vld [vmem:[#allocation2 + $0x10] sm:$0xff]  ;;  %s6518_s5 = smov 112   ;;  %s6519_s25 = smov 32  }
  0x14   :  { %5822 = vrot.lane.b32.xlu2 %v5821_v13, %s6512_s14  ;;  %v5826_v42 = vpack.i.bf16 %v6659_v41, %v366_v40  ;;  %v6663_v45 = vld [vmem:[#allocation2 + $0x60] sm:$0xff]  ;;  %s6520_s27 = smov 120   ;;  %s6521_s30 = smov 96  }
  0x15   :  { %v5831_v47 = vpack.i.bf16 %v6663_v45, %v364_v44  ;;  %v358_v11 = vld [vmem:[#allocation2] sm:$0x3f]  ;;  %s6522_s18 = smov 72   ;;  %s6524_s9 = smov 124  }
  0x16   :  { %s6525_s23 = smov 108   ;;  %s6526_s24 = smov 8  }
  0x17   :  { %s8025_s28 = smov 56  }
  0x18   :  { %5551 = vmatmul.msk.f32.gmra.mxu0 %vm100_vm1, %v6623_v2 }
  0x1c   :  { %200 = vrot.lane.b32.xlu2 %v194_v14, %s6513_s15 }
  0x6e   :  { %v5823_v24 = vpop.permute.xlu2 %5822 }
  0x6f   :  { %v5824_v35 = vunpack.i.l.bf16 %v5823_v24  ;;  %v5825_v36 = vunpack.i.h.bf16 %v5823_v24 }
  0x71   :  { %279 = vmatpush.msra.mxu3 %v5824_v35 }
  0x73   :  { %280 = vmatpush.msra.mxu3 %v5825_v36 }
  0x76   :  { %v201_v31 = vpop.permute.xlu2 %200 }
  0x8d   :  { %v128_v3 = vpop.f32.mrf.mxu0 }
  0x8e   :  { %v186_v30 = vadd.f32 %v6131_v17, %v128_v3 }
  0x90   :  { %v188_v32 = vmax.f32 %v186_v30, 0.0 }
  0x95   :  { %v131_v4 = vpop.f32.mrf.mxu0 }
  0x96   :  { %v5811_v5 = vpack.i.bf16 %v128_v3, %v131_v4  ;;  %v187_v33 = vadd.f32 %v6131_v17, %v131_v4 }
  0x98   :  { %5812 = vrot.lane.b32.xlu0 %v5811_v5, %s6511_s26  ;;  %v189_v34 = vmax.f32 %v187_v33, 0.0 }
 0x10a   :  { %v5813_v6 = vpop.permute.xlu0 %5812 }
 0x10b   :  { %v5814_v7 = vunpack.i.l.bf16 %v5813_v6  ;;  %v5815_v8 = vunpack.i.h.bf16 %v5813_v6 }
 0x10d   :  { %163 = vmatpush.msra.mxu1 %v5814_v7 }
 0x10f   :  { %164 = vmatpush.msra.mxu1 %v5815_v8 }
 0x110   :  { %5552 = vmatmul.msk.f32.vlgmr.msra.gmra.mxu1 %vm142_vm2, %v6631_v9 }
 0x118   :  { %5553 = vmatmul.msk.f32.gmra.mxu1 %vm142_vm2, %v6638_v10 }
 0x18d   :  { %v166_v15 = vpop.f32.mrf.mxu1 }
 0x18e   :  { %174 = vrot.lane.b32.xlu0 %v166_v15, %s8028_s16 }
 0x195   :  { %v169_v16 = vpop.f32.mrf.mxu1 }
 0x196   :  { %176 = vrot.lane.b32.xlu1 %v169_v16, %s8028_s16  ;;  %250 = vrot.lane.b32.xlu0 %v194_v14, %s6512_s14 }
 0x19e   :  { %5817 = vrot.lane.b32.xlu1 %v5821_v13, %s6513_s15  ;;  %209 = vrot.lane.b32.xlu0 %v6131_v17, %s6513_s15  ;;  %v359_v13 = vld [vmem:[#allocation2 + $0x8] sm:$0x3f] }
 0x200   :  { %v175_v18 = vpop.permute.xlu0 %174 }
 0x201   :  { %v180_v19 = vsub.f32 %v128_v3, %v175_v18  ;;  %v5841_v3 = vpack.i.bf16 %v6671_v62, %v360_v61 }
 0x203   :  { %v190_v20 = vadd.f32 %v6131_v17, %v180_v19 }
 0x205   :  { %v192_v21 = vmax.f32 %v190_v20, 0.0 }
 0x207   :  { %246 = vrot.lane.b32.xlu1 %v192_v21, %s6511_s26 }
 0x208   :  { %v177_v22 = vpop.permute.xlu1 %176  ;;  %v251_v37 = vpop.permute.xlu0 %250 }
 0x209   :  { %v181_v23 = vsub.f32 %v131_v4, %v177_v22  ;;  %281 = vmatpush.msra.mxu3 %v251_v37 }
 0x20b   :  { %v191_v25 = vadd.f32 %v6131_v17, %v181_v23 }
 0x20d   :  { %v193_v26 = vmax.f32 %v191_v25, 0.0 }
 0x20f   :  { %248 = vrot.lane.b32.xlu2 %v193_v26, %s6511_s26  ;;  %259 = vrot.lane.b32.xlu1 %v6131_v17, %s6512_s14 }
 0x210   :  { %v5818_v27 = vpop.permute.xlu1 %5817  ;;  %v210_v46 = vpop.permute.xlu0 %209 }
 0x211   :  { %v5819_v28 = vunpack.i.l.bf16 %v5818_v27  ;;  %v5820_v29 = vunpack.i.h.bf16 %v5818_v27 }
 0x213   :  { %232 = vmatpush.msra.mxu2 %v5819_v28 }
 0x215   :  { %233 = vmatpush.msra.mxu2 %v5820_v29 }
 0x217   :  { %234 = vmatpush.msra.mxu2 %v201_v31  ;;  %5827 = vrot.lane.b32.xlu1 %v5826_v42, %s6515_s20 }
 0x218   :  { %5554 = vmatmul.msk.f32.vlgmr.msra.gmra.mxu2 %vm8027_vm3, %v188_v32 }
 0x21f   :  { %5832 = vrot.lane.b32.xlu1 %v5831_v47, %s6515_s20 }
 0x220   :  { %5555 = vmatmul.msk.f32.gmra.mxu2 %vm8027_vm3, %v189_v34 }
 0x227   :  { %5837 = vrot.lane.b32.xlu1 %v5836_v55, %s6515_s20 }
 0x22f   :  { %5842 = vrot.lane.b32.xlu1 %v5841_v3, %s6515_s20 }
 0x237   :  { %432 = vrot.lane.b32.xlu1 %v358_v11, %s6516_s21 }
 0x269   :  { %v249_v39 = vpop.permute.xlu2 %248 }
 0x279   :  { %v247_v38 = vpop.permute.xlu1 %246 }
 0x27a   :  { %5556 = vmatmul.msk.f32.vlgmr.msra.gmra.mxu3 %vm8027_vm3, %v247_v38 }
 0x281   :  { %v260_v49 = vpop.permute.xlu1 %259 }
 0x282   :  { %5557 = vmatmul.msk.f32.gmra.mxu3 %vm8027_vm3, %v249_v39 }
 0x289   :  { %v5828_v14 = vpop.permute.xlu1 %5827 }
 0x28a   :  { %v5830_v15 = vunpack.i.h.bf16 %v5828_v14  ;;  %v5829_v16 = vunpack.i.l.bf16 %v5828_v14 }
 0x28c   :  { %v396_v17 = vsel %vm8024_vm5, %v5829_v16, %v5830_v15 }
 0x28d   :  { %419 = vmatpush.msrb.mxu0 %v396_v17 }
 0x291   :  { %v5833_v18 = vpop.permute.xlu1 %5832 }
 0x292   :  { %v5835_v19 = vunpack.i.h.bf16 %v5833_v18  ;;  %v5834_v20 = vunpack.i.l.bf16 %v5833_v18 }
 0x294   :  { %v395_v21 = vsel %vm8024_vm5, %v5834_v20, %v5835_v19 }
 0x295   :  { %420 = vmatpush.msrb.mxu0 %v395_v21 }
 0x299   :  { %v5838_v22 = vpop.permute.xlu1 %5837 }
 0x29a   :  { %v5840_v23 = vunpack.i.h.bf16 %v5838_v22  ;;  %v5839_v24 = vunpack.i.l.bf16 %v5838_v22 }
 0x29b   :  { %v236_v43 = vpop.f32.mrf.mxu2 }
 0x29c   :  { %v237_v48 = vadd.f32 %v236_v43, %v210_v46  ;;  %v394_v25 = vsel %vm8024_vm5, %v5839_v24, %v5840_v23 }
 0x29d   :  { %421 = vmatpush.msrb.mxu0 %v394_v25 }
 0x29e   :  { %6141 = vtanh.f32 %v237_v48 }
 0x2a1   :  { %v5843_v27 = vpop.permute.xlu1 %5842 }
 0x2a2   :  { %v5845_v28 = vunpack.i.h.bf16 %v5843_v27  ;;  %v5844_v29 = vunpack.i.l.bf16 %v5843_v27 }
 0x2a3   :  { %v239_v54 = vpop.f32.mrf.mxu2 }
 0x2a4   :  { %v240_v56 = vadd.f32 %v239_v54, %v210_v46  ;;  %v6142_v57 = vpop.eup %6141  ;;  %v393_v30 = vsel %vm8024_vm5, %v5844_v29, %v5845_v28 }
 0x2a5   :  { %422 = vmatpush.msrb.mxu0 %v393_v30 }
 0x2a9   :  { %v433_v34 = vpop.permute.xlu1 %432 }
 0x2fd   :  { %v283_v50 = vpop.f32.mrf.mxu3 }
 0x2fe   :  { %v284_v51 = vadd.f32 %v283_v50, %v260_v49 }
 0x300   :  { %6143 = vtanh.f32 %v284_v51 }
 0x301   :  { %6145 = vtanh.f32 %v240_v56 }
 0x305   :  { %v286_v58 = vpop.f32.mrf.mxu3 }
 0x306   :  { %v6144_v59 = vpop.eup %6143  ;;  %v287_v60 = vadd.f32 %v286_v58, %v260_v49 }
 0x307   :  { %v6673_v63 = vadd.f32 %v6144_v59, %v6142_v57  ;;  %v6146_v5 = vpop.eup %6145 }
 0x308   :  { %6147 = vtanh.f32 %v287_v60 }
 0x309   :  { %v293_v0 = vmul.f32 %v6673_v63, %v6673_v63 }
 0x30b   :  { %v296_v4 = vsel %vm295_vm4, %v293_v0, 0.0 }
 0x30c   :  { %297 = vadd.xlane.f32.xlu2 %v296_v4 }
 0x30e   :  { %v6148_v6 = vpop.eup %6147 }
 0x30f   :  { %v6680_v7 = vadd.f32 %v6148_v6, %v6146_v5 }
 0x311   :  { %v294_v8 = vmul.f32 %v6680_v7, %v6680_v7 }
 0x313   :  { %v299_v12 = vsel %vm295_vm4, %v294_v8, 0.0 }
 0x314   :  { %300 = vadd.xlane.f32.xlu0 %v299_v12 }
 0x324   :  { %434 = vrot.lane.b32.xlu2 %v359_v13, %s6516_s21 }
 0x37f   :  { %v298_v26 = vpop.xlane.xlu2 %297 }
 0x380   :  { %6149 = vrsqrt.f32 %v298_v26  ;;  %vm309_vm6 = vcmp.eq.f32.partialorder %v298_v26, inf  ;;  %v312_v47 = vand.u32 2147483648, %v298_v26  ;;  %vm311_vm7 = vcmp.eq.f32.partialorder %v298_v26, 0.0 }
 0x386   :  { %v6150_v31 = vpop.eup %6149 }
 0x387   :  { %v303_v32 = vmul.f32 %v6150_v31, %v298_v26  ;;  %v301_v33 = vpop.xlane.xlu0 %300  ;;  %v435_v35 = vpop.permute.xlu2 %434 }
 0x388   :  { %6151 = vrsqrt.f32 %v301_v33  ;;  %v436_v37 = vsel %vm142_vm2, %v433_v34, %v435_v35  ;;  %vm321_vm8 = vcmp.eq.f32.partialorder %v301_v33, inf  ;;  %v324_v55 = vand.u32 2147483648, %v301_v33  ;;  %v531_v34 = vld [vmem:[#allocation2 + $0xb0] sm:$0xff] }
 0x389   :  { %v304_v36 = vmul.f32 %v6150_v31, %v303_v32  ;;  %5560 = vmatpush.msk.msrb.mxu1 %vm107_vm0, %v436_v37  ;;  %vm323_vm9 = vcmp.eq.f32.partialorder %v301_v33, 0.0  ;;  %v5851_v35 = vpack.i.bf16 %v6659_v41, %v531_v34  ;;  %v5856_v37 = vpack.i.bf16 %v6667_v53, %v6663_v45 }
 0x38a   :  { %5561 = vmatmul.msk.f32.vlgmr.msrb.gmra.mxu1 %vm100_vm1, %v6615_v1 }
 0x38b   :  { %v305_v38 = vmul.f32 0.5, %v304_v36  ;;  %5852 = vrot.lane.b32.xlu2 %v5851_v35, %s6518_s5 }
 0x38d   :  { %v306_v39 = vsub.f32 1.5, %v305_v38  ;;  %v503_v38 = vld [vmem:[%s8015_s6] sm:$0x3] }
 0x38e   :  { %v6152_v40 = vpop.eup %6151  ;;  %v506_v41 = vperm.slane %v503_v38, 1 }
 0x38f   :  { %v307_v42 = vmul.f32 %v6150_v31, %v306_v39  ;;  %v315_v43 = vmul.f32 %v6152_v40, %v301_v33  ;;  %v505_v39 = vperm.slane %v503_v38, 0 }
 0x391   :  { %v308_v44 = vmul.f32 %v307_v42, %v298_v26  ;;  %v316_v46 = vmul.f32 %v6152_v40, %v315_v43 }
 0x392   :  { %5562 = vmatmul.msk.f32.gmra.mxu1 %vm100_vm1, %v6623_v2 }
 0x393   :  { %v310_v48 = vsel %vm309_vm6, %v298_v26, %v308_v44  ;;  %v317_v49 = vmul.f32 0.5, %v316_v46  ;;  %5857 = vrot.lane.b32.xlu2 %v5856_v37, %s6518_s5 }
 0x394   :  { %v313_v50 = vsel %vm311_vm7, %v312_v47, %v310_v48 }
 0x395   :  { %v318_v51 = vsub.f32 1.5, %v317_v49  ;;  %6153 = vrcp.f32 %v313_v50  ;;  %v337_v61 = vand.u32 2147483648, %v313_v50  ;;  %v335_v3 = vand.u32 2147483647, %v313_v50 }
 0x396   :  { %vm331_vm11 = vweird.f32 %v313_v50 }
 0x397   :  { %v319_v52 = vmul.f32 %v6152_v40, %v318_v51  ;;  %v338_v6 = vor.u32 1.1754944e-38, %v337_v61  ;;  %vm336_vm13 = vcmp.eq.f32.partialorder %v335_v3, 8.507059e+37 }
 0x399   :  { %v320_v54 = vmul.f32 %v319_v52, %v301_v33 }
 0x39b   :  { %v6154_v56 = vpop.eup %6153  ;;  %v322_v57 = vsel %vm321_vm8, %v301_v33, %v320_v54  ;;  %5867 = vrot.lane.b32.xlu2 %v5856_v37, %s6513_s15  ;;  %vm8023_vm8 = vcmask 326656  }
 0x39c   :  { %v327_v58 = vmul.f32 %v6154_v56, %v313_v50  ;;  %v325_v59 = vsel %vm323_vm9, %v324_v55, %v322_v57  ;;  %vm332_vm10 = vweird.f32 %v6154_v56 }
 0x39d   :  { %6155 = vrcp.f32 %v325_v59  ;;  %vm333_vm12 = vmor %vm331_vm11, %vm332_vm10  ;;  %v352_v15 = vand.u32 2147483648, %v325_v59  ;;  %v350_v18 = vand.u32 2147483647, %v325_v59  ;;  %vm346_vm15 = vweird.f32 %v325_v59 }
 0x39e   :  { %v328_v60 = vsub.f32 1.0, %v327_v58 }
 0x39f   :  { %v353_v20 = vor.u32 1.1754944e-38, %v352_v15  ;;  %vm351_vm7 = vcmp.eq.f32.partialorder %v350_v18, 8.507059e+37 }
 0x3a0   :  { %v329_v0 = vmul.f32 %v6154_v56, %v328_v60 }
 0x3a2   :  { %v330_v4 = vadd.f32 %v6154_v56, %v329_v0 }
 0x3a3   :  { %v6156_v5 = vpop.eup %6155 }
 0x3a4   :  { %v334_v8 = vsel %vm333_vm12, %v6154_v56, %v330_v4  ;;  %v342_v11 = vmul.f32 %v6156_v5, %v325_v59  ;;  %vm347_vm14 = vweird.f32 %v6156_v5 }
 0x3a5   :  { %v339_v12 = vsel %vm336_vm13, %v338_v6, %v334_v8  ;;  %vm348_vm6 = vmor %vm346_vm15, %vm347_vm14 }
 0x3a6   :  { %v340_v13 = vmul.f32 %v339_v12, %v6673_v63  ;;  %v343_v14 = vsub.f32 1.0, %v342_v11 }
 0x3a8   :  { %v356_v16 = vmax.f32 %v340_v13, 0.0  ;;  %v344_v17 = vmul.f32 %v6156_v5, %v343_v14 }
 0x3aa   :  { %5558 = vmatmul.msk.f32.vlgmr.msrb.gmra.mxu0 %vm295_vm4, %v356_v16  ;;  %v345_v19 = vadd.f32 %v6156_v5, %v344_v17 }
 0x3ac   :  { %v349_v21 = vsel %vm348_vm6, %v6156_v5, %v345_v19 }
 0x3ad   :  { %v354_v22 = vsel %vm351_vm7, %v353_v20, %v349_v21 }
 0x3ae   :  { %v355_v23 = vmul.f32 %v354_v22, %v6680_v7  ;;  %v6132_v7 = vld [vmem:[%s8015_s6 + $0x1] ss:$0 sm:$0xff] }
 0x3b0   :  { %v357_v24 = vmax.f32 %v355_v23, 0.0 }
 0x3b2   :  { %5559 = vmatmul.msk.f32.gmra.mxu0 %vm295_vm4, %v357_v24 }
 0x3e5   :  { %v5853_v45 = vpop.permute.xlu2 %5852 }
 0x3e6   :  { %v5854_v53 = vunpack.i.l.bf16 %v5853_v45  ;;  %v5855_v42 = vunpack.i.h.bf16 %v5853_v45 }
 0x3e8   :  { %573 = vmatpush.msrb.mxu3 %v5854_v53 }
 0x3ea   :  { %574 = vmatpush.msrb.mxu3 %v5855_v42 }
 0x3ed   :  { %v5858_v43 = vpop.permute.xlu2 %5857 }
 0x3ee   :  { %v5859_v44 = vunpack.i.l.bf16 %v5858_v43  ;;  %v5860_v46 = vunpack.i.h.bf16 %v5858_v43 }
 0x3f0   :  { %575 = vmatpush.msrb.mxu3 %v5859_v44 }
 0x3f2   :  { %576 = vmatpush.msrb.mxu3 %v5860_v46 }
 0x3f5   :  { %v5868_v11 = vpop.permute.xlu2 %5867 }
 0x3f6   :  { %v5869_v12 = vunpack.i.l.bf16 %v5868_v11  ;;  %v5870_v13 = vunpack.i.h.bf16 %v5868_v11 }
 0x407   :  { %v456_v63 = vpop.f32.mrf.mxu1 }
 0x40f   :  { %v459_v26 = vpop.f32.mrf.mxu1 }
 0x427   :  { %v424_v25 = vpop.f32.mrf.mxu0 }
 0x428   :  { %v457_v28 = vadd.f32 %v456_v63, %v424_v25 }
 0x42f   :  { %v427_v27 = vpop.f32.mrf.mxu0 }
 0x430   :  { %v6701_v29 = vadd.f32 %v459_v26, %v427_v27 }
 0x432   :  { %v5846_v30 = vpack.i.bf16 %v457_v28, %v6701_v29 }
 0x434   :  { %5847 = vrot.lane.b32.xlu1 %v5846_v30, %s6517_s22 }
 0x43c   :  { %520 = vrot.lane.b32.xlu1 %v6132_v7, %s6516_s21 }
 0x4a6   :  { %v5848_v31 = vpop.permute.xlu1 %5847 }
 0x4a7   :  { %v5849_v32 = vunpack.i.l.bf16 %v5848_v31  ;;  %v5850_v33 = vunpack.i.h.bf16 %v5848_v31 }
 0x4a9   :  { %484 = vmatpush.msrb.mxu2 %v5849_v32 }
 0x4ab   :  { %485 = vmatpush.msrb.mxu2 %v5850_v33 }
 0x4ac   :  { %5563 = vmatmul.msk.f32.vlgmr.msrb.gmra.mxu2 %vm142_vm2, %v6631_v9 }
 0x4ae   :  { %v521_v47 = vpop.permute.xlu1 %520 }
 0x4b4   :  { %5564 = vmatmul.msk.f32.gmra.mxu2 %vm142_vm2, %v6638_v10 }
 0x52f   :  { %v487_v36 = vpop.f32.mrf.mxu2 }
 0x530   :  { %495 = vrot.lane.b32.xlu0 %v487_v36, %s6508_s17 }
 0x537   :  { %v490_v40 = vpop.f32.mrf.mxu2 }
 0x538   :  { %497 = vrot.lane.b32.xlu1 %v490_v40, %s6508_s17  ;;  %507 = vrot.lane.b32.xlu0 %v505_v39, %s6516_s21 }
 0x540   :  { %509 = vrot.lane.b32.xlu1 %v506_v41, %s6516_s21  ;;  %5862 = vrot.lane.b32.xlu0 %v5851_v35, %s6513_s15 }
 0x548   :  { %537 = vrot.lane.b32.xlu1 %v6671_v62, %s6518_s5  ;;  %593 = vrot.lane.b32.xlu0 %v6671_v62, %s6513_s15 }
 0x550   :  { %552 = vrot.lane.b32.xlu0 %v6132_v7, %s6515_s20 }
 0x5a2   :  { %v496_v48 = vpop.permute.xlu0 %495 }
 0x5a3   :  { %v501_v49 = vsub.f32 %v457_v28, %v496_v48 }
 0x5a5   :  { %v523_v50 = vadd.f32 %v521_v47, %v501_v49 }
 0x5a7   :  { %v525_v51 = vmax.f32 %v523_v50, 0.0 }
 0x5a9   :  { %589 = vrot.lane.b32.xlu1 %v525_v51, %s6517_s22 }
 0x5aa   :  { %v498_v52 = vpop.permute.xlu1 %497  ;;  %v508_v57 = vpop.permute.xlu0 %507 }
 0x5ab   :  { %v502_v54 = vsub.f32 %v6701_v29, %v498_v52 }
 0x5ad   :  { %v524_v55 = vadd.f32 %v521_v47, %v502_v54 }
 0x5af   :  { %v526_v56 = vmax.f32 %v524_v55, 0.0 }
 0x5b1   :  { %591 = vrot.lane.b32.xlu2 %v526_v56, %s6517_s22  ;;  %608 = vrot.lane.b32.xlu1 %v6132_v7, %s6519_s25 }
 0x5b2   :  { %v510_v58 = vpop.permute.xlu1 %509  ;;  %v5863_v5 = vpop.permute.xlu0 %5862 }
 0x5b3   :  { %v511_v59 = vsel %vm142_vm2, %v508_v57, %v510_v58  ;;  %v5865_v6 = vunpack.i.h.bf16 %v5863_v5  ;;  %v5864_v8 = vunpack.i.l.bf16 %v5863_v5 }
 0x5b4   :  { %v513_v60 = vadd.f32 %v511_v59, %v457_v28  ;;  %v514_v3 = vadd.f32 %v511_v59, %v6701_v29 }
 0x5b5   :  { %626 = vmatpush.msra.mxu0 %v5864_v8 }
 0x5b6   :  { %v515_v61 = vmax.f32 %v513_v60, 0.0  ;;  %v516_v4 = vmax.f32 %v514_v3, 0.0 }
 0x5b7   :  { %627 = vmatpush.msra.mxu0 %v5865_v6 }
 0x5b9   :  { %628 = vmatpush.msra.mxu0 %v5869_v12 }
 0x5ba   :  { %v538_v0 = vpop.permute.xlu1 %537  ;;  %v594_v14 = vpop.permute.xlu0 %593 }
 0x5bb   :  { %577 = vmatpush.msrb.mxu3 %v538_v0  ;;  %629 = vmatpush.msra.mxu0 %v5870_v13 }
 0x5bc   :  { %5565 = vmatmul.msk.f32.vlgmr.msrb.gmra.mxu3 %vm8023_vm8, %v515_v61 }
 0x5bd   :  { %630 = vmatpush.msra.mxu0 %v594_v14 }
 0x5c2   :  { %v553_v18 = vpop.permute.xlu0 %552 }
 0x5c4   :  { %5566 = vmatmul.msk.f32.gmra.mxu3 %vm8023_vm8, %v516_v4 }
 0x60b   :  { %v592_v16 = vpop.permute.xlu2 %591 }
 0x61b   :  { %v590_v15 = vpop.permute.xlu1 %589 }
 0x61c   :  { %5567 = vmatmul.msk.f32.vlgmr.msra.gmra.mxu0 %vm8023_vm8, %v590_v15 }
 0x623   :  { %v609_v20 = vpop.permute.xlu1 %608 }
 0x624   :  { %5568 = vmatmul.msk.f32.gmra.mxu0 %vm8023_vm8, %v592_v16 }
 0x63f   :  { %v579_v17 = vpop.f32.mrf.mxu3 }
 0x640   :  { %v580_v19 = vadd.f32 %v579_v17, %v553_v18 }
 0x642   :  { %6157 = vtanh.f32 %v580_v19 }
 0x647   :  { %v582_v23 = vpop.f32.mrf.mxu3 }
 0x648   :  { %v583_v24 = vadd.f32 %v582_v23, %v553_v18  ;;  %v6158_v63 = vpop.eup %6157 }
 0x699   :  { %v632_v21 = vpop.f32.mrf.mxu0 }
 0x69a   :  { %v633_v22 = vadd.f32 %v632_v21, %v609_v20 }
 0x69c   :  { %6159 = vtanh.f32 %v633_v22  ;;  %v726_v22 = vld [vmem:[#allocation2 + $0x10] sm:$0x3f] }
 0x69d   :  { %6161 = vtanh.f32 %v583_v24 }
 0x6a1   :  { %v635_v25 = vpop.f32.mrf.mxu0 }
 0x6a2   :  { %v6160_v26 = vpop.eup %6159  ;;  %v636_v27 = vadd.f32 %v635_v25, %v609_v20 }
 0x6a3   :  { %v640_v28 = vadd.f32 %v6160_v26, %v6158_v63  ;;  %v6162_v31 = vpop.eup %6161  ;;  %v6753_v63 = vld [vmem:[#allocation2 + $0x18] sm:$0xff] }
 0x6a4   :  { %6163 = vtanh.f32 %v636_v27  ;;  %v5871_v25 = vpack.i.bf16 %v6753_v63, %v6671_v62 }
 0x6a5   :  { %v642_v29 = vmul.f32 %v640_v28, %v640_v28 }
 0x6a7   :  { %v644_v30 = vsel %vm295_vm4, %v642_v29, 0.0 }
 0x6a8   :  { %645 = vadd.xlane.f32.xlu2 %v644_v30 }
 0x6aa   :  { %v6164_v32 = vpop.eup %6163 }
 0x6ab   :  { %v6743_v33 = vadd.f32 %v6164_v32, %v6162_v31 }
 0x6ad   :  { %v643_v7 = vmul.f32 %v6743_v33, %v6743_v33 }
 0x6af   :  { %v647_v34 = vsel %vm295_vm4, %v643_v7, 0.0 }
 0x6b0   :  { %648 = vadd.xlane.f32.xlu0 %v647_v34 }
 0x71b   :  { %v646_v35 = vpop.xlane.xlu2 %645 }
 0x71c   :  { %6165 = vrsqrt.f32 %v646_v35  ;;  %vm657_vm9 = vcmp.eq.f32.partialorder %v646_v35, inf  ;;  %v660_v46 = vand.u32 2147483648, %v646_v35  ;;  %vm659_vm10 = vcmp.eq.f32.partialorder %v646_v35, 0.0 }
 0x722   :  { %v6166_v36 = vpop.eup %6165 }
 0x723   :  { %v651_v37 = vmul.f32 %v6166_v36, %v646_v35  ;;  %v649_v38 = vpop.xlane.xlu0 %648 }
 0x724   :  { %6167 = vrsqrt.f32 %v649_v38  ;;  %vm669_vm11 = vcmp.eq.f32.partialorder %v649_v38, inf  ;;  %v672_v54 = vand.u32 2147483648, %v649_v38  ;;  %vm671_vm12 = vcmp.eq.f32.partialorder %v649_v38, 0.0 }
 0x725   :  { %v652_v39 = vmul.f32 %v6166_v36, %v651_v37 }
 0x727   :  { %v653_v40 = vmul.f32 0.5, %v652_v39 }
 0x729   :  { %v654_v41 = vsub.f32 1.5, %v653_v40 }
 0x72a   :  { %v6168_v45 = vpop.eup %6167 }
 0x72b   :  { %v655_v53 = vmul.f32 %v6166_v36, %v654_v41  ;;  %v663_v42 = vmul.f32 %v6168_v45, %v649_v38 }
 0x72d   :  { %v656_v43 = vmul.f32 %v655_v53, %v646_v35  ;;  %v664_v44 = vmul.f32 %v6168_v45, %v663_v42 }
 0x72f   :  { %v665_v47 = vmul.f32 0.5, %v664_v44  ;;  %v658_v48 = vsel %vm657_vm9, %v646_v35, %v656_v43  ;;  %v849_v43 = vld [vmem:[#allocation2 + $0x40] sm:$0xff] }
 0x730   :  { %v661_v49 = vsel %vm659_vm10, %v660_v46, %v658_v48  ;;  %v5881_v44 = vpack.i.bf16 %v6753_v63, %v849_v43  ;;  %v6779_v48 = vld [vmem:[%s8015_s6 + $0x2] ss:$0 sm:$0xff] }
 0x731   :  { %v666_v50 = vsub.f32 1.5, %v665_v47  ;;  %6169 = vrcp.f32 %v661_v49  ;;  %v685_v60 = vand.u32 2147483648, %v661_v49  ;;  %v683_v0 = vand.u32 2147483647, %v661_v49 }
 0x732   :  { %vm679_vm14 = vweird.f32 %v661_v49 }
 0x733   :  { %v667_v51 = vmul.f32 %v6168_v45, %v666_v50  ;;  %v686_v5 = vor.u32 1.1754944e-38, %v685_v60  ;;  %vm684_vm6 = vcmp.eq.f32.partialorder %v683_v0, 8.507059e+37 }
 0x735   :  { %v668_v52 = vmul.f32 %v667_v51, %v649_v38 }
 0x737   :  { %v6170_v55 = vpop.eup %6169  ;;  %v670_v56 = vsel %vm669_vm11, %v649_v38, %v668_v52 }
 0x738   :  { %v675_v57 = vmul.f32 %v6170_v55, %v661_v49  ;;  %v673_v58 = vsel %vm671_vm12, %v672_v54, %v670_v56  ;;  %vm680_vm13 = vweird.f32 %v6170_v55  ;;  %vm737_vm12 = vcmask 64512  }
 0x739   :  { %6171 = vrcp.f32 %v673_v58  ;;  %vm681_vm15 = vmor %vm679_vm14, %vm680_vm13  ;;  %v700_v14 = vand.u32 2147483648, %v673_v58  ;;  %v698_v16 = vand.u32 2147483647, %v673_v58  ;;  %vm694_vm9 = vweird.f32 %v673_v58 }
 0x73a   :  { %v676_v59 = vsub.f32 1.0, %v675_v57 }
 0x73b   :  { %v701_v18 = vor.u32 1.1754944e-38, %v700_v14  ;;  %vm699_vm11 = vcmp.eq.f32.partialorder %v698_v16, 8.507059e+37 }
 0x73c   :  { %v677_v61 = vmul.f32 %v6170_v55, %v676_v59 }
 0x73e   :  { %v678_v3 = vadd.f32 %v6170_v55, %v677_v61 }
 0x73f   :  { %v6172_v4 = vpop.eup %6171 }
 0x740   :  { %v682_v6 = vsel %vm681_vm15, %v6170_v55, %v678_v3  ;;  %v690_v8 = vmul.f32 %v6172_v4, %v673_v58  ;;  %vm695_vm7 = vweird.f32 %v6172_v4 }
 0x741   :  { %v687_v11 = vsel %vm684_vm6, %v686_v5, %v682_v6  ;;  %vm696_vm10 = vmor %vm694_vm9, %vm695_vm7 }
 0x742   :  { %v688_v12 = vmul.f32 %v687_v11, %v640_v28  ;;  %v691_v13 = vsub.f32 1.0, %v690_v8  ;;  %v1000_v11 = vld [vmem:[#allocation2 + $0x18] sm:$0x3f] }
 0x744   :  { %706 = vrot.lane.b32.xlu1 %v688_v12, %s6520_s27  ;;  %v692_v15 = vmul.f32 %v6172_v4, %v691_v13 }
 0x746   :  { %v693_v17 = vadd.f32 %v6172_v4, %v692_v15 }
 0x748   :  { %v697_v19 = vsel %vm696_vm10, %v6172_v4, %v693_v17 }
 0x749   :  { %v702_v20 = vsel %vm699_vm11, %v701_v18, %v697_v19 }
 0x74a   :  { %v703_v21 = vmul.f32 %v702_v20, %v6743_v33 }
 0x74c   :  { %708 = vrot.lane.b32.xlu1 %v703_v21, %s6520_s27 }
 0x754   :  { %768 = vrot.lane.b32.xlu1 %v726_v22, %s6512_s14 }
 0x7b6   :  { %v707_v23 = vpop.permute.xlu1 %706 }
 0x7b7   :  { %v712_v24 = vmax.f32 %v688_v12, %v707_v23 }
 0x7b9   :  { %716 = vrot.lane.b32.xlu1 %v712_v24, %s6518_s5 }
 0x7be   :  { %v709_v26 = vpop.permute.xlu1 %708 }
 0x7bf   :  { %v713_v27 = vmax.f32 %v703_v21, %v709_v26 }
 0x7c1   :  { %5872 = vrot.lane.b32.xlu1 %v5871_v25, %s6516_s21  ;;  %718 = vrot.lane.b32.xlu2 %v713_v27, %s6518_s5 }
 0x7c6   :  { %v769_v28 = vpop.permute.xlu1 %768 }
 0x7c7   :  { %5571 = vmatpush.msk.msra.mxu2 %vm107_vm0, %v769_v28 }
 0x7c8   :  { %5572 = vmatmul.msk.f32.vlgmr.msra.gmra.mxu2 %vm100_vm1, %v6615_v1 }
 0x7c9   :  { %5887 = vrot.lane.b32.xlu2 %v5881_v44, %s6511_s26 }
 0x7d0   :  { %5573 = vmatmul.msk.f32.gmra.mxu2 %vm100_vm1, %v6623_v2 }
 0x7d1   :  { %858 = vrot.lane.b32.xlu2 %v6779_v48, %s6521_s30 }
 0x81b   :  { %v719_v34 = vpop.permute.xlu2 %718 }
 0x81c   :  { %v723_v35 = vmax.f32 %v713_v27, %v719_v34  ;;  %v6822_v34 = vld [vmem:[%s8009_s0 + $0x8] sm:$0xff] }
 0x81e   :  { %v725_v36 = vmax.f32 %v723_v35, 0.0 }
 0x82b   :  { %v717_v29 = vpop.permute.xlu1 %716 }
 0x82c   :  { %v722_v30 = vmax.f32 %v712_v24, %v717_v29 }
 0x82e   :  { %v724_v33 = vmax.f32 %v722_v30, 0.0 }
 0x833   :  { %v5873_v31 = vpop.permute.xlu1 %5872 }
 0x834   :  { %v5875_v32 = vunpack.i.h.bf16 %v5873_v31  ;;  %v5874_v62 = vunpack.i.l.bf16 %v5873_v31 }
 0x836   :  { %v735_v7 = vsel %vm142_vm2, %v5874_v62, %v5875_v32  ;;  %v6815_v62 = vld [vmem:[%s8009_s0] sm:$0xff]  ;;  %s6523_s0 = smov 116  }
 0x837   :  { %759 = vmatpush.msra.mxu1 %v735_v7 }
 0x838   :  { %5569 = vmatmul.msk.f32.vlgmr.msra.gmra.mxu1 %vm737_vm12, %v724_v33 }
 0x840   :  { %5570 = vmatmul.msk.f32.gmra.mxu1 %vm737_vm12, %v725_v36 }
 0x84b   :  { %v789_v1 = vpop.f32.mrf.mxu2 }
 0x853   :  { %v792_v2 = vpop.f32.mrf.mxu2 }
 0x8b5   :  { %v761_v37 = vpop.f32.mrf.mxu1 }
 0x8b6   :  { %v790_v39 = vadd.f32 %v789_v1, %v761_v37 }
 0x8b8   :  { %v840_v59 = vadd.f32 %v6779_v48, %v790_v39 }
 0x8ba   :  { %v842_v3 = vmax.f32 %v840_v59, 0.0 }
 0x8bd   :  { %v764_v38 = vpop.f32.mrf.mxu1 }
 0x8be   :  { %v793_v40 = vadd.f32 %v792_v2, %v764_v38 }
 0x8c0   :  { %v5876_v41 = vpack.i.bf16 %v790_v39, %v793_v40  ;;  %v841_v4 = vadd.f32 %v6779_v48, %v793_v40 }
 0x8c2   :  { %5877 = vrot.lane.b32.xlu0 %v5876_v41, %s6518_s5  ;;  %v843_v5 = vmax.f32 %v841_v4, 0.0 }
 0x934   :  { %v5878_v45 = vpop.permute.xlu0 %5877 }
 0x935   :  { %v5879_v53 = vunpack.i.l.bf16 %v5878_v45  ;;  %v5880_v42 = vunpack.i.h.bf16 %v5878_v45 }
 0x937   :  { %817 = vmatpush.msra.mxu3 %v5879_v53 }
 0x939   :  { %818 = vmatpush.msra.mxu3 %v5880_v42 }
 0x93a   :  { %5574 = vmatmul.msk.f32.vlgmr.msra.gmra.mxu3 %vm142_vm2, %v6631_v9  ;;  %v5888_v9 = vpop.permute.xlu2 %5887 }
 0x93b   :  { %v5889_v49 = vunpack.i.l.bf16 %v5888_v9 }
 0x93d   :  { %925 = vmatpush.msrb.mxu1 %v5889_v49 }
 0x942   :  { %5575 = vmatmul.msk.f32.gmra.mxu3 %vm142_vm2, %v6638_v10  ;;  %v5890_v10 = vunpack.i.h.bf16 %v5888_v9  ;;  %v859_v13 = vpop.permute.xlu2 %858 }
 0x944   :  { %926 = vmatpush.msrb.mxu1 %v5890_v10 }
 0x9bd   :  { %v820_v46 = vpop.f32.mrf.mxu3 }
 0x9be   :  { %828 = vrot.lane.b32.xlu1 %v820_v46, %s6516_s21 }
 0x9c5   :  { %v823_v47 = vpop.f32.mrf.mxu3 }
 0x9c6   :  { %830 = vrot.lane.b32.xlu1 %v823_v47, %s6516_s21 }
 0x9ce   :  { %5882 = vrot.lane.b32.xlu1 %v5881_v44, %s6518_s5 }
 0xa30   :  { %v829_v50 = vpop.permute.xlu1 %828 }
 0xa31   :  { %v834_v51 = vsub.f32 %v790_v39, %v829_v50 }
 0xa33   :  { %v844_v52 = vadd.f32 %v6779_v48, %v834_v51 }
 0xa35   :  { %v846_v54 = vmax.f32 %v844_v52, 0.0 }
 0xa37   :  { %894 = vrot.lane.b32.xlu0 %v846_v54, %s6518_s5 }
 0xa38   :  { %v831_v55 = vpop.permute.xlu1 %830 }
 0xa39   :  { %v835_v56 = vsub.f32 %v793_v40, %v831_v55 }
 0xa3b   :  { %v845_v57 = vadd.f32 %v6779_v48, %v835_v56 }
 0xa3d   :  { %v847_v58 = vmax.f32 %v845_v57, 0.0 }
 0xa3f   :  { %896 = vrot.lane.b32.xlu1 %v847_v58, %s6518_s5  ;;  %904 = vrot.lane.b32.xlu0 %v6779_v48, %s6517_s22 }
 0xa40   :  { %v5883_v60 = vpop.permute.xlu1 %5882 }
 0xa41   :  { %v5885_v61 = vunpack.i.h.bf16 %v5883_v60  ;;  %v5884_v0 = vunpack.i.l.bf16 %v5883_v60 }
 0xa43   :  { %881 = vmatpush.msrb.mxu0 %v5884_v0 }
 0xa45   :  { %882 = vmatpush.msrb.mxu0 %v5885_v61 }
 0xa46   :  { %5576 = vmatmul.msk.f32.vlgmr.msrb.gmra.mxu0 %vm142_vm2, %v842_v3 }
 0xa47   :  { %1002 = vrot.lane.b32.xlu0 %v1000_v11, %s6522_s18 }
 0xa4e   :  { %5577 = vmatmul.msk.f32.gmra.mxu0 %vm142_vm2, %v843_v5 }
 0xa4f   :  { %1029 = vrot.lane.b32.xlu0 %v6753_v63, %s6521_s30 }
 0xa57   :  { %1061 = vrot.lane.b32.xlu0 %v6779_v48, %s6513_s15 }
 0xaa9   :  { %v895_v6 = vpop.permute.xlu0 %894 }
 0xaaa   :  { %5578 = vmatmul.msk.f32.vlgmr.msrb.gmra.mxu1 %vm142_vm2, %v895_v6 }
 0xab1   :  { %v897_v8 = vpop.permute.xlu1 %896  ;;  %v905_v15 = vpop.permute.xlu0 %904 }
 0xab2   :  { %5579 = vmatmul.msk.f32.gmra.mxu1 %vm142_vm2, %v897_v8 }
 0xab9   :  { %v1003_v32 = vpop.permute.xlu0 %1002 }
 0xaba   :  { %5580 = vmatpush.msk.msrb.mxu2 %vm107_vm0, %v1003_v32 }
 0xabb   :  { %5581 = vmatmul.msk.f32.vlgmr.msrb.gmra.mxu2 %vm100_vm1, %v6815_v62 }
 0xac1   :  { %v1030_v7 = vpop.permute.xlu0 %1029 }
 0xac2   :  { %1053 = vmatpush.msrb.mxu3 %v1030_v7  ;;  %v6859_v7 = vld [vmem:[%s8012_s3] sm:$0xff] }
 0xac3   :  { %v884_v12 = vpop.f32.mrf.mxu0  ;;  %5582 = vmatmul.msk.f32.gmra.mxu2 %vm100_vm1, %v6822_v34 }
 0xac4   :  { %v885_v14 = vadd.f32 %v884_v12, %v859_v13 }
 0xac6   :  { %6173 = vtanh.f32 %v885_v14 }
 0xacb   :  { %v887_v18 = vpop.f32.mrf.mxu0 }
 0xacc   :  { %v888_v19 = vadd.f32 %v887_v18, %v859_v13  ;;  %v6174_v20 = vpop.eup %6173 }
 0xb27   :  { %v928_v16 = vpop.f32.mrf.mxu1 }
 0xb28   :  { %v929_v17 = vadd.f32 %v928_v16, %v905_v15 }
 0xb2a   :  { %6175 = vtanh.f32 %v929_v17 }
 0xb2b   :  { %6177 = vtanh.f32 %v888_v19 }
 0xb2f   :  { %v931_v21 = vpop.f32.mrf.mxu1 }
 0xb30   :  { %v6176_v22 = vpop.eup %6175  ;;  %v932_v23 = vadd.f32 %v931_v21, %v905_v15 }
 0xb31   :  { %v6801_v24 = vadd.f32 %v6176_v22, %v6174_v20  ;;  %v6178_v27 = vpop.eup %6177  ;;  %v1062_v20 = vpop.permute.xlu0 %1061 }
 0xb32   :  { %6179 = vtanh.f32 %v932_v23 }
 0xb33   :  { %v938_v25 = vmul.f32 %v6801_v24, %v6801_v24 }
 0xb35   :  { %v940_v26 = vsel %vm737_vm12, %v938_v25, 0.0 }
 0xb36   :  { %941 = vadd.xlane.f32.xlu1 %v940_v26 }
 0xb38   :  { %v6180_v28 = vpop.eup %6179 }
 0xb39   :  { %v6806_v29 = vadd.f32 %v6180_v28, %v6178_v27 }
 0xb3b   :  { %v939_v30 = vmul.f32 %v6806_v29, %v6806_v29 }
 0xb3d   :  { %v943_v31 = vsel %vm737_vm12, %v939_v30, 0.0 }
 0xb3e   :  { %944 = vadd.xlane.f32.xlu2 %v943_v31  ;;  %v1023_v18 = vpop.f32.mrf.mxu2 }
 0xb46   :  { %v1026_v23 = vpop.f32.mrf.mxu2 }
 0xba9   :  { %v942_v33 = vpop.xlane.xlu1 %941 }
 0xbaa   :  { %6181 = vrsqrt.f32 %v942_v33  ;;  %vm953_vm13 = vcmp.eq.f32.partialorder %v942_v33, inf  ;;  %v956_v42 = vand.u32 2147483648, %v942_v33  ;;  %vm955_vm14 = vcmp.eq.f32.partialorder %v942_v33, 0.0 }
 0xbb0   :  { %v6182_v35 = vpop.eup %6181 }
 0xbb1   :  { %v947_v36 = vmul.f32 %v6182_v35, %v942_v33  ;;  %v945_v1 = vpop.xlane.xlu2 %944 }
 0xbb2   :  { %6183 = vrsqrt.f32 %v945_v1  ;;  %vm965_vm15 = vcmp.eq.f32.partialorder %v945_v1, inf  ;;  %v968_v49 = vand.u32 2147483648, %v945_v1  ;;  %vm967_vm6 = vcmp.eq.f32.partialorder %v945_v1, 0.0 }
 0xbb3   :  { %v948_v37 = vmul.f32 %v6182_v35, %v947_v36 }
 0xbb5   :  { %v949_v2 = vmul.f32 0.5, %v948_v37 }
 0xbb7   :  { %v950_v38 = vsub.f32 1.5, %v949_v2  ;;  %v6868_v2 = vld [vmem:[%s8012_s3 + $0x8] sm:$0xff] }
 0xbb8   :  { %v6184_v39 = vpop.eup %6183 }
 0xbb9   :  { %v951_v40 = vmul.f32 %v6182_v35, %v950_v38  ;;  %v959_v41 = vmul.f32 %v6184_v39, %v945_v1 }
 0xbbb   :  { %v952_v45 = vmul.f32 %v951_v40, %v942_v33  ;;  %v960_v53 = vmul.f32 %v6184_v39, %v959_v41 }
 0xbbd   :  { %v954_v43 = vsel %vm953_vm13, %v942_v33, %v952_v45  ;;  %v961_v44 = vmul.f32 0.5, %v960_v53 }
 0xbbe   :  { %v957_v46 = vsel %vm955_vm14, %v956_v42, %v954_v43 }
 0xbbf   :  { %v962_v47 = vsub.f32 1.5, %v961_v44  ;;  %6185 = vrcp.f32 %v957_v46  ;;  %v981_v56 = vand.u32 2147483648, %v957_v46  ;;  %v979_v58 = vand.u32 2147483647, %v957_v46 }
 0xbc0   :  { %vm975_vm9 = vweird.f32 %v957_v46 }
 0xbc1   :  { %v963_v9 = vmul.f32 %v6184_v39, %v962_v47  ;;  %v982_v61 = vor.u32 1.1754944e-38, %v981_v56  ;;  %vm980_vm11 = vcmp.eq.f32.partialorder %v979_v58, 8.507059e+37 }
 0xbc3   :  { %v964_v10 = vmul.f32 %v963_v9, %v945_v1 }
 0xbc5   :  { %v6186_v50 = vpop.eup %6185  ;;  %v966_v51 = vsel %vm965_vm15, %v945_v1, %v964_v10 }
 0xbc6   :  { %v971_v52 = vmul.f32 %v6186_v50, %v957_v46  ;;  %v969_v54 = vsel %vm967_vm6, %v968_v49, %v966_v51  ;;  %vm976_vm7 = vweird.f32 %v6186_v50 }
 0xbc7   :  { %6187 = vrcp.f32 %v969_v54  ;;  %vm977_vm10 = vmor %vm975_vm9, %vm976_vm7  ;;  %v996_v8 = vand.u32 2147483648, %v969_v54  ;;  %v994_v12 = vand.u32 2147483647, %v969_v54  ;;  %vm990_vm14 = vweird.f32 %v969_v54 }
 0xbc8   :  { %v972_v55 = vsub.f32 1.0, %v971_v52  ;;  %vm1072_vm7 = vcmask 31744   ;;  %vm95_vm9 = vcmp.gt.f32.partialorder %v6859_v7, 0.0 }
 0xbc9   :  { %v997_v14 = vor.u32 1.1754944e-38, %v996_v8  ;;  %vm995_vm6 = vcmp.eq.f32.partialorder %v994_v12, 8.507059e+37 }
 0xbca   :  { %v973_v57 = vmul.f32 %v6186_v50, %v972_v55 }
 0xbcc   :  { %v974_v59 = vadd.f32 %v6186_v50, %v973_v57 }
 0xbcd   :  { %v6188_v60 = vpop.eup %6187 }
 0xbce   :  { %v978_v0 = vsel %vm977_vm10, %v6186_v50, %v974_v59  ;;  %v986_v3 = vmul.f32 %v6188_v60, %v969_v54  ;;  %vm991_vm13 = vweird.f32 %v6188_v60  ;;  %vm96_vm10 = vcmp.gt.f32.partialorder %v6868_v2, 0.0 }
 0xbcf   :  { %v983_v4 = vsel %vm980_vm11, %v982_v61, %v978_v0  ;;  %vm992_vm15 = vmor %vm990_vm14, %vm991_vm13 }
 0xbd0   :  { %v984_v5 = vmul.f32 %v983_v4, %v6801_v24  ;;  %v987_v6 = vsub.f32 1.0, %v986_v3 }
 0xbd2   :  { %5583 = vmatmul.msk.f32.vlgmr.msrb.gmra.mxu3 %vm737_vm12, %v984_v5  ;;  %v988_v11 = vmul.f32 %v6188_v60, %v987_v6 }
 0xbd4   :  { %v989_v13 = vadd.f32 %v6188_v60, %v988_v11 }
 0xbd6   :  { %v993_v15 = vsel %vm992_vm15, %v6188_v60, %v989_v13 }
 0xbd7   :  { %v998_v16 = vsel %vm995_vm6, %v997_v14, %v993_v15 }
 0xbd8   :  { %v999_v17 = vmul.f32 %v998_v16, %v6806_v29 }
 0xbda   :  { %5584 = vmatmul.msk.f32.gmra.mxu3 %vm737_vm12, %v999_v17  ;;  %v1191_v17 = vld [vmem:[#allocation2 + $0x18] sm:$0xf] }
 0xc55   :  { %v1055_v19 = vpop.f32.mrf.mxu3 }
 0xc56   :  { %v1056_v21 = vadd.f32 %v1055_v19, %v1023_v18 }
 0xc58   :  { %v6830_v22 = vadd.f32 %v1062_v20, %v1056_v21 }
 0xc5a   :  { %1068 = vrot.lane.b32.xlu1 %v6830_v22, %s6520_s27  ;;  %1241 = vrot.lane.b32.xlu2 %v6830_v22, %s6523_s0 }
 0xc5d   :  { %v1058_v24 = vpop.f32.mrf.mxu3 }
 0xc5e   :  { %v1059_v25 = vadd.f32 %v1058_v24, %v1026_v23 }
 0xc60   :  { %v6836_v26 = vadd.f32 %v1062_v20, %v1059_v25 }
 0xc62   :  { %1070 = vrot.lane.b32.xlu0 %v6836_v26, %s6520_s27  ;;  %v5891_v11 = vpack.i.bf16 %v6830_v22, %v6836_v26 }
 0xc6a   :  { %1243 = vrot.lane.b32.xlu0 %v6836_v26, %s6523_s0 }
 0xc72   :  { %1237 = vrot.lane.b32.xlu0 %v6830_v22, %s6524_s9 }
 0xc7a   :  { %1239 = vrot.lane.b32.xlu0 %v6836_v26, %s6524_s9 }
 0xcb4   :  { %v1242_v30 = vpop.permute.xlu2 %1241 }
 0xccc   :  { %v1069_v28 = vpop.permute.xlu1 %1068 }
 0xcd4   :  { %v1071_v27 = vpop.permute.xlu0 %1070 }
 0xcd5   :  { %5585 = vmatpush.xpose.msk.msra.mxu0 %vm1072_vm7, %v1071_v27 }
 0xcd9   :  { %5586 = vmatpush.xpose.msk.msra.mxu0 %vm1072_vm7, %v1069_v28 }
 0xcdc   :  { %5587 = vmatmul.msk.f32.vlgmr.msra.gmra.mxu0 %vm1072_vm7, %v6830_v22  ;;  %v1244_v29 = vpop.permute.xlu0 %1243 }
 0xcdd   :  { %5594 = vmatpush.xpose.msk.msra.mxu3 %vm1072_vm7, %v1244_v29 }
 0xce1   :  { %5595 = vmatpush.xpose.msk.msra.mxu3 %vm1072_vm7, %v1242_v30 }
 0xce4   :  { %5588 = vmatmul.msk.f32.gmra.mxu0 %vm1072_vm7, %v6836_v26  ;;  %v1238_v31 = vpop.permute.xlu0 %1237 }
 0xce5   :  { %5596 = vmatmul.msk.f32.vlgmr.msra.gmra.mxu3 %vm1072_vm7, %v1238_v31 }
 0xcec   :  { %v1240_v32 = vpop.permute.xlu0 %1239 }
 0xced   :  { %5597 = vmatmul.msk.f32.gmra.mxu3 %vm1072_vm7, %v1240_v32 }
 0xd59   :  { %v1098_v33 = vpop.f32.mrf.mxu0 }
 0xd5a   :  { %v1104_v35 = vmul.f32 0.5, %v1098_v33 }
 0xd5c   :  { %v1106_v36 = vsel %vm95_vm9, %v1104_v35, -inf }
 0xd5d   :  { %v1108_v1 = vsel %vm142_vm2, %v1106_v36, -inf }
 0xd5e   :  { %1109 = vmax.xlane.f32.xlu0 %v1108_v1 }
 0xd61   :  { %v1101_v37 = vpop.f32.mrf.mxu0 }
 0xd62   :  { %v1105_v38 = vmul.f32 0.5, %v1101_v37 }
 0xd64   :  { %v1107_v39 = vsel %vm96_vm10, %v1105_v38, -inf }
 0xd65   :  { %v1111_v40 = vsel %vm142_vm2, %v1107_v39, -inf }
 0xd66   :  { %1112 = vmax.xlane.f32.xlu1 %v1111_v40 }
 0xd68   :  { %v1270_v41 = vpop.f32.mrf.mxu3 }
 0xd69   :  { %v1276_v45 = vmul.f32 0.5, %v1270_v41 }
 0xd6b   :  { %v1278_v53 = vsel %vm95_vm9, %v1276_v45, -inf }
 0xd6c   :  { %v1280_v42 = vsel %vm142_vm2, %v1278_v53, -inf }
 0xd6d   :  { %1281 = vmax.xlane.f32.xlu2 %v1280_v42 }
 0xd70   :  { %v1273_v43 = vpop.f32.mrf.mxu3 }
 0xd71   :  { %v1277_v44 = vmul.f32 0.5, %v1273_v43 }
 0xd73   :  { %v1279_v46 = vsel %vm96_vm10, %v1277_v44, -inf }
 0xd74   :  { %v1283_v47 = vsel %vm142_vm2, %v1279_v46, -inf }
 0xd75   :  { %1284 = vmax.xlane.f32.xlu0 %v1283_v47 }
 0xdd1   :  { %v1110_v9 = vpop.xlane.xlu0 %1109 }
 0xdd2   :  { %v1114_v10 = vsub.f32 %v1106_v36, %v1110_v9 }
 0xdd4   :  { %v1116_v49 = vmul.f32 1.442695, %v1114_v10 }
 0xdd6   :  { %6189 = vpow2.f32 %v1116_v49 }
 0xdd9   :  { %v1113_v50 = vpop.xlane.xlu1 %1112 }
 0xdda   :  { %v1115_v51 = vsub.f32 %v1107_v39, %v1113_v50 }
 0xddc   :  { %v6880_v52 = vpop.eup %6189  ;;  %v1118_v54 = vmul.f32 1.442695, %v1115_v51 }
 0xddd   :  { %v1120_v55 = vsel %vm142_vm2, %v6880_v52, 0.0 }
 0xdde   :  { %6191 = vpow2.f32 %v1118_v54  ;;  %1121 = vadd.xlane.f32.xlu2 %v1120_v55 }
 0xde0   :  { %v1282_v56 = vpop.xlane.xlu2 %1281 }
 0xde1   :  { %v1286_v57 = vsub.f32 %v1278_v53, %v1282_v56 }
 0xde3   :  { %v1288_v58 = vmul.f32 1.442695, %v1286_v57 }
 0xde4   :  { %v6884_v59 = vpop.eup %6191 }
 0xde5   :  { %6193 = vpow2.f32 %v1288_v58  ;;  %v1123_v60 = vsel %vm142_vm2, %v6884_v59, 0.0 }
 0xde6   :  { %1124 = vadd.xlane.f32.xlu1 %v1123_v60 }
 0xde8   :  { %v1285_v61 = vpop.xlane.xlu0 %1284 }
 0xde9   :  { %v1287_v0 = vsub.f32 %v1279_v46, %v1285_v61 }
 0xdeb   :  { %v6888_v3 = vpop.eup %6193  ;;  %v1290_v4 = vmul.f32 1.442695, %v1287_v0 }
 0xdec   :  { %v1292_v5 = vsel %vm142_vm2, %v6888_v3, 0.0 }
 0xded   :  { %6195 = vpow2.f32 %v1290_v4  ;;  %1293 = vadd.xlane.f32.xlu0 %v1292_v5 }
 0xdf3   :  { %v6892_v6 = vpop.eup %6195 }
 0xdf4   :  { %v1295_v8 = vsel %vm142_vm2, %v6892_v6, 0.0 }
 0xdf5   :  { %1296 = vadd.xlane.f32.xlu2 %v1295_v8 }
 0xdff   :  { %5892 = vrot.lane.b32.xlu1 %v5891_v11, %s6518_s5 }
 0xe01   :  { %5897 = vrot.lane.b32.xlu0 %v5891_v11, %s6525_s23 }
 0xe09   :  { %1363 = vrot.lane.b32.xlu0 %v1191_v17, %s6508_s17 }
 0xe0d   :  { %1193 = vrot.lane.b32.xlu2 %v1191_v17, %s6512_s14 }
 0xe51   :  { %v1122_v12 = vpop.xlane.xlu2 %1121 }
 0xe52   :  { %6197 = vrcp.f32 %v1122_v12  ;;  %v1137_v28 = vand.u32 2147483648, %v1122_v12  ;;  %vm1131_vm13 = vweird.f32 %v1122_v12  ;;  %v1135_v30 = vand.u32 2147483647, %v1122_v12 }
 0xe54   :  { %v1138_v38 = vor.u32 1.1754944e-38, %v1137_v28 }
 0xe58   :  { %v6198_v14 = vpop.eup %6197 }
 0xe59   :  { %v6900_v13 = vpop.xlane.xlu1 %1124  ;;  %v1127_v15 = vmul.f32 %v6198_v14, %v1122_v12  ;;  %vm1132_vm11 = vweird.f32 %v6198_v14 }
 0xe5a   :  { %6199 = vrcp.f32 %v6900_v13  ;;  %vm6909_vm15 = vmor %vm1131_vm13, %vm1132_vm11  ;;  %vm1136_vm11 = vcmp.eq.f32.partialorder %v1135_v30, 8.507059e+37  ;;  %v1152_v9 = vand.u32 2147483648, %v6900_v13  ;;  %v1150_v55 = vand.u32 2147483647, %v6900_v13 }
 0xe5b   :  { %v1128_v18 = vsub.f32 1.0, %v1127_v15 }
 0xe5c   :  { %v1153_v0 = vor.u32 1.1754944e-38, %v1152_v9  ;;  %vm1151_vm5 = vcmp.eq.f32.partialorder %v1150_v55, 8.507059e+37 }
 0xe5d   :  { %v1129_v21 = vmul.f32 %v6198_v14, %v1128_v18 }
 0xe5f   :  { %v1130_v26 = vadd.f32 %v6198_v14, %v1129_v21  ;;  %v1406_v21 = vld [vmem:[#allocation2 + $0x18] sm:$0x3f] }
 0xe60   :  { %v1294_v16 = vpop.xlane.xlu0 %1293  ;;  %v6905_v19 = vpop.eup %6199 }
 0xe61   :  { %6201 = vrcp.f32 %v1294_v16  ;;  %v1142_v22 = vmul.f32 %v6905_v19, %v6900_v13  ;;  %v1309_v33 = vand.u32 2147483648, %v1294_v16  ;;  %v1134_v36 = vsel %vm6909_vm15, %v6198_v14, %v1130_v26 }
 0xe62   :  { %vm1303_vm6 = vweird.f32 %v1294_v16  ;;  %v1307_v1 = vand.u32 2147483647, %v1294_v16  ;;  %v1139_v44 = vsel %vm1136_vm11, %v1138_v38, %v1134_v36  ;;  %vm1147_vm15 = vweird.f32 %v6905_v19 }
 0xe63   :  { %v1143_v27 = vsub.f32 1.0, %v1142_v22  ;;  %v1310_v53 = vor.u32 1.1754944e-38, %v1309_v33  ;;  %v6926_v54 = vmul.f32 %v6880_v52, %v1139_v44  ;;  %v1407_v22 = vld [vmem:[#allocation2 + $0x20] sm:$0x3f] }
 0xe64   :  { %vm1308_vm13 = vcmp.eq.f32.partialorder %v1307_v1, 8.507059e+37 }
 0xe65   :  { %v1144_v37 = vmul.f32 %v6905_v19, %v1143_v27 }
 0xe67   :  { %v6202_v20 = vpop.eup %6201  ;;  %v1145_v47 = vadd.f32 %v6905_v19, %v1144_v37 }
 0xe68   :  { %v1299_v23 = vmul.f32 %v6202_v20, %v1294_v16  ;;  %v1297_v24 = vpop.xlane.xlu2 %1296  ;;  %vm1304_vm14 = vweird.f32 %v6202_v20 }
 0xe69   :  { %6203 = vrcp.f32 %v1297_v24  ;;  %vm6916_vm8 = vmor %vm1303_vm6, %vm1304_vm14  ;;  %v1324_v58 = vand.u32 2147483648, %v1297_v24  ;;  %vm1318_vm11 = vweird.f32 %v1297_v24  ;;  %v1322_v61 = vand.u32 2147483647, %v1297_v24 }
 0xe6a   :  { %v1300_v25 = vsub.f32 1.0, %v1299_v23 }
 0xe6b   :  { %v1325_v8 = vor.u32 1.1754944e-38, %v1324_v58 }
 0xe6c   :  { %v1301_v29 = vmul.f32 %v6202_v20, %v1300_v25 }
 0xe6e   :  { %v1302_v32 = vadd.f32 %v6202_v20, %v1301_v29 }
 0xe6f   :  { %v6204_v35 = vpop.eup %6203 }
 0xe70   :  { %v1314_v40 = vmul.f32 %v6204_v35, %v1297_v24  ;;  %v1306_v41 = vsel %vm6916_vm8, %v6202_v20, %v1302_v32  ;;  %vm1146_vm8 = vweird.f32 %v6900_v13  ;;  %vm1319_vm14 = vweird.f32 %v6204_v35  ;;  %v1194_v13 = vpop.permute.xlu2 %1193 }
 0xe71   :  { %v5893_v45 = vpop.permute.xlu1 %5892  ;;  %v1311_v50 = vsel %vm1308_vm13, %v1310_v53, %v1306_v41  ;;  %vm1148_vm6 = vmor %vm1146_vm8, %vm1147_vm15  ;;  %vm1323_vm15 = vcmp.eq.f32.partialorder %v1322_v61, 8.507059e+37  ;;  %vm1201_vm8 = vcmask 1043456  }
 0xe72   :  { %v1315_v42 = vsub.f32 1.0, %v1314_v40  ;;  %v5894_v43 = vunpack.i.l.bf16 %v5893_v45  ;;  %v5895_v10 = vunpack.i.h.bf16 %v5893_v45  ;;  %v6933_v60 = vmul.f32 %v6888_v3, %v1311_v50  ;;  %vm1320_vm13 = vmor %vm1318_vm11, %vm1319_vm14  ;;  %5591 = vmatpush.msk.msra.mxu2 %vm1201_vm8, %v1194_v13 }
 0xe73   :  { %v5898_v46 = vpop.permute.xlu0 %5897  ;;  %v1149_v52 = vsel %vm1148_vm6, %v6905_v19, %v1145_v47 }
 0xe74   :  { %v5899_v49 = vunpack.i.l.bf16 %v5898_v46  ;;  %1182 = vmatpush.msra.mxu1 %v5894_v43  ;;  %v1316_v51 = vmul.f32 %v6204_v35, %v1315_v42  ;;  %v5900_v56 = vunpack.i.h.bf16 %v5898_v46  ;;  %v1154_v5 = vsel %vm1151_vm5, %v1153_v0, %v1149_v52 }
 0xe75   :  { %v6939_v12 = vmul.f32 %v6884_v59, %v1154_v5  ;;  %vm1695_vm5 = vcmp.eq.f32.partialorder %v6933_v60, 0.0 }
 0xe76   :  { %1183 = vmatpush.msra.mxu1 %v5895_v10  ;;  %1354 = vmatpush.msrb.mxu0 %v5899_v49  ;;  %v1317_v57 = vadd.f32 %v6204_v35, %v1316_v51 }
 0xe77   :  { %5589 = vmatmul.msk.f32.vlgmr.msra.gmra.mxu1 %vm142_vm2, %v6926_v54 }
 0xe78   :  { %1355 = vmatpush.msrb.mxu0 %v5900_v56  ;;  %v1321_v4 = vsel %vm1320_vm13, %v6204_v35, %v1317_v57 }
 0xe79   :  { %5598 = vmatmul.msk.f32.vlgmr.msrb.gmra.mxu0 %vm142_vm2, %v6933_v60  ;;  %v1326_v11 = vsel %vm1323_vm15, %v1325_v8, %v1321_v4 }
 0xe7a   :  { %v6944_v3 = vmul.f32 %v6892_v6, %v1326_v11 }
 0xe7b   :  { %v1364_v14 = vpop.permute.xlu0 %1363 }
 0xe7c   :  { %5600 = vmatpush.msk.msrb.mxu1 %vm1201_vm8, %v1364_v14  ;;  %vm1696_vm14 = vcmp.eq.f32.partialorder %v6944_v3, 0.0 }
 0xe7f   :  { %5590 = vmatmul.msk.f32.gmra.mxu1 %vm142_vm2, %v6939_v12 }
 0xe81   :  { %5599 = vmatmul.msk.f32.gmra.mxu0 %vm142_vm2, %v6944_v3 }
 0xef4   :  { %v1185_v15 = vpop.f32.mrf.mxu1 }
 0xef5   :  { %5592 = vmatmul.msk.f32.vlgmr.msra.gmra.mxu2 %vm1072_vm7, %v1185_v15 }
 0xef6   :  { %v1357_v59 = vpop.f32.mrf.mxu0 }
 0xef7   :  { %5601 = vmatmul.msk.f32.vlgmr.msrb.gmra.mxu1 %vm1072_vm7, %v1357_v59 }
 0xefc   :  { %v1188_v16 = vpop.f32.mrf.mxu1 }
 0xefd   :  { %5593 = vmatmul.msk.f32.gmra.mxu2 %vm1072_vm7, %v1188_v16 }
 0xefe   :  { %v1360_v6 = vpop.f32.mrf.mxu0 }
 0xeff   :  { %5602 = vmatmul.msk.f32.gmra.mxu1 %vm1072_vm7, %v1360_v6 }
 0xf74   :  { %v1390_v17 = vpop.f32.mrf.mxu1 }
 0xf75   :  { %1398 = vrot.lane.b32.xlu0 %v1390_v17, %s6522_s18 }
 0xf78   :  { %v1221_v18 = vpop.f32.mrf.mxu2 }
 0xf79   :  { %1229 = vrot.lane.b32.xlu1 %v1221_v18, %s6522_s18 }
 0xf7c   :  { %v1393_v19 = vpop.f32.mrf.mxu1 }
 0xf7d   :  { %1410 = vrot.lane.b32.xlu0 %v1406_v21, %s6526_s24 }
 0xf80   :  { %v1224_v20 = vpop.f32.mrf.mxu2 }
 0xf81   :  { %1231 = vrot.lane.b32.xlu2 %v1224_v20, %s6522_s18  ;;  %1400 = vrot.lane.b32.xlu1 %v1393_v19, %s6522_s18 }
 0xf89   :  { %1446 = vrot.lane.b32.xlu1 %v6753_v63, %s6519_s25  ;;  %1412 = vrot.lane.b32.xlu2 %v1407_v22, %s6526_s24 }
 0xf91   :  { %1476 = vrot.lane.b32.xlu1 %v6779_v48, %s6512_s14 }
 0xfdb   :  { %v1232_v27 = vpop.permute.xlu2 %1231 }
 0xfdc   :  { %v1236_v63 = vadd.f32 %v6779_v48, %v1232_v27 }
 0xfe3   :  { %v1413_v31 = vpop.permute.xlu2 %1412 }
 0xfe7   :  { %v1399_v25 = vpop.permute.xlu0 %1398 }
 0xfeb   :  { %v1230_v23 = vpop.permute.xlu1 %1229 }
 0xfec   :  { %v1235_v24 = vadd.f32 %v6779_v48, %v1230_v23 }
 0xfee   :  { %v1404_v26 = vadd.f32 %v1399_v25, %v1235_v24 }
 0xfef   :  { %v1411_v32 = vpop.permute.xlu0 %1410 }
 0xff0   :  { %1442 = vrot.lane.b32.xlu0 %v1404_v26, %s8025_s28  ;;  %v1414_v33 = vsel %vm737_vm12, %v1411_v32, %v1413_v31 }
 0xff1   :  { %5603 = vmatpush.msk.msrb.mxu2 %vm107_vm0, %v1414_v33  ;;  %vm1520_vm0 = vcmp.eq.f32.partialorder %v6926_v54, 0.0 }
 0xff2   :  { %5604 = vmatmul.msk.f32.vlgmr.msrb.gmra.mxu2 %vm100_vm1, %v6815_v62 }
 0xff3   :  { %v1401_v28 = vpop.permute.xlu1 %1400 }
 0xff4   :  { %v1405_v29 = vadd.f32 %v1401_v28, %v1236_v63 }
 0xff6   :  { %1444 = vrot.lane.b32.xlu2 %v1405_v29, %s8025_s28 }
 0xffa   :  { %5605 = vmatmul.msk.f32.gmra.mxu2 %vm100_vm1, %v6822_v34  ;;  %vm1521_vm1 = vcmp.eq.f32.partialorder %v6939_v12, 0.0 }
 0xffb   :  { %v1447_v30 = vpop.permute.xlu1 %1446 }
 0xffc   :  { %1468 = vmatpush.msrb.mxu3 %v1447_v30 }
0x1003   :  { %v1477_v37 = vpop.permute.xlu1 %1476 }
0x1050   :  { %v1445_v48 = vpop.permute.xlu2 %1444 }
0x1062   :  { %v1443_v35 = vpop.permute.xlu0 %1442 }
0x1063   :  { %5606 = vmatmul.msk.f32.vlgmr.msrb.gmra.mxu3 %vm737_vm12, %v1443_v35  ;;  %v1609_v35 = vld [vmem:[#allocation2 + $0x20] sm:$0xf] }
0x106b   :  { %5607 = vmatmul.msk.f32.gmra.mxu3 %vm737_vm12, %v1445_v48 }
0x1075   :  { %v1434_v36 = vpop.f32.mrf.mxu2 }
0x107d   :  { %v1437_v40 = vpop.f32.mrf.mxu2 }
0x10e6   :  { %v1470_v1 = vpop.f32.mrf.mxu3 }
0x10e7   :  { %v1471_v38 = vadd.f32 %v1470_v1, %v1434_v36 }
0x10e9   :  { %v6976_v39 = vadd.f32 %v1477_v37, %v1471_v38 }
0x10eb   :  { %1483 = vrot.lane.b32.xlu1 %v6976_v39, %s6520_s27 }
0x10ee   :  { %v1473_v62 = vpop.f32.mrf.mxu3 }
0x10ef   :  { %v1474_v41 = vadd.f32 %v1473_v62, %v1437_v40 }
0x10f1   :  { %v6980_v45 = vadd.f32 %v1477_v37, %v1474_v41 }
0x10f3   :  { %1660 = vrot.lane.b32.xlu2 %v6980_v45, %s6523_s0  ;;  %1485 = vrot.lane.b32.xlu0 %v6980_v45, %s6520_s27  ;;  %v5906_v29 = vpack.i.bf16 %v6976_v39, %v6980_v45 }
0x10f4   :  { %1656 = vrot.lane.b32.xlu1 %v6980_v45, %s6524_s9 }
0x10fb   :  { %1654 = vrot.lane.b32.xlu2 %v6976_v39, %s6524_s9  ;;  %1658 = vrot.lane.b32.xlu0 %v6976_v39, %s6523_s0 }
0x114d   :  { %v1661_v34 = vpop.permute.xlu2 %1660 }
0x114e   :  { %5617 = vmatpush.xpose.msk.msra.mxu3 %vm1072_vm7, %v1661_v34 }
0x1155   :  { %v1655_v44 = vpop.permute.xlu2 %1654 }
0x115d   :  { %v1484_v42 = vpop.permute.xlu1 %1483 }
0x1165   :  { %v1486_v53 = vpop.permute.xlu0 %1485 }
0x1166   :  { %5608 = vmatpush.xpose.msk.msra.mxu0 %vm1072_vm7, %v1486_v53  ;;  %v1657_v46 = vpop.permute.xlu1 %1656 }
0x116a   :  { %5609 = vmatpush.xpose.msk.msra.mxu0 %vm1072_vm7, %v1484_v42 }
0x116d   :  { %v1659_v43 = vpop.permute.xlu0 %1658  ;;  %5610 = vmatmul.msk.f32.vlgmr.msra.gmra.mxu0 %vm1072_vm7, %v6976_v39 }
0x116e   :  { %5618 = vmatpush.xpose.msk.msra.mxu3 %vm1072_vm7, %v1659_v43 }
0x1171   :  { %5619 = vmatmul.msk.f32.vlgmr.msra.gmra.mxu3 %vm1072_vm7, %v1655_v44 }
0x1175   :  { %5611 = vmatmul.msk.f32.gmra.mxu0 %vm1072_vm7, %v6980_v45 }
0x1179   :  { %5620 = vmatmul.msk.f32.gmra.mxu3 %vm1072_vm7, %v1657_v46 }
0x11ea   :  { %v1512_v47 = vpop.f32.mrf.mxu0 }
0x11eb   :  { %v1518_v9 = vmul.f32 0.5, %v1512_v47 }
0x11ed   :  { %v1522_v10 = vsel %vm1520_vm0, -9e+15, %v1518_v9 }
0x11ee   :  { %v1524_v49 = vsel %vm95_vm9, %v1522_v10, -inf }
0x11ef   :  { %v1526_v50 = vsel %vm142_vm2, %v1524_v49, -inf }
0x11f0   :  { %1527 = vmax.xlane.f32.xlu0 %v1526_v50 }
0x11f2   :  { %v1515_v51 = vpop.f32.mrf.mxu0 }
0x11f3   :  { %v1519_v55 = vmul.f32 0.5, %v1515_v51 }
0x11f4   :  { %v1687_v56 = vpop.f32.mrf.mxu3 }
0x11f5   :  { %v1693_v57 = vmul.f32 0.5, %v1687_v56  ;;  %v1523_v58 = vsel %vm1521_vm1, -9e+15, %v1519_v55 }
0x11f6   :  { %v1525_v52 = vsel %vm96_vm10, %v1523_v58, -inf }
0x11f7   :  { %v1529_v54 = vsel %vm142_vm2, %v1525_v52, -inf  ;;  %v1697_v61 = vsel %vm1695_vm5, -9e+15, %v1693_v57 }
0x11f8   :  { %1530 = vmax.xlane.f32.xlu2 %v1529_v54  ;;  %v1699_v0 = vsel %vm95_vm9, %v1697_v61, -inf }
0x11f9   :  { %v1701_v4 = vsel %vm142_vm2, %v1699_v0, -inf }
0x11fa   :  { %1702 = vmax.xlane.f32.xlu1 %v1701_v4 }
0x11fc   :  { %v1690_v5 = vpop.f32.mrf.mxu3 }
0x11fd   :  { %v1694_v8 = vmul.f32 0.5, %v1690_v5 }
0x11ff   :  { %v1698_v11 = vsel %vm1696_vm14, -9e+15, %v1694_v8 }
0x1200   :  { %v1700_v12 = vsel %vm96_vm10, %v1698_v11, -inf }
0x1201   :  { %v1704_v60 = vsel %vm142_vm2, %v1700_v12, -inf }
0x1202   :  { %1705 = vmax.xlane.f32.xlu0 %v1704_v60 }
0x1263   :  { %v1528_v13 = vpop.xlane.xlu0 %1527 }
0x1264   :  { %v1532_v14 = vsub.f32 %v1524_v49, %v1528_v13 }
0x1266   :  { %v1534_v15 = vmul.f32 1.442695, %v1532_v14 }
0x1268   :  { %6205 = vpow2.f32 %v1534_v15 }
0x126b   :  { %v1531_v59 = vpop.xlane.xlu2 %1530 }
0x126c   :  { %v1533_v16 = vsub.f32 %v1525_v52, %v1531_v59 }
0x126d   :  { %v1703_v6 = vpop.xlane.xlu1 %1702 }
0x126e   :  { %v7018_v17 = vpop.eup %6205  ;;  %v1536_v18 = vmul.f32 1.442695, %v1533_v16  ;;  %v1707_v19 = vsub.f32 %v1699_v0, %v1703_v6 }
0x126f   :  { %v1538_v3 = vsel %vm142_vm2, %v7018_v17, 0.0 }
0x1270   :  { %6207 = vpow2.f32 %v1536_v18  ;;  %v1709_v20 = vmul.f32 1.442695, %v1707_v19  ;;  %1539 = vadd.xlane.f32.xlu2 %v1538_v3 }
0x1272   :  { %6209 = vpow2.f32 %v1709_v20 }
0x1275   :  { %v1706_v21 = vpop.xlane.xlu0 %1705 }
0x1276   :  { %v7022_v22 = vpop.eup %6207  ;;  %v1708_v23 = vsub.f32 %v1700_v12, %v1706_v21 }
0x1277   :  { %v1541_v24 = vsel %vm142_vm2, %v7022_v22, 0.0 }
0x1278   :  { %v7026_v25 = vpop.eup %6209  ;;  %v1711_v26 = vmul.f32 1.442695, %v1708_v23  ;;  %1542 = vadd.xlane.f32.xlu1 %v1541_v24 }
0x1279   :  { %v1713_v27 = vsel %vm142_vm2, %v7026_v25, 0.0 }
0x127a   :  { %6211 = vpow2.f32 %v1711_v26  ;;  %1714 = vadd.xlane.f32.xlu0 %v1713_v27 }
0x1280   :  { %v7030_v63 = vpop.eup %6211 }
0x1281   :  { %v1716_v28 = vsel %vm142_vm2, %v7030_v63, 0.0 }
0x1282   :  { %1717 = vadd.xlane.f32.xlu2 %v1716_v28 }
0x128e   :  { %5907 = vrot.lane.b32.xlu0 %v5906_v29, %s6525_s23 }
0x1291   :  { %5902 = vrot.lane.b32.xlu1 %v5906_v29, %s6518_s5  ;;  %v1860_v29 = vld [vmem:[#allocation5] sm:$0x1f] }
0x1296   :  { %1784 = vrot.lane.b32.xlu0 %v1609_v35, %s6511_s26 }
0x129a   :  { %1611 = vrot.lane.b32.xlu2 %v1609_v35, %s6518_s5 }
0x12e3   :  { %v1540_v30 = vpop.xlane.xlu2 %1539 }
0x12e4   :  { %6213 = vrcp.f32 %v1540_v30  ;;  %v1555_v34 = vand.u32 2147483648, %v1540_v30  ;;  %vm1549_vm0 = vweird.f32 %v1540_v30  ;;  %v1553_v10 = vand.u32 2147483647, %v1540_v30 }
0x12e6   :  { %v1556_v57 = vor.u32 1.1754944e-38, %v1555_v34  ;;  %vm1554_vm14 = vcmp.eq.f32.partialorder %v1553_v10, 8.507059e+37 }
0x12ea   :  { %v6214_v31 = vpop.eup %6213 }
0x12eb   :  { %v7038_v32 = vpop.xlane.xlu1 %1542  ;;  %v1545_v48 = vmul.f32 %v6214_v31, %v1540_v30  ;;  %vm1550_vm11 = vweird.f32 %v6214_v31  ;;  %v7079_v30 = vld [vmem:[%s8010_s1] sm:$0xff] }
0x12ec   :  { %vm7047_vm1 = vmor %vm1549_vm0, %vm1550_vm11  ;;  %v1570_v18 = vand.u32 2147483648, %v7038_v32  ;;  %vm1564_vm0 = vweird.f32 %v7038_v32  ;;  %v1568_v20 = vand.u32 2147483647, %v7038_v32 }
0x12ed   :  { %v1715_v33 = vpop.xlane.xlu0 %1714  ;;  %v1546_v1 = vsub.f32 1.0, %v1545_v48 }
0x12ee   :  { %6215 = vrcp.f32 %v1715_v33  ;;  %v1730_v42 = vand.u32 2147483648, %v1715_v33  ;;  %vm1724_vm13 = vweird.f32 %v1715_v33  ;;  %v1728_v46 = vand.u32 2147483647, %v1715_v33 }
0x12ef   :  { %6217 = vrcp.f32 %v7038_v32  ;;  %v1547_v62 = vmul.f32 %v6214_v31, %v1546_v1  ;;  %v1571_v24 = vor.u32 1.1754944e-38, %v1570_v18 }
0x12f0   :  { %v1731_v51 = vor.u32 1.1754944e-38, %v1730_v42  ;;  %vm1729_vm5 = vcmp.eq.f32.partialorder %v1728_v46, 8.507059e+37 }
0x12f1   :  { %v1548_v44 = vadd.f32 %v6214_v31, %v1547_v62 }
0x12f3   :  { %v1552_v56 = vsel %vm7047_vm1, %v6214_v31, %v1548_v44 }
0x12f4   :  { %v6216_v36 = vpop.eup %6215  ;;  %v1557_v8 = vsel %vm1554_vm14, %v1556_v57, %v1552_v56  ;;  %vm1569_vm14 = vcmp.eq.f32.partialorder %v1568_v20, 8.507059e+37  ;;  %v94_v56 = vld [vmem:[%s8013_s4] sm:$0x3] }
0x12f5   :  { %v1720_v37 = vmul.f32 %v6216_v36, %v1715_v33  ;;  %v1718_v38 = vpop.xlane.xlu2 %1717  ;;  %v7043_v39 = vpop.eup %6217  ;;  %vm1725_vm6 = vweird.f32 %v6216_v36  ;;  %v1558_v19 = vmul.f32 %v7018_v17, %v1557_v8 }
0x12f6   :  { %6219 = vrcp.f32 %v1718_v38  ;;  %v1560_v41 = vmul.f32 %v7043_v39, %v7038_v32  ;;  %vm1726_vm15 = vmor %vm1724_vm13, %vm1725_vm6  ;;  %v1745_v12 = vand.u32 2147483648, %v1718_v38  ;;  %vm1739_vm11 = vweird.f32 %v1718_v38 }
0x12f7   :  { %v1721_v40 = vsub.f32 1.0, %v1720_v37  ;;  %v1743_v14 = vand.u32 2147483647, %v1718_v38 }
0x12f8   :  { %v1561_v47 = vsub.f32 1.0, %v1560_v41  ;;  %v1746_v3 = vor.u32 1.1754944e-38, %v1745_v12  ;;  %v6391_v41 = vld [vmem:[%s8015_s6 + $0x2] ss:$0 sm:$0xff] }
0x12f9   :  { %v1722_v45 = vmul.f32 %v6216_v36, %v1721_v40  ;;  %vm1744_vm1 = vcmp.eq.f32.partialorder %v1743_v14, 8.507059e+37 }
0x12fa   :  { %v1562_v0 = vmul.f32 %v7043_v39, %v1561_v47  ;;  %v1949_v47 = vld [vmem:[#allocation5 + $0x28] sm:$0xff] }
0x12fb   :  { %v1723_v53 = vadd.f32 %v6216_v36, %v1722_v45 }
0x12fc   :  { %v6220_v43 = vpop.eup %6219  ;;  %v1563_v59 = vadd.f32 %v7043_v39, %v1562_v0 }
0x12fd   :  { %v1735_v9 = vmul.f32 %v6220_v43, %v1718_v38  ;;  %v1727_v49 = vsel %vm1726_vm15, %v6216_v36, %v1723_v53  ;;  %vm1740_vm6 = vweird.f32 %v6220_v43  ;;  %vm1565_vm15 = vweird.f32 %v7043_v39  ;;  %v1612_v28 = vpop.permute.xlu2 %1611 }
0x12fe   :  { %v1732_v54 = vsel %vm1729_vm5, %v1731_v51, %v1727_v49  ;;  %vm7055_vm13 = vmor %vm1739_vm11, %vm1740_vm6  ;;  %5614 = vmatpush.msk.msra.mxu2 %vm1201_vm8, %v1612_v28  ;;  %vm1868_vm6 = vcmask 1044480   ;;  %vm1861_vm11 = vcmask 39936   ;;  %v2118_v28 = vld [vmem:[#allocation5 + $0x80] sm:$0xff] }
0x12ff   :  { %v1736_v55 = vsub.f32 1.0, %v1735_v9  ;;  %v1733_v13 = vmul.f32 %v7026_v25, %v1732_v54  ;;  %vm1566_vm5 = vmor %vm1564_vm0, %vm1565_vm15  ;;  %5627 = vmatpush.msk.msrb.mxu3 %vm1868_vm6, %v1860_v29  ;;  %v1950_v9 = vld [vmem:[#allocation5 + $0x50] sm:$0xff]  ;;  %v6134_v54 = vld [vmem:[%s8017_s8] ss:$0 sm:$0xff] }
0x1300   :  { %v5908_v58 = vpop.permute.xlu0 %5907  ;;  %v1567_v23 = vsel %vm1566_vm5, %v7043_v39, %v1563_v59  ;;  %5628 = vmatmul.msk.f32.vlgmr.msrb.gmra.mxu3 %vm1861_vm11, %v7079_v30  ;;  %v5921_v10 = vpack.i.bf16 %v1949_v47, %v1950_v9  ;;  %v7136_v29 = vld [vmem:[#allocation5 + $0x88] sm:$0xff]  ;;  %v7150_v47 = vld [vmem:[#allocation5 + $0x10] sm:$0xff] }
0x1301   :  { %v5909_v52 = vunpack.i.l.bf16 %v5908_v58  ;;  %v1737_v61 = vmul.f32 %v6220_v43, %v1736_v55  ;;  %v5910_v4 = vunpack.i.h.bf16 %v5908_v58  ;;  %v1572_v26 = vsel %vm1569_vm14, %v1571_v24, %v1567_v23 }
0x1302   :  { %v1573_v17 = vmul.f32 %v7022_v22, %v1572_v26  ;;  %v7087_v22 = vld [vmem:[%s8010_s1 + $0x8] sm:$0xff] }
0x1303   :  { %1775 = vmatpush.msrb.mxu0 %v5909_v52  ;;  %v5903_v5 = vpop.permute.xlu1 %5902  ;;  %v1738_v11 = vadd.f32 %v6220_v43, %v1737_v61  ;;  %v1948_v52 = vld [vmem:[#allocation5] sm:$0xff] }
0x1304   :  { %v5904_v60 = vunpack.i.l.bf16 %v5903_v5  ;;  %v5905_v16 = vunpack.i.h.bf16 %v5903_v5 }
0x1305   :  { %1776 = vmatpush.msrb.mxu0 %v5910_v4  ;;  %v1742_v6 = vsel %vm7055_vm13, %v6220_v43, %v1738_v11  ;;  %vm8038_vm13 = vcmask 523264  }
0x1306   :  { %1600 = vmatpush.msra.mxu1 %v5904_v60  ;;  %5621 = vmatmul.msk.f32.vlgmr.msrb.gmra.mxu0 %vm142_vm2, %v1733_v13  ;;  %v1747_v21 = vsel %vm1744_vm1, %v1746_v3, %v1742_v6  ;;  %vm8039_vm15 = vmmov %vm8038_vm13 }
0x1307   :  { %v1748_v25 = vmul.f32 %v7030_v63, %v1747_v21  ;;  %vm8040_vm0 = vmmov %vm8038_vm13 }
0x1308   :  { %1601 = vmatpush.msra.mxu1 %v5905_v16  ;;  %v1785_v27 = vpop.permute.xlu0 %1784  ;;  %5629 = vmatmul.msk.f32.gmra.mxu3 %vm1861_vm11, %v7087_v22  ;;  %vm8041_vm1 = vmmov %vm8040_vm0 }
0x1309   :  { %5612 = vmatmul.msk.f32.vlgmr.msra.gmra.mxu1 %vm142_vm2, %v1558_v19 }
0x130a   :  { %5623 = vmatpush.msk.msrb.mxu1 %vm1201_vm8, %v1785_v27 }
0x130e   :  { %5622 = vmatmul.msk.f32.gmra.mxu0 %vm142_vm2, %v1748_v25 }
0x1311   :  { %5613 = vmatmul.msk.f32.gmra.mxu1 %vm142_vm2, %v1573_v17 }
0x1383   :  { %v1778_v63 = vpop.f32.mrf.mxu0  ;;  %v7099_v37 = vpop.f32.mrf.mxu3 }
0x1384   :  { %5624 = vmatmul.msk.f32.vlgmr.msrb.gmra.mxu1 %vm1072_vm7, %v1778_v63  ;;  %v1940_v14 = vadd.f32 %v6134_v54, %v7099_v37  ;;  %v5931_v63 = vpack.i.bf16 %v7136_v29, %v2118_v28 }
0x1386   :  { %v1603_v31 = vpop.f32.mrf.mxu1  ;;  %v1942_v59 = vmax.f32 %v1940_v14, 0.0 }
0x1387   :  { %5615 = vmatmul.msk.f32.vlgmr.msra.gmra.mxu2 %vm1072_vm7, %v1603_v31 }
0x138b   :  { %v1781_v32 = vpop.f32.mrf.mxu0  ;;  %v1892_v38 = vpop.f32.mrf.mxu3 }
0x138c   :  { %5625 = vmatmul.msk.f32.gmra.mxu1 %vm1072_vm7, %v1781_v32  ;;  %v5916_v39 = vpack.i.bf16 %v7099_v37, %v1892_v38  ;;  %v1941_v6 = vadd.f32 %v6134_v54, %v1892_v38  ;;  %v2116_v32 = vld [vmem:[#allocation5 + $0x58] sm:$0xff] }
0x138e   :  { %v1606_v33 = vpop.f32.mrf.mxu1  ;;  %v1943_v19 = vmax.f32 %v1941_v6, 0.0 }
0x138f   :  { %5616 = vmatmul.msk.f32.gmra.mxu2 %vm1072_vm7, %v1606_v33  ;;  %v7140_v33 = vld [vmem:[#allocation5 + $0x60] sm:$0xff] }
0x1401   :  { %v1811_v35 = vpop.f32.mrf.mxu1 }
0x1409   :  { %v1814_v48 = vpop.f32.mrf.mxu1 }
0x140a   :  { %v1638_v36 = vpop.f32.mrf.mxu2  ;;  %1821 = vrot.lane.b32.xlu0 %v1814_v48, %s6511_s26  ;;  %v5936_v48 = vpack.i.bf16 %v7140_v33, %v2116_v32 }
0x140b   :  { %1646 = vrot.lane.b32.xlu2 %v1638_v36, %s6511_s26 }
0x1412   :  { %v1641_v1 = vpop.f32.mrf.mxu2  ;;  %5917 = vrot.lane.b32.xlu0 %v5916_v39, %s6511_s26  ;;  %v2114_v39 = vld [vmem:[#allocation5 + $0x30] sm:$0xff] }
0x1413   :  { %1648 = vrot.lane.b32.xlu1 %v1641_v1, %s6511_s26 }
0x141a   :  { %5922 = vrot.lane.b32.xlu0 %v5921_v10, %s6513_s15 }
0x141b   :  { %1819 = vrot.lane.b32.xlu1 %v1811_v35, %s6511_s26 }
0x1422   :  { %2003 = vrot.lane.b32.xlu0 %v1948_v52, %s6512_s14 }
0x142a   :  { %1963 = vrot.lane.b32.xlu0 %v6134_v54, %s6513_s15 }
0x1465   :  { %v1647_v62 = vpop.permute.xlu2 %1646 }
0x1466   :  { %v1652_v34 = vadd.f32 %v6391_v41, %v1647_v62 }
0x147c   :  { %v1822_v53 = vpop.permute.xlu0 %1821 }
0x1484   :  { %v5918_v51 = vpop.permute.xlu0 %5917 }
0x1485   :  { %v1649_v40 = vpop.permute.xlu1 %1648  ;;  %v5919_v57 = vunpack.i.l.bf16 %v5918_v51  ;;  %v5920_v58 = vunpack.i.h.bf16 %v5918_v51 }
0x1486   :  { %v1653_v45 = vadd.f32 %v6391_v41, %v1649_v40  ;;  %v7144_v40 = vld [vmem:[#allocation5 + $0x38] sm:$0xff] }
0x1487   :  { %v5941_v41 = vpack.i.bf16 %v7144_v40, %v2114_v39 }
0x1488   :  { %v1826_v43 = vadd.f32 %v1822_v53, %v1653_v45 }
0x148c   :  { %v5923_v5 = vpop.permute.xlu0 %5922 }
0x148d   :  { %v1820_v42 = vpop.permute.xlu1 %1819  ;;  %v5925_v8 = vunpack.i.h.bf16 %v5923_v5  ;;  %v5924_v11 = vunpack.i.l.bf16 %v5923_v5 }
0x148e   :  { %v1825_v44 = vadd.f32 %v1820_v42, %v1652_v34 }
0x148f   :  { %1985 = vmatpush.msra.mxu0 %v5924_v11 }
0x1490   :  { %v5911_v46 = vpack.i.bf16 %v1825_v44, %v1826_v43 }
0x1491   :  { %1986 = vmatpush.msra.mxu0 %v5925_v8 }
0x1492   :  { %5912 = vrot.lane.b32.xlu2 %v5911_v46, %s8028_s16  ;;  %v2112_v46 = vld [vmem:[#allocation5 + $0x8] sm:$0xff] }
0x1494   :  { %v2004_v26 = vpop.permute.xlu0 %2003 }
0x149c   :  { %v1964_v35 = vpop.permute.xlu0 %1963 }
0x14ec   :  { %v5913_v49 = vpop.permute.xlu2 %5912 }
0x14ed   :  { %v5914_v50 = vunpack.i.l.bf16 %v5913_v49  ;;  %v5915_v55 = vunpack.i.h.bf16 %v5913_v49 }
0x14ef   :  { %1852 = vmatpush.msrb.mxu2 %v5914_v50 }
0x14f1   :  { %1853 = vmatpush.msrb.mxu2 %v5915_v55 }
0x14f2   :  { %5626 = vmatmul.msk.f32.vlgmr.msrb.gmra.mxu2 %vm142_vm2, %v94_v56 }
0x14f3   :  { %1917 = vmatpush.msra.mxu2 %v5919_v57 }
0x14f5   :  { %1918 = vmatpush.msra.mxu2 %v5920_v58  ;;  %v2110_v58 = vld [vmem:[#allocation5] sm:$0x1f] }
0x14fa   :  { %5630 = vmatmul.msk.f32.vlgmr.msra.gmra.mxu2 %vm142_vm2, %v6859_v7 }
0x1502   :  { %5631 = vmatmul.msk.f32.gmra.mxu2 %vm142_vm2, %v6868_v2 }
0x1575   :  { %v7121_v61 = vpop.f32.mrf.mxu2 }
0x157d   :  { %v1920_v0 = vpop.f32.mrf.mxu2 }
0x157e   :  { %1928 = vrot.lane.b32.xlu1 %v1920_v0, %s8028_s16 }
0x1585   :  { %v1923_v4 = vpop.f32.mrf.mxu2 }
0x1586   :  { %1930 = vrot.lane.b32.xlu2 %v1923_v4, %s8028_s16  ;;  %5927 = vrot.lane.b32.xlu1 %v5921_v10, %s6512_s14  ;;  %v5946_v10 = vpack.i.bf16 %v7150_v47, %v2112_v46 }
0x158e   :  { %1954 = vrot.lane.b32.xlu2 %v1948_v52, %s6513_s15  ;;  %v2111_v52 = vld [vmem:[#allocation5 + $0x8] sm:$0x1f] }
0x15e0   :  { %v1931_v12 = vpop.permute.xlu2 %1930 }
0x15e1   :  { %v1935_v60 = vsub.f32 %v1892_v38, %v1931_v12 }
0x15e3   :  { %v1945_v13 = vadd.f32 %v6134_v54, %v1935_v60 }
0x15e5   :  { %v1947_v15 = vmax.f32 %v1945_v13, 0.0 }
0x15e7   :  { %2001 = vrot.lane.b32.xlu2 %v1947_v15, %s6511_s26 }
0x15e8   :  { %v1955_v16 = vpop.permute.xlu2 %1954 }
0x15e9   :  { %1987 = vmatpush.msra.mxu0 %v1955_v16 }
0x15ea   :  { %5632 = vmatmul.msk.f32.vlgmr.msra.gmra.mxu0 %vm8027_vm3, %v1942_v59 }
0x15f0   :  { %v1929_v18 = vpop.permute.xlu1 %1928 }
0x15f1   :  { %v1934_v3 = vsub.f32 %v7099_v37, %v1929_v18 }
0x15f2   :  { %5633 = vmatmul.msk.f32.gmra.mxu0 %vm8027_vm3, %v1943_v19 }
0x15f3   :  { %v1944_v20 = vadd.f32 %v6134_v54, %v1934_v3 }
0x15f5   :  { %v1946_v21 = vmax.f32 %v1944_v20, 0.0 }
0x15f7   :  { %1999 = vrot.lane.b32.xlu1 %v1946_v21, %s6511_s26 }
0x15f8   :  { %v5928_v23 = vpop.permute.xlu1 %5927 }
0x15f9   :  { %v5930_v24 = vunpack.i.h.bf16 %v5928_v23  ;;  %v5929_v25 = vunpack.i.l.bf16 %v5928_v23 }
0x15fb   :  { %2032 = vmatpush.msra.mxu1 %v5929_v25 }
0x15fd   :  { %2033 = vmatpush.msra.mxu1 %v5930_v24 }
0x15ff   :  { %2012 = vrot.lane.b32.xlu1 %v6134_v54, %s6512_s14  ;;  %2034 = vmatpush.msra.mxu1 %v2004_v26 }
0x1607   :  { %5932 = vrot.lane.b32.xlu1 %v5931_v63, %s6515_s20 }
0x160f   :  { %5937 = vrot.lane.b32.xlu1 %v5936_v48, %s6515_s20 }
0x1617   :  { %5942 = vrot.lane.b32.xlu1 %v5941_v41, %s6515_s20 }
0x161f   :  { %5947 = vrot.lane.b32.xlu1 %v5946_v10, %s6515_s20 }
0x1627   :  { %2183 = vrot.lane.b32.xlu1 %v2110_v58, %s6516_s21 }
0x1641   :  { %v2002_v27 = vpop.permute.xlu2 %2001 }
0x1667   :  { %v1989_v31 = vpop.f32.mrf.mxu0 }
0x1668   :  { %v1990_v36 = vadd.f32 %v1989_v31, %v1964_v35 }
0x1669   :  { %v2000_v17 = vpop.permute.xlu1 %1999 }
0x166a   :  { %5634 = vmatmul.msk.f32.vlgmr.msra.gmra.mxu1 %vm8027_vm3, %v2000_v17  ;;  %6221 = vtanh.f32 %v1990_v36 }
0x166f   :  { %v1992_v62 = vpop.f32.mrf.mxu0 }
0x1670   :  { %v1993_v45 = vadd.f32 %v1992_v62, %v1964_v35  ;;  %v6222_v34 = vpop.eup %6221 }
0x1671   :  { %v2013_v1 = vpop.permute.xlu1 %2012 }
0x1672   :  { %5635 = vmatmul.msk.f32.gmra.mxu1 %vm8027_vm3, %v2002_v27 }
0x1679   :  { %v5933_v54 = vpop.permute.xlu1 %5932 }
0x167a   :  { %v5935_v0 = vunpack.i.h.bf16 %v5933_v54  ;;  %v5934_v4 = vunpack.i.l.bf16 %v5933_v54 }
0x167c   :  { %v2147_v5 = vsel %vm8038_vm13, %v5934_v4, %v5935_v0 }
0x167d   :  { %2170 = vmatpush.msra.mxu3 %v2147_v5 }
0x1681   :  { %v5938_v8 = vpop.permute.xlu1 %5937 }
0x1682   :  { %v5940_v11 = vunpack.i.h.bf16 %v5938_v8  ;;  %v5939_v12 = vunpack.i.l.bf16 %v5938_v8 }
0x1684   :  { %v2146_v60 = vsel %vm8039_vm15, %v5939_v12, %v5940_v11 }
0x1685   :  { %2171 = vmatpush.msra.mxu3 %v2146_v60 }
0x1689   :  { %v5943_v13 = vpop.permute.xlu1 %5942 }
0x168a   :  { %v5945_v14 = vunpack.i.h.bf16 %v5943_v13  ;;  %v5944_v15 = vunpack.i.l.bf16 %v5943_v13 }
0x168c   :  { %v2145_v59 = vsel %vm8040_vm0, %v5944_v15, %v5945_v14 }
0x168d   :  { %2172 = vmatpush.msra.mxu3 %v2145_v59 }
0x1691   :  { %v5948_v6 = vpop.permute.xlu1 %5947 }
0x1692   :  { %v5950_v18 = vunpack.i.h.bf16 %v5948_v6  ;;  %v5949_v19 = vunpack.i.l.bf16 %v5948_v6 }
0x1694   :  { %v2144_v3 = vsel %vm8041_vm1, %v5949_v19, %v5950_v18 }
0x1695   :  { %2173 = vmatpush.msra.mxu3 %v2144_v3 }
0x1699   :  { %v2184_v25 = vpop.permute.xlu1 %2183 }
0x16e7   :  { %v2036_v37 = vpop.f32.mrf.mxu1 }
0x16e8   :  { %v2037_v38 = vadd.f32 %v2036_v37, %v2013_v1 }
0x16ea   :  { %6223 = vtanh.f32 %v2037_v38 }
0x16eb   :  { %6225 = vtanh.f32 %v1993_v45 }
0x16ef   :  { %v2039_v53 = vpop.f32.mrf.mxu1 }
0x16f0   :  { %v6224_v42 = vpop.eup %6223  ;;  %v2040_v43 = vadd.f32 %v2039_v53, %v2013_v1 }
0x16f1   :  { %v7148_v44 = vadd.f32 %v6224_v42, %v6222_v34  ;;  %v6226_v50 = vpop.eup %6225 }
0x16f2   :  { %6227 = vtanh.f32 %v2040_v43 }
0x16f3   :  { %v2046_v9 = vmul.f32 %v7148_v44, %v7148_v44 }
0x16f5   :  { %v2048_v49 = vsel %vm295_vm4, %v2046_v9, 0.0 }
0x16f6   :  { %2049 = vadd.xlane.f32.xlu2 %v2048_v49 }
0x16f8   :  { %v6228_v51 = vpop.eup %6227 }
0x16f9   :  { %v7157_v55 = vadd.f32 %v6228_v51, %v6226_v50 }
0x16fb   :  { %v2047_v56 = vmul.f32 %v7157_v55, %v7157_v55 }
0x16fd   :  { %v2051_v57 = vsel %vm295_vm4, %v2047_v56, 0.0 }
0x16fe   :  { %2052 = vadd.xlane.f32.xlu0 %v2051_v57 }
0x170e   :  { %2185 = vrot.lane.b32.xlu2 %v2111_v52, %s6516_s21 }
0x1769   :  { %v2050_v16 = vpop.xlane.xlu2 %2049 }
0x176a   :  { %6229 = vrsqrt.f32 %v2050_v16  ;;  %vm2061_vm5 = vcmp.eq.f32.partialorder %v2050_v16, inf  ;;  %v2064_v36 = vand.u32 2147483648, %v2050_v16  ;;  %vm2063_vm14 = vcmp.eq.f32.partialorder %v2050_v16, 0.0 }
0x1770   :  { %v6230_v20 = vpop.eup %6229 }
0x1771   :  { %v2055_v21 = vmul.f32 %v6230_v20, %v2050_v16  ;;  %v2053_v23 = vpop.xlane.xlu0 %2052  ;;  %v2186_v24 = vpop.permute.xlu2 %2185 }
0x1772   :  { %6231 = vrsqrt.f32 %v2053_v23  ;;  %v2187_v17 = vsel %vm142_vm2, %v2184_v25, %v2186_v24  ;;  %vm2073_vm13 = vcmp.eq.f32.partialorder %v2053_v23, inf  ;;  %v2076_v45 = vand.u32 2147483648, %v2053_v23  ;;  %v7195_v25 = vld [vmem:[%s8012_s3 + $0x8] sm:$0xff] }
0x1773   :  { %v2056_v26 = vmul.f32 %v6230_v20, %v2055_v21  ;;  %5638 = vmatpush.msk.msrb.mxu2 %vm1868_vm6, %v2187_v17  ;;  %vm2075_vm15 = vcmp.eq.f32.partialorder %v2053_v23, 0.0 }
0x1774   :  { %5639 = vmatmul.msk.f32.vlgmr.msrb.gmra.mxu2 %vm1861_vm11, %v7079_v30 }
0x1775   :  { %v2057_v27 = vmul.f32 0.5, %v2056_v26  ;;  %v6135_v26 = vld [vmem:[%s8017_s8 + $0x1] ss:$0 sm:$0xff] }
0x1777   :  { %v2058_v28 = vsub.f32 1.5, %v2057_v27  ;;  %v5961_v27 = vpack.i.bf16 %v7144_v40, %v7140_v33 }
0x1778   :  { %v6232_v63 = vpop.eup %6231 }
0x1779   :  { %v2059_v31 = vmul.f32 %v6230_v20, %v2058_v28  ;;  %v2067_v32 = vmul.f32 %v6232_v63, %v2053_v23  ;;  %v2282_v28 = vld [vmem:[#allocation5 + $0xb0] sm:$0xff]  ;;  %5962 = vrot.lane.b32.xlu2 %v5961_v27, %s6513_s15 }
0x177b   :  { %v2060_v35 = vmul.f32 %v2059_v31, %v2050_v16  ;;  %v2068_v48 = vmul.f32 %v6232_v63, %v2067_v32  ;;  %v2254_v32 = vld [vmem:[%s8017_s8] sm:$0x3] }
0x177c   :  { %5640 = vmatmul.msk.f32.gmra.mxu2 %vm1861_vm11, %v7087_v22  ;;  %v2256_v33 = vperm.slane %v2254_v32, 0  ;;  %v2257_v40 = vperm.slane %v2254_v32, 1 }
0x177d   :  { %v2062_v1 = vsel %vm2061_vm5, %v2050_v16, %v2060_v35  ;;  %v2069_v37 = vmul.f32 0.5, %v2068_v48 }
0x177e   :  { %v2065_v38 = vsel %vm2063_vm14, %v2064_v36, %v2062_v1 }
0x177f   :  { %6233 = vrcp.f32 %v2065_v38  ;;  %v2070_v39 = vsub.f32 1.5, %v2069_v37  ;;  %v2089_v9 = vand.u32 2147483648, %v2065_v38  ;;  %v2087_v49 = vand.u32 2147483647, %v2065_v38 }
0x1780   :  { %vm2083_vm1 = vweird.f32 %v2065_v38 }
0x1781   :  { %v2071_v62 = vmul.f32 %v6232_v63, %v2070_v39  ;;  %v2090_v56 = vor.u32 1.1754944e-38, %v2089_v9  ;;  %vm2088_vm14 = vcmp.eq.f32.partialorder %v2087_v49, 8.507059e+37  ;;  %v5966_v63 = vpack.i.bf16 %v7136_v29, %v2282_v28 }
0x1783   :  { %v2072_v41 = vmul.f32 %v2071_v62, %v2053_v23 }
0x1785   :  { %v6234_v34 = vpop.eup %6233  ;;  %v2074_v53 = vsel %vm2073_vm13, %v2053_v23, %v2072_v41 }
0x1786   :  { %v2079_v42 = vmul.f32 %v6234_v34, %v2065_v38  ;;  %v2077_v43 = vsel %vm2075_vm15, %v2076_v45, %v2074_v53  ;;  %vm2084_vm0 = vweird.f32 %v6234_v34 }
0x1787   :  { %6235 = vrcp.f32 %v2077_v43  ;;  %vm2085_vm5 = vmor %vm2083_vm1, %vm2084_vm0  ;;  %v2104_v4 = vand.u32 2147483648, %v2077_v43  ;;  %v2102_v11 = vand.u32 2147483647, %v2077_v43  ;;  %vm2098_vm15 = vweird.f32 %v2077_v43 }
0x1788   :  { %v2080_v46 = vsub.f32 1.0, %v2079_v42 }
0x1789   :  { %v2105_v60 = vor.u32 1.1754944e-38, %v2104_v4  ;;  %vm2103_vm0 = vcmp.eq.f32.partialorder %v2102_v11, 8.507059e+37 }
0x178a   :  { %v2081_v10 = vmul.f32 %v6234_v34, %v2080_v46 }
0x178c   :  { %v2082_v50 = vadd.f32 %v6234_v34, %v2081_v10 }
0x178d   :  { %v6236_v51 = vpop.eup %6235 }
0x178e   :  { %v2086_v57 = vsel %vm2085_vm5, %v6234_v34, %v2082_v50  ;;  %v2094_v58 = vmul.f32 %v6236_v51, %v2077_v43  ;;  %vm2099_vm13 = vweird.f32 %v6236_v51 }
0x178f   :  { %v2091_v52 = vsel %vm2088_vm14, %v2090_v56, %v2086_v57  ;;  %vm2100_vm3 = vmor %vm2098_vm15, %vm2099_vm13 }
0x1790   :  { %v2092_v54 = vmul.f32 %v2091_v52, %v7148_v44  ;;  %v2095_v0 = vsub.f32 1.0, %v2094_v58 }
0x1792   :  { %v2108_v5 = vmax.f32 %v2092_v54, 0.0  ;;  %v2096_v8 = vmul.f32 %v6236_v51, %v2095_v0 }
0x1794   :  { %5636 = vmatmul.msk.f32.vlgmr.msra.gmra.mxu3 %vm295_vm4, %v2108_v5  ;;  %v2097_v12 = vadd.f32 %v6236_v51, %v2096_v8 }
0x1796   :  { %v2101_v13 = vsel %vm2100_vm3, %v6236_v51, %v2097_v12  ;;  %vm8042_vm3 = vcmask 326656  }
0x1797   :  { %v2106_v14 = vsel %vm2103_vm0, %v2105_v60, %v2101_v13  ;;  %vm8043_vm1 = vmmov %vm8042_vm3 }
0x1798   :  { %v2107_v15 = vmul.f32 %v2106_v14, %v7157_v55  ;;  %v7188_v55 = vld [vmem:[%s8012_s3] sm:$0xff]  ;;  %vm8044_vm5 = vmmov %vm8043_vm1 }
0x1799   :  { %vm8045_vm14 = vmmov %vm8043_vm1 }
0x179a   :  { %v2109_v59 = vmax.f32 %v2107_v15, 0.0 }
0x179c   :  { %5637 = vmatmul.msk.f32.gmra.mxu3 %vm295_vm4, %v2109_v59 }
0x17d3   :  { %v5963_v45 = vpop.permute.xlu2 %5962 }
0x17d4   :  { %v5964_v53 = vunpack.i.l.bf16 %v5963_v45  ;;  %v5965_v43 = vunpack.i.h.bf16 %v5963_v45 }
0x17f7   :  { %v2207_v44 = vpop.f32.mrf.mxu2 }
0x17ff   :  { %v2210_v6 = vpop.f32.mrf.mxu2 }
0x1817   :  { %v2175_v16 = vpop.f32.mrf.mxu3 }
0x1818   :  { %v7178_v19 = vadd.f32 %v2207_v44, %v2175_v16 }
0x181f   :  { %v2178_v18 = vpop.f32.mrf.mxu3 }
0x1820   :  { %v7180_v3 = vadd.f32 %v2210_v6, %v2178_v18 }
0x1822   :  { %v5951_v20 = vpack.i.bf16 %v7178_v19, %v7180_v3 }
0x1824   :  { %5952 = vrot.lane.b32.xlu1 %v5951_v20, %s6517_s22 }
0x182c   :  { %2271 = vrot.lane.b32.xlu1 %v6135_v26, %s6516_s21 }
0x1896   :  { %v5953_v21 = vpop.permute.xlu1 %5952 }
0x1897   :  { %v5954_v23 = vunpack.i.l.bf16 %v5953_v21  ;;  %v5955_v24 = vunpack.i.h.bf16 %v5953_v21 }
0x1899   :  { %2235 = vmatpush.msrb.mxu0 %v5954_v23 }
0x189b   :  { %2236 = vmatpush.msrb.mxu0 %v5955_v24 }
0x189c   :  { %5641 = vmatmul.msk.f32.vlgmr.msrb.gmra.mxu0 %vm142_vm2, %v7188_v55 }
0x189e   :  { %v2272_v29 = vpop.permute.xlu1 %2271 }
0x18a4   :  { %5642 = vmatmul.msk.f32.gmra.mxu0 %vm142_vm2, %v7195_v25 }
0x1919   :  { %v2238_v17 = vpop.f32.mrf.mxu0 }
0x191a   :  { %2246 = vrot.lane.b32.xlu0 %v2238_v17, %s6508_s17 }
0x1921   :  { %v2241_v31 = vpop.f32.mrf.mxu0 }
0x1922   :  { %5957 = vrot.lane.b32.xlu0 %v5966_v63, %s6513_s15  ;;  %2248 = vrot.lane.b32.xlu1 %v2241_v31, %s6508_s17 }
0x192a   :  { %2343 = vrot.lane.b32.xlu0 %v7150_v47, %s6513_s15  ;;  %5967 = vrot.lane.b32.xlu1 %v5966_v63, %s6518_s5 }
0x1932   :  { %2260 = vrot.lane.b32.xlu0 %v2257_v40, %s6516_s21  ;;  %2258 = vrot.lane.b32.xlu1 %v2256_v33, %s6516_s21 }
0x193a   :  { %2288 = vrot.lane.b32.xlu1 %v7150_v47, %s6518_s5 }
0x1942   :  { %2358 = vrot.lane.b32.xlu1 %v6135_v26, %s6519_s25 }
0x198c   :  { %v2247_v35 = vpop.permute.xlu0 %2246 }
0x198d   :  { %v2252_v48 = vsub.f32 %v7178_v19, %v2247_v35 }
0x198f   :  { %v2274_v36 = vadd.f32 %v2272_v29, %v2252_v48 }
0x1991   :  { %v2276_v1 = vmax.f32 %v2274_v36, 0.0 }
0x1993   :  { %2339 = vrot.lane.b32.xlu2 %v2276_v1, %s6517_s22 }
0x1994   :  { %v5958_v37 = vpop.permute.xlu0 %5957  ;;  %v2249_v38 = vpop.permute.xlu1 %2248 }
0x1995   :  { %v5960_v39 = vunpack.i.h.bf16 %v5958_v37  ;;  %v5959_v62 = vunpack.i.l.bf16 %v5958_v37  ;;  %v2253_v41 = vsub.f32 %v7180_v3, %v2249_v38 }
0x1997   :  { %v2275_v34 = vadd.f32 %v2272_v29, %v2253_v41  ;;  %2376 = vmatpush.msrb.mxu3 %v5959_v62 }
0x1999   :  { %v2277_v42 = vmax.f32 %v2275_v34, 0.0  ;;  %2377 = vmatpush.msrb.mxu3 %v5960_v39 }
0x199b   :  { %5972 = vrot.lane.b32.xlu2 %v5961_v27, %s6518_s5  ;;  %2341 = vrot.lane.b32.xlu0 %v2277_v42, %s6517_s22 }
0x199c   :  { %v5968_v46 = vpop.permute.xlu1 %5967  ;;  %2378 = vmatpush.msrb.mxu3 %v5964_v53  ;;  %v2344_v49 = vpop.permute.xlu0 %2343 }
0x199d   :  { %v5970_v9 = vunpack.i.h.bf16 %v5968_v46  ;;  %v5969_v10 = vunpack.i.l.bf16 %v5968_v46 }
0x199e   :  { %2379 = vmatpush.msrb.mxu3 %v5965_v43 }
0x199f   :  { %2323 = vmatpush.msrb.mxu1 %v5969_v10 }
0x19a0   :  { %2380 = vmatpush.msrb.mxu3 %v2344_v49 }
0x19a1   :  { %2324 = vmatpush.msrb.mxu1 %v5970_v9 }
0x19a3   :  { %2303 = vrot.lane.b32.xlu2 %v6135_v26, %s6515_s20 }
0x19a4   :  { %v2261_v51 = vpop.permute.xlu0 %2260  ;;  %v2259_v56 = vpop.permute.xlu1 %2258 }
0x19a5   :  { %v2262_v57 = vsel %vm142_vm2, %v2259_v56, %v2261_v51 }
0x19a6   :  { %v2264_v0 = vadd.f32 %v2262_v57, %v7178_v19  ;;  %v2265_v8 = vadd.f32 %v2262_v57, %v7180_v3 }
0x19a8   :  { %v2266_v5 = vmax.f32 %v2264_v0, 0.0  ;;  %v2267_v11 = vmax.f32 %v2265_v8, 0.0 }
0x19ac   :  { %v2289_v4 = vpop.permute.xlu1 %2288 }
0x19b4   :  { %v2359_v60 = vpop.permute.xlu1 %2358 }
0x19ed   :  { %v2340_v50 = vpop.permute.xlu2 %2339 }
0x19ee   :  { %5645 = vmatmul.msk.f32.vlgmr.msrb.gmra.mxu3 %vm8042_vm3, %v2340_v50 }
0x19f5   :  { %v5973_v58 = vpop.permute.xlu2 %5972 }
0x19f6   :  { %v5975_v52 = vunpack.i.h.bf16 %v5973_v58  ;;  %v5974_v54 = vunpack.i.l.bf16 %v5973_v58 }
0x19f8   :  { %2325 = vmatpush.msrb.mxu1 %v5974_v54 }
0x19fa   :  { %2326 = vmatpush.msrb.mxu1 %v5975_v52 }
0x19fc   :  { %2327 = vmatpush.msrb.mxu1 %v2289_v4 }
0x19fd   :  { %5643 = vmatmul.msk.f32.vlgmr.msrb.gmra.mxu1 %vm8043_vm1, %v2266_v5  ;;  %v2304_v15 = vpop.permute.xlu2 %2303 }
0x1a05   :  { %5644 = vmatmul.msk.f32.gmra.mxu1 %vm8044_vm5, %v2267_v11 }
0x1a0d   :  { %v2342_v12 = vpop.permute.xlu0 %2341 }
0x1a0e   :  { %5646 = vmatmul.msk.f32.gmra.mxu3 %vm8045_vm14, %v2342_v12 }
0x1a71   :  { %v2382_v13 = vpop.f32.mrf.mxu3 }
0x1a72   :  { %v2383_v14 = vadd.f32 %v2382_v13, %v2359_v60 }
0x1a74   :  { %6237 = vtanh.f32 %v2383_v14 }
0x1a7a   :  { %v2329_v59 = vpop.f32.mrf.mxu1  ;;  %v6238_v16 = vpop.eup %6237 }
0x1a7b   :  { %v2330_v44 = vadd.f32 %v2329_v59, %v2304_v15 }
0x1a7d   :  { %6239 = vtanh.f32 %v2330_v44 }
0x1a82   :  { %v2332_v20 = vpop.f32.mrf.mxu1 }
0x1a83   :  { %v6240_v6 = vpop.eup %6239  ;;  %v2333_v21 = vadd.f32 %v2332_v20, %v2304_v15 }
0x1a84   :  { %v2390_v18 = vadd.f32 %v6240_v6, %v6238_v16 }
0x1a85   :  { %6241 = vtanh.f32 %v2333_v21 }
0x1a86   :  { %v2392_v19 = vmul.f32 %v2390_v18, %v2390_v18 }
0x1a88   :  { %v2394_v3 = vsel %vm295_vm4, %v2392_v19, 0.0 }
0x1a89   :  { %2395 = vadd.xlane.f32.xlu0 %v2394_v3  ;;  %v2476_v3 = vld [vmem:[#allocation5 + $0x10] sm:$0x1f] }
0x1a8b   :  { %v6242_v26 = vpop.eup %6241 }
0x1a91   :  { %v2385_v23 = vpop.f32.mrf.mxu3 }
0x1a92   :  { %v2386_v24 = vadd.f32 %v2385_v23, %v2359_v60 }
0x1a94   :  { %6243 = vtanh.f32 %v2386_v24 }
0x1a9a   :  { %v6244_v17 = vpop.eup %6243 }
0x1a9b   :  { %v7235_v27 = vadd.f32 %v6244_v17, %v6242_v26 }
0x1a9d   :  { %v2393_v28 = vmul.f32 %v7235_v27, %v7235_v27 }
0x1a9f   :  { %v2397_v63 = vsel %vm295_vm4, %v2393_v28, 0.0 }
0x1aa0   :  { %2398 = vadd.xlane.f32.xlu2 %v2397_v63 }
0x1ab8   :  { %2517 = vrot.lane.b32.xlu2 %v2476_v3, %s6512_s14 }
0x1afc   :  { %v2396_v31 = vpop.xlane.xlu0 %2395 }
0x1afd   :  { %6245 = vrsqrt.f32 %v2396_v31  ;;  %vm2407_vm13 = vcmp.eq.f32.partialorder %v2396_v31, inf  ;;  %v2410_v1 = vand.u32 2147483648, %v2396_v31  ;;  %vm2409_vm15 = vcmp.eq.f32.partialorder %v2396_v31, 0.0 }
0x1b03   :  { %v6246_v32 = vpop.eup %6245 }
0x1b04   :  { %v2401_v33 = vmul.f32 %v6246_v32, %v2396_v31 }
0x1b06   :  { %v2402_v40 = vmul.f32 %v6246_v32, %v2401_v33 }
0x1b08   :  { %v2403_v29 = vmul.f32 0.5, %v2402_v40 }
0x1b0a   :  { %v2404_v35 = vsub.f32 1.5, %v2403_v29 }
0x1b0c   :  { %v2405_v48 = vmul.f32 %v6246_v32, %v2404_v35 }
0x1b0e   :  { %v2406_v36 = vmul.f32 %v2405_v48, %v2396_v31 }
0x1b10   :  { %v2408_v37 = vsel %vm2407_vm13, %v2396_v31, %v2406_v36 }
0x1b11   :  { %v2411_v38 = vsel %vm2409_vm15, %v2410_v1, %v2408_v37 }
0x1b12   :  { %6247 = vrcp.f32 %v2411_v38  ;;  %v2435_v42 = vand.u32 2147483648, %v2411_v38  ;;  %v2433_v9 = vand.u32 2147483647, %v2411_v38  ;;  %vm2429_vm3 = vweird.f32 %v2411_v38 }
0x1b13   :  { %v2399_v39 = vpop.xlane.xlu2 %2398 }
0x1b14   :  { %6249 = vrsqrt.f32 %v2399_v39  ;;  %v2436_v50 = vor.u32 1.1754944e-38, %v2435_v42  ;;  %vm2434_vm5 = vcmp.eq.f32.partialorder %v2433_v9, 8.507059e+37  ;;  %vm2419_vm14 = vcmp.eq.f32.partialorder %v2399_v39, inf }
0x1b15   :  { %v2422_v0 = vand.u32 2147483648, %v2399_v39  ;;  %vm2421_vm13 = vcmp.eq.f32.partialorder %v2399_v39, 0.0 }
0x1b18   :  { %v6248_v62 = vpop.eup %6247 }
0x1b19   :  { %v2425_v41 = vmul.f32 %v6248_v62, %v2411_v38  ;;  %vm2430_vm0 = vweird.f32 %v6248_v62 }
0x1b1a   :  { %v6250_v45 = vpop.eup %6249  ;;  %vm2431_vm1 = vmor %vm2429_vm3, %vm2430_vm0 }
0x1b1b   :  { %v2413_v34 = vmul.f32 %v6250_v45, %v2399_v39  ;;  %v2426_v53 = vsub.f32 1.0, %v2425_v41  ;;  %v2598_v41 = vld [vmem:[#allocation5 + $0x40] sm:$0xff] }
0x1b1d   :  { %v2414_v43 = vmul.f32 %v6250_v45, %v2413_v34  ;;  %v2427_v46 = vmul.f32 %v6248_v62, %v2426_v53  ;;  %v7269_v34 = vld [vmem:[%s8017_s8 + $0x2] ss:$0 sm:$0xff] }
0x1b1f   :  { %v2415_v10 = vmul.f32 0.5, %v2414_v43  ;;  %v2428_v49 = vadd.f32 %v6248_v62, %v2427_v46 }
0x1b21   :  { %v2416_v51 = vsub.f32 1.5, %v2415_v10  ;;  %v2432_v56 = vsel %vm2431_vm1, %v6248_v62, %v2428_v49 }
0x1b22   :  { %v2437_v57 = vsel %vm2434_vm5, %v2436_v50, %v2432_v56 }
0x1b23   :  { %v2417_v58 = vmul.f32 %v6250_v45, %v2416_v51  ;;  %v2438_v52 = vmul.f32 %v2437_v57, %v2390_v18  ;;  %v7243_v18 = vld [vmem:[#allocation5 + $0x18] sm:$0xff] }
0x1b24   :  { %v5976_v19 = vpack.i.bf16 %v7243_v18, %v7150_v47  ;;  %v2518_v47 = vpop.permute.xlu2 %2517  ;;  %v5986_v45 = vpack.i.bf16 %v7243_v18, %v2598_v41 }
0x1b25   :  { %v2418_v54 = vmul.f32 %v2417_v58, %v2399_v39  ;;  %2456 = vrot.lane.b32.xlu1 %v2438_v52, %s6520_s27  ;;  %5649 = vmatpush.msk.msra.mxu0 %vm1868_vm6, %v2518_v47 }
0x1b26   :  { %5650 = vmatmul.msk.f32.vlgmr.msra.gmra.mxu0 %vm1861_vm11, %v7079_v30 }
0x1b27   :  { %v2420_v4 = vsel %vm2419_vm14, %v2399_v39, %v2418_v54 }
0x1b28   :  { %v2423_v5 = vsel %vm2421_vm13, %v2422_v0, %v2420_v4 }
0x1b29   :  { %6251 = vrcp.f32 %v2423_v5  ;;  %v2450_v60 = vand.u32 2147483648, %v2423_v5  ;;  %v2448_v14 = vand.u32 2147483647, %v2423_v5  ;;  %vm2444_vm0 = vweird.f32 %v2423_v5 }
0x1b2b   :  { %v2451_v59 = vor.u32 1.1754944e-38, %v2450_v60  ;;  %vm2449_vm1 = vcmp.eq.f32.partialorder %v2448_v14, 8.507059e+37 }
0x1b2e   :  { %5651 = vmatmul.msk.f32.gmra.mxu0 %vm1861_vm11, %v7087_v22 }
0x1b2f   :  { %v6252_v8 = vpop.eup %6251 }
0x1b30   :  { %v2440_v11 = vmul.f32 %v6252_v8, %v2423_v5  ;;  %vm2445_vm15 = vweird.f32 %v6252_v8 }
0x1b31   :  { %vm2446_vm3 = vmor %vm2444_vm0, %vm2445_vm15 }
0x1b32   :  { %v2441_v12 = vsub.f32 1.0, %v2440_v11 }
0x1b34   :  { %v2442_v13 = vmul.f32 %v6252_v8, %v2441_v12 }
0x1b36   :  { %v2443_v15 = vadd.f32 %v6252_v8, %v2442_v13 }
0x1b38   :  { %v2447_v44 = vsel %vm2446_vm3, %v6252_v8, %v2443_v15 }
0x1b39   :  { %v2452_v16 = vsel %vm2449_vm1, %v2451_v59, %v2447_v44 }
0x1b3a   :  { %v2453_v6 = vmul.f32 %v2452_v16, %v7235_v27 }
0x1b3c   :  { %2458 = vrot.lane.b32.xlu1 %v2453_v6, %s6520_s27 }
0x1b44   :  { %5977 = vrot.lane.b32.xlu1 %v5976_v19, %s6516_s21 }
0x1b97   :  { %v2457_v20 = vpop.permute.xlu1 %2456 }
0x1b98   :  { %v2462_v21 = vmax.f32 %v2438_v52, %v2457_v20 }
0x1b9a   :  { %2466 = vrot.lane.b32.xlu1 %v2462_v21, %s6518_s5 }
0x1ba3   :  { %v2538_v35 = vpop.f32.mrf.mxu0 }
0x1bab   :  { %v2541_v36 = vpop.f32.mrf.mxu0 }
0x1bae   :  { %v2459_v23 = vpop.permute.xlu1 %2458 }
0x1baf   :  { %v2463_v24 = vmax.f32 %v2453_v6, %v2459_v23 }
0x1bb1   :  { %2468 = vrot.lane.b32.xlu1 %v2463_v24, %s6518_s5 }
0x1bb6   :  { %v5978_v26 = vpop.permute.xlu1 %5977 }
0x1bb7   :  { %v5980_v17 = vunpack.i.h.bf16 %v5978_v26  ;;  %v5979_v27 = vunpack.i.l.bf16 %v5978_v26 }
0x1bb9   :  { %v2485_v28 = vsel %vm142_vm2, %v5979_v27, %v5980_v17 }
0x1bba   :  { %2508 = vmatpush.msra.mxu2 %v2485_v28 }
0x1c0c   :  { %v2467_v63 = vpop.permute.xlu1 %2466 }
0x1c0d   :  { %v2472_v31 = vmax.f32 %v2462_v21, %v2467_v63  ;;  %v2749_v21 = vld [vmem:[#allocation5 + $0x18] sm:$0x1f] }
0x1c0f   :  { %v2474_v32 = vmax.f32 %v2472_v31, 0.0 }
0x1c11   :  { %5647 = vmatmul.msk.f32.vlgmr.msra.gmra.mxu2 %vm737_vm12, %v2474_v32 }
0x1c23   :  { %v2469_v33 = vpop.permute.xlu1 %2468 }
0x1c24   :  { %v2473_v40 = vmax.f32 %v2463_v24, %v2469_v33  ;;  %v7303_v33 = vld [vmem:[%s8010_s1] sm:$0xff] }
0x1c26   :  { %v2475_v29 = vmax.f32 %v2473_v40, 0.0  ;;  %v7310_v40 = vld [vmem:[%s8010_s1 + $0x8] sm:$0xff]  ;;  %s8048_s1 = smov 56  }
0x1c28   :  { %5648 = vmatmul.msk.f32.gmra.mxu2 %vm737_vm12, %v2475_v29 }
0x1c94   :  { %v2510_v48 = vpop.f32.mrf.mxu2 }
0x1c95   :  { %v2539_v37 = vadd.f32 %v2538_v35, %v2510_v48 }
0x1c97   :  { %v2589_v58 = vadd.f32 %v7269_v34, %v2539_v37 }
0x1c99   :  { %v2591_v4 = vmax.f32 %v2589_v58, 0.0 }
0x1cab   :  { %v2513_v1 = vpop.f32.mrf.mxu2 }
0x1cac   :  { %v2542_v38 = vadd.f32 %v2541_v36, %v2513_v1 }
0x1cae   :  { %v5981_v30 = vpack.i.bf16 %v2539_v37, %v2542_v38  ;;  %v2590_v5 = vadd.f32 %v7269_v34, %v2542_v38 }
0x1cb0   :  { %5982 = vrot.lane.b32.xlu0 %v5981_v30, %s6518_s5  ;;  %v2592_v8 = vmax.f32 %v2590_v5, 0.0 }
0x1cb8   :  { %5992 = vrot.lane.b32.xlu0 %v5986_v45, %s6511_s26 }
0x1cc0   :  { %2607 = vrot.lane.b32.xlu0 %v7269_v34, %s6521_s30 }
0x1d22   :  { %v5983_v22 = vpop.permute.xlu0 %5982 }
0x1d23   :  { %v5984_v39 = vunpack.i.l.bf16 %v5983_v22  ;;  %v5985_v62 = vunpack.i.h.bf16 %v5983_v22 }
0x1d25   :  { %2566 = vmatpush.msra.mxu1 %v5984_v39 }
0x1d27   :  { %2567 = vmatpush.msra.mxu1 %v5985_v62 }
0x1d28   :  { %5652 = vmatmul.msk.f32.vlgmr.msra.gmra.mxu1 %vm142_vm2, %v7188_v55 }
0x1d30   :  { %5653 = vmatmul.msk.f32.gmra.mxu1 %vm142_vm2, %v7195_v25  ;;  %v5993_v25 = vpop.permute.xlu0 %5992 }
0x1d31   :  { %v5995_v42 = vunpack.i.h.bf16 %v5993_v25  ;;  %v5994_v43 = vunpack.i.l.bf16 %v5993_v25 }
0x1d33   :  { %2674 = vmatpush.msrb.mxu2 %v5994_v43 }
0x1d35   :  { %2675 = vmatpush.msrb.mxu2 %v5995_v42 }
0x1d38   :  { %v2608_v60 = vpop.permute.xlu0 %2607 }
0x1da5   :  { %v2569_v53 = vpop.f32.mrf.mxu1 }
0x1da6   :  { %2577 = vrot.lane.b32.xlu1 %v2569_v53, %s6516_s21 }
0x1dad   :  { %v2572_v55 = vpop.f32.mrf.mxu1 }
0x1dae   :  { %2579 = vrot.lane.b32.xlu1 %v2572_v55, %s6516_s21 }
0x1db6   :  { %5987 = vrot.lane.b32.xlu1 %v5986_v45, %s6518_s5 }
0x1e18   :  { %v2578_v46 = vpop.permute.xlu1 %2577 }
0x1e19   :  { %v2583_v9 = vsub.f32 %v2539_v37, %v2578_v46 }
0x1e1b   :  { %v2593_v10 = vadd.f32 %v7269_v34, %v2583_v9 }
0x1e1d   :  { %v2595_v49 = vmax.f32 %v2593_v10, 0.0 }
0x1e1f   :  { %2643 = vrot.lane.b32.xlu2 %v2595_v49, %s6518_s5 }
0x1e20   :  { %v2580_v50 = vpop.permute.xlu1 %2579 }
0x1e21   :  { %v2584_v51 = vsub.f32 %v2542_v38, %v2580_v50 }
0x1e23   :  { %v2594_v56 = vadd.f32 %v7269_v34, %v2584_v51 }
0x1e25   :  { %v2596_v57 = vmax.f32 %v2594_v56, 0.0 }
0x1e27   :  { %2645 = vrot.lane.b32.xlu1 %v2596_v57, %s6518_s5  ;;  %2653 = vrot.lane.b32.xlu2 %v7269_v34, %s6517_s22 }
0x1e28   :  { %v5988_v52 = vpop.permute.xlu1 %5987 }
0x1e29   :  { %v5990_v54 = vunpack.i.h.bf16 %v5988_v52  ;;  %v5989_v0 = vunpack.i.l.bf16 %v5988_v52 }
0x1e2b   :  { %2630 = vmatpush.msra.mxu3 %v5989_v0 }
0x1e2d   :  { %2631 = vmatpush.msra.mxu3 %v5990_v54 }
0x1e2e   :  { %5654 = vmatmul.msk.f32.vlgmr.msra.gmra.mxu3 %vm142_vm2, %v2591_v4 }
0x1e2f   :  { %2751 = vrot.lane.b32.xlu2 %v2749_v21, %s6522_s18 }
0x1e36   :  { %5655 = vmatmul.msk.f32.gmra.mxu3 %vm142_vm2, %v2592_v8 }
0x1e37   :  { %2778 = vrot.lane.b32.xlu2 %v7243_v18, %s6521_s30 }
0x1e3f   :  { %2810 = vrot.lane.b32.xlu2 %v7269_v34, %s6513_s15 }
0x1e79   :  { %v2644_v11 = vpop.permute.xlu2 %2643 }
0x1e7a   :  { %5656 = vmatmul.msk.f32.vlgmr.msrb.gmra.mxu2 %vm142_vm2, %v2644_v11 }
0x1e81   :  { %v2654_v15 = vpop.permute.xlu2 %2653 }
0x1e89   :  { %v2752_v32 = vpop.permute.xlu2 %2751 }
0x1e8a   :  { %5658 = vmatpush.msk.msrb.mxu0 %vm1868_vm6, %v2752_v32 }
0x1e8b   :  { %5659 = vmatmul.msk.f32.vlgmr.msrb.gmra.mxu0 %vm1861_vm11, %v7303_v33 }
0x1e91   :  { %v2779_v36 = vpop.permute.xlu2 %2778 }
0x1e92   :  { %2802 = vmatpush.msrb.mxu1 %v2779_v36 }
0x1e93   :  { %5660 = vmatmul.msk.f32.gmra.mxu0 %vm1861_vm11, %v7310_v40 }
0x1e99   :  { %v2646_v12 = vpop.permute.xlu1 %2645 }
0x1e9a   :  { %5657 = vmatmul.msk.f32.gmra.mxu2 %vm142_vm2, %v2646_v12 }
0x1eb1   :  { %v2633_v13 = vpop.f32.mrf.mxu3 }
0x1eb2   :  { %v2634_v14 = vadd.f32 %v2633_v13, %v2608_v60 }
0x1eb4   :  { %6253 = vtanh.f32 %v2634_v14 }
0x1eb9   :  { %v2636_v23 = vpop.f32.mrf.mxu3 }
0x1eba   :  { %v6254_v16 = vpop.eup %6253  ;;  %v2637_v24 = vadd.f32 %v2636_v23, %v2608_v60  ;;  %v2811_v23 = vpop.permute.xlu2 %2810 }
0x1efd   :  { %v2677_v59 = vpop.f32.mrf.mxu2 }
0x1efe   :  { %v2678_v44 = vadd.f32 %v2677_v59, %v2654_v15 }
0x1f00   :  { %6255 = vtanh.f32 %v2678_v44 }
0x1f01   :  { %6257 = vtanh.f32 %v2637_v24 }
0x1f06   :  { %v6256_v6 = vpop.eup %6255 }
0x1f07   :  { %v2685_v19 = vadd.f32 %v6256_v6, %v6254_v16  ;;  %v6258_v27 = vpop.eup %6257 }
0x1f09   :  { %v2687_v3 = vmul.f32 %v2685_v19, %v2685_v19 }
0x1f0b   :  { %v2689_v20 = vsel %vm737_vm12, %v2687_v3, 0.0 }
0x1f0c   :  { %2690 = vadd.xlane.f32.xlu1 %v2689_v20  ;;  %v2772_v20 = vpop.f32.mrf.mxu0 }
0x1f1d   :  { %v2680_v26 = vpop.f32.mrf.mxu2 }
0x1f1e   :  { %v2681_v17 = vadd.f32 %v2680_v26, %v2654_v15 }
0x1f20   :  { %6259 = vtanh.f32 %v2681_v17  ;;  %v2775_v17 = vpop.f32.mrf.mxu0 }
0x1f26   :  { %v6260_v28 = vpop.eup %6259 }
0x1f27   :  { %v7294_v47 = vadd.f32 %v6260_v28, %v6258_v27 }
0x1f29   :  { %v2688_v63 = vmul.f32 %v7294_v47, %v7294_v47 }
0x1f2b   :  { %v2692_v31 = vsel %vm737_vm12, %v2688_v63, 0.0 }
0x1f2c   :  { %2693 = vadd.xlane.f32.xlu0 %v2692_v31 }
0x1f7f   :  { %v2691_v29 = vpop.xlane.xlu1 %2690 }
0x1f80   :  { %6261 = vrsqrt.f32 %v2691_v29  ;;  %vm2702_vm5 = vcmp.eq.f32.partialorder %v2691_v29, inf  ;;  %v2705_v39 = vand.u32 2147483648, %v2691_v29  ;;  %vm2704_vm14 = vcmp.eq.f32.partialorder %v2691_v29, 0.0 }
0x1f86   :  { %v6262_v35 = vpop.eup %6261 }
0x1f87   :  { %v2696_v48 = vmul.f32 %v6262_v35, %v2691_v29 }
0x1f89   :  { %v2697_v1 = vmul.f32 %v6262_v35, %v2696_v48 }
0x1f8b   :  { %v2698_v37 = vmul.f32 0.5, %v2697_v1 }
0x1f8d   :  { %v2699_v38 = vsub.f32 1.5, %v2698_v37 }
0x1f8f   :  { %v2700_v30 = vmul.f32 %v6262_v35, %v2699_v38 }
0x1f91   :  { %v2701_v22 = vmul.f32 %v2700_v30, %v2691_v29 }
0x1f93   :  { %v2703_v62 = vsel %vm2702_vm5, %v2691_v29, %v2701_v22 }
0x1f94   :  { %v2706_v41 = vsel %vm2704_vm14, %v2705_v39, %v2703_v62 }
0x1f95   :  { %6263 = vrcp.f32 %v2706_v41  ;;  %v2730_v42 = vand.u32 2147483648, %v2706_v41  ;;  %v2728_v46 = vand.u32 2147483647, %v2706_v41  ;;  %vm2724_vm15 = vweird.f32 %v2706_v41 }
0x1f97   :  { %v2731_v10 = vor.u32 1.1754944e-38, %v2730_v42  ;;  %vm2729_vm3 = vcmp.eq.f32.partialorder %v2728_v46, 8.507059e+37 }
0x1f9b   :  { %v6264_v45 = vpop.eup %6263 }
0x1f9c   :  { %v2720_v53 = vmul.f32 %v6264_v45, %v2706_v41  ;;  %vm2725_vm13 = vweird.f32 %v6264_v45 }
0x1f9d   :  { %vm2726_vm0 = vmor %vm2724_vm15, %vm2725_vm13 }
0x1f9e   :  { %v2721_v55 = vsub.f32 1.0, %v2720_v53 }
0x1f9f   :  { %v2694_v25 = vpop.xlane.xlu0 %2693 }
0x1fa0   :  { %6265 = vrsqrt.f32 %v2694_v25  ;;  %v2722_v43 = vmul.f32 %v6264_v45, %v2721_v55  ;;  %vm2714_vm1 = vcmp.eq.f32.partialorder %v2694_v25, inf  ;;  %v2717_v5 = vand.u32 2147483648, %v2694_v25 }
0x1fa1   :  { %vm2716_vm5 = vcmp.eq.f32.partialorder %v2694_v25, 0.0 }
0x1fa2   :  { %v2723_v9 = vadd.f32 %v6264_v45, %v2722_v43 }
0x1fa4   :  { %v2727_v49 = vsel %vm2726_vm0, %v6264_v45, %v2723_v9 }
0x1fa5   :  { %v2732_v50 = vsel %vm2729_vm3, %v2731_v10, %v2727_v49 }
0x1fa6   :  { %v6266_v51 = vpop.eup %6265  ;;  %v2733_v56 = vmul.f32 %v2732_v50, %v2685_v19 }
0x1fa7   :  { %v2708_v57 = vmul.f32 %v6266_v51, %v2694_v25 }
0x1fa8   :  { %5661 = vmatmul.msk.f32.vlgmr.msrb.gmra.mxu1 %vm737_vm12, %v2733_v56 }
0x1fa9   :  { %v2709_v58 = vmul.f32 %v6266_v51, %v2708_v57 }
0x1fab   :  { %v2710_v52 = vmul.f32 0.5, %v2709_v58 }
0x1fad   :  { %v2711_v54 = vsub.f32 1.5, %v2710_v52 }
0x1faf   :  { %v2712_v0 = vmul.f32 %v6266_v51, %v2711_v54 }
0x1fb1   :  { %v2713_v4 = vmul.f32 %v2712_v0, %v2694_v25 }
0x1fb3   :  { %v2715_v8 = vsel %vm2714_vm1, %v2694_v25, %v2713_v4 }
0x1fb4   :  { %v2718_v11 = vsel %vm2716_vm5, %v2717_v5, %v2715_v8 }
0x1fb5   :  { %6267 = vrcp.f32 %v2718_v11  ;;  %v2745_v14 = vand.u32 2147483648, %v2718_v11  ;;  %v2743_v59 = vand.u32 2147483647, %v2718_v11  ;;  %vm2739_vm13 = vweird.f32 %v2718_v11 }
0x1fb7   :  { %v2746_v16 = vor.u32 1.1754944e-38, %v2745_v14  ;;  %vm2744_vm0 = vcmp.eq.f32.partialorder %v2743_v59, 8.507059e+37 }
0x1fbb   :  { %v6268_v12 = vpop.eup %6267 }
0x1fbc   :  { %v2735_v60 = vmul.f32 %v6268_v12, %v2718_v11  ;;  %vm2740_vm14 = vweird.f32 %v6268_v12 }
0x1fbd   :  { %vm2741_vm15 = vmor %vm2739_vm13, %vm2740_vm14 }
0x1fbe   :  { %v2736_v13 = vsub.f32 1.0, %v2735_v60 }
0x1fc0   :  { %v2737_v15 = vmul.f32 %v6268_v12, %v2736_v13 }
0x1fc2   :  { %v2738_v44 = vadd.f32 %v6268_v12, %v2737_v15 }
0x1fc4   :  { %v2742_v6 = vsel %vm2741_vm15, %v6268_v12, %v2738_v44 }
0x1fc5   :  { %v2747_v19 = vsel %vm2744_vm0, %v2746_v16, %v2742_v6  ;;  %v2939_v6 = vld [vmem:[#allocation5 + $0x18] sm:$0xf] }
0x1fc6   :  { %v2748_v3 = vmul.f32 %v2747_v19, %v7294_v47 }
0x1fc8   :  { %5662 = vmatmul.msk.f32.gmra.mxu1 %vm737_vm12, %v2748_v3 }
0x2025   :  { %v2804_v21 = vpop.f32.mrf.mxu1 }
0x2026   :  { %v2805_v24 = vadd.f32 %v2804_v21, %v2772_v20 }
0x2028   :  { %v7317_v26 = vadd.f32 %v2811_v23, %v2805_v24 }
0x202a   :  { %2817 = vrot.lane.b32.xlu1 %v7317_v26, %s6520_s27  ;;  %2988 = vrot.lane.b32.xlu0 %v7317_v26, %s6523_s0 }
0x2045   :  { %v2807_v27 = vpop.f32.mrf.mxu1 }
0x2046   :  { %v2808_v28 = vadd.f32 %v2807_v27, %v2775_v17 }
0x2048   :  { %v7323_v63 = vadd.f32 %v2811_v23, %v2808_v28 }
0x204a   :  { %2819 = vrot.lane.b32.xlu2 %v7323_v63, %s6520_s27  ;;  %v5996_v59 = vpack.i.bf16 %v7317_v26, %v7323_v63 }
0x2052   :  { %2990 = vrot.lane.b32.xlu2 %v7323_v63, %s6523_s0 }
0x205a   :  { %2984 = vrot.lane.b32.xlu2 %v7317_v26, %s6524_s9 }
0x2062   :  { %2986 = vrot.lane.b32.xlu2 %v7323_v63, %s6524_s9 }
0x209c   :  { %v2818_v31 = vpop.permute.xlu1 %2817  ;;  %v2989_v29 = vpop.permute.xlu0 %2988 }
0x20a4   :  { %v2820_v47 = vpop.permute.xlu2 %2819 }
0x20a5   :  { %5663 = vmatpush.xpose.msk.msrb.mxu3 %vm1072_vm7, %v2820_v47 }
0x20a9   :  { %5664 = vmatpush.xpose.msk.msrb.mxu3 %vm1072_vm7, %v2818_v31 }
0x20ac   :  { %5665 = vmatmul.msk.f32.vlgmr.msrb.gmra.mxu3 %vm1072_vm7, %v7317_v26  ;;  %v2991_v32 = vpop.permute.xlu2 %2990 }
0x20ad   :  { %5672 = vmatpush.xpose.msk.msra.mxu1 %vm1072_vm7, %v2991_v32 }
0x20b1   :  { %5673 = vmatpush.xpose.msk.msra.mxu1 %vm1072_vm7, %v2989_v29 }
0x20b4   :  { %5666 = vmatmul.msk.f32.gmra.mxu3 %vm1072_vm7, %v7323_v63  ;;  %v2985_v35 = vpop.permute.xlu2 %2984 }
0x20b5   :  { %5674 = vmatmul.msk.f32.vlgmr.msra.gmra.mxu1 %vm1072_vm7, %v2985_v35 }
0x20bc   :  { %v2987_v48 = vpop.permute.xlu2 %2986 }
0x20bd   :  { %5675 = vmatmul.msk.f32.gmra.mxu1 %vm1072_vm7, %v2987_v48 }
0x212f   :  { %v2846_v36 = vpop.f32.mrf.mxu3 }
0x2130   :  { %v2852_v1 = vmul.f32 0.5, %v2846_v36 }
0x2132   :  { %v2854_v37 = vsel %vm95_vm9, %v2852_v1, -inf  ;;  %v3017_v38 = vpop.f32.mrf.mxu1 }
0x2133   :  { %v3023_v30 = vmul.f32 0.5, %v3017_v38  ;;  %v2856_v22 = vsel %vm142_vm2, %v2854_v37, -inf }
0x2134   :  { %2857 = vmax.xlane.f32.xlu0 %v2856_v22 }
0x2135   :  { %v3025_v39 = vsel %vm95_vm9, %v3023_v30, -inf }
0x2136   :  { %v3027_v62 = vsel %vm142_vm2, %v3025_v39, -inf }
0x2137   :  { %v2849_v41 = vpop.f32.mrf.mxu3  ;;  %3028 = vmax.xlane.f32.xlu2 %v3027_v62 }
0x2138   :  { %v2853_v45 = vmul.f32 0.5, %v2849_v41 }
0x213a   :  { %v3020_v53 = vpop.f32.mrf.mxu1  ;;  %v2855_v55 = vsel %vm96_vm10, %v2853_v45, -inf }
0x213b   :  { %v3024_v25 = vmul.f32 0.5, %v3020_v53  ;;  %v2859_v43 = vsel %vm142_vm2, %v2855_v55, -inf }
0x213d   :  { %v3026_v42 = vsel %vm96_vm10, %v3024_v25, -inf }
0x213e   :  { %v3030_v46 = vsel %vm142_vm2, %v3026_v42, -inf }
0x213f   :  { %2860 = vmax.xlane.f32.xlu2 %v2859_v43  ;;  %3031 = vmax.xlane.f32.xlu1 %v3030_v46 }
0x21a7   :  { %v2858_v9 = vpop.xlane.xlu0 %2857 }
0x21a8   :  { %v2862_v10 = vsub.f32 %v2854_v37, %v2858_v9 }
0x21aa   :  { %v2864_v49 = vmul.f32 1.442695, %v2862_v10  ;;  %v3029_v50 = vpop.xlane.xlu2 %3028 }
0x21ab   :  { %v3033_v51 = vsub.f32 %v3025_v39, %v3029_v50 }
0x21ac   :  { %6269 = vpow2.f32 %v2864_v49 }
0x21ad   :  { %v3035_v56 = vmul.f32 1.442695, %v3033_v51 }
0x21af   :  { %6271 = vpow2.f32 %v3035_v56 }
0x21b2   :  { %v7355_v57 = vpop.eup %6269  ;;  %v2861_v58 = vpop.xlane.xlu2 %2860 }
0x21b3   :  { %v3032_v52 = vpop.xlane.xlu1 %3031  ;;  %v2863_v54 = vsub.f32 %v2855_v55, %v2861_v58  ;;  %v2868_v4 = vsel %vm142_vm2, %v7355_v57, 0.0 }
0x21b4   :  { %v3034_v0 = vsub.f32 %v3026_v42, %v3032_v52  ;;  %2869 = vadd.xlane.f32.xlu1 %v2868_v4 }
0x21b5   :  { %v7359_v5 = vpop.eup %6271  ;;  %v2866_v8 = vmul.f32 1.442695, %v2863_v54 }
0x21b6   :  { %v3037_v11 = vmul.f32 1.442695, %v3034_v0  ;;  %v3039_v12 = vsel %vm142_vm2, %v7359_v5, 0.0 }
0x21b7   :  { %6273 = vpow2.f32 %v2866_v8  ;;  %3040 = vadd.xlane.f32.xlu0 %v3039_v12 }
0x21b8   :  { %6275 = vpow2.f32 %v3037_v11 }
0x21bd   :  { %v7363_v60 = vpop.eup %6273 }
0x21be   :  { %v7365_v13 = vpop.eup %6275  ;;  %v2871_v14 = vsel %vm142_vm2, %v7363_v60, 0.0 }
0x21bf   :  { %2872 = vadd.xlane.f32.xlu0 %v2871_v14  ;;  %v3042_v15 = vsel %vm142_vm2, %v7365_v13, 0.0 }
0x21c0   :  { %3043 = vadd.xlane.f32.xlu2 %v3042_v15 }
0x21cd   :  { %5997 = vrot.lane.b32.xlu1 %v5996_v59, %s6525_s23 }
0x21d3   :  { %3110 = vrot.lane.b32.xlu0 %v2939_v6, %s6508_s17 }
0x21d5   :  { %2941 = vrot.lane.b32.xlu1 %v2939_v6, %s6512_s14 }
0x21d8   :  { %6002 = vrot.lane.b32.xlu2 %v5996_v59, %s6518_s5 }
0x2227   :  { %v2870_v44 = vpop.xlane.xlu1 %2869 }
0x2228   :  { %6277 = vrcp.f32 %v2870_v44  ;;  %v2885_v63 = vand.u32 2147483648, %v2870_v44  ;;  %vm2879_vm1 = vweird.f32 %v2870_v44  ;;  %v2883_v31 = vand.u32 2147483647, %v2870_v44 }
0x222a   :  { %v3041_v16 = vpop.xlane.xlu0 %3040  ;;  %v2886_v1 = vor.u32 1.1754944e-38, %v2885_v63  ;;  %vm2884_vm13 = vcmp.eq.f32.partialorder %v2883_v31, 8.507059e+37 }
0x222b   :  { %6279 = vrcp.f32 %v3041_v16  ;;  %v3056_v48 = vand.u32 2147483648, %v3041_v16  ;;  %vm3050_vm15 = vweird.f32 %v3041_v16  ;;  %v3054_v38 = vand.u32 2147483647, %v3041_v16 }
0x222d   :  { %v3057_v55 = vor.u32 1.1754944e-38, %v3056_v48 }
0x222e   :  { %v6278_v19 = vpop.eup %6277 }
0x222f   :  { %v2875_v3 = vmul.f32 %v6278_v19, %v2870_v44  ;;  %vm2880_vm3 = vweird.f32 %v6278_v19 }
0x2230   :  { %vm2881_vm5 = vmor %vm2879_vm1, %vm2880_vm3  ;;  %vm3055_vm1 = vcmp.eq.f32.partialorder %v3054_v38, 8.507059e+37 }
0x2231   :  { %v6280_v20 = vpop.eup %6279  ;;  %v2876_v21 = vsub.f32 1.0, %v2875_v3 }
0x2232   :  { %v3046_v23 = vmul.f32 %v6280_v20, %v3041_v16  ;;  %v2873_v24 = vpop.xlane.xlu0 %2872  ;;  %vm3051_vm14 = vweird.f32 %v6280_v20 }
0x2233   :  { %v2877_v26 = vmul.f32 %v6278_v19, %v2876_v21  ;;  %v7377_v17 = vpop.xlane.xlu2 %3043  ;;  %6281 = vrcp.f32 %v2873_v24  ;;  %vm7381_vm0 = vmor %vm3050_vm15, %vm3051_vm14  ;;  %v2900_v43 = vand.u32 2147483648, %v2873_v24  ;;  %v2898_v50 = vand.u32 2147483647, %v2873_v24 }
0x2234   :  { %v3047_v27 = vsub.f32 1.0, %v3046_v23  ;;  %6283 = vrcp.f32 %v7377_v17  ;;  %v3071_v54 = vand.u32 2147483648, %v7377_v17  ;;  %vm3065_vm15 = vweird.f32 %v7377_v17 }
0x2235   :  { %v2878_v28 = vadd.f32 %v6278_v19, %v2877_v26  ;;  %v2901_v0 = vor.u32 1.1754944e-38, %v2900_v43  ;;  %v3069_v11 = vand.u32 2147483647, %v7377_v17 }
0x2236   :  { %v3048_v47 = vmul.f32 %v6280_v20, %v3047_v27  ;;  %v3072_v15 = vor.u32 1.1754944e-38, %v3071_v54 }
0x2237   :  { %v2882_v29 = vsel %vm2881_vm5, %v6278_v19, %v2878_v28  ;;  %vm2894_vm5 = vweird.f32 %v2873_v24 }
0x2238   :  { %v3049_v35 = vadd.f32 %v6280_v20, %v3048_v47  ;;  %v2887_v39 = vsel %vm2884_vm13, %v2886_v1, %v2882_v29 }
0x2239   :  { %v6282_v32 = vpop.eup %6281  ;;  %v7388_v49 = vmul.f32 %v7355_v57, %v2887_v39 }
0x223a   :  { %v6284_v36 = vpop.eup %6283  ;;  %v2890_v37 = vmul.f32 %v6282_v32, %v2873_v24  ;;  %v3053_v53 = vsel %vm7381_vm0, %v6280_v20, %v3049_v35  ;;  %vm2895_vm3 = vweird.f32 %v6282_v32  ;;  %vm2899_vm0 = vcmp.eq.f32.partialorder %v2898_v50, 8.507059e+37  ;;  %v3154_v24 = vld [vmem:[#allocation5 + $0x20] sm:$0x1f] }
0x223b   :  { %v3061_v30 = vmul.f32 %v6284_v36, %v7377_v17  ;;  %v6003_v22 = vpop.permute.xlu2 %6002  ;;  %v3058_v51 = vsel %vm3055_vm1, %v3057_v55, %v3053_v53  ;;  %vm3066_vm14 = vweird.f32 %v6284_v36  ;;  %vm2896_vm13 = vmor %vm2894_vm5, %vm2895_vm3  ;;  %vm3070_vm3 = vcmp.eq.f32.partialorder %v3069_v11, 8.507059e+37  ;;  %v3153_v17 = vld [vmem:[#allocation5 + $0x18] sm:$0x1f] }
0x223c   :  { %v2891_v41 = vsub.f32 1.0, %v2890_v37  ;;  %v6004_v45 = vunpack.i.l.bf16 %v6003_v22  ;;  %v6005_v46 = vunpack.i.h.bf16 %v6003_v22  ;;  %v7395_v8 = vmul.f32 %v7359_v5, %v3058_v51  ;;  %vm3067_vm1 = vmor %vm3065_vm15, %vm3066_vm14 }
0x223d   :  { %v3062_v25 = vsub.f32 1.0, %v3061_v30 }
0x223e   :  { %v2892_v42 = vmul.f32 %v6282_v32, %v2891_v41  ;;  %2930 = vmatpush.msra.mxu2 %v6004_v45 }
0x223f   :  { %v3063_v9 = vmul.f32 %v6284_v36, %v3062_v25  ;;  %v5998_v10 = vpop.permute.xlu1 %5997 }
0x2240   :  { %2931 = vmatpush.msra.mxu2 %v6005_v46  ;;  %v5999_v56 = vunpack.i.l.bf16 %v5998_v10  ;;  %v2893_v58 = vadd.f32 %v6282_v32, %v2892_v42  ;;  %v6000_v4 = vunpack.i.h.bf16 %v5998_v10 }
0x2241   :  { %5667 = vmatmul.msk.f32.vlgmr.msra.gmra.mxu2 %vm142_vm2, %v7388_v49  ;;  %v3064_v52 = vadd.f32 %v6284_v36, %v3063_v9 }
0x2242   :  { %3101 = vmatpush.msra.mxu3 %v5999_v56  ;;  %v2897_v57 = vsel %vm2896_vm13, %v6282_v32, %v2893_v58 }
0x2243   :  { %v2902_v12 = vsel %vm2899_vm0, %v2901_v0, %v2897_v57  ;;  %v3068_v14 = vsel %vm3067_vm1, %v6284_v36, %v3064_v52 }
0x2244   :  { %3102 = vmatpush.msra.mxu3 %v6000_v4  ;;  %v7402_v59 = vmul.f32 %v7363_v60, %v2902_v12  ;;  %v3073_v44 = vsel %vm3070_vm3, %v3072_v15, %v3068_v14 }
0x2245   :  { %5676 = vmatmul.msk.f32.vlgmr.msra.gmra.mxu3 %vm142_vm2, %v7395_v8  ;;  %v7407_v5 = vmul.f32 %v7365_v13, %v3073_v44  ;;  %v3111_v6 = vpop.permute.xlu0 %3110 }
0x2246   :  { %5678 = vmatpush.msk.msrb.mxu2 %vm1201_vm8, %v3111_v6  ;;  %vm3268_vm5 = vcmp.eq.f32.partialorder %v7402_v59, 0.0 }
0x2247   :  { %v2942_v16 = vpop.permute.xlu1 %2941  ;;  %vm3443_vm14 = vcmp.eq.f32.partialorder %v7407_v5, 0.0 }
0x2248   :  { %5669 = vmatpush.msk.msra.mxu0 %vm1201_vm8, %v2942_v16 }
0x2249   :  { %5668 = vmatmul.msk.f32.gmra.mxu2 %vm142_vm2, %v7402_v59 }
0x224d   :  { %5677 = vmatmul.msk.f32.gmra.mxu3 %vm142_vm2, %v7407_v5 }
0x22c4   :  { %v2933_v19 = vpop.f32.mrf.mxu2 }
0x22c5   :  { %5670 = vmatmul.msk.f32.vlgmr.msra.gmra.mxu0 %vm1072_vm7, %v2933_v19 }
0x22c8   :  { %v3104_v60 = vpop.f32.mrf.mxu3 }
0x22c9   :  { %5679 = vmatmul.msk.f32.vlgmr.msrb.gmra.mxu2 %vm1072_vm7, %v3104_v60 }
0x22cc   :  { %v2936_v3 = vpop.f32.mrf.mxu2 }
0x22cd   :  { %5671 = vmatmul.msk.f32.gmra.mxu0 %vm1072_vm7, %v2936_v3 }
0x22d0   :  { %v3107_v13 = vpop.f32.mrf.mxu3 }
0x22d1   :  { %5680 = vmatmul.msk.f32.gmra.mxu2 %vm1072_vm7, %v3107_v13 }
0x2342   :  { %v2968_v20 = vpop.f32.mrf.mxu0 }
0x2343   :  { %2976 = vrot.lane.b32.xlu0 %v2968_v20, %s6522_s18 }
0x234a   :  { %v2971_v21 = vpop.f32.mrf.mxu0 }
0x234b   :  { %2978 = vrot.lane.b32.xlu1 %v2971_v21, %s6522_s18 }
0x234c   :  { %v3137_v23 = vpop.f32.mrf.mxu2 }
0x234d   :  { %3145 = vrot.lane.b32.xlu2 %v3137_v23, %s6522_s18 }
0x2353   :  { %3159 = vrot.lane.b32.xlu1 %v3154_v24, %s6526_s24 }
0x2354   :  { %v3140_v26 = vpop.f32.mrf.mxu2 }
0x2355   :  { %3147 = vrot.lane.b32.xlu0 %v3140_v26, %s6522_s18  ;;  %3157 = vrot.lane.b32.xlu2 %v3153_v17, %s6526_s24 }
0x235d   :  { %3193 = vrot.lane.b32.xlu0 %v7243_v18, %s6519_s25 }
0x2365   :  { %3223 = vrot.lane.b32.xlu0 %v7269_v34, %s6512_s14 }
0x23a7   :  { %v3146_v63 = vpop.permute.xlu2 %3145 }
0x23af   :  { %v3158_v36 = vpop.permute.xlu2 %3157 }
0x23b5   :  { %v2977_v27 = vpop.permute.xlu0 %2976 }
0x23b6   :  { %v2982_v28 = vadd.f32 %v7269_v34, %v2977_v27  ;;  %v3604_v27 = vld [vmem:[#allocation7] sm:$0xf] }
0x23b8   :  { %v3151_v47 = vadd.f32 %v3146_v63, %v2982_v28  ;;  %v7488_v28 = vld [vmem:[%s8011_s2] sm:$0xff] }
0x23ba   :  { %3189 = vrot.lane.b32.xlu2 %v3151_v47, %s8048_s1 }
0x23bd   :  { %v2979_v31 = vpop.permute.xlu1 %2978 }
0x23be   :  { %v2983_v32 = vadd.f32 %v7269_v34, %v2979_v31 }
0x23c5   :  { %v3160_v48 = vpop.permute.xlu1 %3159 }
0x23c6   :  { %v3161_v1 = vsel %vm737_vm12, %v3158_v36, %v3160_v48 }
0x23c7   :  { %v3148_v29 = vpop.permute.xlu0 %3147  ;;  %5681 = vmatpush.msk.msrb.mxu0 %vm1868_vm6, %v3161_v1  ;;  %vm3267_vm6 = vcmp.eq.f32.partialorder %v7388_v49, 0.0 }
0x23c8   :  { %v3152_v35 = vadd.f32 %v3148_v29, %v2983_v32  ;;  %5682 = vmatmul.msk.f32.vlgmr.msrb.gmra.mxu0 %vm1861_vm11, %v7303_v33 }
0x23ca   :  { %3191 = vrot.lane.b32.xlu1 %v3152_v35, %s8048_s1  ;;  %v7499_v35 = vld [vmem:[%s8011_s2 + $0x8] sm:$0xff] }
0x23cf   :  { %v3194_v18 = vpop.permute.xlu0 %3193 }
0x23d0   :  { %3215 = vmatpush.msrb.mxu1 %v3194_v18  ;;  %5683 = vmatmul.msk.f32.gmra.mxu0 %vm1861_vm11, %v7310_v40  ;;  %vm3442_vm11 = vcmp.eq.f32.partialorder %v7395_v8, 0.0 }
0x23d7   :  { %v3224_v22 = vpop.permute.xlu0 %3223 }
0x2414   :  { %v3190_v37 = vpop.permute.xlu2 %3189 }
0x2415   :  { %5684 = vmatmul.msk.f32.vlgmr.msrb.gmra.mxu1 %vm737_vm12, %v3190_v37 }
0x243c   :  { %v3192_v34 = vpop.permute.xlu1 %3191 }
0x243d   :  { %5685 = vmatmul.msk.f32.gmra.mxu1 %vm737_vm12, %v3192_v34 }
0x2445   :  { %v3181_v38 = vpop.f32.mrf.mxu0 }
0x244d   :  { %v3184_v41 = vpop.f32.mrf.mxu0 }
0x2492   :  { %v3217_v30 = vpop.f32.mrf.mxu1 }
0x2493   :  { %v3218_v39 = vadd.f32 %v3217_v30, %v3181_v38 }
0x2495   :  { %v7439_v62 = vadd.f32 %v3224_v22, %v3218_v39  ;;  %v3356_v39 = vld [vmem:[#allocation5 + $0x20] sm:$0xf] }
0x2497   :  { %3230 = vrot.lane.b32.xlu0 %v7439_v62, %s6520_s27 }
0x24ba   :  { %v3220_v33 = vpop.f32.mrf.mxu1 }
0x24bb   :  { %v3221_v45 = vadd.f32 %v3220_v33, %v3184_v41 }
0x24bd   :  { %v7443_v53 = vadd.f32 %v3224_v22, %v3221_v45 }
0x24bf   :  { %3407 = vrot.lane.b32.xlu1 %v7443_v53, %s6523_s0  ;;  %3232 = vrot.lane.b32.xlu2 %v7443_v53, %s6520_s27  ;;  %v6006_v29 = vpack.i.bf16 %v7439_v62, %v7443_v53 }
0x24c0   :  { %3403 = vrot.lane.b32.xlu0 %v7443_v53, %s6524_s9 }
0x24c7   :  { %3401 = vrot.lane.b32.xlu1 %v7439_v62, %s6524_s9  ;;  %3405 = vrot.lane.b32.xlu2 %v7439_v62, %s6523_s0 }
0x2509   :  { %v3231_v55 = vpop.permute.xlu0 %3230 }
0x2519   :  { %v3233_v40 = vpop.permute.xlu2 %3232 }
0x251a   :  { %5686 = vmatpush.xpose.msk.msrb.mxu3 %vm1072_vm7, %v3233_v40 }
0x251e   :  { %5687 = vmatpush.xpose.msk.msrb.mxu3 %vm1072_vm7, %v3231_v55 }
0x2521   :  { %5688 = vmatmul.msk.f32.vlgmr.msrb.gmra.mxu3 %vm1072_vm7, %v7439_v62  ;;  %v3406_v42 = vpop.permute.xlu2 %3405 }
0x2529   :  { %5689 = vmatmul.msk.f32.gmra.mxu3 %vm1072_vm7, %v7443_v53 }
0x2531   :  { %v3408_v25 = vpop.permute.xlu1 %3407 }
0x2532   :  { %5695 = vmatpush.xpose.msk.msra.mxu1 %vm1072_vm7, %v3408_v25  ;;  %v3404_v46 = vpop.permute.xlu0 %3403 }
0x2536   :  { %5696 = vmatpush.xpose.msk.msra.mxu1 %vm1072_vm7, %v3406_v42 }
0x2539   :  { %v3402_v43 = vpop.permute.xlu1 %3401 }
0x253a   :  { %5697 = vmatmul.msk.f32.vlgmr.msra.gmra.mxu1 %vm1072_vm7, %v3402_v43 }
0x253b   :  { %5705 = vmatpush.msk.msrb.mxu1 %vm1201_vm8, %v3604_v27 }
0x2542   :  { %5698 = vmatmul.msk.f32.gmra.mxu1 %vm1072_vm7, %v3404_v46 }
0x254a   :  { %5706 = vmatmul.msk.f32.vlgmr.msrb.gmra.mxu1 %vm1072_vm7, %v7488_v28 }
0x2552   :  { %5707 = vmatmul.msk.f32.gmra.mxu1 %vm1072_vm7, %v7499_v35 }
0x25a4   :  { %v3259_v9 = vpop.f32.mrf.mxu3 }
0x25a5   :  { %v3265_v10 = vmul.f32 0.5, %v3259_v9 }
0x25a7   :  { %v3269_v50 = vsel %vm3267_vm6, -9e+15, %v3265_v10 }
0x25a8   :  { %v3271_v51 = vsel %vm95_vm9, %v3269_v50, -inf }
0x25a9   :  { %v3273_v56 = vsel %vm142_vm2, %v3271_v51, -inf }
0x25aa   :  { %3274 = vmax.xlane.f32.xlu1 %v3273_v56 }
0x25ac   :  { %v3262_v58 = vpop.f32.mrf.mxu3 }
0x25ad   :  { %v3266_v0 = vmul.f32 0.5, %v3262_v58 }
0x25af   :  { %v3270_v49 = vsel %vm3268_vm5, -9e+15, %v3266_v0 }
0x25b0   :  { %v3272_v15 = vsel %vm96_vm10, %v3270_v49, -inf }
0x25b1   :  { %v3276_v16 = vsel %vm142_vm2, %v3272_v15, -inf }
0x25b7   :  { %v3434_v52 = vpop.f32.mrf.mxu1 }
0x25b8   :  { %v3440_v54 = vmul.f32 0.5, %v3434_v52 }
0x25ba   :  { %v3444_v4 = vsel %vm3442_vm11, -9e+15, %v3440_v54 }
0x25bb   :  { %v3446_v57 = vsel %vm95_vm9, %v3444_v4, -inf }
0x25bc   :  { %v3448_v11 = vsel %vm142_vm2, %v3446_v57, -inf }
0x25bd   :  { %3449 = vmax.xlane.f32.xlu2 %v3448_v11 }
0x25bf   :  { %v3437_v12 = vpop.f32.mrf.mxu1 }
0x25c0   :  { %v3441_v14 = vmul.f32 0.5, %v3437_v12 }
0x25c2   :  { %v3445_v44 = vsel %vm3443_vm14, -9e+15, %v3441_v14 }
0x25c3   :  { %v3447_v8 = vsel %vm96_vm10, %v3445_v44, -inf }
0x25c4   :  { %v3451_v6 = vsel %vm142_vm2, %v3447_v8, -inf }
0x25c5   :  { %3277 = vmax.xlane.f32.xlu2 %v3276_v16  ;;  %3452 = vmax.xlane.f32.xlu0 %v3451_v6 }
0x25c7   :  { %v7522_v25 = vpop.f32.mrf.mxu1 }
0x25cf   :  { %v7525_v11 = vpop.f32.mrf.mxu1 }
0x25d0   :  { %v6016_v12 = vpack.i.bf16 %v7522_v25, %v7525_v11 }
0x261d   :  { %v3275_v59 = vpop.xlane.xlu1 %3274 }
0x261e   :  { %v3279_v19 = vsub.f32 %v3271_v51, %v3275_v59 }
0x2620   :  { %v3281_v60 = vmul.f32 1.442695, %v3279_v19 }
0x2622   :  { %6285 = vpow2.f32 %v3281_v60 }
0x2628   :  { %v7481_v3 = vpop.eup %6285 }
0x2629   :  { %v3285_v5 = vsel %vm142_vm2, %v7481_v3, 0.0 }
0x262a   :  { %3286 = vadd.xlane.f32.xlu2 %v3285_v5 }
0x2630   :  { %v3450_v13 = vpop.xlane.xlu2 %3449 }
0x2631   :  { %v3454_v20 = vsub.f32 %v3446_v57, %v3450_v13 }
0x2633   :  { %v3456_v21 = vmul.f32 1.442695, %v3454_v20 }
0x2635   :  { %6287 = vpow2.f32 %v3456_v21 }
0x2638   :  { %v3278_v23 = vpop.xlane.xlu2 %3277  ;;  %v3453_v24 = vpop.xlane.xlu0 %3452 }
0x2639   :  { %v3280_v26 = vsub.f32 %v3272_v15, %v3278_v23  ;;  %v3455_v17 = vsub.f32 %v3447_v8, %v3453_v24 }
0x263b   :  { %v6288_v63 = vpop.eup %6287  ;;  %v3283_v47 = vmul.f32 1.442695, %v3280_v26  ;;  %v3458_v31 = vmul.f32 1.442695, %v3455_v17 }
0x263c   :  { %v3460_v32 = vsel %vm142_vm2, %v6288_v63, 0.0 }
0x263d   :  { %6289 = vpow2.f32 %v3283_v47  ;;  %3461 = vadd.xlane.f32.xlu1 %v3460_v32 }
0x263e   :  { %6291 = vpow2.f32 %v3458_v31 }
0x2642   :  { %6007 = vrot.lane.b32.xlu2 %v6006_v29, %s6525_s23 }
0x2643   :  { %v7502_v18 = vpop.eup %6289 }
0x2644   :  { %v7504_v48 = vpop.eup %6291  ;;  %v3288_v36 = vsel %vm142_vm2, %v7502_v18, 0.0 }
0x2645   :  { %3289 = vadd.xlane.f32.xlu1 %v3288_v36  ;;  %v3463_v1 = vsel %vm142_vm2, %v7504_v48, 0.0 }
0x2646   :  { %3464 = vadd.xlane.f32.xlu0 %v3463_v1 }
0x264a   :  { %6017 = vrot.lane.b32.xlu2 %v6016_v12, %s6511_s26 }
0x265a   :  { %6012 = vrot.lane.b32.xlu0 %v6006_v29, %s6518_s5 }
0x265e   :  { %3531 = vrot.lane.b32.xlu1 %v3356_v39, %s6511_s26 }
0x2662   :  { %3358 = vrot.lane.b32.xlu0 %v3356_v39, %s6518_s5 }
0x269d   :  { %v7513_v37 = vpop.xlane.xlu2 %3286 }
0x269e   :  { %6293 = vrcp.f32 %v7513_v37  ;;  %v3302_v6 = vand.u32 2147483648, %v7513_v37  ;;  %vm3296_vm5 = vweird.f32 %v7513_v37  ;;  %v3300_v19 = vand.u32 2147483647, %v7513_v37 }
0x26a0   :  { %v3303_v23 = vor.u32 1.1754944e-38, %v3302_v6 }
0x26a4   :  { %v6294_v62 = vpop.eup %6293 }
0x26a5   :  { %v6008_v34 = vpop.permute.xlu2 %6007  ;;  %v3292_v40 = vmul.f32 %v6294_v62, %v7513_v37  ;;  %vm3297_vm6 = vweird.f32 %v6294_v62 }
0x26a6   :  { %v6009_v38 = vunpack.i.l.bf16 %v6008_v34  ;;  %v6010_v30 = vunpack.i.h.bf16 %v6008_v34 }
0x26a7   :  { %v3293_v9 = vsub.f32 1.0, %v3292_v40 }
0x26a8   :  { %3522 = vmatpush.msra.mxu3 %v6009_v38 }
0x26a9   :  { %v3294_v0 = vmul.f32 %v6294_v62, %v3293_v9  ;;  %v3690_v9 = vld [vmem:[#allocation7] sm:$0xff] }
0x26aa   :  { %3523 = vmatpush.msra.mxu3 %v6010_v30 }
0x26ab   :  { %v3295_v8 = vadd.f32 %v6294_v62, %v3294_v0 }
0x26b0   :  { %v3462_v22 = vpop.xlane.xlu1 %3461 }
0x26b1   :  { %6295 = vrcp.f32 %v3462_v22  ;;  %v3477_v42 = vand.u32 2147483648, %v3462_v22  ;;  %v3475_v46 = vand.u32 2147483647, %v3462_v22  ;;  %vm3471_vm15 = vweird.f32 %v3462_v22 }
0x26b3   :  { %v3478_v51 = vor.u32 1.1754944e-38, %v3477_v42  ;;  %vm3476_vm1 = vcmp.eq.f32.partialorder %v3475_v46, 8.507059e+37 }
0x26b7   :  { %v6296_v41 = vpop.eup %6295 }
0x26b8   :  { %v3467_v33 = vmul.f32 %v6296_v41, %v3462_v22  ;;  %v7518_v45 = vpop.xlane.xlu1 %3289  ;;  %vm3472_vm13 = vweird.f32 %v6296_v41  ;;  %v7547_v22 = vld [vmem:[%s8012_s3] sm:$0xff] }
0x26b9   :  { %6297 = vrcp.f32 %v7518_v45  ;;  %v3465_v53 = vpop.xlane.xlu0 %3464  ;;  %vm3473_vm0 = vmor %vm3471_vm15, %vm3472_vm13  ;;  %v3317_v47 = vand.u32 2147483648, %v7518_v45  ;;  %v3315_v29 = vand.u32 2147483647, %v7518_v45 }
0x26ba   :  { %v3468_v55 = vsub.f32 1.0, %v3467_v33  ;;  %6299 = vrcp.f32 %v3465_v53  ;;  %v3492_v14 = vand.u32 2147483648, %v3465_v53  ;;  %v3490_v44 = vand.u32 2147483647, %v3465_v53  ;;  %vm3298_vm13 = vmor %vm3296_vm5, %vm3297_vm6 }
0x26bb   :  { %vm3486_vm11 = vweird.f32 %v3465_v53  ;;  %v3299_v13 = vsel %vm3298_vm13, %v6294_v62, %v3295_v8  ;;  %v3318_v36 = vor.u32 1.1754944e-38, %v3317_v47  ;;  %vm8050_vm5 = vcmask 195584  }
0x26bc   :  { %v3469_v43 = vmul.f32 %v6296_v41, %v3468_v55  ;;  %v3493_v60 = vor.u32 1.1754944e-38, %v3492_v14  ;;  %vm3491_vm15 = vcmp.eq.f32.partialorder %v3490_v44, 8.507059e+37  ;;  %vm8052_vm13 = vmmov %vm8050_vm5 }
0x26be   :  { %v3470_v10 = vadd.f32 %v6296_v41, %v3469_v43 }
0x26bf   :  { %v6298_v50 = vpop.eup %6297 }
0x26c0   :  { %v6300_v56 = vpop.eup %6299  ;;  %v3474_v58 = vsel %vm3473_vm0, %v6296_v41, %v3470_v10  ;;  %v3307_v57 = vmul.f32 %v6298_v50, %v7518_v45  ;;  %vm3301_vm0 = vcmp.eq.f32.partialorder %v3300_v19, 8.507059e+37 }
0x26c1   :  { %v3479_v52 = vsel %vm3476_vm1, %v3478_v51, %v3474_v58  ;;  %v3482_v54 = vmul.f32 %v6300_v56, %v3465_v53  ;;  %vm3487_vm3 = vweird.f32 %v6300_v56  ;;  %v3304_v17 = vsel %vm3301_vm0, %v3303_v23, %v3299_v13  ;;  %v3692_v51 = vld [vmem:[#allocation7 + $0x50] sm:$0xff] }
0x26c2   :  { %v3480_v4 = vmul.f32 %v6288_v63, %v3479_v52  ;;  %v3308_v16 = vsub.f32 1.0, %v3307_v57  ;;  %vm3488_vm14 = vmor %vm3486_vm11, %vm3487_vm3  ;;  %vm3312_vm1 = vweird.f32 %v6298_v50  ;;  %v3305_v32 = vmul.f32 %v7481_v3, %v3304_v17  ;;  %v6018_v3 = vpop.permute.xlu2 %6017  ;;  %v6137_v58 = vld [vmem:[%s8019_s10] ss:$0 sm:$0xff] }
0x26c3   :  { %v3483_v49 = vsub.f32 1.0, %v3482_v54  ;;  %vm3311_vm3 = vweird.f32 %v7518_v45  ;;  %vm3316_vm11 = vcmp.eq.f32.partialorder %v3315_v29, 8.507059e+37  ;;  %v6020_v38 = vunpack.i.h.bf16 %v6018_v3 }
0x26c4   :  { %5699 = vmatmul.msk.f32.vlgmr.msra.gmra.mxu3 %vm142_vm2, %v3480_v4  ;;  %v3309_v20 = vmul.f32 %v6298_v50, %v3308_v16  ;;  %vm3313_vm6 = vmor %vm3311_vm3, %vm3312_vm1  ;;  %v6019_v30 = vunpack.i.l.bf16 %v6018_v3  ;;  %v6398_v4 = vld [vmem:[%s8017_s8 + $0x2] ss:$0 sm:$0xff]  ;;  %v3860_v3 = vld [vmem:[#allocation7 + $0x80] sm:$0xff]  ;;  %vm8054_vm0 = vcmask 523264  }
0x26c5   :  { %v3484_v15 = vmul.f32 %v6300_v56, %v3483_v49  ;;  %vm8055_vm1 = vmmov %vm8054_vm0 }
0x26c6   :  { %v3310_v63 = vadd.f32 %v6298_v50, %v3309_v20  ;;  %3659 = vmatpush.msrb.mxu3 %v6019_v30  ;;  %v3852_v30 = vld [vmem:[#allocation7] sm:$0xf]  ;;  %vm8056_vm3 = vmmov %vm8054_vm0 }
0x26c7   :  { %v3485_v59 = vadd.f32 %v6300_v56, %v3484_v15 }
0x26c8   :  { %3660 = vmatpush.msrb.mxu3 %v6020_v38  ;;  %v7596_v38 = vld [vmem:[#allocation7 + $0x88] sm:$0xff] }
0x26c9   :  { %v3489_v5 = vsel %vm3488_vm14, %v6300_v56, %v3485_v59  ;;  %vm8051_vm14 = vmmov %vm8050_vm5 }
0x26ca   :  { %v3494_v21 = vsel %vm3491_vm15, %v3493_v60, %v3489_v5  ;;  %vm8053_vm15 = vmmov %vm8050_vm5 }
0x26cb   :  { %v3495_v24 = vmul.f32 %v7504_v48, %v3494_v21  ;;  %v3314_v48 = vsel %vm3313_vm6, %v6298_v50, %v3310_v63  ;;  %v3691_v50 = vld [vmem:[#allocation7 + $0x28] sm:$0xff] }
0x26cc   :  { %v6013_v26 = vpop.permute.xlu0 %6012  ;;  %v3319_v1 = vsel %vm3316_vm11, %v3318_v36, %v3314_v48  ;;  %v6021_v56 = vpack.i.bf16 %v3691_v50, %v3692_v51 }
0x26cd   :  { %v6014_v27 = vunpack.i.l.bf16 %v6013_v26  ;;  %5700 = vmatmul.msk.f32.gmra.mxu3 %vm142_vm2, %v3495_v24  ;;  %v6015_v31 = vunpack.i.h.bf16 %v6013_v26  ;;  %v3320_v37 = vmul.f32 %v7502_v18, %v3319_v1  ;;  %v7555_v18 = vld [vmem:[%s8012_s3 + $0x8] sm:$0xff]  ;;  %s8049_s3 = smov 24   ;;  %v3683_v1 = vadd.f32 %v6137_v58, %v7525_v11 }
0x26cf   :  { %3347 = vmatpush.msra.mxu2 %v6014_v27 }
0x26d0   :  { %v3532_v34 = vpop.permute.xlu1 %3531 }
0x26d1   :  { %3348 = vmatpush.msra.mxu2 %v6015_v31  ;;  %v6399_v31 = vld [vmem:[%s8013_s4] sm:$0x3] }
0x26d2   :  { %5690 = vmatmul.msk.f32.vlgmr.msra.gmra.mxu2 %vm142_vm2, %v3305_v32  ;;  %v3682_v32 = vadd.f32 %v6137_v58, %v7522_v25 }
0x26d3   :  { %5701 = vmatpush.msk.msrb.mxu2 %vm1201_vm8, %v3532_v34  ;;  %v3685_v34 = vmax.f32 %v3683_v1, 0.0 }
0x26d4   :  { %v3359_v39 = vpop.permute.xlu0 %3358  ;;  %v3684_v36 = vmax.f32 %v3682_v32, 0.0 }
0x26d5   :  { %5708 = vmatmul.msk.f32.vlgmr.msrb.gmra.mxu3 %vm142_vm2, %v7547_v22  ;;  %5692 = vmatpush.msk.msra.mxu0 %vm1201_vm8, %v3359_v39 }
0x26da   :  { %5691 = vmatmul.msk.f32.gmra.mxu2 %vm142_vm2, %v3320_v37 }
0x26dd   :  { %5709 = vmatmul.msk.f32.gmra.mxu3 %vm142_vm2, %v7555_v18 }
0x2747   :  { %v3525_v62 = vpop.f32.mrf.mxu3 }
0x2748   :  { %5702 = vmatmul.msk.f32.vlgmr.msrb.gmra.mxu2 %vm1072_vm7, %v3525_v62  ;;  %v3853_v62 = vld [vmem:[#allocation7 + $0x8] sm:$0xf] }
0x2750   :  { %v3528_v41 = vpop.f32.mrf.mxu3 }
0x2751   :  { %5703 = vmatmul.msk.f32.gmra.mxu2 %vm1072_vm7, %v3528_v41 }
0x2755   :  { %v3350_v33 = vpop.f32.mrf.mxu2 }
0x2756   :  { %5693 = vmatmul.msk.f32.vlgmr.msra.gmra.mxu0 %vm1072_vm7, %v3350_v33  ;;  %v3858_v33 = vld [vmem:[#allocation7 + $0x58] sm:$0xff] }
0x2758   :  { %v3662_v40 = vpop.f32.mrf.mxu3 }
0x275d   :  { %v3353_v45 = vpop.f32.mrf.mxu2 }
0x275e   :  { %5694 = vmatmul.msk.f32.gmra.mxu0 %vm1072_vm7, %v3353_v45  ;;  %v7604_v45 = vld [vmem:[#allocation7 + $0x60] sm:$0xff] }
0x2760   :  { %v3665_v43 = vpop.f32.mrf.mxu3 }
0x27cb   :  { %v3558_v53 = vpop.f32.mrf.mxu2 }
0x27d3   :  { %v3385_v55 = vpop.f32.mrf.mxu0 }
0x27d4   :  { %3393 = vrot.lane.b32.xlu2 %v3385_v55, %s6511_s26  ;;  %v3561_v42 = vpop.f32.mrf.mxu2 }
0x27d5   :  { %3568 = vrot.lane.b32.xlu1 %v3561_v42, %s6511_s26 }
0x27db   :  { %v3388_v46 = vpop.f32.mrf.mxu0 }
0x27dc   :  { %3566 = vrot.lane.b32.xlu2 %v3558_v53, %s6511_s26  ;;  %3395 = vrot.lane.b32.xlu0 %v3388_v46, %s6511_s26  ;;  %v3856_v46 = vld [vmem:[#allocation7 + $0x30] sm:$0xff] }
0x27dd   :  { %3672 = vrot.lane.b32.xlu1 %v3665_v43, %s8049_s3  ;;  %v6041_v43 = vpack.i.bf16 %v7604_v45, %v3858_v33 }
0x27e4   :  { %3670 = vrot.lane.b32.xlu0 %v3662_v40, %s8049_s3  ;;  %6022 = vrot.lane.b32.xlu2 %v6021_v56, %s6512_s14 }
0x27e5   :  { %3745 = vrot.lane.b32.xlu1 %v3690_v9, %s6512_s14 }
0x27ec   :  { %6032 = vrot.lane.b32.xlu2 %v6021_v56, %s6513_s15 }
0x27ed   :  { %3696 = vrot.lane.b32.xlu1 %v3690_v9, %s6513_s15  ;;  %v7608_v9 = vld [vmem:[#allocation7 + $0x38] sm:$0xff] }
0x27f4   :  { %3705 = vrot.lane.b32.xlu2 %v6137_v58, %s6513_s15 }
0x27f5   :  { %3754 = vrot.lane.b32.xlu1 %v6137_v58, %s6512_s14 }
0x282e   :  { %v3394_v10 = vpop.permute.xlu2 %3393 }
0x282f   :  { %v3399_v57 = vadd.f32 %v6398_v4, %v3394_v10 }
0x2836   :  { %v3567_v52 = vpop.permute.xlu2 %3566 }
0x2837   :  { %v3572_v12 = vadd.f32 %v3567_v52, %v3399_v57 }
0x283e   :  { %v6023_v13 = vpop.permute.xlu2 %6022 }
0x283f   :  { %v6025_v20 = vunpack.i.h.bf16 %v6023_v13  ;;  %v6024_v21 = vunpack.i.l.bf16 %v6023_v13 }
0x2841   :  { %3774 = vmatpush.msra.mxu2 %v6024_v21 }
0x2843   :  { %3775 = vmatpush.msra.mxu2 %v6025_v20 }
0x2846   :  { %v6033_v26 = vpop.permute.xlu2 %6032 }
0x2847   :  { %v3569_v54 = vpop.permute.xlu1 %3568  ;;  %v6034_v63 = vunpack.i.l.bf16 %v6033_v26  ;;  %v6035_v47 = vunpack.i.h.bf16 %v6033_v26 }
0x284e   :  { %v3396_v0 = vpop.permute.xlu0 %3395 }
0x284f   :  { %v3400_v49 = vadd.f32 %v6398_v4, %v3396_v0  ;;  %v3673_v16 = vpop.permute.xlu1 %3672 }
0x2850   :  { %v3677_v59 = vsub.f32 %v7525_v11, %v3673_v16  ;;  %v3706_v11 = vpop.permute.xlu2 %3705  ;;  %v7622_v16 = vld [vmem:[#allocation7 + $0x10] sm:$0xff] }
0x2851   :  { %v3573_v14 = vadd.f32 %v3569_v54, %v3400_v49  ;;  %v6046_v54 = vpack.i.bf16 %v7608_v9, %v3856_v46 }
0x2852   :  { %v3687_v60 = vadd.f32 %v6137_v58, %v3677_v59 }
0x2853   :  { %v6026_v15 = vpack.i.bf16 %v3572_v12, %v3573_v14 }
0x2854   :  { %v3689_v5 = vmax.f32 %v3687_v60, 0.0 }
0x2855   :  { %6027 = vrot.lane.b32.xlu0 %v6026_v15, %s8049_s3 }
0x2856   :  { %v3671_v44 = vpop.permute.xlu0 %3670 }
0x2857   :  { %v3676_v8 = vsub.f32 %v7522_v25, %v3671_v44  ;;  %v3746_v23 = vpop.permute.xlu1 %3745  ;;  %v6036_v25 = vpack.i.bf16 %v7596_v38, %v3860_v3 }
0x2858   :  { %3776 = vmatpush.msra.mxu2 %v3746_v23 }
0x2859   :  { %v3686_v6 = vadd.f32 %v6137_v58, %v3676_v8  ;;  %6037 = vrot.lane.b32.xlu1 %v6036_v25, %s6515_s20  ;;  %v3854_v8 = vld [vmem:[#allocation7 + $0x8] sm:$0xff] }
0x285b   :  { %v3688_v19 = vmax.f32 %v3686_v6, 0.0  ;;  %v6051_v6 = vpack.i.bf16 %v7622_v16, %v3854_v8 }
0x285d   :  { %3741 = vrot.lane.b32.xlu0 %v3688_v19, %s6511_s26 }
0x285f   :  { %v3697_v48 = vpop.permute.xlu1 %3696 }
0x2861   :  { %3925 = vrot.lane.b32.xlu1 %v3852_v30, %s6516_s21 }
0x2865   :  { %3743 = vrot.lane.b32.xlu0 %v3689_v5, %s6511_s26 }
0x2867   :  { %v3755_v41 = vpop.permute.xlu1 %3754 }
0x2869   :  { %3927 = vrot.lane.b32.xlu1 %v3853_v62, %s6516_s21 }
0x2871   :  { %6042 = vrot.lane.b32.xlu1 %v6041_v43, %s6515_s20 }
0x2879   :  { %6047 = vrot.lane.b32.xlu1 %v6046_v54, %s6515_s20 }
0x28c7   :  { %v6028_v24 = vpop.permute.xlu0 %6027 }
0x28c8   :  { %v6029_v17 = vunpack.i.l.bf16 %v6028_v24  ;;  %v6030_v27 = vunpack.i.h.bf16 %v6028_v24 }
0x28ca   :  { %3596 = vmatpush.msrb.mxu0 %v6029_v17 }
0x28cb   :  { %v6038_v59 = vpop.permute.xlu1 %6037 }
0x28cc   :  { %3597 = vmatpush.msrb.mxu0 %v6030_v27  ;;  %v6040_v19 = vunpack.i.h.bf16 %v6038_v59  ;;  %v6039_v60 = vunpack.i.l.bf16 %v6038_v59 }
0x28cd   :  { %5704 = vmatmul.msk.f32.vlgmr.msrb.gmra.mxu0 %vm142_vm2, %v6399_v31 }
0x28ce   :  { %3727 = vmatpush.msra.mxu0 %v6034_v63  ;;  %v3889_v13 = vsel %vm8054_vm0, %v6039_v60, %v6040_v19 }
0x28cf   :  { %v3742_v29 = vpop.permute.xlu0 %3741  ;;  %3912 = vmatpush.msra.mxu1 %v3889_v13 }
0x28d0   :  { %5712 = vmatmul.msk.f32.vlgmr.msra.gmra.mxu2 %vm8050_vm5, %v3742_v29  ;;  %3728 = vmatpush.msra.mxu0 %v6035_v47  ;;  %vm8057_vm5 = vmmov %vm8054_vm0 }
0x28d2   :  { %3729 = vmatpush.msra.mxu0 %v3697_v48 }
0x28d3   :  { %v3926_v5 = vpop.permute.xlu1 %3925 }
0x28d5   :  { %5710 = vmatmul.msk.f32.vlgmr.msra.gmra.mxu0 %vm8051_vm14, %v3684_v36 }
0x28d7   :  { %v3744_v37 = vpop.permute.xlu0 %3743 }
0x28d8   :  { %5713 = vmatmul.msk.f32.gmra.mxu2 %vm8052_vm13, %v3744_v37 }
0x28db   :  { %v3928_v20 = vpop.permute.xlu1 %3927 }
0x28dc   :  { %v3929_v21 = vsel %vm142_vm2, %v3926_v5, %v3928_v20 }
0x28dd   :  { %5711 = vmatmul.msk.f32.gmra.mxu0 %vm8053_vm15, %v3685_v34  ;;  %5716 = vmatpush.msk.msra.mxu3 %vm1201_vm8, %v3929_v21 }
0x28de   :  { %5717 = vmatmul.msk.f32.vlgmr.msra.gmra.mxu3 %vm1072_vm7, %v7488_v28 }
0x28e3   :  { %v6043_v23 = vpop.permute.xlu1 %6042 }
0x28e4   :  { %v6045_v24 = vunpack.i.h.bf16 %v6043_v23  ;;  %v6044_v26 = vunpack.i.l.bf16 %v6043_v23 }
0x28e6   :  { %5718 = vmatmul.msk.f32.gmra.mxu3 %vm1072_vm7, %v7499_v35  ;;  %v3888_v27 = vsel %vm8055_vm1, %v6044_v26, %v6045_v24 }
0x28e7   :  { %3913 = vmatpush.msra.mxu1 %v3888_v27 }
0x28eb   :  { %v6048_v63 = vpop.permute.xlu1 %6047 }
0x28ec   :  { %v6050_v47 = vunpack.i.h.bf16 %v6048_v63  ;;  %v6049_v31 = vunpack.i.l.bf16 %v6048_v63 }
0x28ee   :  { %v3887_v36 = vsel %vm8056_vm3, %v6049_v31, %v6050_v47 }
0x28ef   :  { %3914 = vmatpush.msra.mxu1 %v3887_v36 }
0x294a   :  { %v7601_v39 = vpop.f32.mrf.mxu0 }
0x2952   :  { %v3731_v53 = vpop.f32.mrf.mxu0 }
0x2953   :  { %v3732_v40 = vadd.f32 %v3731_v53, %v3706_v11  ;;  %v3778_v55 = vpop.f32.mrf.mxu2 }
0x2954   :  { %v3779_v42 = vadd.f32 %v3778_v55, %v3755_v41 }
0x2955   :  { %6301 = vtanh.f32 %v3732_v40 }
0x2956   :  { %6303 = vtanh.f32 %v3779_v42 }
0x295a   :  { %v3734_v10 = vpop.f32.mrf.mxu0 }
0x295b   :  { %v6302_v50 = vpop.eup %6301  ;;  %v3735_v51 = vadd.f32 %v3734_v10, %v3706_v11  ;;  %v3781_v56 = vpop.f32.mrf.mxu2 }
0x295c   :  { %v6304_v58 = vpop.eup %6303  ;;  %v3782_v52 = vadd.f32 %v3781_v56, %v3755_v41 }
0x295d   :  { %6305 = vtanh.f32 %v3735_v51  ;;  %v7611_v0 = vadd.f32 %v6304_v58, %v6302_v50 }
0x295e   :  { %6307 = vtanh.f32 %v3782_v52 }
0x295f   :  { %v3788_v4 = vmul.f32 %v7611_v0, %v7611_v0 }
0x2961   :  { %v3790_v57 = vsel %vm295_vm4, %v3788_v4, 0.0 }
0x2962   :  { %3791 = vadd.xlane.f32.xlu0 %v3790_v57 }
0x2963   :  { %v6306_v49 = vpop.eup %6305 }
0x2964   :  { %v6308_v12 = vpop.eup %6307 }
0x2965   :  { %v7617_v14 = vadd.f32 %v6308_v12, %v6306_v49 }
0x2967   :  { %v3789_v15 = vmul.f32 %v7617_v14, %v7617_v14 }
0x2969   :  { %v3793_v44 = vsel %vm295_vm4, %v3789_v15, 0.0 }
0x296a   :  { %3794 = vadd.xlane.f32.xlu2 %v3793_v44 }
0x2976   :  { %6052 = vrot.lane.b32.xlu0 %v6051_v6, %s6515_s20 }
0x29d5   :  { %v3792_v17 = vpop.xlane.xlu0 %3791 }
0x29d6   :  { %6309 = vrsqrt.f32 %v3792_v17  ;;  %vm3803_vm6 = vcmp.eq.f32.partialorder %v3792_v17, inf  ;;  %vm3805_vm11 = vcmp.eq.f32.partialorder %v3792_v17, 0.0  ;;  %v3806_v62 = vand.u32 2147483648, %v3792_v17 }
0x29dc   :  { %v6310_v32 = vpop.eup %6309 }
0x29dd   :  { %v3797_v29 = vmul.f32 %v6310_v32, %v3792_v17  ;;  %v3795_v48 = vpop.xlane.xlu2 %3794 }
0x29de   :  { %6311 = vrsqrt.f32 %v3795_v48  ;;  %vm3815_vm14 = vcmp.eq.f32.partialorder %v3795_v48, inf  ;;  %v3818_v50 = vand.u32 2147483648, %v3795_v48  ;;  %vm3817_vm13 = vcmp.eq.f32.partialorder %v3795_v48, 0.0 }
0x29df   :  { %v3798_v28 = vmul.f32 %v6310_v32, %v3797_v29 }
0x29e1   :  { %v3799_v35 = vmul.f32 0.5, %v3798_v28  ;;  %v6138_v28 = vld [vmem:[%s8019_s10 + $0x1] ss:$0 sm:$0xff] }
0x29e3   :  { %v3800_v1 = vsub.f32 1.5, %v3799_v35 }
0x29e4   :  { %v6312_v37 = vpop.eup %6311 }
0x29e5   :  { %v3801_v34 = vmul.f32 %v6310_v32, %v3800_v1  ;;  %v3809_v3 = vmul.f32 %v6312_v37, %v3795_v48 }
0x29e7   :  { %v3802_v25 = vmul.f32 %v3801_v34, %v3792_v17  ;;  %v3810_v30 = vmul.f32 %v6312_v37, %v3809_v3  ;;  %v6066_v3 = vpack.i.bf16 %v7608_v9, %v7604_v45 }
0x29e8   :  { %v6053_v11 = vpop.permute.xlu0 %6052 }
0x29e9   :  { %v3804_v41 = vsel %vm3803_vm6, %v3792_v17, %v3802_v25  ;;  %v3811_v33 = vmul.f32 0.5, %v3810_v30  ;;  %v6055_v53 = vunpack.i.h.bf16 %v6053_v11  ;;  %v6054_v40 = vunpack.i.l.bf16 %v6053_v11  ;;  %v3996_v30 = vld [vmem:[%s8019_s10] sm:$0x3] }
0x29ea   :  { %v3807_v55 = vsel %vm3805_vm11, %v3806_v62, %v3804_v41  ;;  %v3999_v62 = vperm.slane %v3996_v30, 1 }
0x29eb   :  { %6313 = vrcp.f32 %v3807_v55  ;;  %v3812_v42 = vsub.f32 1.5, %v3811_v33  ;;  %v3886_v43 = vsel %vm8057_vm5, %v6054_v40, %v6055_v53  ;;  %v3831_v4 = vand.u32 2147483648, %v3807_v55 }
0x29ec   :  { %3915 = vmatpush.msra.mxu1 %v3886_v43  ;;  %v3829_v49 = vand.u32 2147483647, %v3807_v55  ;;  %vm3825_vm0 = vweird.f32 %v3807_v55 }
0x29ed   :  { %v3813_v46 = vmul.f32 %v6312_v37, %v3812_v42  ;;  %v3832_v44 = vor.u32 1.1754944e-38, %v3831_v4  ;;  %v4024_v37 = vld [vmem:[#allocation7 + $0xb0] sm:$0xff] }
0x29ee   :  { %vm3830_vm3 = vcmp.eq.f32.partialorder %v3829_v49, 8.507059e+37  ;;  %v6061_v34 = vpack.i.bf16 %v7596_v38, %v4024_v37  ;;  %v3998_v38 = vperm.slane %v3996_v30, 0 }
0x29ef   :  { %v3814_v10 = vmul.f32 %v3813_v46, %v3795_v48 }
0x29f0   :  { %6062 = vrot.lane.b32.xlu0 %v6061_v34, %s6518_s5 }
0x29f1   :  { %v6314_v51 = vpop.eup %6313  ;;  %v3816_v56 = vsel %vm3815_vm14, %v3795_v48, %v3814_v10 }
0x29f2   :  { %v3821_v58 = vmul.f32 %v6314_v51, %v3807_v55  ;;  %v3819_v52 = vsel %vm3817_vm13, %v3818_v50, %v3816_v56  ;;  %vm3826_vm15 = vweird.f32 %v6314_v51  ;;  %vm8058_vm13 = vcmask 326656  }
0x29f3   :  { %6315 = vrcp.f32 %v3819_v52  ;;  %vm3827_vm1 = vmor %vm3825_vm0, %vm3826_vm15  ;;  %v3846_v5 = vand.u32 2147483648, %v3819_v52  ;;  %v3844_v21 = vand.u32 2147483647, %v3819_v52  ;;  %vm3840_vm11 = vweird.f32 %v3819_v52 }
0x29f4   :  { %v3822_v54 = vsub.f32 1.0, %v3821_v58  ;;  %vm8059_vm15 = vmmov %vm8058_vm13 }
0x29f5   :  { %v3847_v24 = vor.u32 1.1754944e-38, %v3846_v5  ;;  %vm3845_vm14 = vcmp.eq.f32.partialorder %v3844_v21, 8.507059e+37  ;;  %vm8060_vm0 = vmmov %vm8058_vm13 }
0x29f6   :  { %v3823_v57 = vmul.f32 %v6314_v51, %v3822_v54 }
0x29f8   :  { %v3824_v12 = vadd.f32 %v6314_v51, %v3823_v57  ;;  %6067 = vrot.lane.b32.xlu0 %v6066_v3, %s6518_s5 }
0x29f9   :  { %v6316_v15 = vpop.eup %6315 }
0x29fa   :  { %v3828_v8 = vsel %vm3827_vm1, %v6314_v51, %v3824_v12  ;;  %v3836_v6 = vmul.f32 %v6316_v15, %v3819_v52  ;;  %vm3841_vm6 = vweird.f32 %v6316_v15  ;;  %vm8061_vm1 = vmmov %vm8060_vm0 }
0x29fb   :  { %v3833_v59 = vsel %vm3830_vm3, %v3832_v44, %v3828_v8  ;;  %vm3842_vm5 = vmor %vm3840_vm11, %vm3841_vm6 }
0x29fc   :  { %v3834_v19 = vmul.f32 %v3833_v59, %v7611_v0  ;;  %v3837_v60 = vsub.f32 1.0, %v3836_v6  ;;  %v3949_v0 = vpop.f32.mrf.mxu3 }
0x29fe   :  { %v3850_v13 = vmax.f32 %v3834_v19, 0.0  ;;  %v3838_v20 = vmul.f32 %v6316_v15, %v3837_v60 }
0x2a00   :  { %5714 = vmatmul.msk.f32.vlgmr.msra.gmra.mxu1 %vm295_vm4, %v3850_v13  ;;  %v3839_v23 = vadd.f32 %v6316_v15, %v3838_v20  ;;  %6077 = vrot.lane.b32.xlu0 %v6066_v3, %s6513_s15 }
0x2a02   :  { %v3843_v26 = vsel %vm3842_vm5, %v6316_v15, %v3839_v23 }
0x2a03   :  { %v3848_v17 = vsel %vm3845_vm14, %v3847_v24, %v3843_v26 }
0x2a04   :  { %v3849_v27 = vmul.f32 %v3848_v17, %v7617_v14  ;;  %v3952_v31 = vpop.f32.mrf.mxu3 }
0x2a06   :  { %v3851_v63 = vmax.f32 %v3849_v27, 0.0 }
0x2a08   :  { %5715 = vmatmul.msk.f32.gmra.mxu1 %vm295_vm4, %v3851_v63 }
0x2a62   :  { %v6063_v45 = vpop.permute.xlu0 %6062 }
0x2a63   :  { %v6065_v9 = vunpack.i.h.bf16 %v6063_v45  ;;  %v6064_v41 = vunpack.i.l.bf16 %v6063_v45 }
0x2a65   :  { %4065 = vmatpush.msrb.mxu2 %v6064_v41 }
0x2a67   :  { %4066 = vmatpush.msrb.mxu2 %v6065_v9 }
0x2a6a   :  { %v6068_v43 = vpop.permute.xlu0 %6067 }
0x2a6b   :  { %v6070_v46 = vunpack.i.h.bf16 %v6068_v43  ;;  %v6069_v10 = vunpack.i.l.bf16 %v6068_v43 }
0x2a6d   :  { %4067 = vmatpush.msrb.mxu2 %v6069_v10 }
0x2a6f   :  { %4068 = vmatpush.msrb.mxu2 %v6070_v46 }
0x2a72   :  { %v6078_v8 = vpop.permute.xlu0 %6077 }
0x2a73   :  { %v6079_v19 = vunpack.i.l.bf16 %v6078_v8  ;;  %v6080_v5 = vunpack.i.h.bf16 %v6078_v8 }
0x2a7d   :  { %v3917_v47 = vpop.f32.mrf.mxu1 }
0x2a7e   :  { %v3950_v29 = vadd.f32 %v3949_v0, %v3917_v47 }
0x2a85   :  { %v3920_v32 = vpop.f32.mrf.mxu1 }
0x2a86   :  { %v3953_v48 = vadd.f32 %v3952_v31, %v3920_v32 }
0x2a88   :  { %v6056_v36 = vpack.i.bf16 %v3950_v29, %v3953_v48 }
0x2a8a   :  { %6057 = vrot.lane.b32.xlu1 %v6056_v36, %s6517_s22 }
0x2a92   :  { %4013 = vrot.lane.b32.xlu1 %v6138_v28, %s6516_s21 }
0x2afc   :  { %v6058_v35 = vpop.permute.xlu1 %6057 }
0x2afd   :  { %v6059_v14 = vunpack.i.l.bf16 %v6058_v35  ;;  %v6060_v1 = vunpack.i.h.bf16 %v6058_v35 }
0x2aff   :  { %3977 = vmatpush.msrb.mxu0 %v6059_v14 }
0x2b01   :  { %3978 = vmatpush.msrb.mxu0 %v6060_v1 }
0x2b02   :  { %5719 = vmatmul.msk.f32.vlgmr.msrb.gmra.mxu0 %vm142_vm2, %v7547_v22 }
0x2b04   :  { %v4014_v53 = vpop.permute.xlu1 %4013 }
0x2b0a   :  { %5720 = vmatmul.msk.f32.gmra.mxu0 %vm142_vm2, %v7555_v18 }
0x2b7f   :  { %v3980_v25 = vpop.f32.mrf.mxu0 }
0x2b80   :  { %3988 = vrot.lane.b32.xlu2 %v3980_v25, %s6508_s17 }
0x2b87   :  { %v3983_v11 = vpop.f32.mrf.mxu0 }
0x2b88   :  { %3990 = vrot.lane.b32.xlu1 %v3983_v11, %s6508_s17  ;;  %4002 = vrot.lane.b32.xlu2 %v3999_v62, %s6516_s21 }
0x2b90   :  { %4000 = vrot.lane.b32.xlu1 %v3998_v38, %s6516_s21  ;;  %4030 = vrot.lane.b32.xlu2 %v7622_v16, %s6518_s5 }
0x2b98   :  { %6072 = vrot.lane.b32.xlu1 %v6061_v34, %s6513_s15 }
0x2ba0   :  { %4085 = vrot.lane.b32.xlu1 %v7622_v16, %s6513_s15 }
0x2ba8   :  { %4045 = vrot.lane.b32.xlu1 %v6138_v28, %s6515_s20 }
0x2bda   :  { %v3989_v33 = vpop.permute.xlu2 %3988 }
0x2bdb   :  { %v3994_v40 = vsub.f32 %v3950_v29, %v3989_v33 }
0x2bdd   :  { %v4016_v55 = vadd.f32 %v4014_v53, %v3994_v40 }
0x2bdf   :  { %v4018_v42 = vmax.f32 %v4016_v55, 0.0 }
0x2be1   :  { %4081 = vrot.lane.b32.xlu2 %v4018_v42, %s6517_s22 }
0x2be2   :  { %v4003_v50 = vpop.permute.xlu2 %4002 }
0x2be9   :  { %4100 = vrot.lane.b32.xlu2 %v6138_v28, %s6519_s25 }
0x2bea   :  { %v4031_v51 = vpop.permute.xlu2 %4030 }
0x2beb   :  { %4069 = vmatpush.msrb.mxu2 %v4031_v51 }
0x2bfa   :  { %v3991_v56 = vpop.permute.xlu1 %3990 }
0x2bfb   :  { %v3995_v58 = vsub.f32 %v3953_v48, %v3991_v56 }
0x2bfd   :  { %v4017_v52 = vadd.f32 %v4014_v53, %v3995_v58 }
0x2bff   :  { %v4019_v54 = vmax.f32 %v4017_v52, 0.0 }
0x2c01   :  { %4083 = vrot.lane.b32.xlu0 %v4019_v54, %s6517_s22 }
0x2c02   :  { %v4001_v4 = vpop.permute.xlu1 %4000 }
0x2c03   :  { %v4004_v57 = vsel %vm142_vm2, %v4001_v4, %v4003_v50 }
0x2c04   :  { %v4006_v49 = vadd.f32 %v4004_v57, %v3950_v29  ;;  %v4007_v15 = vadd.f32 %v4004_v57, %v3953_v48 }
0x2c06   :  { %v4008_v12 = vmax.f32 %v4006_v49, 0.0  ;;  %v4009_v60 = vmax.f32 %v4007_v15, 0.0 }
0x2c08   :  { %5721 = vmatmul.msk.f32.vlgmr.msrb.gmra.mxu2 %vm8058_vm13, %v4008_v12  ;;  %v4218_v12 = vld [vmem:[#allocation7 + $0x10] sm:$0xf] }
0x2c0a   :  { %v6073_v44 = vpop.permute.xlu1 %6072 }
0x2c0b   :  { %v6075_v6 = vunpack.i.h.bf16 %v6073_v44  ;;  %v6074_v59 = vunpack.i.l.bf16 %v6073_v44 }
0x2c0d   :  { %4118 = vmatpush.msrb.mxu1 %v6074_v59 }
0x2c0f   :  { %4119 = vmatpush.msrb.mxu1 %v6075_v6 }
0x2c10   :  { %5722 = vmatmul.msk.f32.gmra.mxu2 %vm8059_vm15, %v4009_v60 }
0x2c11   :  { %4120 = vmatpush.msrb.mxu1 %v6079_v19 }
0x2c12   :  { %v4086_v13 = vpop.permute.xlu1 %4085 }
0x2c13   :  { %4121 = vmatpush.msrb.mxu1 %v6080_v5 }
0x2c15   :  { %4122 = vmatpush.msrb.mxu1 %v4086_v13 }
0x2c1a   :  { %v4046_v24 = vpop.permute.xlu1 %4045 }
0x2c3b   :  { %v4082_v20 = vpop.permute.xlu2 %4081 }
0x2c3c   :  { %5723 = vmatmul.msk.f32.vlgmr.msrb.gmra.mxu1 %vm8060_vm0, %v4082_v20 }
0x2c43   :  { %v4101_v17 = vpop.permute.xlu2 %4100 }
0x2c73   :  { %v4084_v21 = vpop.permute.xlu0 %4083 }
0x2c74   :  { %5724 = vmatmul.msk.f32.gmra.mxu1 %vm8061_vm1, %v4084_v21 }
0x2c8b   :  { %v4071_v23 = vpop.f32.mrf.mxu2 }
0x2c8c   :  { %v4072_v26 = vadd.f32 %v4071_v23, %v4046_v24 }
0x2c8e   :  { %6317 = vtanh.f32 %v4072_v26 }
0x2c93   :  { %v4074_v48 = vpop.f32.mrf.mxu2 }
0x2c94   :  { %v6318_v0 = vpop.eup %6317  ;;  %v4075_v36 = vadd.f32 %v4074_v48, %v4046_v24 }
0x2cb9   :  { %v4124_v27 = vpop.f32.mrf.mxu1 }
0x2cba   :  { %v4125_v63 = vadd.f32 %v4124_v27, %v4101_v17 }
0x2cbc   :  { %6319 = vtanh.f32 %v4125_v63 }
0x2cbd   :  { %6321 = vtanh.f32 %v4075_v36 }
0x2cc2   :  { %v6320_v47 = vpop.eup %6319 }
0x2cc3   :  { %v4132_v31 = vadd.f32 %v6320_v47, %v6318_v0  ;;  %v6322_v14 = vpop.eup %6321 }
0x2cc5   :  { %v4134_v32 = vmul.f32 %v4132_v31, %v4132_v31 }
0x2cc7   :  { %v4136_v29 = vsel %vm295_vm4, %v4134_v32, 0.0 }
0x2cc8   :  { %4137 = vadd.xlane.f32.xlu0 %v4136_v29 }
0x2cdc   :  { %4259 = vrot.lane.b32.xlu0 %v4218_v12, %s6512_s14 }
0x2cf1   :  { %v4127_v28 = vpop.f32.mrf.mxu1 }
0x2cf2   :  { %v4128_v35 = vadd.f32 %v4127_v28, %v4101_v17 }
0x2cf4   :  { %6323 = vtanh.f32 %v4128_v35 }
0x2cfa   :  { %v6324_v1 = vpop.eup %6323 }
0x2cfb   :  { %v7677_v37 = vadd.f32 %v6324_v1, %v6322_v14 }
0x2cfd   :  { %v4135_v34 = vmul.f32 %v7677_v37, %v7677_v37 }
0x2cff   :  { %v4139_v3 = vsel %vm295_vm4, %v4135_v34, 0.0  ;;  %v4340_v34 = vld [vmem:[#allocation7 + $0x40] sm:$0xff] }
0x2d00   :  { %4140 = vadd.xlane.f32.xlu1 %v4139_v3 }
0x2d3b   :  { %v4138_v25 = vpop.xlane.xlu0 %4137 }
0x2d3c   :  { %6325 = vrsqrt.f32 %v4138_v25  ;;  %vm4149_vm3 = vcmp.eq.f32.partialorder %v4138_v25, inf  ;;  %v4152_v33 = vand.u32 2147483648, %v4138_v25  ;;  %vm4151_vm6 = vcmp.eq.f32.partialorder %v4138_v25, 0.0 }
0x2d42   :  { %v6326_v30 = vpop.eup %6325 }
0x2d43   :  { %v4143_v62 = vmul.f32 %v6326_v30, %v4138_v25 }
0x2d45   :  { %v4144_v11 = vmul.f32 %v6326_v30, %v4143_v62 }
0x2d47   :  { %v4145_v38 = vmul.f32 0.5, %v4144_v11 }
0x2d49   :  { %v4146_v45 = vsub.f32 1.5, %v4145_v38 }
0x2d4b   :  { %v4147_v9 = vmul.f32 %v6326_v30, %v4146_v45  ;;  %v7707_v30 = vld [vmem:[%s8011_s2 + $0x8] sm:$0xff] }
0x2d4d   :  { %v4148_v41 = vmul.f32 %v4147_v9, %v4138_v25 }
0x2d4f   :  { %v4150_v53 = vsel %vm4149_vm3, %v4138_v25, %v4148_v41  ;;  %v7699_v25 = vld [vmem:[%s8011_s2] sm:$0xff] }
0x2d50   :  { %v4153_v40 = vsel %vm4151_vm6, %v4152_v33, %v4150_v53 }
0x2d51   :  { %6327 = vrcp.f32 %v4153_v40  ;;  %v4177_v46 = vand.u32 2147483648, %v4153_v40  ;;  %v4175_v50 = vand.u32 2147483647, %v4153_v40  ;;  %vm4171_vm11 = vweird.f32 %v4153_v40 }
0x2d53   :  { %v4178_v56 = vor.u32 1.1754944e-38, %v4177_v46  ;;  %vm4176_vm14 = vcmp.eq.f32.partialorder %v4175_v50, 8.507059e+37 }
0x2d57   :  { %v6328_v55 = vpop.eup %6327 }
0x2d58   :  { %v4167_v42 = vmul.f32 %v6328_v55, %v4153_v40  ;;  %vm4172_vm4 = vweird.f32 %v6328_v55 }
0x2d59   :  { %vm4173_vm5 = vmor %vm4171_vm11, %vm4172_vm4 }
0x2d5a   :  { %v4168_v43 = vsub.f32 1.0, %v4167_v42 }
0x2d5c   :  { %v4169_v10 = vmul.f32 %v6328_v55, %v4168_v43 }
0x2d5e   :  { %v4170_v51 = vadd.f32 %v6328_v55, %v4169_v10 }
0x2d60   :  { %v4174_v58 = vsel %vm4173_vm5, %v6328_v55, %v4170_v51  ;;  %v7717_v55 = vld [vmem:[%s8019_s10 + $0x2] ss:$0 sm:$0xff] }
0x2d61   :  { %v4179_v52 = vsel %vm4176_vm14, %v4178_v56, %v4174_v58 }
0x2d62   :  { %v4180_v54 = vmul.f32 %v4179_v52, %v4132_v31  ;;  %v7686_v31 = vld [vmem:[#allocation7 + $0x18] sm:$0xff] }
0x2d63   :  { %v6081_v32 = vpack.i.bf16 %v7686_v31, %v7622_v16  ;;  %v6091_v16 = vpack.i.bf16 %v7686_v31, %v4340_v34 }
0x2d64   :  { %4198 = vrot.lane.b32.xlu2 %v4180_v54, %s6520_s27 }
0x2d65   :  { %6092 = vrot.lane.b32.xlu0 %v6091_v16, %s6511_s26 }
0x2d6d   :  { %6097 = vrot.lane.b32.xlu0 %v6091_v16, %s6518_s5 }
0x2d73   :  { %v4141_v4 = vpop.xlane.xlu1 %4140 }
0x2d74   :  { %6329 = vrsqrt.f32 %v4141_v4  ;;  %vm4161_vm13 = vcmp.eq.f32.partialorder %v4141_v4, inf  ;;  %v4164_v19 = vand.u32 2147483648, %v4141_v4  ;;  %vm4163_vm15 = vcmp.eq.f32.partialorder %v4141_v4, 0.0 }
0x2d75   :  { %4395 = vrot.lane.b32.xlu0 %v7717_v55, %s6517_s22 }
0x2d7a   :  { %v6330_v57 = vpop.eup %6329 }
0x2d7b   :  { %v4155_v49 = vmul.f32 %v6330_v57, %v4141_v4 }
0x2d7d   :  { %v4156_v15 = vmul.f32 %v6330_v57, %v4155_v49  ;;  %4520 = vrot.lane.b32.xlu0 %v7686_v31, %s6521_s30 }
0x2d7f   :  { %v4157_v44 = vmul.f32 0.5, %v4156_v15 }
0x2d81   :  { %v4158_v8 = vsub.f32 1.5, %v4157_v44 }
0x2d83   :  { %v4159_v6 = vmul.f32 %v6330_v57, %v4158_v8 }
0x2d85   :  { %v4160_v59 = vmul.f32 %v4159_v6, %v4141_v4 }
0x2d87   :  { %v4162_v60 = vsel %vm4161_vm13, %v4141_v4, %v4160_v59 }
0x2d88   :  { %v4165_v5 = vsel %vm4163_vm15, %v4164_v19, %v4162_v60 }
0x2d89   :  { %6331 = vrcp.f32 %v4165_v5  ;;  %v4192_v23 = vand.u32 2147483648, %v4165_v5  ;;  %v4190_v26 = vand.u32 2147483647, %v4165_v5  ;;  %vm4186_vm1 = vweird.f32 %v4165_v5 }
0x2d8b   :  { %v4193_v27 = vor.u32 1.1754944e-38, %v4192_v23  ;;  %vm4191_vm6 = vcmp.eq.f32.partialorder %v4190_v26, 8.507059e+37  ;;  %v7742_v26 = vld [vmem:[#allocation7 + $0x18] sm:$0xf] }
0x2d8c   :  { %4493 = vrot.lane.b32.xlu0 %v7742_v26, %s6522_s18 }
0x2d8f   :  { %v6332_v13 = vpop.eup %6331 }
0x2d90   :  { %v4182_v20 = vmul.f32 %v6332_v13, %v4165_v5  ;;  %vm4187_vm0 = vweird.f32 %v6332_v13 }
0x2d91   :  { %vm4188_vm3 = vmor %vm4186_vm1, %vm4187_vm0 }
0x2d92   :  { %v4183_v21 = vsub.f32 1.0, %v4182_v20 }
0x2d94   :  { %v4184_v24 = vmul.f32 %v6332_v13, %v4183_v21  ;;  %4552 = vrot.lane.b32.xlu0 %v7717_v55, %s6513_s15 }
0x2d96   :  { %v4185_v17 = vadd.f32 %v6332_v13, %v4184_v24 }
0x2d98   :  { %v4189_v63 = vsel %vm4188_vm3, %v6332_v13, %v4185_v17 }
0x2d99   :  { %v4194_v0 = vsel %vm4191_vm6, %v4193_v27, %v4189_v63 }
0x2d9a   :  { %v4195_v47 = vmul.f32 %v4194_v0, %v7677_v37  ;;  %v4260_v37 = vpop.permute.xlu0 %4259 }
0x2d9b   :  { %5727 = vmatpush.msk.msra.mxu0 %vm1201_vm8, %v4260_v37 }
0x2d9c   :  { %4200 = vrot.lane.b32.xlu2 %v4195_v47, %s6520_s27  ;;  %5728 = vmatmul.msk.f32.vlgmr.msra.gmra.mxu0 %vm1072_vm7, %v7699_v25 }
0x2da4   :  { %6082 = vrot.lane.b32.xlu2 %v6081_v32, %s6516_s21  ;;  %5729 = vmatmul.msk.f32.gmra.mxu0 %vm1072_vm7, %v7707_v30 }
0x2dbe   :  { %v4199_v29 = vpop.permute.xlu2 %4198 }
0x2dbf   :  { %v4204_v48 = vmax.f32 %v4180_v54, %v4199_v29 }
0x2dc1   :  { %4208 = vrot.lane.b32.xlu2 %v4204_v48, %s6518_s5 }
0x2dd7   :  { %v6093_v33 = vpop.permute.xlu0 %6092 }
0x2dd8   :  { %v6095_v53 = vunpack.i.h.bf16 %v6093_v33  ;;  %v6094_v40 = vunpack.i.l.bf16 %v6093_v33 }
0x2ddf   :  { %v6098_v42 = vpop.permute.xlu0 %6097 }
0x2de0   :  { %v6099_v43 = vunpack.i.l.bf16 %v6098_v42  ;;  %v6100_v46 = vunpack.i.h.bf16 %v6098_v42 }
0x2de2   :  { %4372 = vmatpush.msra.mxu1 %v6099_v43 }
0x2de4   :  { %4373 = vmatpush.msra.mxu1 %v6100_v46 }
0x2de7   :  { %v4396_v0 = vpop.permute.xlu0 %4395 }
0x2df6   :  { %v4201_v36 = vpop.permute.xlu2 %4200 }
0x2df7   :  { %v4205_v28 = vmax.f32 %v4195_v47, %v4201_v36 }
0x2df9   :  { %4210 = vrot.lane.b32.xlu2 %v4205_v28, %s6518_s5 }
0x2dfe   :  { %v6083_v35 = vpop.permute.xlu2 %6082 }
0x2dff   :  { %v6085_v14 = vunpack.i.h.bf16 %v6083_v35  ;;  %v6084_v1 = vunpack.i.l.bf16 %v6083_v35 }
0x2e01   :  { %v4227_v3 = vsel %vm142_vm2, %v6084_v1, %v6085_v14 }
0x2e02   :  { %4250 = vmatpush.msrb.mxu3 %v4227_v3 }
0x2e04   :  { %4416 = vmatpush.msra.mxu3 %v6094_v40 }
0x2e06   :  { %4417 = vmatpush.msra.mxu3 %v6095_v53 }
0x2e19   :  { %v4280_v10 = vpop.f32.mrf.mxu0 }
0x2e1b   :  { %v4209_v62 = vpop.permute.xlu2 %4208 }
0x2e1c   :  { %v4214_v11 = vmax.f32 %v4204_v48, %v4209_v62 }
0x2e1e   :  { %v4216_v38 = vmax.f32 %v4214_v11, 0.0 }
0x2e20   :  { %5725 = vmatmul.msk.f32.vlgmr.msrb.gmra.mxu3 %vm737_vm12, %v4216_v38 }
0x2e21   :  { %v4283_v52 = vpop.f32.mrf.mxu0 }
0x2e53   :  { %v4211_v45 = vpop.permute.xlu2 %4210 }
0x2e54   :  { %v4215_v9 = vmax.f32 %v4205_v28, %v4211_v45 }
0x2e56   :  { %v4217_v41 = vmax.f32 %v4215_v9, 0.0  ;;  %v4521_v9 = vpop.permute.xlu0 %4520 }
0x2e58   :  { %5726 = vmatmul.msk.f32.gmra.mxu3 %vm737_vm12, %v4217_v41 }
0x2e5e   :  { %v4494_v40 = vpop.permute.xlu0 %4493 }
0x2e5f   :  { %5736 = vmatpush.msk.msrb.mxu0 %vm1201_vm8, %v4494_v40 }
0x2e60   :  { %5737 = vmatmul.msk.f32.vlgmr.msrb.gmra.mxu0 %vm1072_vm7, %v7699_v25 }
0x2e68   :  { %5738 = vmatmul.msk.f32.gmra.mxu0 %vm1072_vm7, %v7707_v30 }
0x2ea3   :  { %v4252_v50 = vpop.f32.mrf.mxu3 }
0x2ea4   :  { %v4281_v51 = vadd.f32 %v4280_v10, %v4252_v50 }
0x2ea6   :  { %v4331_v56 = vadd.f32 %v7717_v55, %v4281_v51 }
0x2ea8   :  { %v4333_v58 = vmax.f32 %v4331_v56, 0.0 }
0x2eaa   :  { %5732 = vmatmul.msk.f32.vlgmr.msra.gmra.mxu1 %vm142_vm2, %v4333_v58 }
0x2edb   :  { %v4255_v54 = vpop.f32.mrf.mxu3 }
0x2edc   :  { %v4284_v4 = vadd.f32 %v4283_v52, %v4255_v54 }
0x2ede   :  { %v4332_v57 = vadd.f32 %v7717_v55, %v4284_v4  ;;  %v6086_v49 = vpack.i.bf16 %v4281_v51, %v4284_v4 }
0x2ee0   :  { %v4334_v12 = vmax.f32 %v4332_v57, 0.0  ;;  %6087 = vrot.lane.b32.xlu2 %v6086_v49, %s6518_s5 }
0x2ee2   :  { %5733 = vmatmul.msk.f32.gmra.mxu1 %vm142_vm2, %v4334_v12 }
0x2f27   :  { %v4375_v27 = vpop.f32.mrf.mxu1 }
0x2f3a   :  { %v6088_v15 = vpop.permute.xlu2 %6087 }
0x2f3b   :  { %v6089_v44 = vunpack.i.l.bf16 %v6088_v15  ;;  %v6090_v8 = vunpack.i.h.bf16 %v6088_v15 }
0x2f3d   :  { %4308 = vmatpush.msra.mxu2 %v6089_v44 }
0x2f3f   :  { %4309 = vmatpush.msra.mxu2 %v6090_v8 }
0x2f40   :  { %5730 = vmatmul.msk.f32.vlgmr.msra.gmra.mxu2 %vm142_vm2, %v7547_v22 }
0x2f41   :  { %4544 = vmatpush.msrb.mxu2 %v4521_v9 }
0x2f48   :  { %5731 = vmatmul.msk.f32.gmra.mxu2 %vm142_vm2, %v7555_v18 }
0x2f5f   :  { %v4378_v29 = vpop.f32.mrf.mxu1 }
0x2fc3   :  { %v4311_v6 = vpop.f32.mrf.mxu2 }
0x2fc4   :  { %4319 = vrot.lane.b32.xlu1 %v4311_v6, %s6516_s21 }
0x2fcb   :  { %v4314_v59 = vpop.f32.mrf.mxu2 }
0x2fcc   :  { %4349 = vrot.lane.b32.xlu1 %v7717_v55, %s6521_s30  ;;  %4321 = vrot.lane.b32.xlu2 %v4314_v59, %s6516_s21 }
0x3026   :  { %v4322_v5 = vpop.permute.xlu2 %4321 }
0x3027   :  { %v4326_v20 = vsub.f32 %v4284_v4, %v4322_v5 }
0x3029   :  { %v4336_v22 = vadd.f32 %v7717_v55, %v4326_v20 }
0x302b   :  { %v4338_v18 = vmax.f32 %v4336_v22, 0.0 }
0x3036   :  { %v4320_v19 = vpop.permute.xlu1 %4319 }
0x3037   :  { %v4325_v60 = vsub.f32 %v4281_v51, %v4320_v19 }
0x3039   :  { %v4335_v13 = vadd.f32 %v7717_v55, %v4325_v60 }
0x303b   :  { %v4337_v21 = vmax.f32 %v4335_v13, 0.0 }
0x303d   :  { %4385 = vrot.lane.b32.xlu2 %v4337_v21, %s6518_s5 }
0x303e   :  { %v4350_v17 = vpop.permute.xlu1 %4349 }
0x303f   :  { %v4376_v63 = vadd.f32 %v4375_v27, %v4350_v17  ;;  %v4379_v48 = vadd.f32 %v4378_v29, %v4350_v17 }
0x3041   :  { %6333 = vtanh.f32 %v4376_v63 }
0x3045   :  { %4387 = vrot.lane.b32.xlu2 %v4338_v18, %s6518_s5 }
0x3047   :  { %v6334_v36 = vpop.eup %6333 }
0x3097   :  { %v4386_v23 = vpop.permute.xlu2 %4385 }
0x3098   :  { %5734 = vmatmul.msk.f32.vlgmr.msra.gmra.mxu3 %vm142_vm2, %v4386_v23 }
0x309f   :  { %v4388_v24 = vpop.permute.xlu2 %4387 }
0x30a0   :  { %5735 = vmatmul.msk.f32.gmra.mxu3 %vm142_vm2, %v4388_v24 }
0x311b   :  { %v4419_v47 = vpop.f32.mrf.mxu3 }
0x311c   :  { %v4420_v32 = vadd.f32 %v4419_v47, %v4396_v0 }
0x311e   :  { %6335 = vtanh.f32 %v4420_v32 }
0x311f   :  { %6337 = vtanh.f32 %v4379_v48 }
0x3123   :  { %v4422_v28 = vpop.f32.mrf.mxu3 }
0x3124   :  { %v6336_v35 = vpop.eup %6335  ;;  %v4423_v14 = vadd.f32 %v4422_v28, %v4396_v0 }
0x3125   :  { %v7748_v1 = vadd.f32 %v6336_v35, %v6334_v36  ;;  %v6338_v3 = vpop.eup %6337 }
0x3126   :  { %6339 = vtanh.f32 %v4423_v14  ;;  %v4514_v14 = vpop.f32.mrf.mxu0 }
0x3127   :  { %v4429_v37 = vmul.f32 %v7748_v1, %v7748_v1 }
0x3129   :  { %v4431_v34 = vsel %vm737_vm12, %v4429_v37, 0.0  ;;  %v4553_v37 = vpop.permute.xlu0 %4552 }
0x312a   :  { %4432 = vadd.xlane.f32.xlu2 %v4431_v34 }
0x312c   :  { %v6340_v16 = vpop.eup %6339 }
0x312d   :  { %v7753_v62 = vadd.f32 %v6340_v16, %v6338_v3 }
0x312e   :  { %v4517_v16 = vpop.f32.mrf.mxu0 }
0x312f   :  { %v4430_v11 = vmul.f32 %v7753_v62, %v7753_v62 }
0x3131   :  { %v4434_v38 = vsel %vm737_vm12, %v4430_v11, 0.0 }
0x3132   :  { %4435 = vadd.xlane.f32.xlu1 %v4434_v38 }
0x319d   :  { %v4433_v45 = vpop.xlane.xlu2 %4432 }
0x319e   :  { %6341 = vrsqrt.f32 %v4433_v45  ;;  %vm4444_vm4 = vcmp.eq.f32.partialorder %v4433_v45, inf  ;;  %v4447_v52 = vand.u32 2147483648, %v4433_v45  ;;  %vm4446_vm11 = vcmp.eq.f32.partialorder %v4433_v45, 0.0 }
0x31a4   :  { %v6342_v41 = vpop.eup %6341 }
0x31a5   :  { %v4438_v33 = vmul.f32 %v6342_v41, %v4433_v45  ;;  %v4436_v53 = vpop.xlane.xlu1 %4435 }
0x31a6   :  { %6343 = vrsqrt.f32 %v4436_v53  ;;  %vm4456_vm5 = vcmp.eq.f32.partialorder %v4436_v53, inf  ;;  %v4459_v44 = vand.u32 2147483648, %v4436_v53  ;;  %vm4458_vm14 = vcmp.eq.f32.partialorder %v4436_v53, 0.0 }
0x31a7   :  { %v4439_v42 = vmul.f32 %v6342_v41, %v4438_v33 }
0x31a9   :  { %v4440_v43 = vmul.f32 0.5, %v4439_v42 }
0x31ab   :  { %v4441_v46 = vsub.f32 1.5, %v4440_v43 }
0x31ac   :  { %v6344_v10 = vpop.eup %6343 }
0x31ad   :  { %v4442_v50 = vmul.f32 %v6342_v41, %v4441_v46  ;;  %v4450_v51 = vmul.f32 %v6344_v10, %v4436_v53 }
0x31af   :  { %v4443_v56 = vmul.f32 %v4442_v50, %v4433_v45  ;;  %v4451_v58 = vmul.f32 %v6344_v10, %v4450_v51 }
0x31b1   :  { %v4445_v54 = vsel %vm4444_vm4, %v4433_v45, %v4443_v56  ;;  %v4452_v4 = vmul.f32 0.5, %v4451_v58 }
0x31b2   :  { %v4448_v57 = vsel %vm4446_vm11, %v4447_v52, %v4445_v54 }
0x31b3   :  { %6345 = vrcp.f32 %v4448_v57  ;;  %v4453_v49 = vsub.f32 1.5, %v4452_v4  ;;  %v4472_v5 = vand.u32 2147483648, %v4448_v57  ;;  %v4470_v20 = vand.u32 2147483647, %v4448_v57 }
0x31b4   :  { %vm4466_vm15 = vweird.f32 %v4448_v57 }
0x31b5   :  { %v4454_v12 = vmul.f32 %v6344_v10, %v4453_v49  ;;  %v4473_v18 = vor.u32 1.1754944e-38, %v4472_v5  ;;  %vm4471_vm1 = vcmp.eq.f32.partialorder %v4470_v20, 8.507059e+37 }
0x31b7   :  { %v4455_v15 = vmul.f32 %v4454_v12, %v4436_v53 }
0x31b9   :  { %v6346_v8 = vpop.eup %6345  ;;  %v4457_v6 = vsel %vm4456_vm5, %v4436_v53, %v4455_v15 }
0x31ba   :  { %v4462_v59 = vmul.f32 %v6346_v8, %v4448_v57  ;;  %v4460_v19 = vsel %vm4458_vm14, %v4459_v44, %v4457_v6  ;;  %vm4467_vm13 = vweird.f32 %v6346_v8 }
0x31bb   :  { %6347 = vrcp.f32 %v4460_v19  ;;  %vm4468_vm0 = vmor %vm4466_vm15, %vm4467_vm13  ;;  %v4487_v0 = vand.u32 2147483648, %v4460_v19  ;;  %v4485_v32 = vand.u32 2147483647, %v4460_v19  ;;  %vm4481_vm6 = vweird.f32 %v4460_v19 }
0x31bc   :  { %v4463_v60 = vsub.f32 1.0, %v4462_v59 }
0x31bd   :  { %v4488_v48 = vor.u32 1.1754944e-38, %v4487_v0  ;;  %vm4486_vm11 = vcmp.eq.f32.partialorder %v4485_v32, 8.507059e+37 }
0x31be   :  { %v4464_v13 = vmul.f32 %v6346_v8, %v4463_v60 }
0x31c0   :  { %v4465_v21 = vadd.f32 %v6346_v8, %v4464_v13 }
0x31c1   :  { %v6348_v22 = vpop.eup %6347 }
0x31c2   :  { %v4469_v23 = vsel %vm4468_vm0, %v6346_v8, %v4465_v21  ;;  %v4477_v24 = vmul.f32 %v6348_v22, %v4460_v19  ;;  %vm4482_vm3 = vweird.f32 %v6348_v22 }
0x31c3   :  { %v4474_v17 = vsel %vm4471_vm1, %v4473_v18, %v4469_v23  ;;  %vm4483_vm4 = vmor %vm4481_vm6, %vm4482_vm3 }
0x31c4   :  { %v4475_v27 = vmul.f32 %v4474_v17, %v7748_v1  ;;  %v4478_v63 = vsub.f32 1.0, %v4477_v24 }
0x31c6   :  { %5739 = vmatmul.msk.f32.vlgmr.msrb.gmra.mxu2 %vm737_vm12, %v4475_v27  ;;  %v4479_v47 = vmul.f32 %v6348_v22, %v4478_v63 }
0x31c8   :  { %v4480_v29 = vadd.f32 %v6348_v22, %v4479_v47 }
0x31ca   :  { %v4484_v36 = vsel %vm4483_vm4, %v6348_v22, %v4480_v29 }
0x31cb   :  { %v4489_v28 = vsel %vm4486_vm11, %v4488_v48, %v4484_v36 }
0x31cc   :  { %v4490_v35 = vmul.f32 %v4489_v28, %v7753_v62 }
0x31ce   :  { %5740 = vmatmul.msk.f32.gmra.mxu2 %vm737_vm12, %v4490_v35 }
0x3249   :  { %v4546_v1 = vpop.f32.mrf.mxu2 }
0x324a   :  { %v4547_v34 = vadd.f32 %v4546_v1, %v4514_v14 }
0x324c   :  { %v7767_v3 = vadd.f32 %v4553_v37, %v4547_v34 }
0x324e   :  { %4724 = vrot.lane.b32.xlu1 %v7767_v3, %s6524_s9  ;;  %4728 = vrot.lane.b32.xlu2 %v7767_v3, %s6523_s0 }
0x3251   :  { %v4549_v11 = vpop.f32.mrf.mxu2 }
0x3252   :  { %v4550_v38 = vadd.f32 %v4549_v11, %v4517_v16 }
0x3254   :  { %v7773_v45 = vadd.f32 %v4553_v37, %v4550_v38 }
0x3256   :  { %4730 = vrot.lane.b32.xlu0 %v7773_v45, %s6523_s0  ;;  %v6101_v48 = vpack.i.bf16 %v7767_v3, %v7773_v45 }
0x325e   :  { %4561 = vrot.lane.b32.xlu0 %v7773_v45, %s6520_s27 }
0x3266   :  { %4559 = vrot.lane.b32.xlu0 %v7767_v3, %s6520_s27 }
0x326e   :  { %4726 = vrot.lane.b32.xlu0 %v7773_v45, %s6524_s9 }
0x32a8   :  { %v4729_v9 = vpop.permute.xlu2 %4728 }
0x32c0   :  { %v4725_v41 = vpop.permute.xlu1 %4724 }
0x32c8   :  { %v4731_v62 = vpop.permute.xlu0 %4730 }
0x32c9   :  { %5750 = vmatpush.xpose.msk.msra.mxu2 %vm1072_vm7, %v4731_v62 }
0x32cd   :  { %5751 = vmatpush.xpose.msk.msra.mxu2 %vm1072_vm7, %v4729_v9 }
0x32d0   :  { %v4562_v33 = vpop.permute.xlu0 %4561  ;;  %5752 = vmatmul.msk.f32.vlgmr.msra.gmra.mxu2 %vm1072_vm7, %v4725_v41 }
0x32d1   :  { %5741 = vmatpush.xpose.msk.msrb.mxu1 %vm1072_vm7, %v4562_v33 }
0x32d8   :  { %v4560_v53 = vpop.permute.xlu0 %4559 }
0x32d9   :  { %5742 = vmatpush.xpose.msk.msrb.mxu1 %vm1072_vm7, %v4560_v53 }
0x32dc   :  { %5743 = vmatmul.msk.f32.vlgmr.msrb.gmra.mxu1 %vm1072_vm7, %v7767_v3 }
0x32e0   :  { %v4727_v40 = vpop.permute.xlu0 %4726 }
0x32e1   :  { %5753 = vmatmul.msk.f32.gmra.mxu2 %vm1072_vm7, %v4727_v40 }
0x32e4   :  { %5744 = vmatmul.msk.f32.gmra.mxu1 %vm1072_vm7, %v7773_v45 }
0x3353   :  { %v4757_v42 = vpop.f32.mrf.mxu2 }
0x3354   :  { %v4763_v43 = vmul.f32 0.5, %v4757_v42 }
0x3356   :  { %v4765_v46 = vsel %vm95_vm9, %v4763_v43, -inf }
0x3357   :  { %v4767_v10 = vsel %vm142_vm2, %v4765_v46, -inf }
0x3358   :  { %4768 = vmax.xlane.f32.xlu2 %v4767_v10 }
0x3359   :  { %v4588_v50 = vpop.f32.mrf.mxu1 }
0x335a   :  { %v4594_v51 = vmul.f32 0.5, %v4588_v50 }
0x335c   :  { %v4596_v56 = vsel %vm95_vm9, %v4594_v51, -inf }
0x335d   :  { %v4598_v58 = vsel %vm142_vm2, %v4596_v56, -inf }
0x335e   :  { %4599 = vmax.xlane.f32.xlu0 %v4598_v58 }
0x3361   :  { %v4591_v52 = vpop.f32.mrf.mxu1 }
0x3362   :  { %v4595_v54 = vmul.f32 0.5, %v4591_v52 }
0x3364   :  { %v4597_v4 = vsel %vm96_vm10, %v4595_v54, -inf  ;;  %v4760_v57 = vpop.f32.mrf.mxu2 }
0x3365   :  { %v4764_v49 = vmul.f32 0.5, %v4760_v57  ;;  %v4601_v12 = vsel %vm142_vm2, %v4597_v4, -inf }
0x3366   :  { %4602 = vmax.xlane.f32.xlu1 %v4601_v12 }
0x3367   :  { %v4766_v15 = vsel %vm96_vm10, %v4764_v49, -inf }
0x3368   :  { %v4770_v44 = vsel %vm142_vm2, %v4766_v15, -inf }
0x3369   :  { %4771 = vmax.xlane.f32.xlu0 %v4770_v44 }
0x33cb   :  { %v4769_v8 = vpop.xlane.xlu2 %4768 }
0x33cc   :  { %v4773_v6 = vsub.f32 %v4765_v46, %v4769_v8 }
0x33ce   :  { %v4775_v59 = vmul.f32 1.442695, %v4773_v6 }
0x33d0   :  { %6349 = vpow2.f32 %v4775_v59 }
0x33d1   :  { %v4600_v19 = vpop.xlane.xlu0 %4599 }
0x33d2   :  { %v4604_v60 = vsub.f32 %v4596_v56, %v4600_v19 }
0x33d4   :  { %v4606_v5 = vmul.f32 1.442695, %v4604_v60 }
0x33d6   :  { %v7805_v13 = vpop.eup %6349  ;;  %6351 = vpow2.f32 %v4606_v5 }
0x33d7   :  { %v4779_v20 = vsel %vm142_vm2, %v7805_v13, 0.0 }
0x33d8   :  { %4780 = vadd.xlane.f32.xlu1 %v4779_v20 }
0x33d9   :  { %v4603_v21 = vpop.xlane.xlu1 %4602 }
0x33da   :  { %v4605_v22 = vsub.f32 %v4597_v4, %v4603_v21 }
0x33dc   :  { %v6352_v18 = vpop.eup %6351  ;;  %v4608_v23 = vmul.f32 1.442695, %v4605_v22  ;;  %v4772_v24 = vpop.xlane.xlu0 %4771 }
0x33dd   :  { %v4774_v17 = vsub.f32 %v4766_v15, %v4772_v24  ;;  %v4610_v27 = vsel %vm142_vm2, %v6352_v18, 0.0 }
0x33de   :  { %6353 = vpow2.f32 %v4608_v23  ;;  %4611 = vadd.xlane.f32.xlu2 %v4610_v27 }
0x33df   :  { %v4777_v63 = vmul.f32 1.442695, %v4774_v17 }
0x33e1   :  { %6355 = vpow2.f32 %v4777_v63 }
0x33e4   :  { %v7810_v0 = vpop.eup %6353 }
0x33e5   :  { %v4613_v47 = vsel %vm142_vm2, %v7810_v0, 0.0 }
0x33e6   :  { %4614 = vadd.xlane.f32.xlu0 %v4613_v47 }
0x33e7   :  { %v7814_v32 = vpop.eup %6355 }
0x33e8   :  { %v4782_v29 = vsel %vm142_vm2, %v7814_v32, 0.0 }
0x33e9   :  { %4783 = vadd.xlane.f32.xlu2 %v4782_v29 }
0x33f1   :  { %6102 = vrot.lane.b32.xlu1 %v6101_v48, %s6518_s5 }
0x33fa   :  { %6107 = vrot.lane.b32.xlu0 %v6101_v48, %s6525_s23 }
0x3401   :  { %4850 = vrot.lane.b32.xlu2 %v7742_v26, %s6508_s17 }
0x3402   :  { %4681 = vrot.lane.b32.xlu0 %v7742_v26, %s6512_s14 }
0x344b   :  { %v4781_v36 = vpop.xlane.xlu1 %4780 }
0x344c   :  { %6357 = vrcp.f32 %v4781_v36  ;;  %v4796_v56 = vand.u32 2147483648, %v4781_v36  ;;  %vm4790_vm6 = vweird.f32 %v4781_v36  ;;  %v4794_v44 = vand.u32 2147483647, %v4781_v36 }
0x344e   :  { %v4797_v60 = vor.u32 1.1754944e-38, %v4796_v56 }
0x3451   :  { %v4612_v28 = vpop.xlane.xlu2 %4611 }
0x3452   :  { %6359 = vrcp.f32 %v4612_v28  ;;  %v6358_v35 = vpop.eup %6357  ;;  %v4627_v45 = vand.u32 2147483648, %v4612_v28  ;;  %vm4621_vm14 = vweird.f32 %v4612_v28  ;;  %v4625_v62 = vand.u32 2147483647, %v4612_v28 }
0x3453   :  { %v4786_v34 = vmul.f32 %v6358_v35, %v4781_v36  ;;  %vm4791_vm0 = vweird.f32 %v6358_v35 }
0x3454   :  { %v4628_v40 = vor.u32 1.1754944e-38, %v4627_v45  ;;  %vm4626_vm15 = vcmp.eq.f32.partialorder %v4625_v62, 8.507059e+37  ;;  %vm4792_vm11 = vmor %vm4790_vm6, %vm4791_vm0 }
0x3455   :  { %v4787_v38 = vsub.f32 1.0, %v4786_v34 }
0x3457   :  { %v4788_v53 = vmul.f32 %v6358_v35, %v4787_v38  ;;  %v7868_v38 = vld [vmem:[#allocation7 + $0x20] sm:$0xf] }
0x3458   :  { %v6360_v14 = vpop.eup %6359 }
0x3459   :  { %v4617_v1 = vmul.f32 %v6360_v14, %v4612_v28  ;;  %v4615_v37 = vpop.xlane.xlu0 %4614  ;;  %vm4622_vm5 = vweird.f32 %v6360_v14  ;;  %v4789_v52 = vadd.f32 %v6358_v35, %v4788_v53 }
0x345a   :  { %6361 = vrcp.f32 %v4615_v37  ;;  %vm4623_vm13 = vmor %vm4621_vm14, %vm4622_vm5  ;;  %v4642_v54 = vand.u32 2147483648, %v4615_v37  ;;  %vm4636_vm3 = vweird.f32 %v4615_v37  ;;  %v4640_v15 = vand.u32 2147483647, %v4615_v37 }
0x345b   :  { %v4618_v3 = vsub.f32 1.0, %v4617_v1  ;;  %v4793_v6 = vsel %vm4792_vm11, %v6358_v35, %v4789_v52  ;;  %vm4795_vm14 = vcmp.eq.f32.partialorder %v4794_v44, 8.507059e+37 }
0x345c   :  { %v7826_v16 = vpop.xlane.xlu2 %4783  ;;  %v4643_v59 = vor.u32 1.1754944e-38, %v4642_v54  ;;  %vm4641_vm5 = vcmp.eq.f32.partialorder %v4640_v15, 8.507059e+37  ;;  %v4798_v21 = vsel %vm4795_vm14, %v4797_v60, %v4793_v6 }
0x345d   :  { %v4619_v11 = vmul.f32 %v6360_v14, %v4618_v3  ;;  %6363 = vrcp.f32 %v7826_v16  ;;  %v4811_v23 = vand.u32 2147483648, %v7826_v16  ;;  %v7840_v27 = vmul.f32 %v7805_v13, %v4798_v21 }
0x345e   :  { %v4809_v63 = vand.u32 2147483647, %v7826_v16 }
0x345f   :  { %v4620_v26 = vadd.f32 %v6360_v14, %v4619_v11  ;;  %v4812_v29 = vor.u32 1.1754944e-38, %v4811_v23 }
0x3460   :  { %v6362_v9 = vpop.eup %6361 }
0x3461   :  { %v4624_v41 = vsel %vm4623_vm13, %v6360_v14, %v4620_v26  ;;  %v4632_v33 = vmul.f32 %v6362_v9, %v4615_v37  ;;  %vm4637_vm1 = vweird.f32 %v6362_v9 }
0x3462   :  { %v4629_v10 = vsel %vm4626_vm15, %v4628_v40, %v4624_v41  ;;  %vm4638_vm4 = vmor %vm4636_vm3, %vm4637_vm1  ;;  %vm4805_vm15 = vweird.f32 %v7826_v16  ;;  %vm4810_vm1 = vcmp.eq.f32.partialorder %v4809_v63, 8.507059e+37  ;;  %vm5180_vm3 = vcmp.eq.f32.partialorder %v7840_v27, 0.0 }
0x3463   :  { %v6364_v42 = vpop.eup %6363  ;;  %v4633_v43 = vsub.f32 1.0, %v4632_v33  ;;  %v6103_v46 = vpop.permute.xlu1 %6102  ;;  %v7830_v49 = vmul.f32 %v6352_v18, %v4629_v10 }
0x3464   :  { %v4801_v50 = vmul.f32 %v6364_v42, %v7826_v16  ;;  %v6104_v51 = vunpack.i.l.bf16 %v6103_v46  ;;  %v6105_v57 = vunpack.i.h.bf16 %v6103_v46  ;;  %vm4806_vm13 = vweird.f32 %v6364_v42  ;;  %v4851_v36 = vpop.permute.xlu2 %4850  ;;  %v4893_v16 = vld [vmem:[#allocation7 + $0x18] sm:$0xf] }
0x3465   :  { %v4634_v58 = vmul.f32 %v6362_v9, %v4633_v43  ;;  %vm4807_vm0 = vmor %vm4805_vm15, %vm4806_vm13  ;;  %vm5007_vm6 = vcmp.eq.f32.partialorder %v7830_v49, 0.0 }
0x3466   :  { %v4802_v4 = vsub.f32 1.0, %v4801_v50  ;;  %4672 = vmatpush.msrb.mxu3 %v6104_v51 }
0x3467   :  { %v4635_v12 = vadd.f32 %v6362_v9, %v4634_v58 }
0x3468   :  { %4673 = vmatpush.msrb.mxu3 %v6105_v57  ;;  %v4803_v19 = vmul.f32 %v6364_v42, %v4802_v4  ;;  %v7904_v57 = vld [vmem:[%s8020_s11] sm:$0xff] }
0x3469   :  { %5745 = vmatmul.msk.f32.vlgmr.msrb.gmra.mxu3 %vm142_vm2, %v7830_v49  ;;  %v4639_v8 = vsel %vm4638_vm4, %v6362_v9, %v4635_v12 }
0x346a   :  { %v4644_v20 = vsel %vm4641_vm5, %v4643_v59, %v4639_v8  ;;  %v4804_v18 = vadd.f32 %v6364_v42, %v4803_v19  ;;  %5756 = vmatpush.msk.msra.mxu3 %vm1201_vm8, %v4851_v36 }
0x346b   :  { %v7837_v17 = vmul.f32 %v7810_v0, %v4644_v20 }
0x346c   :  { %v6108_v5 = vpop.permute.xlu0 %6107  ;;  %v4808_v47 = vsel %vm4807_vm0, %v6364_v42, %v4804_v18 }
0x346d   :  { %v6109_v22 = vunpack.i.l.bf16 %v6108_v5  ;;  %v6110_v24 = vunpack.i.h.bf16 %v6108_v5  ;;  %v4813_v48 = vsel %vm4810_vm1, %v4812_v29, %v4808_v47  ;;  %vm5008_vm11 = vcmp.eq.f32.partialorder %v7837_v17, 0.0 }
0x346e   :  { %v7850_v13 = vmul.f32 %v7814_v32, %v4813_v48 }
0x346f   :  { %4841 = vmatpush.msra.mxu1 %v6109_v22 }
0x3470   :  { %vm5181_vm4 = vcmp.eq.f32.partialorder %v7850_v13, 0.0 }
0x3471   :  { %5746 = vmatmul.msk.f32.gmra.mxu3 %vm142_vm2, %v7837_v17  ;;  %4842 = vmatpush.msra.mxu1 %v6110_v24 }
0x3472   :  { %5754 = vmatmul.msk.f32.vlgmr.msra.gmra.mxu1 %vm142_vm2, %v7840_v27 }
0x3474   :  { %v4682_v0 = vpop.permute.xlu0 %4681 }
0x3475   :  { %5747 = vmatpush.msk.msra.mxu0 %vm1201_vm8, %v4682_v0 }
0x347a   :  { %5755 = vmatmul.msk.f32.gmra.mxu1 %vm142_vm2, %v7850_v13 }
0x34ec   :  { %v4675_v28 = vpop.f32.mrf.mxu3 }
0x34ed   :  { %5748 = vmatmul.msk.f32.vlgmr.msra.gmra.mxu0 %vm1072_vm7, %v4675_v28 }
0x34ef   :  { %v4844_v35 = vpop.f32.mrf.mxu1 }
0x34f0   :  { %5757 = vmatmul.msk.f32.vlgmr.msra.gmra.mxu3 %vm1072_vm7, %v4844_v35 }
0x34f4   :  { %v4678_v14 = vpop.f32.mrf.mxu3 }
0x34f5   :  { %5749 = vmatmul.msk.f32.gmra.mxu0 %vm1072_vm7, %v4678_v14 }
0x34f7   :  { %v4847_v1 = vpop.f32.mrf.mxu1 }
0x34f8   :  { %5758 = vmatmul.msk.f32.gmra.mxu3 %vm1072_vm7, %v4847_v1 }
0x356a   :  { %v4708_v32 = vpop.f32.mrf.mxu0 }
0x356b   :  { %4716 = vrot.lane.b32.xlu1 %v4708_v32, %s6522_s18 }
0x3572   :  { %v4711_v37 = vpop.f32.mrf.mxu0 }
0x3573   :  { %4718 = vrot.lane.b32.xlu0 %v4711_v37, %s6522_s18  ;;  %v4877_v34 = vpop.f32.mrf.mxu3 }
0x3574   :  { %4885 = vrot.lane.b32.xlu2 %v4877_v34, %s6522_s18 }
0x357b   :  { %v4880_v3 = vpop.f32.mrf.mxu3 }
0x357c   :  { %4887 = vrot.lane.b32.xlu1 %v4880_v3, %s6522_s18  ;;  %4933 = vrot.lane.b32.xlu2 %v7686_v31, %s6519_s25  ;;  %s5538_s18 = sshll.u32 %s8022_s13, 4  ;;  %s5539_s18 = int_to_ptr.hbm [resolvable:$true] %s5538_s18 }
0x3584   :  { %4897 = vrot.lane.b32.xlu1 %v4893_v16, %s6526_s24  ;;  %4899 = vrot.lane.b32.xlu2 %v7868_v38, %s6526_s24 }
0x358c   :  { %4963 = vrot.lane.b32.xlu1 %v7717_v55, %s6512_s14 }
0x35ce   :  { %v4886_v11 = vpop.permute.xlu2 %4885 }
0x35d6   :  { %v4934_v45 = vpop.permute.xlu2 %4933 }
0x35d7   :  { %4955 = vmatpush.msrb.mxu2 %v4934_v45 }
0x35dd   :  { %v4717_v26 = vpop.permute.xlu1 %4716 }
0x35de   :  { %v4722_v62 = vadd.f32 %v7717_v55, %v4717_v26  ;;  %v4900_v40 = vpop.permute.xlu2 %4899 }
0x35e0   :  { %v4891_v9 = vadd.f32 %v4886_v11, %v4722_v62 }
0x35e2   :  { %4929 = vrot.lane.b32.xlu0 %v4891_v9, %s8048_s1 }
0x35e5   :  { %v4719_v31 = vpop.permute.xlu0 %4718 }
0x35e6   :  { %v4723_v41 = vadd.f32 %v7717_v55, %v4719_v31 }
0x35ee   :  { %v4888_v33 = vpop.permute.xlu1 %4887 }
0x35ef   :  { %v4892_v53 = vadd.f32 %v4888_v33, %v4723_v41 }
0x35f1   :  { %4931 = vrot.lane.b32.xlu0 %v4892_v53, %s8048_s1 }
0x35f6   :  { %v4898_v42 = vpop.permute.xlu1 %4897 }
0x35f7   :  { %v4901_v43 = vsel %vm737_vm12, %v4898_v42, %v4900_v40 }
0x35f8   :  { %5759 = vmatpush.msk.msrb.mxu0 %vm1201_vm8, %v4901_v43 }
0x35f9   :  { %5760 = vmatmul.msk.f32.vlgmr.msrb.gmra.mxu0 %vm1072_vm7, %v7699_v25 }
0x35fe   :  { %v4964_v51 = vpop.permute.xlu1 %4963 }
0x3601   :  { %5761 = vmatmul.msk.f32.gmra.mxu0 %vm1072_vm7, %v7707_v30 }
0x3654   :  { %v4930_v46 = vpop.permute.xlu0 %4929 }
0x3655   :  { %5762 = vmatmul.msk.f32.vlgmr.msrb.gmra.mxu2 %vm737_vm12, %v4930_v46 }
0x3663   :  { %v4932_v55 = vpop.permute.xlu0 %4931 }
0x3664   :  { %5763 = vmatmul.msk.f32.gmra.mxu2 %vm737_vm12, %v4932_v55 }
0x3676   :  { %v4921_v10 = vpop.f32.mrf.mxu0 }
0x367e   :  { %v4924_v52 = vpop.f32.mrf.mxu0 }
0x36d8   :  { %v4957_v50 = vpop.f32.mrf.mxu2 }
0x36d9   :  { %v4958_v56 = vadd.f32 %v4957_v50, %v4921_v10 }
0x36db   :  { %v7884_v58 = vadd.f32 %v4964_v51, %v4958_v56 }
0x36dd   :  { %5143 = vrot.lane.b32.xlu1 %v7884_v58, %s6523_s0 }
0x36e7   :  { %v4960_v25 = vpop.f32.mrf.mxu2 }
0x36e8   :  { %v4961_v54 = vadd.f32 %v4960_v25, %v4924_v52 }
0x36ea   :  { %v7888_v4 = vadd.f32 %v4964_v51, %v4961_v54 }
0x36ec   :  { %4972 = vrot.lane.b32.xlu0 %v7888_v4, %s6520_s27  ;;  %5145 = vrot.lane.b32.xlu2 %v7888_v4, %s6523_s0  ;;  %v6111_v31 = vpack.i.bf16 %v7884_v58, %v7888_v4 }
0x36ed   :  { %5141 = vrot.lane.b32.xlu1 %v7888_v4, %s6524_s9 }
0x36f4   :  { %4970 = vrot.lane.b32.xlu0 %v7884_v58, %s6520_s27  ;;  %5139 = vrot.lane.b32.xlu2 %v7884_v58, %s6524_s9 }
0x3746   :  { %v5146_v30 = vpop.permute.xlu2 %5145 }
0x3747   :  { %5773 = vmatpush.xpose.msk.msra.mxu2 %vm1072_vm7, %v5146_v30 }
0x374e   :  { %v5140_v15 = vpop.permute.xlu2 %5139 }
0x374f   :  { %v5144_v12 = vpop.permute.xlu1 %5143 }
0x3750   :  { %5774 = vmatpush.xpose.msk.msra.mxu2 %vm1072_vm7, %v5144_v12 }
0x3753   :  { %5775 = vmatmul.msk.f32.vlgmr.msra.gmra.mxu2 %vm1072_vm7, %v5140_v15 }
0x3754   :  { %5360 = vmatpush.msrb.mxu2 %v7904_v57 }
0x375e   :  { %v4973_v44 = vpop.permute.xlu0 %4972 }
0x375f   :  { %v5142_v8 = vpop.permute.xlu1 %5141  ;;  %5764 = vmatpush.xpose.msk.msrb.mxu1 %vm1072_vm7, %v4973_v44 }
0x3760   :  { %5776 = vmatmul.msk.f32.gmra.mxu2 %vm1072_vm7, %v5142_v8 }
0x3766   :  { %v4971_v6 = vpop.permute.xlu0 %4970 }
0x3767   :  { %5765 = vmatpush.xpose.msk.msrb.mxu1 %vm1072_vm7, %v4971_v6 }
0x3768   :  { %5783 = vmatmul.msk.f32.vlgmr.msrb.gmra.mxu2 %vm737_vm12, %v7121_v61 }
0x376a   :  { %5766 = vmatmul.msk.f32.vlgmr.msrb.gmra.mxu1 %vm1072_vm7, %v7884_v58 }
0x3772   :  { %5767 = vmatmul.msk.f32.gmra.mxu1 %vm1072_vm7, %v7888_v4 }
0x37d6   :  { %v5172_v59 = vpop.f32.mrf.mxu2 }
0x37d7   :  { %v5178_v19 = vmul.f32 0.5, %v5172_v59 }
0x37d9   :  { %v5182_v60 = vsel %vm5180_vm3, -9e+15, %v5178_v19 }
0x37da   :  { %v5184_v5 = vsel %vm95_vm9, %v5182_v60, -inf }
0x37db   :  { %v5186_v20 = vsel %vm142_vm2, %v5184_v5, -inf }
0x37dc   :  { %5187 = vmax.xlane.f32.xlu0 %v5186_v20 }
0x37e3   :  { %v5175_v21 = vpop.f32.mrf.mxu2 }
0x37e4   :  { %v5179_v18 = vmul.f32 0.5, %v5175_v21 }
0x37e6   :  { %v5183_v27 = vsel %vm5181_vm4, -9e+15, %v5179_v18 }
0x37e7   :  { %v4999_v22 = vpop.f32.mrf.mxu1  ;;  %v5185_v0 = vsel %vm96_vm10, %v5183_v27, -inf }
0x37e8   :  { %v5005_v61 = vmul.f32 0.5, %v4999_v22  ;;  %v5189_v36 = vsel %vm142_vm2, %v5185_v0, -inf }
0x37ea   :  { %v5009_v23 = vsel %vm5007_vm6, -9e+15, %v5005_v61 }
0x37eb   :  { %v5011_v24 = vsel %vm95_vm9, %v5009_v23, -inf }
0x37ec   :  { %v5013_v63 = vsel %vm142_vm2, %v5011_v24, -inf }
0x37ed   :  { %5014 = vmax.xlane.f32.xlu2 %v5013_v63 }
0x37ef   :  { %v5002_v47 = vpop.f32.mrf.mxu1 }
0x37f0   :  { %v5006_v29 = vmul.f32 0.5, %v5002_v47 }
0x37f2   :  { %v5010_v48 = vsel %vm5008_vm11, -9e+15, %v5006_v29 }
0x37f3   :  { %v5012_v49 = vsel %vm96_vm10, %v5010_v48, -inf }
0x37f4   :  { %v5016_v7 = vsel %vm142_vm2, %v5012_v49, -inf }
0x37f5   :  { %5017 = vmax.xlane.f32.xlu1 %v5016_v7  ;;  %5190 = vmax.xlane.f32.xlu2 %v5189_v36 }
0x384f   :  { %v5188_v13 = vpop.xlane.xlu0 %5187 }
0x3850   :  { %v5192_v28 = vsub.f32 %v5184_v5, %v5188_v13 }
0x3852   :  { %v5194_v35 = vmul.f32 1.442695, %v5192_v28 }
0x3854   :  { %6365 = vpow2.f32 %v5194_v35 }
0x385a   :  { %v7934_v14 = vpop.eup %6365 }
0x385b   :  { %v5198_v17 = vsel %vm142_vm2, %v7934_v14, 0.0 }
0x385c   :  { %5199 = vadd.xlane.f32.xlu1 %v5198_v17 }
0x3860   :  { %v5015_v1 = vpop.xlane.xlu2 %5014 }
0x3861   :  { %v5019_v32 = vsub.f32 %v5011_v24, %v5015_v1 }
0x3863   :  { %v5021_v2 = vmul.f32 1.442695, %v5019_v32 }
0x3865   :  { %6367 = vpow2.f32 %v5021_v2 }
0x3868   :  { %v5191_v37 = vpop.xlane.xlu2 %5190  ;;  %v5018_v34 = vpop.xlane.xlu1 %5017 }
0x3869   :  { %v5193_v3 = vsub.f32 %v5185_v0, %v5191_v37  ;;  %v5020_v16 = vsub.f32 %v5012_v49, %v5018_v34 }
0x386b   :  { %v7938_v11 = vpop.eup %6367  ;;  %v5196_v45 = vmul.f32 1.442695, %v5193_v3  ;;  %v5023_v26 = vmul.f32 1.442695, %v5020_v16 }
0x386c   :  { %v5025_v62 = vsel %vm142_vm2, %v7938_v11, 0.0 }
0x386d   :  { %6369 = vpow2.f32 %v5196_v45  ;;  %5026 = vadd.xlane.f32.xlu0 %v5025_v62 }
0x386e   :  { %6371 = vpow2.f32 %v5023_v26 }
0x3873   :  { %v7942_v9 = vpop.eup %6369 }
0x3874   :  { %v7946_v41 = vpop.eup %6371  ;;  %v5201_v33 = vsel %vm142_vm2, %v7942_v9, 0.0 }
0x3875   :  { %6112 = vrot.lane.b32.xlu1 %v6111_v31, %s6518_s5  ;;  %5202 = vadd.xlane.f32.xlu0 %v5201_v33  ;;  %v5028_v53 = vsel %vm142_vm2, %v7946_v41, 0.0 }
0x3876   :  { %5029 = vadd.xlane.f32.xlu2 %v5028_v53 }
0x3889   :  { %5269 = vrot.lane.b32.xlu0 %v7868_v38, %s6511_s26 }
0x388e   :  { %6117 = vrot.lane.b32.xlu2 %v6111_v31, %s6525_s23 }
0x3896   :  { %5096 = vrot.lane.b32.xlu2 %v7868_v38, %s6518_s5 }
0x38cf   :  { %v5200_v40 = vpop.xlane.xlu1 %5199 }
0x38d0   :  { %6373 = vrcp.f32 %v5200_v40  ;;  %v5215_v4 = vand.u32 2147483648, %v5200_v40  ;;  %vm5209_vm10 = vweird.f32 %v5200_v40  ;;  %v5213_v12 = vand.u32 2147483647, %v5200_v40 }
0x38d2   :  { %v5216_v59 = vor.u32 1.1754944e-38, %v5215_v4  ;;  %vm5214_vm15 = vcmp.eq.f32.partialorder %v5213_v12, 8.507059e+37 }
0x38d6   :  { %v6374_v42 = vpop.eup %6373 }
0x38d7   :  { %v5205_v43 = vmul.f32 %v6374_v42, %v5200_v40  ;;  %vm5210_vm9 = vweird.f32 %v6374_v42 }
0x38d8   :  { %vm5211_vm5 = vmor %vm5209_vm10, %vm5210_vm9 }
0x38d9   :  { %v5206_v55 = vsub.f32 1.0, %v5205_v43  ;;  %v6140_v43 = vld [vmem:[%s8021_s12] ss:$0 sm:$0xff] }
0x38db   :  { %v5207_v10 = vmul.f32 %v6374_v42, %v5206_v55 }
0x38dd   :  { %v5208_v25 = vadd.f32 %v6374_v42, %v5207_v10  ;;  %v6402_v10 = vld [vmem:[%s8019_s10 + $0x2] ss:$0 sm:$0xff] }
0x38df   :  { %v5212_v6 = vsel %vm5211_vm5, %v6374_v42, %v5208_v25 }
0x38e0   :  { %v5027_v46 = vpop.xlane.xlu0 %5026  ;;  %v5217_v21 = vsel %vm5214_vm15, %v5216_v59, %v5212_v6 }
0x38e1   :  { %6375 = vrcp.f32 %v5027_v46  ;;  %v5042_v15 = vand.u32 2147483648, %v5027_v46  ;;  %v5040_v8 = vand.u32 2147483647, %v5027_v46  ;;  %vm5036_vm13 = vweird.f32 %v5027_v46 }
0x38e2   :  { %v5218_v29 = vmul.f32 %v7934_v14, %v5217_v21 }
0x38e3   :  { %v5043_v5 = vor.u32 1.1754944e-38, %v5042_v15  ;;  %vm5041_vm1 = vcmp.eq.f32.partialorder %v5040_v8, 8.507059e+37  ;;  %v5464_v8 = vld [vmem:[%s8020_s11 + $0x8] sm:$0xff] }
0x38e4   :  { %v6126_v6 = vpack.i.bf16 %v7904_v57, %v5464_v8 }
0x38e7   :  { %v6376_v50 = vpop.eup %6375  ;;  %v6113_v51 = vpop.permute.xlu1 %6112 }
0x38e8   :  { %v5032_v56 = vmul.f32 %v6376_v50, %v5027_v46  ;;  %v6114_v58 = vunpack.i.l.bf16 %v6113_v51  ;;  %v5203_v52 = vpop.xlane.xlu0 %5202  ;;  %v6115_v38 = vunpack.i.h.bf16 %v6113_v51  ;;  %vm5037_vm14 = vweird.f32 %v6376_v50 }
0x38e9   :  { %6377 = vrcp.f32 %v5203_v52  ;;  %v5030_v54 = vpop.xlane.xlu2 %5029  ;;  %vm5038_vm0 = vmor %vm5036_vm13, %vm5037_vm14  ;;  %v5230_v0 = vand.u32 2147483648, %v5203_v52  ;;  %v5228_v13 = vand.u32 2147483647, %v5203_v52  ;;  %vm5224_vm4 = vweird.f32 %v5203_v52 }
0x38ea   :  { %v5033_v30 = vsub.f32 1.0, %v5032_v56  ;;  %6379 = vrcp.f32 %v5030_v54  ;;  %5087 = vmatpush.msrb.mxu3 %v6114_v58  ;;  %v5057_v7 = vand.u32 2147483648, %v5030_v54  ;;  %v5055_v35 = vand.u32 2147483647, %v5030_v54 }
0x38eb   :  { %vm5051_vm9 = vweird.f32 %v5030_v54  ;;  %v5231_v14 = vor.u32 1.1754944e-38, %v5230_v0  ;;  %vm5229_vm5 = vcmp.eq.f32.partialorder %v5228_v13, 8.507059e+37 }
0x38ec   :  { %v5034_v44 = vmul.f32 %v6376_v50, %v5033_v30  ;;  %5088 = vmatpush.msrb.mxu3 %v6115_v38  ;;  %v5058_v32 = vor.u32 1.1754944e-38, %v5057_v7  ;;  %vm5056_vm14 = vcmp.eq.f32.partialorder %v5055_v35, 8.507059e+37 }
0x38ee   :  { %v5035_v19 = vadd.f32 %v6376_v50, %v5034_v44  ;;  %v6403_v44 = vld [vmem:[%s8013_s4] sm:$0x3]  ;;  %s6529_s4 = smov [#allocation8]  }
0x38ef   :  { %v6378_v60 = vpop.eup %6377  ;;  %s5536_s11 = sshll.u32 %s6529_s4, 4  ;;  %s5537_s11 = int_to_ptr.vmem [resolvable:$true] %s5536_s11 }
0x38f0   :  { %v6380_v20 = vpop.eup %6379  ;;  %v5039_v22 = vsel %vm5038_vm0, %v6376_v50, %v5035_v19  ;;  %v5220_v61 = vmul.f32 %v6378_v60, %v5203_v52  ;;  %vm5225_vm3 = vweird.f32 %v6378_v60  ;;  %v6528_v19 = vmov 2.0  }
0x38f1   :  { %v5044_v18 = vsel %vm5041_vm1, %v5043_v5, %v5039_v22  ;;  %v5047_v23 = vmul.f32 %v6380_v20, %v5030_v54  ;;  %v6118_v24 = vpop.permute.xlu2 %6117  ;;  %vm5052_vm6 = vweird.f32 %v6380_v20  ;;  %vm5226_vm11 = vmor %vm5224_vm4, %vm5225_vm3  ;;  %6381 = vrcp.f32 %v6528_v19  ;;  %v5362_v5 = vpop.f32.mrf.mxu2 }
0x38f2   :  { %v5045_v63 = vmul.f32 %v7938_v11, %v5044_v18  ;;  %v5221_v27 = vsub.f32 1.0, %v5220_v61  ;;  %v6119_v47 = vunpack.i.l.bf16 %v6118_v24  ;;  %v6120_v36 = vunpack.i.h.bf16 %v6118_v24  ;;  %vm5053_vm10 = vmor %vm5051_vm9, %vm5052_vm6 }
0x38f3   :  { %v5048_v48 = vsub.f32 1.0, %v5047_v23  ;;  %v5368_v21 = vadd.f32 %v6140_v43, %v5362_v5  ;;  %vm5499_vm0 = vcmask 25600  }
0x38f4   :  { %v5222_v49 = vmul.f32 %v6378_v60, %v5221_v27  ;;  %5260 = vmatpush.msra.mxu1 %v6119_v47  ;;  %5768 = vmatmul.msk.f32.vlgmr.msrb.gmra.mxu3 %vm142_vm2, %v5045_v63 }
0x38f5   :  { %v5049_v28 = vmul.f32 %v6380_v20, %v5048_v48 }
0x38f6   :  { %v5223_v17 = vadd.f32 %v6378_v60, %v5222_v49  ;;  %5261 = vmatpush.msra.mxu1 %v6120_v36 }
0x38f7   :  { %v5050_v1 = vadd.f32 %v6380_v20, %v5049_v28  ;;  %5777 = vmatmul.msk.f32.vlgmr.msra.gmra.mxu1 %vm142_vm2, %v5218_v29 }
0x38f8   :  { %v5227_v2 = vsel %vm5226_vm11, %v6378_v60, %v5223_v17  ;;  %v6382_v60 = vpop.eup %6381 }
0x38f9   :  { %v5054_v37 = vsel %vm5053_vm10, %v6380_v20, %v5050_v1  ;;  %v5232_v3 = vsel %vm5229_vm5, %v5231_v14, %v5227_v2  ;;  %v5097_v26 = vpop.permute.xlu2 %5096  ;;  %v5433_v22 = vmul.f32 2.0, %v6382_v60 }
0x38fa   :  { %v5059_v34 = vsel %vm5056_vm14, %v5058_v32, %v5054_v37  ;;  %v5233_v45 = vmul.f32 %v7942_v9, %v5232_v3  ;;  %5770 = vmatpush.msk.msra.mxu0 %vm1201_vm8, %v5097_v26 }
0x38fb   :  { %v5060_v16 = vmul.f32 %v7946_v41, %v5059_v34  ;;  %v5270_v11 = vpop.permute.xlu0 %5269  ;;  %v5434_v23 = vsub.f32 1.0, %v5433_v22 }
0x38fc   :  { %5779 = vmatpush.msk.msra.mxu3 %vm1201_vm8, %v5270_v11 }
0x38fd   :  { %5769 = vmatmul.msk.f32.gmra.mxu3 %vm142_vm2, %v5060_v16  ;;  %v5435_v63 = vmul.f32 %v6382_v60, %v5434_v23 }
0x38ff   :  { %5778 = vmatmul.msk.f32.gmra.mxu1 %vm142_vm2, %v5233_v45  ;;  %v5436_v29 = vadd.f32 %v6382_v60, %v5435_v63 }
0x3974   :  { %v5263_v62 = vpop.f32.mrf.mxu1 }
0x3975   :  { %5780 = vmatmul.msk.f32.vlgmr.msra.gmra.mxu3 %vm1072_vm7, %v5263_v62 }
0x3977   :  { %v5090_v31 = vpop.f32.mrf.mxu3 }
0x3978   :  { %5771 = vmatmul.msk.f32.vlgmr.msra.gmra.mxu0 %vm1072_vm7, %v5090_v31 }
0x397c   :  { %v5266_v33 = vpop.f32.mrf.mxu1 }
0x397d   :  { %5781 = vmatmul.msk.f32.gmra.mxu3 %vm1072_vm7, %v5266_v33 }
0x3980   :  { %v5093_v41 = vpop.f32.mrf.mxu3 }
0x3981   :  { %5772 = vmatmul.msk.f32.gmra.mxu0 %vm1072_vm7, %v5093_v41  ;;  %vm5424_vm7 = vcmask 123904  }
0x39f5   :  { %v5123_v53 = vpop.f32.mrf.mxu0 }
0x39f6   :  { %5131 = vrot.lane.b32.xlu1 %v5123_v53, %s6511_s26 }
0x39f8   :  { %v5296_v9 = vpop.f32.mrf.mxu3 }
0x39fe   :  { %v5126_v40 = vpop.f32.mrf.mxu0 }
0x39ff   :  { %5133 = vrot.lane.b32.xlu0 %v5126_v40, %s6511_s26 }
0x3a00   :  { %v5299_v42 = vpop.f32.mrf.mxu3 }
0x3a01   :  { %5306 = vrot.lane.b32.xlu2 %v5299_v42, %s6511_s26 }
0x3a07   :  { %5304 = vrot.lane.b32.xlu0 %v5296_v9, %s6511_s26 }
0x3a09   :  { %5370 = vrot.lane.b32.xlu2 %v7904_v57, %s6518_s5 }
0x3a0f   :  { %5397 = vrot.lane.b32.xlu0 %v7904_v57, %s6521_s30 }
0x3a11   :  { %5473 = vrot.lane.b32.xlu2 %v6140_v43, %s6518_s5 }
0x3a5b   :  { %v5307_v56 = vpop.permute.xlu2 %5306 }
0x3a63   :  { %v5371_v15 = vpop.permute.xlu2 %5370 }
0x3a68   :  { %v5132_v55 = vpop.permute.xlu1 %5131 }
0x3a69   :  { %v5137_v51 = vadd.f32 %v6402_v10, %v5132_v55 }
0x3a6b   :  { %v5474_v43 = vpop.permute.xlu2 %5473 }
0x3a71   :  { %v5134_v46 = vpop.permute.xlu0 %5133 }
0x3a72   :  { %v5138_v50 = vadd.f32 %v6402_v10, %v5134_v46 }
0x3a74   :  { %v5311_v52 = vadd.f32 %v5307_v56, %v5138_v50 }
0x3a79   :  { %v5305_v58 = vpop.permute.xlu0 %5304 }
0x3a7a   :  { %v5310_v25 = vadd.f32 %v5305_v58, %v5137_v51 }
0x3a7c   :  { %v6121_v54 = vpack.i.bf16 %v5310_v25, %v5311_v52 }
0x3a7e   :  { %6122 = vrot.lane.b32.xlu1 %v6121_v54, %s8049_s3 }
0x3a81   :  { %v5398_v4 = vpop.permute.xlu0 %5397 }
0x3a82   :  { %5418 = vmatpush.msrb.mxu1 %v5398_v4 }
0x3a86   :  { %6127 = vrot.lane.b32.xlu1 %v6126_v6, %s6513_s15 }
0x3af0   :  { %v6123_v30 = vpop.permute.xlu1 %6122 }
0x3af1   :  { %v6124_v38 = vunpack.i.l.bf16 %v6123_v30  ;;  %v6125_v12 = vunpack.i.h.bf16 %v6123_v30 }
0x3af3   :  { %5334 = vmatpush.msrb.mxu0 %v6124_v38 }
0x3af5   :  { %5335 = vmatpush.msrb.mxu0 %v6125_v12 }
0x3af6   :  { %5782 = vmatmul.msk.f32.vlgmr.msrb.gmra.mxu0 %vm142_vm2, %v6403_v44 }
0x3af7   :  { %5391 = vmatpush.msra.mxu0 %v5371_v15 }
0x3af8   :  { %v6128_v17 = vpop.permute.xlu1 %6127 }
0x3af9   :  { %v6129_v14 = vunpack.i.l.bf16 %v6128_v17  ;;  %v6130_v2 = vunpack.i.h.bf16 %v6128_v17 }
0x3afb   :  { %5493 = vmatpush.msra.mxu2 %v6129_v14 }
0x3afd   :  { %5494 = vmatpush.msra.mxu2 %v6130_v2 }
0x3afe   :  { %5784 = vmatmul.msk.f32.vlgmr.msra.gmra.mxu0 %vm737_vm12, %v7601_v39 }
0x3b73   :  { %v5337_v59 = vpop.f32.mrf.mxu0 }
0x3b74   :  { %5785 = vmatmul.msk.f32.vlgmr.msrb.gmra.mxu1 %vm737_vm12, %v5337_v59  ;;  %vm5437_vm12 = vweird.f32 %v6382_v60 }
0x3b75   :  { %v5438_v49 = vsel %vm5437_vm12, %v6382_v60, %v5436_v29 }
0x3b7b   :  { %v5393_v20 = vpop.f32.mrf.mxu0 }
0x3b7c   :  { %v5396_v61 = vadd.f32 %v5393_v20, %v5368_v21 }
0x3bf1   :  { %v5420_v39 = vpop.f32.mrf.mxu1 }
0x3bf2   :  { %v5423_v18 = vadd.f32 %v5420_v39, %v5396_v61 }
0x3bf4   :  { %v5425_v24 = vsel %vm5424_vm7, %v5423_v18, 0.0 }
0x3bf5   :  { %v5426_v57 = vrot.slane %v5425_v24, 4 }
0x3bf7   :  { %v5427_v27 = vadd.f32 %v5426_v57, %v5425_v24 }
0x3bf9   :  { %v5428_v47 = vrot.slane %v5427_v27, 2 }
0x3bfb   :  { %v5429_v0 = vadd.f32 %v5428_v47, %v5427_v27 }
0x3bfd   :  { %v5430_v48 = vrot.slane %v5429_v0, 1 }
0x3bff   :  { %v5431_v7 = vadd.f32 %v5430_v48, %v5429_v0 }
0x3c01   :  { %v5439_v36 = vmul.f32 %v5438_v49, %v5431_v7 }
0x3c03   :  { %v5440_v13 = vsub.f32 %v5423_v18, %v5439_v36 }
0x3c05   :  { %v5441_v28 = vmul.f32 %v5440_v13, %v5440_v13 }
0x3c07   :  { %v5442_v35 = vsel %vm5424_vm7, %v5441_v28, 0.0 }
0x3c08   :  { %v5443_v1 = vrot.slane %v5442_v35, 4 }
0x3c0a   :  { %v5444_v32 = vadd.f32 %v5443_v1, %v5442_v35 }
0x3c0c   :  { %v5445_v37 = vrot.slane %v5444_v32, 2 }
0x3c0e   :  { %v5446_v34 = vadd.f32 %v5445_v37, %v5444_v32 }
0x3c10   :  { %v5447_v3 = vrot.slane %v5446_v34, 1 }
0x3c12   :  { %v5448_v16 = vadd.f32 %v5447_v3, %v5446_v34 }
0x3c14   :  { %v5449_v11 = vmul.f32 %v5448_v16, %v5438_v49 }
0x3c16   :  { %v5450_v45 = vadd.f32 1e-05, %v5449_v11 }
0x3c18   :  { %6383 = vrsqrt.f32 %v5450_v45  ;;  %vm5457_vm13 = vweird.f32 %v5450_v45 }
0x3c1e   :  { %v6384_v26 = vpop.eup %6383 }
0x3c1f   :  { %v5452_v62 = vmul.f32 %v6384_v26, %v5450_v45  ;;  %vm5458_vm8 = vweird.f32 %v6384_v26 }
0x3c20   :  { %vm5459_vm15 = vmor %vm5457_vm13, %vm5458_vm8 }
0x3c21   :  { %v5453_v31 = vmul.f32 %v6384_v26, %v5452_v62 }
0x3c23   :  { %v5454_v33 = vmul.f32 0.5, %v5453_v31 }
0x3c25   :  { %v5455_v41 = vsub.f32 1.5, %v5454_v33 }
0x3c27   :  { %v5456_v53 = vmul.f32 %v6384_v26, %v5455_v41 }
0x3c29   :  { %v5460_v9 = vsel %vm5459_vm15, %v6384_v26, %v5456_v53 }
0x3c2a   :  { %v5461_v40 = vmul.f32 %v5460_v9, %v5440_v13 }
0x3c2c   :  { %v5462_v42 = vmax.f32 %v5461_v40, 0.0 }
0x3c2e   :  { %5786 = vmatmul.msk.f32.vlgmr.msra.gmra.mxu2 %vm142_vm2, %v5462_v42 }
0x3cb1   :  { %v5496_v46 = vpop.f32.mrf.mxu2 }
0x3cb2   :  { %v5497_v55 = vadd.f32 %v5496_v46, %v5474_v43 }
0x3cb4   :  { %v5500_v10 = vsel %vm5499_vm0, %v5497_v55, 0.0 }
0x3cb5   :  { %v5501_v50 = vrot.slane %v5500_v10, 4 }
0x3cb7   :  { %v5502_v51 = vadd.f32 %v5501_v50, %v5500_v10 }
0x3cb9   :  { %v5503_v56 = vrot.slane %v5502_v51, 2 }
0x3cbb   :  { %v5504_v58 = vadd.f32 %v5503_v56, %v5502_v51 }
0x3cbd   :  { %v5505_v52 = vrot.slane %v5504_v58, 1 }
0x3cbf   :  { %v5506_v25 = vadd.f32 %v5505_v52, %v5504_v58 }
0x3cc1   :  { %v5507_v54 = vmul.f32 %v5506_v25, %v5438_v49 }
0x3cc3   :  { %v5508_v4 = vsub.f32 %v5497_v55, %v5507_v54 }
0x3cc5   :  { %v5509_v30 = vmul.f32 %v5508_v4, %v5508_v4 }
0x3cc7   :  { %v5510_v38 = vsel %vm5499_vm0, %v5509_v30, 0.0 }
0x3cc8   :  { %v5511_v12 = vrot.slane %v5510_v38, 4 }
0x3cca   :  { %v5512_v15 = vadd.f32 %v5511_v12, %v5510_v38 }
0x3ccc   :  { %v5513_v44 = vrot.slane %v5512_v15, 2 }
0x3cce   :  { %v5514_v8 = vadd.f32 %v5513_v44, %v5512_v15 }
0x3cd0   :  { %v5515_v6 = vrot.slane %v5514_v8, 1 }
0x3cd2   :  { %v5516_v59 = vadd.f32 %v5515_v6, %v5514_v8 }
0x3cd4   :  { %v5517_v19 = vmul.f32 %v5516_v59, %v5438_v49 }
0x3cd6   :  { %v5518_v60 = vadd.f32 1e-05, %v5517_v19 }
0x3cd8   :  { %6385 = vrsqrt.f32 %v5518_v60  ;;  %vm5525_vm1 = vweird.f32 %v5518_v60 }
0x3cde   :  { %v6386_v5 = vpop.eup %6385 }
0x3cdf   :  { %v5520_v20 = vmul.f32 %v6386_v5, %v5518_v60  ;;  %vm5526_vm2 = vweird.f32 %v6386_v5 }
0x3ce0   :  { %vm5527_vm3 = vmor %vm5525_vm1, %vm5526_vm2 }
0x3ce1   :  { %v5521_v21 = vmul.f32 %v6386_v5, %v5520_v20 }
0x3ce3   :  { %v5522_v22 = vmul.f32 0.5, %v5521_v21 }
0x3ce5   :  { %v5523_v61 = vsub.f32 1.5, %v5522_v22 }
0x3ce7   :  { %v5524_v39 = vmul.f32 %v6386_v5, %v5523_v61 }
0x3ce9   :  { %v5528_v18 = vsel %vm5527_vm3, %v6386_v5, %v5524_v39 }
0x3cea   :  { %v5529_v23 = vmul.f32 %v5528_v18, %v5508_v4 }
0x3cec   :  { %5530 = vst.msk [vmem:[#allocation8] sm:$0x3] %vm5499_vm0, %v5529_v23 }
0x3ced   :  { %5541 = dma.vmem_to_hbm [thread:$0]  %s5537_s11, 32, %s5539_s18, [#allocation4]  }
0x3cee   :  { %6504 = dma.done.wait [#allocation4], 32  }
0x3cef   :  { %6505 = vsyncadd [#allocation4], 4294967264 }
0x3cf0   :  { %5546 = vsyncpa [#allocation3], 1 }
0x3cf1   :  { %5547 = vsyncpa [#allocation6], 1 }
0x3cf2   :  { %5548 = vsyncpa [#allocation4], 1 }

</bundles_post_ra>
